<compile_context>
chip_gen: v7x
topology: tpu7x:2x2x1
jax: 0.10.0
libtpu: 0.0.40
codegen_flags: <defaults>
</compile_context>

<pallas_src>
import jax
import jax.numpy as jnp
from jax.experimental import pallas as pl
from jax.experimental.pallas import tpu as pltpu

# ---------------------- small-shape hyper-parameters ------------------------
B = 2
IN_CH = 1
IMG = (32, 32, 32)          # full model: (96, 96, 96)
PATCH = (16, 16, 16)
HID = 128                   # hidden_size (full model: 768)
MLP = 256                   # mlp_dim     (full model: 3072)
HEADS = 4                   # num_heads   (full model: 12)
LAYERS = 2                  # num_layers  (full model: 12)
DECONV_CH = 16              # deconv_chns
OUT_CH = 1
EPS = 1e-5                  # nn.LayerNorm default

D1, D2, D3 = (IMG[0] // PATCH[0], IMG[1] // PATCH[1], IMG[2] // PATCH[2])
NP = D1 * D2 * D3                               # number of patches / tokens
KPE = IN_CH * PATCH[0] * PATCH[1] * PATCH[2]    # per-patch flattened size
HEAD_DIM = HID // HEADS
DC_K = 4                                        # deconv kernel == stride
UP = DC_K * DC_K                                # total upsample per axis (== patch size)
DEC_COLS = OUT_CH * UP * UP * UP                # fused-decoder output columns per token

assert UP == PATCH[0] == PATCH[1] == PATCH[2]


# ------------------------------ kernel helpers ------------------------------
def _layer_norm(x, w, b):
    # x: (N, H); w, b: (1, H) -- PyTorch LayerNorm (biased variance, eps=1e-5)
    mu = jnp.mean(x, axis=-1, keepdims=True)
    var = jnp.mean(jnp.square(x - mu), axis=-1, keepdims=True)
    return (x - mu) * jax.lax.rsqrt(var + EPS) * w + b


def _gelu_exact(x):
    # torch.nn.GELU default: 0.5 * x * (1 + erf(x / sqrt(2)))
    return 0.5 * x * (1.0 + jax.lax.erf(x * (1.0 / jnp.sqrt(2.0))))


# ------------------------------ fused Pallas kernel --------------------------
def _vita_kernel(xp_ref, w_pe_ref, pos_ref,
                 ln1w_ref, ln1b_ref, wqkv_ref, wproj_ref, bproj_ref,
                 ln2w_ref, ln2b_ref, wfc1_ref, bfc1_ref, wfc2_ref, bfc2_ref,
                 lnfw_ref, lnfb_ref, wdec_ref, bdec_ref,
                 hid_ref, rec_ref):
    """One batch element end-to-end; tokens stay resident in VMEM/vregs."""
    # ---- patch embedding (Conv3d k=s=patch == per-patch matmul) + pos embed ----
    # Conv bias is pre-folded into pos_ref on the wrapper side.
    x = (jnp.dot(xp_ref[0], w_pe_ref[...], preferred_element_type=jnp.float32)
         + pos_ref[...])                                         # (NP, HID)
    # nn.Dropout(p=0.0) throughout the model is an identity; omitted.

    for l in range(LAYERS):                                      # static unrolled layer loop
        # ---- self attention branch: x = x + SA(LN1(x)) ----
        h = _layer_norm(x, ln1w_ref[l], ln1b_ref[l])
        # 1/sqrt(head_dim) scale is pre-baked into the q columns of w_qkv (wrapper side).
        qkv = jnp.dot(h, wqkv_ref[l], preferred_element_type=jnp.float32)   # (NP, 3*HID)
        q_all = qkv[:, :HID]
        k_all = qkv[:, HID:2 * HID]
        v_all = qkv[:, 2 * HID:]
        wproj = wproj_ref[l]                                     # (HID, HID)
        attn = jnp.zeros((NP, HID), jnp.float32)
        for hh in range(HEADS):                                  # static unrolled head loop
            s0, s1 = hh * HEAD_DIM, (hh + 1) * HEAD_DIM
            s = jnp.dot(q_all[:, s0:s1], k_all[:, s0:s1].T,
                        preferred_element_type=jnp.float32)      # (NP, NP)
            s = s - jnp.max(s, axis=-1, keepdims=True)
            p = jnp.exp(s)
            p = p * pl.reciprocal(jnp.sum(p, axis=-1, keepdims=True), approx=True)
            ctx = jnp.dot(p, v_all[:, s0:s1], preferred_element_type=jnp.float32)  # (NP, dh)
            # fold the head concat into the output projection (accumulate through MXU)
            attn = attn + jnp.dot(ctx, wproj[s0:s1, :],
                                  preferred_element_type=jnp.float32)
        x = x + attn + bproj_ref[l]

        # ---- MLP branch: x = x + MLP(LN2(x)) ----
        h2 = _layer_norm(x, ln2w_ref[l], ln2b_ref[l])
        a = jnp.dot(h2, wfc1_ref[l], preferred_element_type=jnp.float32) + bfc1_ref[l]
        g = _gelu_exact(a)
        m = jnp.dot(g, wfc2_ref[l], preferred_element_type=jnp.float32) + bfc2_ref[l]
        x = x + m

        hid_ref[l, 0] = x                                        # per-layer hidden state

    # ---- final LayerNorm + fused decoder (two k=s ConvTranspose3d == one matmul) ----
    xf = _layer_norm(x, lnfw_ref[...], lnfb_ref[...])
    rec_ref[0] = (jnp.dot(xf, wdec_ref[...], preferred_element_type=jnp.float32)
                  + bdec_ref[...])                               # (NP, DEC_COLS) lane-dense


# ------------------------------ wrapper --------------------------------------
def _const_spec(shape):
    zeros = (0,) * len(shape)
    return pl.BlockSpec(shape, lambda b, _z=zeros: _z)


def vita_forward(images, params):
    """images: (B, IN_CH, D, H, W) float32 -> (reconstruction, [hidden states])."""
    bsz = images.shape[0]

    # patch extraction: Conv3d(kernel=stride=patch) == per-patch flatten (XLA-side layout
    # plumbing; negligible at this size).
    xp = images.reshape(bsz, IN_CH, D1, PATCH[0], D2, PATCH[1], D3, PATCH[2])
    xp = xp.transpose(0, 2, 4, 6, 1, 3, 5, 7).reshape(bsz, NP, KPE)

    # bake the attention scale into the q-columns of the qkv weight (zero in-kernel cost)
    qscale = jnp.concatenate([jnp.full((HID,), 1.0 / (HEAD_DIM ** 0.5), jnp.float32),
                              jnp.ones((2 * HID,), jnp.float32)])
    w_qkv = params["w_qkv"] * qscale

    # fold the patch-embed conv bias into the positional embedding (identical broadcast add)
    pos_eff = params["pos"] + params["b_pe"]

    # Fuse the two non-overlapping ConvTranspose3d layers (k == s, purely linear, no
    # nonlinearity between) into a single per-token linear map (HID -> OUT_CH * 16^3).
    #   Wc[h, o, z1, z2, y1, y2, x1, x2] = sum_c W1[h, c, z1, y1, x1] * W2[c, o, z2, y2, x2]
    #   bc[o, ., z2, ., y2, ., x2]       = sum_c b1[c] * W2[c, o, z2, y2, x2] + b2[o]
    w1, w2 = params["w_dc1"], params["w_dc2"]
    w_dec = jnp.einsum("hcabd,coefg->hoaebfdg", w1, w2).reshape(HID, DEC_COLS)
    b_eff = (jnp.einsum("c,coefg->oefg", params["b_dc1"], w2)
             + params["b_dc2"][:, None, None, None])             # (OUT_CH, 4, 4, 4)
    b_dec = jnp.broadcast_to(
        b_eff[:, None, :, None, :, None, :],
        (OUT_CH, DC_K, DC_K, DC_K, DC_K, DC_K, DC_K)).reshape(1, DEC_COLS)

    hidden, rec = pl.pallas_call(
        _vita_kernel,
        grid=(bsz,),
        in_specs=[
            pl.BlockSpec((1, NP, KPE), lambda b: (b, 0, 0)),     # patches (per batch)
            _const_spec((KPE, HID)),                             # w_pe
            _const_spec((NP, HID)),                              # pos (+ conv bias)
            _const_spec((LAYERS, 1, HID)),                       # ln1_w
            _const_spec((LAYERS, 1, HID)),                       # ln1_b
            _const_spec((LAYERS, HID, 3 * HID)),                 # w_qkv (scaled)
            _const_spec((LAYERS, HID, HID)),                     # w_proj
            _const_spec((LAYERS, 1, HID)),                       # b_proj
            _const_spec((LAYERS, 1, HID)),                       # ln2_w
            _const_spec((LAYERS, 1, HID)),                       # ln2_b
            _const_spec((LAYERS, HID, MLP)),                     # w_fc1
            _const_spec((LAYERS, 1, MLP)),                       # b_fc1
            _const_spec((LAYERS, MLP, HID)),                     # w_fc2
            _const_spec((LAYERS, 1, HID)),                       # b_fc2
            _const_spec((1, HID)),                               # lnf_w
            _const_spec((1, HID)),                               # lnf_b
            _const_spec((HID, DEC_COLS)),                        # fused decoder weight
            _const_spec((1, DEC_COLS)),                          # fused decoder bias
        ],
        out_specs=(
            pl.BlockSpec((LAYERS, 1, NP, HID), lambda b: (0, b, 0, 0)),
            pl.BlockSpec((1, NP, DEC_COLS), lambda b: (b, 0, 0)),
        ),
        out_shape=(
            jax.ShapeDtypeStruct((LAYERS, bsz, NP, HID), jnp.float32),
            jax.ShapeDtypeStruct((bsz, NP, DEC_COLS), jnp.float32),
        ),
        compiler_params=pltpu.CompilerParams(
            dimension_semantics=("parallel",),                   # one batch per TC on v7x
            vmem_limit_bytes=32 * 1024 * 1024),
    )(xp, params["w_pe"], pos_eff,
      params["ln1_w"], params["ln1_b"], w_qkv,
      params["w_proj"], params["b_proj"],
      params["ln2_w"], params["ln2_b"],
      params["w_fc1"], params["b_fc1"], params["w_fc2"], params["b_fc2"],
      params["lnf_w"], params["lnf_b"], w_dec, b_dec)

    # un-patch: (B, NP, OUT_CH*16^3) -> (B, OUT_CH, 32, 32, 32)
    # TODO(synk): at full 96^3 size move this rearrangement into the out_spec index_map.
    recon = rec.reshape(bsz, D1, D2, D3, OUT_CH, UP, UP, UP)
    recon = recon.transpose(0, 4, 1, 5, 2, 6, 3, 7).reshape(
        bsz, OUT_CH, D1 * UP, D2 * UP, D3 * UP)

    hidden_states_out = [hidden[l] for l in range(LAYERS)]
    return recon, hidden_states_out


# ------------------------------ parameters -----------------------------------
def init_params(key):
    ks = iter(jax.random.split(key, 32))

    def nrm(shape, scale=0.02):
        return scale * jax.random.normal(next(ks), shape, jnp.float32)

    return {
        # patch embedding: torch conv weight (HID, Cin, 16,16,16) stored transposed/flattened
        "w_pe": nrm((KPE, HID)),
        "b_pe": nrm((1, HID)),
        "pos": nrm((NP, HID)),
        # transformer blocks, stacked over the layer axis
        "ln1_w": jnp.ones((LAYERS, 1, HID), jnp.float32),
        "ln1_b": jnp.zeros((LAYERS, 1, HID), jnp.float32),
        "w_qkv": nrm((LAYERS, HID, 3 * HID)),                    # SABlock qkv_bias=False
        "w_proj": nrm((LAYERS, HID, HID)),
        "b_proj": nrm((LAYERS, 1, HID)),
        "ln2_w": jnp.ones((LAYERS, 1, HID), jnp.float32),
        "ln2_b": jnp.zeros((LAYERS, 1, HID), jnp.float32),
        "w_fc1": nrm((LAYERS, HID, MLP)),
        "b_fc1": nrm((LAYERS, 1, MLP)),
        "w_fc2": nrm((LAYERS, MLP, HID)),
        "b_fc2": nrm((LAYERS, 1, HID)),
        # final norm
        "lnf_w": jnp.ones((1, HID), jnp.float32),
        "lnf_b": jnp.zeros((1, HID), jnp.float32),
        # decoder: ConvTranspose3d weights in torch (in, out, kz, ky, kx) layout
        "w_dc1": nrm((HID, DECONV_CH, DC_K, DC_K, DC_K)),
        "b_dc1": nrm((DECONV_CH,)),
        "w_dc2": nrm((DECONV_CH, OUT_CH, DC_K, DC_K, DC_K)),
        "b_dc2": nrm((OUT_CH,)),
    }


# ------------------------------ main -----------------------------------------
if __name__ == "__main__":
    key = jax.random.PRNGKey(0)
    kp, kx = jax.random.split(key)
    params = init_params(kp)
    images = jax.random.normal(kx, (B, IN_CH) + IMG, jnp.float32)

    recon, hidden_states = jax.jit(vita_forward)(images, params)
    jax.block_until_ready((recon, hidden_states))

    assert recon.shape == (B, OUT_CH) + IMG
    assert len(hidden_states) == LAYERS
    assert all(hs.shape == (B, NP, HID) for hs in hidden_states)
    print("KERNEL_OK")
</pallas_src>

<mosaic_0001>
module attributes {stable_mosaic.version = 11 : i64} {
  func.func @_vita_kernel(%arg0: i32, %arg1: memref<1x8x4096xf32, #tpu.memory_space<vmem>>, %arg2: memref<4096x128xf32, #tpu.memory_space<vmem>>, %arg3: memref<8x128xf32, #tpu.memory_space<vmem>>, %arg4: memref<2x1x128xf32, #tpu.memory_space<vmem>>, %arg5: memref<2x1x128xf32, #tpu.memory_space<vmem>>, %arg6: memref<2x128x384xf32, #tpu.memory_space<vmem>>, %arg7: memref<2x128x128xf32, #tpu.memory_space<vmem>>, %arg8: memref<2x1x128xf32, #tpu.memory_space<vmem>>, %arg9: memref<2x1x128xf32, #tpu.memory_space<vmem>>, %arg10: memref<2x1x128xf32, #tpu.memory_space<vmem>>, %arg11: memref<2x128x256xf32, #tpu.memory_space<vmem>>, %arg12: memref<2x1x256xf32, #tpu.memory_space<vmem>>, %arg13: memref<2x256x128xf32, #tpu.memory_space<vmem>>, %arg14: memref<2x1x128xf32, #tpu.memory_space<vmem>>, %arg15: memref<1x128xf32, #tpu.memory_space<vmem>>, %arg16: memref<1x128xf32, #tpu.memory_space<vmem>>, %arg17: memref<128x4096xf32, #tpu.memory_space<vmem>>, %arg18: memref<1x4096xf32, #tpu.memory_space<vmem>>, %arg19: memref<2x1x8x128xf32, #tpu.memory_space<vmem>>, %arg20: memref<1x8x4096xf32, #tpu.memory_space<vmem>>) attributes {dimension_semantics = [#tpu.dimension_semantics<parallel>], iteration_bounds = array<i64: 2>, scalar_prefetch = 0 : i64, scratch_operands = 0 : i64, tpu.core_type = #tpu.core_type<tc>, window_params = [{transform_indices = @transform_0, window_bounds = array<i64: 1, 8, 4096>}, {pipeline_mode = #tpu.pipeline_mode<synchronous>, transform_indices = @transform_1, window_bounds = array<i64: 4096, 128>}, {pipeline_mode = #tpu.pipeline_mode<synchronous>, transform_indices = @transform_2, window_bounds = array<i64: 8, 128>}, {pipeline_mode = #tpu.pipeline_mode<synchronous>, transform_indices = @transform_3, window_bounds = array<i64: 2, 1, 128>}, {pipeline_mode = #tpu.pipeline_mode<synchronous>, transform_indices = @transform_4, window_bounds = array<i64: 2, 1, 128>}, {pipeline_mode = #tpu.pipeline_mode<synchronous>, transform_indices = @transform_5, window_bounds = array<i64: 2, 128, 384>}, {pipeline_mode = #tpu.pipeline_mode<synchronous>, transform_indices = @transform_6, window_bounds = array<i64: 2, 128, 128>}, {pipeline_mode = #tpu.pipeline_mode<synchronous>, transform_indices = @transform_7, window_bounds = array<i64: 2, 1, 128>}, {pipeline_mode = #tpu.pipeline_mode<synchronous>, transform_indices = @transform_8, window_bounds = array<i64: 2, 1, 128>}, {pipeline_mode = #tpu.pipeline_mode<synchronous>, transform_indices = @transform_9, window_bounds = array<i64: 2, 1, 128>}, {pipeline_mode = #tpu.pipeline_mode<synchronous>, transform_indices = @transform_10, window_bounds = array<i64: 2, 128, 256>}, {pipeline_mode = #tpu.pipeline_mode<synchronous>, transform_indices = @transform_11, window_bounds = array<i64: 2, 1, 256>}, {pipeline_mode = #tpu.pipeline_mode<synchronous>, transform_indices = @transform_12, window_bounds = array<i64: 2, 256, 128>}, {pipeline_mode = #tpu.pipeline_mode<synchronous>, transform_indices = @transform_13, window_bounds = array<i64: 2, 1, 128>}, {pipeline_mode = #tpu.pipeline_mode<synchronous>, transform_indices = @transform_14, window_bounds = array<i64: 1, 128>}, {pipeline_mode = #tpu.pipeline_mode<synchronous>, transform_indices = @transform_15, window_bounds = array<i64: 1, 128>}, {pipeline_mode = #tpu.pipeline_mode<synchronous>, transform_indices = @transform_16, window_bounds = array<i64: 128, 4096>}, {pipeline_mode = #tpu.pipeline_mode<synchronous>, transform_indices = @transform_17, window_bounds = array<i64: 1, 4096>}, {transform_indices = @transform_18, window_bounds = array<i64: 2, 1, 8, 128>}, {transform_indices = @transform_19, window_bounds = array<i64: 1, 8, 4096>}]} {
    %c0 = arith.constant 0 : index
    %c0_0 = arith.constant 0 : index
    %c0_1 = arith.constant 0 : index
    %0 = vector.load %arg1[%c0, %c0_0, %c0_1] : memref<1x8x4096xf32, #tpu.memory_space<vmem>>, vector<1x8x4096xf32>
    %1 = vector.shape_cast %0 : vector<1x8x4096xf32> to vector<8x4096xf32>
    %c0_2 = arith.constant 0 : index
    %c0_3 = arith.constant 0 : index
    %2 = vector.load %arg2[%c0_2, %c0_3] : memref<4096x128xf32, #tpu.memory_space<vmem>>, vector<4096x128xf32>
    %cst = arith.constant dense<0.000000e+00> : vector<8x128xf32>
    %3 = tpu.matmul %1, %2, %cst {dimension_numbers = #tpu.dot_dimension_numbers<[1], [0], [0], [1], [0, 0, 1, 1], [], []>} : vector<8x4096xf32>, vector<4096x128xf32>, vector<8x128xf32> -> vector<8x128xf32>
    %c0_4 = arith.constant 0 : index
    %c0_5 = arith.constant 0 : index
    %4 = vector.load %arg3[%c0_4, %c0_5] : memref<8x128xf32, #tpu.memory_space<vmem>>, vector<8x128xf32>
    %5 = arith.addf %3, %4 : vector<8x128xf32>
    %c0_6 = arith.constant 0 : index
    %c0_7 = arith.constant 0 : index
    %c0_8 = arith.constant 0 : index
    %6 = vector.load %arg4[%c0_6, %c0_7, %c0_8] : memref<2x1x128xf32, #tpu.memory_space<vmem>>, vector<1x1x128xf32>
    %7 = vector.shape_cast %6 : vector<1x1x128xf32> to vector<1x128xf32>
    %c0_9 = arith.constant 0 : index
    %c0_10 = arith.constant 0 : index
    %c0_11 = arith.constant 0 : index
    %8 = vector.load %arg5[%c0_9, %c0_10, %c0_11] : memref<2x1x128xf32, #tpu.memory_space<vmem>>, vector<1x1x128xf32>
    %9 = vector.shape_cast %8 : vector<1x1x128xf32> to vector<1x128xf32>
    %cst_12 = arith.constant dense<0.000000e+00> : vector<8xf32>
    %10 = vector.multi_reduction <add>, %5, %cst_12 [1] : vector<8x128xf32> to vector<8xf32>
    %11 = vector.shape_cast %10 : vector<8xf32> to vector<8x1xf32>
    %cst_13 = arith.constant 1.280000e+02 : f32
    %12 = vector.broadcast %cst_13 : f32 to vector<8x1xf32>
    %13 = arith.divf %11, %12 : vector<8x1xf32>
    %14 = vector.broadcast %13 : vector<8x1xf32> to vector<8x128xf32>
    %15 = arith.subf %5, %14 : vector<8x128xf32>
    %16 = arith.mulf %15, %15 : vector<8x128xf32>
    %cst_14 = arith.constant dense<0.000000e+00> : vector<8xf32>
    %17 = vector.multi_reduction <add>, %16, %cst_14 [1] : vector<8x128xf32> to vector<8xf32>
    %18 = vector.shape_cast %17 : vector<8xf32> to vector<8x1xf32>
    %cst_15 = arith.constant 1.280000e+02 : f32
    %19 = vector.broadcast %cst_15 : f32 to vector<8x1xf32>
    %20 = arith.divf %18, %19 : vector<8x1xf32>
    %21 = vector.broadcast %13 : vector<8x1xf32> to vector<8x128xf32>
    %22 = arith.subf %5, %21 : vector<8x128xf32>
    %cst_16 = arith.constant 9.99999974E-6 : f32
    %23 = vector.broadcast %cst_16 : f32 to vector<8x1xf32>
    %24 = arith.addf %20, %23 : vector<8x1xf32>
    %25 = math.rsqrt %24 : vector<8x1xf32>
    %26 = vector.broadcast %25 : vector<8x1xf32> to vector<8x128xf32>
    %27 = arith.mulf %22, %26 : vector<8x128xf32>
    %28 = vector.broadcast %7 : vector<1x128xf32> to vector<8x128xf32>
    %29 = arith.mulf %27, %28 : vector<8x128xf32>
    %30 = vector.broadcast %9 : vector<1x128xf32> to vector<8x128xf32>
    %31 = arith.addf %29, %30 : vector<8x128xf32>
    %c0_17 = arith.constant 0 : index
    %c0_18 = arith.constant 0 : index
    %c0_19 = arith.constant 0 : index
    %32 = vector.load %arg6[%c0_17, %c0_18, %c0_19] : memref<2x128x384xf32, #tpu.memory_space<vmem>>, vector<1x128x384xf32>
    %33 = vector.shape_cast %32 : vector<1x128x384xf32> to vector<128x384xf32>
    %cst_20 = arith.constant dense<0.000000e+00> : vector<8x384xf32>
    %34 = tpu.matmul %31, %33, %cst_20 {dimension_numbers = #tpu.dot_dimension_numbers<[1], [0], [0], [1], [0, 0, 1, 1], [], []>} : vector<8x128xf32>, vector<128x384xf32>, vector<8x384xf32> -> vector<8x384xf32>
    %35 = vector.extract_strided_slice %34 {offsets = [0, 0], sizes = [8, 128], strides = [1, 1]} : vector<8x384xf32> to vector<8x128xf32>
    %36 = vector.extract_strided_slice %34 {offsets = [0, 128], sizes = [8, 128], strides = [1, 1]} : vector<8x384xf32> to vector<8x128xf32>
    %37 = vector.extract_strided_slice %34 {offsets = [0, 256], sizes = [8, 128], strides = [1, 1]} : vector<8x384xf32> to vector<8x128xf32>
    %c0_21 = arith.constant 0 : index
    %c0_22 = arith.constant 0 : index
    %c0_23 = arith.constant 0 : index
    %38 = vector.load %arg7[%c0_21, %c0_22, %c0_23] : memref<2x128x128xf32, #tpu.memory_space<vmem>>, vector<1x128x128xf32>
    %39 = vector.shape_cast %38 : vector<1x128x128xf32> to vector<128x128xf32>
    %cst_24 = arith.constant 0.000000e+00 : f32
    %40 = vector.broadcast %cst_24 : f32 to vector<8x128xf32>
    %41 = vector.extract_strided_slice %35 {offsets = [0, 0], sizes = [8, 32], strides = [1, 1]} : vector<8x128xf32> to vector<8x32xf32>
    %42 = vector.extract_strided_slice %36 {offsets = [0, 0], sizes = [8, 32], strides = [1, 1]} : vector<8x128xf32> to vector<8x32xf32>
    %43 = tpu.transpose %42, [1, 0] : vector<8x32xf32> -> vector<32x8xf32>
    %cst_25 = arith.constant dense<0.000000e+00> : vector<8x8xf32>
    %44 = tpu.matmul %41, %43, %cst_25 {dimension_numbers = #tpu.dot_dimension_numbers<[1], [0], [0], [1], [0, 0, 1, 1], [], []>} : vector<8x32xf32>, vector<32x8xf32>, vector<8x8xf32> -> vector<8x8xf32>
    %cst_26 = arith.constant dense<0xFF800000> : vector<8xf32>
    %45 = vector.multi_reduction <maximumf>, %44, %cst_26 [1] : vector<8x8xf32> to vector<8xf32>
    %46 = vector.shape_cast %45 : vector<8xf32> to vector<8x1xf32>
    %47 = vector.broadcast %46 : vector<8x1xf32> to vector<8x8xf32>
    %48 = arith.subf %44, %47 : vector<8x8xf32>
    %49 = math.exp %48 : vector<8x8xf32>
    %cst_27 = arith.constant dense<0.000000e+00> : vector<8xf32>
    %50 = vector.multi_reduction <add>, %49, %cst_27 [1] : vector<8x8xf32> to vector<8xf32>
    %51 = vector.shape_cast %50 : vector<8xf32> to vector<8x1xf32>
    %52 = tpu.reciprocal %51 {approx = true} : vector<8x1xf32> -> vector<8x1xf32>
    %53 = vector.broadcast %52 : vector<8x1xf32> to vector<8x8xf32>
    %54 = arith.mulf %49, %53 : vector<8x8xf32>
    %55 = vector.extract_strided_slice %37 {offsets = [0, 0], sizes = [8, 32], strides = [1, 1]} : vector<8x128xf32> to vector<8x32xf32>
    %cst_28 = arith.constant dense<0.000000e+00> : vector<8x32xf32>
    %56 = tpu.matmul %54, %55, %cst_28 {dimension_numbers = #tpu.dot_dimension_numbers<[1], [0], [0], [1], [0, 0, 1, 1], [], []>} : vector<8x8xf32>, vector<8x32xf32>, vector<8x32xf32> -> vector<8x32xf32>
    %57 = vector.extract_strided_slice %39 {offsets = [0, 0], sizes = [32, 128], strides = [1, 1]} : vector<128x128xf32> to vector<32x128xf32>
    %cst_29 = arith.constant dense<0.000000e+00> : vector<8x128xf32>
    %58 = tpu.matmul %56, %57, %cst_29 {dimension_numbers = #tpu.dot_dimension_numbers<[1], [0], [0], [1], [0, 0, 1, 1], [], []>} : vector<8x32xf32>, vector<32x128xf32>, vector<8x128xf32> -> vector<8x128xf32>
    %59 = arith.addf %40, %58 : vector<8x128xf32>
    %60 = vector.extract_strided_slice %35 {offsets = [0, 32], sizes = [8, 32], strides = [1, 1]} : vector<8x128xf32> to vector<8x32xf32>
    %61 = vector.extract_strided_slice %36 {offsets = [0, 32], sizes = [8, 32], strides = [1, 1]} : vector<8x128xf32> to vector<8x32xf32>
    %62 = tpu.transpose %61, [1, 0] : vector<8x32xf32> -> vector<32x8xf32>
    %cst_30 = arith.constant dense<0.000000e+00> : vector<8x8xf32>
    %63 = tpu.matmul %60, %62, %cst_30 {dimension_numbers = #tpu.dot_dimension_numbers<[1], [0], [0], [1], [0, 0, 1, 1], [], []>} : vector<8x32xf32>, vector<32x8xf32>, vector<8x8xf32> -> vector<8x8xf32>
    %cst_31 = arith.constant dense<0xFF800000> : vector<8xf32>
    %64 = vector.multi_reduction <maximumf>, %63, %cst_31 [1] : vector<8x8xf32> to vector<8xf32>
    %65 = vector.shape_cast %64 : vector<8xf32> to vector<8x1xf32>
    %66 = vector.broadcast %65 : vector<8x1xf32> to vector<8x8xf32>
    %67 = arith.subf %63, %66 : vector<8x8xf32>
    %68 = math.exp %67 : vector<8x8xf32>
    %cst_32 = arith.constant dense<0.000000e+00> : vector<8xf32>
    %69 = vector.multi_reduction <add>, %68, %cst_32 [1] : vector<8x8xf32> to vector<8xf32>
    %70 = vector.shape_cast %69 : vector<8xf32> to vector<8x1xf32>
    %71 = tpu.reciprocal %70 {approx = true} : vector<8x1xf32> -> vector<8x1xf32>
    %72 = vector.broadcast %71 : vector<8x1xf32> to vector<8x8xf32>
    %73 = arith.mulf %68, %72 : vector<8x8xf32>
    %74 = vector.extract_strided_slice %37 {offsets = [0, 32], sizes = [8, 32], strides = [1, 1]} : vector<8x128xf32> to vector<8x32xf32>
    %cst_33 = arith.constant dense<0.000000e+00> : vector<8x32xf32>
    %75 = tpu.matmul %73, %74, %cst_33 {dimension_numbers = #tpu.dot_dimension_numbers<[1], [0], [0], [1], [0, 0, 1, 1], [], []>} : vector<8x8xf32>, vector<8x32xf32>, vector<8x32xf32> -> vector<8x32xf32>
    %76 = vector.extract_strided_slice %39 {offsets = [32, 0], sizes = [32, 128], strides = [1, 1]} : vector<128x128xf32> to vector<32x128xf32>
    %cst_34 = arith.constant dense<0.000000e+00> : vector<8x128xf32>
    %77 = tpu.matmul %75, %76, %cst_34 {dimension_numbers = #tpu.dot_dimension_numbers<[1], [0], [0], [1], [0, 0, 1, 1], [], []>} : vector<8x32xf32>, vector<32x128xf32>, vector<8x128xf32> -> vector<8x128xf32>
    %78 = arith.addf %59, %77 : vector<8x128xf32>
    %79 = vector.extract_strided_slice %35 {offsets = [0, 64], sizes = [8, 32], strides = [1, 1]} : vector<8x128xf32> to vector<8x32xf32>
    %80 = vector.extract_strided_slice %36 {offsets = [0, 64], sizes = [8, 32], strides = [1, 1]} : vector<8x128xf32> to vector<8x32xf32>
    %81 = tpu.transpose %80, [1, 0] : vector<8x32xf32> -> vector<32x8xf32>
    %cst_35 = arith.constant dense<0.000000e+00> : vector<8x8xf32>
    %82 = tpu.matmul %79, %81, %cst_35 {dimension_numbers = #tpu.dot_dimension_numbers<[1], [0], [0], [1], [0, 0, 1, 1], [], []>} : vector<8x32xf32>, vector<32x8xf32>, vector<8x8xf32> -> vector<8x8xf32>
    %cst_36 = arith.constant dense<0xFF800000> : vector<8xf32>
    %83 = vector.multi_reduction <maximumf>, %82, %cst_36 [1] : vector<8x8xf32> to vector<8xf32>
    %84 = vector.shape_cast %83 : vector<8xf32> to vector<8x1xf32>
    %85 = vector.broadcast %84 : vector<8x1xf32> to vector<8x8xf32>
    %86 = arith.subf %82, %85 : vector<8x8xf32>
    %87 = math.exp %86 : vector<8x8xf32>
    %cst_37 = arith.constant dense<0.000000e+00> : vector<8xf32>
    %88 = vector.multi_reduction <add>, %87, %cst_37 [1] : vector<8x8xf32> to vector<8xf32>
    %89 = vector.shape_cast %88 : vector<8xf32> to vector<8x1xf32>
    %90 = tpu.reciprocal %89 {approx = true} : vector<8x1xf32> -> vector<8x1xf32>
    %91 = vector.broadcast %90 : vector<8x1xf32> to vector<8x8xf32>
    %92 = arith.mulf %87, %91 : vector<8x8xf32>
    %93 = vector.extract_strided_slice %37 {offsets = [0, 64], sizes = [8, 32], strides = [1, 1]} : vector<8x128xf32> to vector<8x32xf32>
    %cst_38 = arith.constant dense<0.000000e+00> : vector<8x32xf32>
    %94 = tpu.matmul %92, %93, %cst_38 {dimension_numbers = #tpu.dot_dimension_numbers<[1], [0], [0], [1], [0, 0, 1, 1], [], []>} : vector<8x8xf32>, vector<8x32xf32>, vector<8x32xf32> -> vector<8x32xf32>
    %95 = vector.extract_strided_slice %39 {offsets = [64, 0], sizes = [32, 128], strides = [1, 1]} : vector<128x128xf32> to vector<32x128xf32>
    %cst_39 = arith.constant dense<0.000000e+00> : vector<8x128xf32>
    %96 = tpu.matmul %94, %95, %cst_39 {dimension_numbers = #tpu.dot_dimension_numbers<[1], [0], [0], [1], [0, 0, 1, 1], [], []>} : vector<8x32xf32>, vector<32x128xf32>, vector<8x128xf32> -> vector<8x128xf32>
    %97 = arith.addf %78, %96 : vector<8x128xf32>
    %98 = vector.extract_strided_slice %35 {offsets = [0, 96], sizes = [8, 32], strides = [1, 1]} : vector<8x128xf32> to vector<8x32xf32>
    %99 = vector.extract_strided_slice %36 {offsets = [0, 96], sizes = [8, 32], strides = [1, 1]} : vector<8x128xf32> to vector<8x32xf32>
    %100 = tpu.transpose %99, [1, 0] : vector<8x32xf32> -> vector<32x8xf32>
    %cst_40 = arith.constant dense<0.000000e+00> : vector<8x8xf32>
    %101 = tpu.matmul %98, %100, %cst_40 {dimension_numbers = #tpu.dot_dimension_numbers<[1], [0], [0], [1], [0, 0, 1, 1], [], []>} : vector<8x32xf32>, vector<32x8xf32>, vector<8x8xf32> -> vector<8x8xf32>
    %cst_41 = arith.constant dense<0xFF800000> : vector<8xf32>
    %102 = vector.multi_reduction <maximumf>, %101, %cst_41 [1] : vector<8x8xf32> to vector<8xf32>
    %103 = vector.shape_cast %102 : vector<8xf32> to vector<8x1xf32>
    %104 = vector.broadcast %103 : vector<8x1xf32> to vector<8x8xf32>
    %105 = arith.subf %101, %104 : vector<8x8xf32>
    %106 = math.exp %105 : vector<8x8xf32>
    %cst_42 = arith.constant dense<0.000000e+00> : vector<8xf32>
    %107 = vector.multi_reduction <add>, %106, %cst_42 [1] : vector<8x8xf32> to vector<8xf32>
    %108 = vector.shape_cast %107 : vector<8xf32> to vector<8x1xf32>
    %109 = tpu.reciprocal %108 {approx = true} : vector<8x1xf32> -> vector<8x1xf32>
    %110 = vector.broadcast %109 : vector<8x1xf32> to vector<8x8xf32>
    %111 = arith.mulf %106, %110 : vector<8x8xf32>
    %112 = vector.extract_strided_slice %37 {offsets = [0, 96], sizes = [8, 32], strides = [1, 1]} : vector<8x128xf32> to vector<8x32xf32>
    %cst_43 = arith.constant dense<0.000000e+00> : vector<8x32xf32>
    %113 = tpu.matmul %111, %112, %cst_43 {dimension_numbers = #tpu.dot_dimension_numbers<[1], [0], [0], [1], [0, 0, 1, 1], [], []>} : vector<8x8xf32>, vector<8x32xf32>, vector<8x32xf32> -> vector<8x32xf32>
    %114 = vector.extract_strided_slice %39 {offsets = [96, 0], sizes = [32, 128], strides = [1, 1]} : vector<128x128xf32> to vector<32x128xf32>
    %cst_44 = arith.constant dense<0.000000e+00> : vector<8x128xf32>
    %115 = tpu.matmul %113, %114, %cst_44 {dimension_numbers = #tpu.dot_dimension_numbers<[1], [0], [0], [1], [0, 0, 1, 1], [], []>} : vector<8x32xf32>, vector<32x128xf32>, vector<8x128xf32> -> vector<8x128xf32>
    %116 = arith.addf %97, %115 : vector<8x128xf32>
    %117 = arith.addf %5, %116 : vector<8x128xf32>
    %c0_45 = arith.constant 0 : index
    %c0_46 = arith.constant 0 : index
    %c0_47 = arith.constant 0 : index
    %118 = vector.load %arg8[%c0_45, %c0_46, %c0_47] : memref<2x1x128xf32, #tpu.memory_space<vmem>>, vector<1x1x128xf32>
    %119 = vector.shape_cast %118 : vector<1x1x128xf32> to vector<1x128xf32>
    %120 = vector.broadcast %119 : vector<1x128xf32> to vector<8x128xf32>
    %121 = arith.addf %117, %120 : vector<8x128xf32>
    %c0_48 = arith.constant 0 : index
    %c0_49 = arith.constant 0 : index
    %c0_50 = arith.constant 0 : index
    %122 = vector.load %arg9[%c0_48, %c0_49, %c0_50] : memref<2x1x128xf32, #tpu.memory_space<vmem>>, vector<1x1x128xf32>
    %123 = vector.shape_cast %122 : vector<1x1x128xf32> to vector<1x128xf32>
    %c0_51 = arith.constant 0 : index
    %c0_52 = arith.constant 0 : index
    %c0_53 = arith.constant 0 : index
    %124 = vector.load %arg10[%c0_51, %c0_52, %c0_53] : memref<2x1x128xf32, #tpu.memory_space<vmem>>, vector<1x1x128xf32>
    %125 = vector.shape_cast %124 : vector<1x1x128xf32> to vector<1x128xf32>
    %cst_54 = arith.constant dense<0.000000e+00> : vector<8xf32>
    %126 = vector.multi_reduction <add>, %121, %cst_54 [1] : vector<8x128xf32> to vector<8xf32>
    %127 = vector.shape_cast %126 : vector<8xf32> to vector<8x1xf32>
    %cst_55 = arith.constant 1.280000e+02 : f32
    %128 = vector.broadcast %cst_55 : f32 to vector<8x1xf32>
    %129 = arith.divf %127, %128 : vector<8x1xf32>
    %130 = vector.broadcast %129 : vector<8x1xf32> to vector<8x128xf32>
    %131 = arith.subf %121, %130 : vector<8x128xf32>
    %132 = arith.mulf %131, %131 : vector<8x128xf32>
    %cst_56 = arith.constant dense<0.000000e+00> : vector<8xf32>
    %133 = vector.multi_reduction <add>, %132, %cst_56 [1] : vector<8x128xf32> to vector<8xf32>
    %134 = vector.shape_cast %133 : vector<8xf32> to vector<8x1xf32>
    %cst_57 = arith.constant 1.280000e+02 : f32
    %135 = vector.broadcast %cst_57 : f32 to vector<8x1xf32>
    %136 = arith.divf %134, %135 : vector<8x1xf32>
    %137 = vector.broadcast %129 : vector<8x1xf32> to vector<8x128xf32>
    %138 = arith.subf %121, %137 : vector<8x128xf32>
    %cst_58 = arith.constant 9.99999974E-6 : f32
    %139 = vector.broadcast %cst_58 : f32 to vector<8x1xf32>
    %140 = arith.addf %136, %139 : vector<8x1xf32>
    %141 = math.rsqrt %140 : vector<8x1xf32>
    %142 = vector.broadcast %141 : vector<8x1xf32> to vector<8x128xf32>
    %143 = arith.mulf %138, %142 : vector<8x128xf32>
    %144 = vector.broadcast %123 : vector<1x128xf32> to vector<8x128xf32>
    %145 = arith.mulf %143, %144 : vector<8x128xf32>
    %146 = vector.broadcast %125 : vector<1x128xf32> to vector<8x128xf32>
    %147 = arith.addf %145, %146 : vector<8x128xf32>
    %c0_59 = arith.constant 0 : index
    %c0_60 = arith.constant 0 : index
    %c0_61 = arith.constant 0 : index
    %148 = vector.load %arg11[%c0_59, %c0_60, %c0_61] : memref<2x128x256xf32, #tpu.memory_space<vmem>>, vector<1x128x256xf32>
    %149 = vector.shape_cast %148 : vector<1x128x256xf32> to vector<128x256xf32>
    %cst_62 = arith.constant dense<0.000000e+00> : vector<8x256xf32>
    %150 = tpu.matmul %147, %149, %cst_62 {dimension_numbers = #tpu.dot_dimension_numbers<[1], [0], [0], [1], [0, 0, 1, 1], [], []>} : vector<8x128xf32>, vector<128x256xf32>, vector<8x256xf32> -> vector<8x256xf32>
    %c0_63 = arith.constant 0 : index
    %c0_64 = arith.constant 0 : index
    %c0_65 = arith.constant 0 : index
    %151 = vector.load %arg12[%c0_63, %c0_64, %c0_65] : memref<2x1x256xf32, #tpu.memory_space<vmem>>, vector<1x1x256xf32>
    %152 = vector.shape_cast %151 : vector<1x1x256xf32> to vector<1x256xf32>
    %153 = vector.broadcast %152 : vector<1x256xf32> to vector<8x256xf32>
    %154 = arith.addf %150, %153 : vector<8x256xf32>
    %cst_66 = arith.constant 5.000000e-01 : f32
    %155 = vector.broadcast %cst_66 : f32 to vector<8x256xf32>
    %156 = arith.mulf %155, %154 : vector<8x256xf32>
    %cst_67 = arith.constant 2.000000e+00 : f32
    %157 = math.sqrt %cst_67 : f32
    %cst_68 = arith.constant 1.000000e+00 : f32
    %158 = arith.divf %cst_68, %157 : f32
    %159 = vector.broadcast %158 : f32 to vector<8x256xf32>
    %160 = arith.mulf %154, %159 : vector<8x256xf32>
    %161 = math.erf %160 : vector<8x256xf32>
    %cst_69 = arith.constant 1.000000e+00 : f32
    %162 = vector.broadcast %cst_69 : f32 to vector<8x256xf32>
    %163 = arith.addf %162, %161 : vector<8x256xf32>
    %164 = arith.mulf %156, %163 : vector<8x256xf32>
    %c0_70 = arith.constant 0 : index
    %c0_71 = arith.constant 0 : index
    %c0_72 = arith.constant 0 : index
    %165 = vector.load %arg13[%c0_70, %c0_71, %c0_72] : memref<2x256x128xf32, #tpu.memory_space<vmem>>, vector<1x256x128xf32>
    %166 = vector.shape_cast %165 : vector<1x256x128xf32> to vector<256x128xf32>
    %cst_73 = arith.constant dense<0.000000e+00> : vector<8x128xf32>
    %167 = tpu.matmul %164, %166, %cst_73 {dimension_numbers = #tpu.dot_dimension_numbers<[1], [0], [0], [1], [0, 0, 1, 1], [], []>} : vector<8x256xf32>, vector<256x128xf32>, vector<8x128xf32> -> vector<8x128xf32>
    %c0_74 = arith.constant 0 : index
    %c0_75 = arith.constant 0 : index
    %c0_76 = arith.constant 0 : index
    %168 = vector.load %arg14[%c0_74, %c0_75, %c0_76] : memref<2x1x128xf32, #tpu.memory_space<vmem>>, vector<1x1x128xf32>
    %169 = vector.shape_cast %168 : vector<1x1x128xf32> to vector<1x128xf32>
    %170 = vector.broadcast %169 : vector<1x128xf32> to vector<8x128xf32>
    %171 = arith.addf %167, %170 : vector<8x128xf32>
    %172 = arith.addf %121, %171 : vector<8x128xf32>
    %c0_77 = arith.constant 0 : index
    %c0_78 = arith.constant 0 : index
    %c0_79 = arith.constant 0 : index
    %c0_80 = arith.constant 0 : index
    %173 = vector.load %arg19[%c0_77, %c0_78, %c0_79, %c0_80] : memref<2x1x8x128xf32, #tpu.memory_space<vmem>>, vector<1x1x8x128xf32>
    %174 = vector.shape_cast %173 : vector<1x1x8x128xf32> to vector<8x128xf32>
    %175 = vector.shape_cast %172 : vector<8x128xf32> to vector<1x1x8x128xf32>
    tpu.vector_store %arg19[%c0_77, %c0_78, %c0_79, %c0_80], %175 {strides = array<i32>} : memref<2x1x8x128xf32, #tpu.memory_space<vmem>>, vector<1x1x8x128xf32>,
    %c1 = arith.constant 1 : index
    %c0_81 = arith.constant 0 : index
    %c0_82 = arith.constant 0 : index
    %176 = vector.load %arg4[%c1, %c0_81, %c0_82] : memref<2x1x128xf32, #tpu.memory_space<vmem>>, vector<1x1x128xf32>
    %177 = vector.shape_cast %176 : vector<1x1x128xf32> to vector<1x128xf32>
    %c1_83 = arith.constant 1 : index
    %c0_84 = arith.constant 0 : index
    %c0_85 = arith.constant 0 : index
    %178 = vector.load %arg5[%c1_83, %c0_84, %c0_85] : memref<2x1x128xf32, #tpu.memory_space<vmem>>, vector<1x1x128xf32>
    %179 = vector.shape_cast %178 : vector<1x1x128xf32> to vector<1x128xf32>
    %cst_86 = arith.constant dense<0.000000e+00> : vector<8xf32>
    %180 = vector.multi_reduction <add>, %172, %cst_86 [1] : vector<8x128xf32> to vector<8xf32>
    %181 = vector.shape_cast %180 : vector<8xf32> to vector<8x1xf32>
    %cst_87 = arith.constant 1.280000e+02 : f32
    %182 = vector.broadcast %cst_87 : f32 to vector<8x1xf32>
    %183 = arith.divf %181, %182 : vector<8x1xf32>
    %184 = vector.broadcast %183 : vector<8x1xf32> to vector<8x128xf32>
    %185 = arith.subf %172, %184 : vector<8x128xf32>
    %186 = arith.mulf %185, %185 : vector<8x128xf32>
    %cst_88 = arith.constant dense<0.000000e+00> : vector<8xf32>
    %187 = vector.multi_reduction <add>, %186, %cst_88 [1] : vector<8x128xf32> to vector<8xf32>
    %188 = vector.shape_cast %187 : vector<8xf32> to vector<8x1xf32>
    %cst_89 = arith.constant 1.280000e+02 : f32
    %189 = vector.broadcast %cst_89 : f32 to vector<8x1xf32>
    %190 = arith.divf %188, %189 : vector<8x1xf32>
    %191 = vector.broadcast %183 : vector<8x1xf32> to vector<8x128xf32>
    %192 = arith.subf %172, %191 : vector<8x128xf32>
    %cst_90 = arith.constant 9.99999974E-6 : f32
    %193 = vector.broadcast %cst_90 : f32 to vector<8x1xf32>
    %194 = arith.addf %190, %193 : vector<8x1xf32>
    %195 = math.rsqrt %194 : vector<8x1xf32>
    %196 = vector.broadcast %195 : vector<8x1xf32> to vector<8x128xf32>
    %197 = arith.mulf %192, %196 : vector<8x128xf32>
    %198 = vector.broadcast %177 : vector<1x128xf32> to vector<8x128xf32>
    %199 = arith.mulf %197, %198 : vector<8x128xf32>
    %200 = vector.broadcast %179 : vector<1x128xf32> to vector<8x128xf32>
    %201 = arith.addf %199, %200 : vector<8x128xf32>
    %c1_91 = arith.constant 1 : index
    %c0_92 = arith.constant 0 : index
    %c0_93 = arith.constant 0 : index
    %202 = vector.load %arg6[%c1_91, %c0_92, %c0_93] : memref<2x128x384xf32, #tpu.memory_space<vmem>>, vector<1x128x384xf32>
    %203 = vector.shape_cast %202 : vector<1x128x384xf32> to vector<128x384xf32>
    %cst_94 = arith.constant dense<0.000000e+00> : vector<8x384xf32>
    %204 = tpu.matmul %201, %203, %cst_94 {dimension_numbers = #tpu.dot_dimension_numbers<[1], [0], [0], [1], [0, 0, 1, 1], [], []>} : vector<8x128xf32>, vector<128x384xf32>, vector<8x384xf32> -> vector<8x384xf32>
    %205 = vector.extract_strided_slice %204 {offsets = [0, 0], sizes = [8, 128], strides = [1, 1]} : vector<8x384xf32> to vector<8x128xf32>
    %206 = vector.extract_strided_slice %204 {offsets = [0, 128], sizes = [8, 128], strides = [1, 1]} : vector<8x384xf32> to vector<8x128xf32>
    %207 = vector.extract_strided_slice %204 {offsets = [0, 256], sizes = [8, 128], strides = [1, 1]} : vector<8x384xf32> to vector<8x128xf32>
    %c1_95 = arith.constant 1 : index
    %c0_96 = arith.constant 0 : index
    %c0_97 = arith.constant 0 : index
    %208 = vector.load %arg7[%c1_95, %c0_96, %c0_97] : memref<2x128x128xf32, #tpu.memory_space<vmem>>, vector<1x128x128xf32>
    %209 = vector.shape_cast %208 : vector<1x128x128xf32> to vector<128x128xf32>
    %cst_98 = arith.constant 0.000000e+00 : f32
    %210 = vector.broadcast %cst_98 : f32 to vector<8x128xf32>
    %211 = vector.extract_strided_slice %205 {offsets = [0, 0], sizes = [8, 32], strides = [1, 1]} : vector<8x128xf32> to vector<8x32xf32>
    %212 = vector.extract_strided_slice %206 {offsets = [0, 0], sizes = [8, 32], strides = [1, 1]} : vector<8x128xf32> to vector<8x32xf32>
    %213 = tpu.transpose %212, [1, 0] : vector<8x32xf32> -> vector<32x8xf32>
    %cst_99 = arith.constant dense<0.000000e+00> : vector<8x8xf32>
    %214 = tpu.matmul %211, %213, %cst_99 {dimension_numbers = #tpu.dot_dimension_numbers<[1], [0], [0], [1], [0, 0, 1, 1], [], []>} : vector<8x32xf32>, vector<32x8xf32>, vector<8x8xf32> -> vector<8x8xf32>
    %cst_100 = arith.constant dense<0xFF800000> : vector<8xf32>
    %215 = vector.multi_reduction <maximumf>, %214, %cst_100 [1] : vector<8x8xf32> to vector<8xf32>
    %216 = vector.shape_cast %215 : vector<8xf32> to vector<8x1xf32>
    %217 = vector.broadcast %216 : vector<8x1xf32> to vector<8x8xf32>
    %218 = arith.subf %214, %217 : vector<8x8xf32>
    %219 = math.exp %218 : vector<8x8xf32>
    %cst_101 = arith.constant dense<0.000000e+00> : vector<8xf32>
    %220 = vector.multi_reduction <add>, %219, %cst_101 [1] : vector<8x8xf32> to vector<8xf32>
    %221 = vector.shape_cast %220 : vector<8xf32> to vector<8x1xf32>
    %222 = tpu.reciprocal %221 {approx = true} : vector<8x1xf32> -> vector<8x1xf32>
    %223 = vector.broadcast %222 : vector<8x1xf32> to vector<8x8xf32>
    %224 = arith.mulf %219, %223 : vector<8x8xf32>
    %225 = vector.extract_strided_slice %207 {offsets = [0, 0], sizes = [8, 32], strides = [1, 1]} : vector<8x128xf32> to vector<8x32xf32>
    %cst_102 = arith.constant dense<0.000000e+00> : vector<8x32xf32>
    %226 = tpu.matmul %224, %225, %cst_102 {dimension_numbers = #tpu.dot_dimension_numbers<[1], [0], [0], [1], [0, 0, 1, 1], [], []>} : vector<8x8xf32>, vector<8x32xf32>, vector<8x32xf32> -> vector<8x32xf32>
    %227 = vector.extract_strided_slice %209 {offsets = [0, 0], sizes = [32, 128], strides = [1, 1]} : vector<128x128xf32> to vector<32x128xf32>
    %cst_103 = arith.constant dense<0.000000e+00> : vector<8x128xf32>
    %228 = tpu.matmul %226, %227, %cst_103 {dimension_numbers = #tpu.dot_dimension_numbers<[1], [0], [0], [1], [0, 0, 1, 1], [], []>} : vector<8x32xf32>, vector<32x128xf32>, vector<8x128xf32> -> vector<8x128xf32>
    %229 = arith.addf %210, %228 : vector<8x128xf32>
    %230 = vector.extract_strided_slice %205 {offsets = [0, 32], sizes = [8, 32], strides = [1, 1]} : vector<8x128xf32> to vector<8x32xf32>
    %231 = vector.extract_strided_slice %206 {offsets = [0, 32], sizes = [8, 32], strides = [1, 1]} : vector<8x128xf32> to vector<8x32xf32>
    %232 = tpu.transpose %231, [1, 0] : vector<8x32xf32> -> vector<32x8xf32>
    %cst_104 = arith.constant dense<0.000000e+00> : vector<8x8xf32>
    %233 = tpu.matmul %230, %232, %cst_104 {dimension_numbers = #tpu.dot_dimension_numbers<[1], [0], [0], [1], [0, 0, 1, 1], [], []>} : vector<8x32xf32>, vector<32x8xf32>, vector<8x8xf32> -> vector<8x8xf32>
    %cst_105 = arith.constant dense<0xFF800000> : vector<8xf32>
    %234 = vector.multi_reduction <maximumf>, %233, %cst_105 [1] : vector<8x8xf32> to vector<8xf32>
    %235 = vector.shape_cast %234 : vector<8xf32> to vector<8x1xf32>
    %236 = vector.broadcast %235 : vector<8x1xf32> to vector<8x8xf32>
    %237 = arith.subf %233, %236 : vector<8x8xf32>
    %238 = math.exp %237 : vector<8x8xf32>
    %cst_106 = arith.constant dense<0.000000e+00> : vector<8xf32>
    %239 = vector.multi_reduction <add>, %238, %cst_106 [1] : vector<8x8xf32> to vector<8xf32>
    %240 = vector.shape_cast %239 : vector<8xf32> to vector<8x1xf32>
    %241 = tpu.reciprocal %240 {approx = true} : vector<8x1xf32> -> vector<8x1xf32>
    %242 = vector.broadcast %241 : vector<8x1xf32> to vector<8x8xf32>
    %243 = arith.mulf %238, %242 : vector<8x8xf32>
    %244 = vector.extract_strided_slice %207 {offsets = [0, 32], sizes = [8, 32], strides = [1, 1]} : vector<8x128xf32> to vector<8x32xf32>
    %cst_107 = arith.constant dense<0.000000e+00> : vector<8x32xf32>
    %245 = tpu.matmul %243, %244, %cst_107 {dimension_numbers = #tpu.dot_dimension_numbers<[1], [0], [0], [1], [0, 0, 1, 1], [], []>} : vector<8x8xf32>, vector<8x32xf32>, vector<8x32xf32> -> vector<8x32xf32>
    %246 = vector.extract_strided_slice %209 {offsets = [32, 0], sizes = [32, 128], strides = [1, 1]} : vector<128x128xf32> to vector<32x128xf32>
    %cst_108 = arith.constant dense<0.000000e+00> : vector<8x128xf32>
    %247 = tpu.matmul %245, %246, %cst_108 {dimension_numbers = #tpu.dot_dimension_numbers<[1], [0], [0], [1], [0, 0, 1, 1], [], []>} : vector<8x32xf32>, vector<32x128xf32>, vector<8x128xf32> -> vector<8x128xf32>
    %248 = arith.addf %229, %247 : vector<8x128xf32>
    %249 = vector.extract_strided_slice %205 {offsets = [0, 64], sizes = [8, 32], strides = [1, 1]} : vector<8x128xf32> to vector<8x32xf32>
    %250 = vector.extract_strided_slice %206 {offsets = [0, 64], sizes = [8, 32], strides = [1, 1]} : vector<8x128xf32> to vector<8x32xf32>
    %251 = tpu.transpose %250, [1, 0] : vector<8x32xf32> -> vector<32x8xf32>
    %cst_109 = arith.constant dense<0.000000e+00> : vector<8x8xf32>
    %252 = tpu.matmul %249, %251, %cst_109 {dimension_numbers = #tpu.dot_dimension_numbers<[1], [0], [0], [1], [0, 0, 1, 1], [], []>} : vector<8x32xf32>, vector<32x8xf32>, vector<8x8xf32> -> vector<8x8xf32>
    %cst_110 = arith.constant dense<0xFF800000> : vector<8xf32>
    %253 = vector.multi_reduction <maximumf>, %252, %cst_110 [1] : vector<8x8xf32> to vector<8xf32>
    %254 = vector.shape_cast %253 : vector<8xf32> to vector<8x1xf32>
    %255 = vector.broadcast %254 : vector<8x1xf32> to vector<8x8xf32>
    %256 = arith.subf %252, %255 : vector<8x8xf32>
    %257 = math.exp %256 : vector<8x8xf32>
    %cst_111 = arith.constant dense<0.000000e+00> : vector<8xf32>
    %258 = vector.multi_reduction <add>, %257, %cst_111 [1] : vector<8x8xf32> to vector<8xf32>
    %259 = vector.shape_cast %258 : vector<8xf32> to vector<8x1xf32>
    %260 = tpu.reciprocal %259 {approx = true} : vector<8x1xf32> -> vector<8x1xf32>
    %261 = vector.broadcast %260 : vector<8x1xf32> to vector<8x8xf32>
    %262 = arith.mulf %257, %261 : vector<8x8xf32>
    %263 = vector.extract_strided_slice %207 {offsets = [0, 64], sizes = [8, 32], strides = [1, 1]} : vector<8x128xf32> to vector<8x32xf32>
    %cst_112 = arith.constant dense<0.000000e+00> : vector<8x32xf32>
    %264 = tpu.matmul %262, %263, %cst_112 {dimension_numbers = #tpu.dot_dimension_numbers<[1], [0], [0], [1], [0, 0, 1, 1], [], []>} : vector<8x8xf32>, vector<8x32xf32>, vector<8x32xf32> -> vector<8x32xf32>
    %265 = vector.extract_strided_slice %209 {offsets = [64, 0], sizes = [32, 128], strides = [1, 1]} : vector<128x128xf32> to vector<32x128xf32>
    %cst_113 = arith.constant dense<0.000000e+00> : vector<8x128xf32>
    %266 = tpu.matmul %264, %265, %cst_113 {dimension_numbers = #tpu.dot_dimension_numbers<[1], [0], [0], [1], [0, 0, 1, 1], [], []>} : vector<8x32xf32>, vector<32x128xf32>, vector<8x128xf32> -> vector<8x128xf32>
    %267 = arith.addf %248, %266 : vector<8x128xf32>
    %268 = vector.extract_strided_slice %205 {offsets = [0, 96], sizes = [8, 32], strides = [1, 1]} : vector<8x128xf32> to vector<8x32xf32>
    %269 = vector.extract_strided_slice %206 {offsets = [0, 96], sizes = [8, 32], strides = [1, 1]} : vector<8x128xf32> to vector<8x32xf32>
    %270 = tpu.transpose %269, [1, 0] : vector<8x32xf32> -> vector<32x8xf32>
    %cst_114 = arith.constant dense<0.000000e+00> : vector<8x8xf32>
    %271 = tpu.matmul %268, %270, %cst_114 {dimension_numbers = #tpu.dot_dimension_numbers<[1], [0], [0], [1], [0, 0, 1, 1], [], []>} : vector<8x32xf32>, vector<32x8xf32>, vector<8x8xf32> -> vector<8x8xf32>
    %cst_115 = arith.constant dense<0xFF800000> : vector<8xf32>
    %272 = vector.multi_reduction <maximumf>, %271, %cst_115 [1] : vector<8x8xf32> to vector<8xf32>
    %273 = vector.shape_cast %272 : vector<8xf32> to vector<8x1xf32>
    %274 = vector.broadcast %273 : vector<8x1xf32> to vector<8x8xf32>
    %275 = arith.subf %271, %274 : vector<8x8xf32>
    %276 = math.exp %275 : vector<8x8xf32>
    %cst_116 = arith.constant dense<0.000000e+00> : vector<8xf32>
    %277 = vector.multi_reduction <add>, %276, %cst_116 [1] : vector<8x8xf32> to vector<8xf32>
    %278 = vector.shape_cast %277 : vector<8xf32> to vector<8x1xf32>
    %279 = tpu.reciprocal %278 {approx = true} : vector<8x1xf32> -> vector<8x1xf32>
    %280 = vector.broadcast %279 : vector<8x1xf32> to vector<8x8xf32>
    %281 = arith.mulf %276, %280 : vector<8x8xf32>
    %282 = vector.extract_strided_slice %207 {offsets = [0, 96], sizes = [8, 32], strides = [1, 1]} : vector<8x128xf32> to vector<8x32xf32>
    %cst_117 = arith.constant dense<0.000000e+00> : vector<8x32xf32>
    %283 = tpu.matmul %281, %282, %cst_117 {dimension_numbers = #tpu.dot_dimension_numbers<[1], [0], [0], [1], [0, 0, 1, 1], [], []>} : vector<8x8xf32>, vector<8x32xf32>, vector<8x32xf32> -> vector<8x32xf32>
    %284 = vector.extract_strided_slice %209 {offsets = [96, 0], sizes = [32, 128], strides = [1, 1]} : vector<128x128xf32> to vector<32x128xf32>
    %cst_118 = arith.constant dense<0.000000e+00> : vector<8x128xf32>
    %285 = tpu.matmul %283, %284, %cst_118 {dimension_numbers = #tpu.dot_dimension_numbers<[1], [0], [0], [1], [0, 0, 1, 1], [], []>} : vector<8x32xf32>, vector<32x128xf32>, vector<8x128xf32> -> vector<8x128xf32>
    %286 = arith.addf %267, %285 : vector<8x128xf32>
    %287 = arith.addf %172, %286 : vector<8x128xf32>
    %c1_119 = arith.constant 1 : index
    %c0_120 = arith.constant 0 : index
    %c0_121 = arith.constant 0 : index
    %288 = vector.load %arg8[%c1_119, %c0_120, %c0_121] : memref<2x1x128xf32, #tpu.memory_space<vmem>>, vector<1x1x128xf32>
    %289 = vector.shape_cast %288 : vector<1x1x128xf32> to vector<1x128xf32>
    %290 = vector.broadcast %289 : vector<1x128xf32> to vector<8x128xf32>
    %291 = arith.addf %287, %290 : vector<8x128xf32>
    %c1_122 = arith.constant 1 : index
    %c0_123 = arith.constant 0 : index
    %c0_124 = arith.constant 0 : index
    %292 = vector.load %arg9[%c1_122, %c0_123, %c0_124] : memref<2x1x128xf32, #tpu.memory_space<vmem>>, vector<1x1x128xf32>
    %293 = vector.shape_cast %292 : vector<1x1x128xf32> to vector<1x128xf32>
    %c1_125 = arith.constant 1 : index
    %c0_126 = arith.constant 0 : index
    %c0_127 = arith.constant 0 : index
    %294 = vector.load %arg10[%c1_125, %c0_126, %c0_127] : memref<2x1x128xf32, #tpu.memory_space<vmem>>, vector<1x1x128xf32>
    %295 = vector.shape_cast %294 : vector<1x1x128xf32> to vector<1x128xf32>
    %cst_128 = arith.constant dense<0.000000e+00> : vector<8xf32>
    %296 = vector.multi_reduction <add>, %291, %cst_128 [1] : vector<8x128xf32> to vector<8xf32>
    %297 = vector.shape_cast %296 : vector<8xf32> to vector<8x1xf32>
    %cst_129 = arith.constant 1.280000e+02 : f32
    %298 = vector.broadcast %cst_129 : f32 to vector<8x1xf32>
    %299 = arith.divf %297, %298 : vector<8x1xf32>
    %300 = vector.broadcast %299 : vector<8x1xf32> to vector<8x128xf32>
    %301 = arith.subf %291, %300 : vector<8x128xf32>
    %302 = arith.mulf %301, %301 : vector<8x128xf32>
    %cst_130 = arith.constant dense<0.000000e+00> : vector<8xf32>
    %303 = vector.multi_reduction <add>, %302, %cst_130 [1] : vector<8x128xf32> to vector<8xf32>
    %304 = vector.shape_cast %303 : vector<8xf32> to vector<8x1xf32>
    %cst_131 = arith.constant 1.280000e+02 : f32
    %305 = vector.broadcast %cst_131 : f32 to vector<8x1xf32>
    %306 = arith.divf %304, %305 : vector<8x1xf32>
    %307 = vector.broadcast %299 : vector<8x1xf32> to vector<8x128xf32>
    %308 = arith.subf %291, %307 : vector<8x128xf32>
    %cst_132 = arith.constant 9.99999974E-6 : f32
    %309 = vector.broadcast %cst_132 : f32 to vector<8x1xf32>
    %310 = arith.addf %306, %309 : vector<8x1xf32>
    %311 = math.rsqrt %310 : vector<8x1xf32>
    %312 = vector.broadcast %311 : vector<8x1xf32> to vector<8x128xf32>
    %313 = arith.mulf %308, %312 : vector<8x128xf32>
    %314 = vector.broadcast %293 : vector<1x128xf32> to vector<8x128xf32>
    %315 = arith.mulf %313, %314 : vector<8x128xf32>
    %316 = vector.broadcast %295 : vector<1x128xf32> to vector<8x128xf32>
    %317 = arith.addf %315, %316 : vector<8x128xf32>
    %c1_133 = arith.constant 1 : index
    %c0_134 = arith.constant 0 : index
    %c0_135 = arith.constant 0 : index
    %318 = vector.load %arg11[%c1_133, %c0_134, %c0_135] : memref<2x128x256xf32, #tpu.memory_space<vmem>>, vector<1x128x256xf32>
    %319 = vector.shape_cast %318 : vector<1x128x256xf32> to vector<128x256xf32>
    %cst_136 = arith.constant dense<0.000000e+00> : vector<8x256xf32>
    %320 = tpu.matmul %317, %319, %cst_136 {dimension_numbers = #tpu.dot_dimension_numbers<[1], [0], [0], [1], [0, 0, 1, 1], [], []>} : vector<8x128xf32>, vector<128x256xf32>, vector<8x256xf32> -> vector<8x256xf32>
    %c1_137 = arith.constant 1 : index
    %c0_138 = arith.constant 0 : index
    %c0_139 = arith.constant 0 : index
    %321 = vector.load %arg12[%c1_137, %c0_138, %c0_139] : memref<2x1x256xf32, #tpu.memory_space<vmem>>, vector<1x1x256xf32>
    %322 = vector.shape_cast %321 : vector<1x1x256xf32> to vector<1x256xf32>
    %323 = vector.broadcast %322 : vector<1x256xf32> to vector<8x256xf32>
    %324 = arith.addf %320, %323 : vector<8x256xf32>
    %cst_140 = arith.constant 5.000000e-01 : f32
    %325 = vector.broadcast %cst_140 : f32 to vector<8x256xf32>
    %326 = arith.mulf %325, %324 : vector<8x256xf32>
    %cst_141 = arith.constant 2.000000e+00 : f32
    %327 = math.sqrt %cst_141 : f32
    %cst_142 = arith.constant 1.000000e+00 : f32
    %328 = arith.divf %cst_142, %327 : f32
    %329 = vector.broadcast %328 : f32 to vector<8x256xf32>
    %330 = arith.mulf %324, %329 : vector<8x256xf32>
    %331 = math.erf %330 : vector<8x256xf32>
    %cst_143 = arith.constant 1.000000e+00 : f32
    %332 = vector.broadcast %cst_143 : f32 to vector<8x256xf32>
    %333 = arith.addf %332, %331 : vector<8x256xf32>
    %334 = arith.mulf %326, %333 : vector<8x256xf32>
    %c1_144 = arith.constant 1 : index
    %c0_145 = arith.constant 0 : index
    %c0_146 = arith.constant 0 : index
    %335 = vector.load %arg13[%c1_144, %c0_145, %c0_146] : memref<2x256x128xf32, #tpu.memory_space<vmem>>, vector<1x256x128xf32>
    %336 = vector.shape_cast %335 : vector<1x256x128xf32> to vector<256x128xf32>
    %cst_147 = arith.constant dense<0.000000e+00> : vector<8x128xf32>
    %337 = tpu.matmul %334, %336, %cst_147 {dimension_numbers = #tpu.dot_dimension_numbers<[1], [0], [0], [1], [0, 0, 1, 1], [], []>} : vector<8x256xf32>, vector<256x128xf32>, vector<8x128xf32> -> vector<8x128xf32>
    %c1_148 = arith.constant 1 : index
    %c0_149 = arith.constant 0 : index
    %c0_150 = arith.constant 0 : index
    %338 = vector.load %arg14[%c1_148, %c0_149, %c0_150] : memref<2x1x128xf32, #tpu.memory_space<vmem>>, vector<1x1x128xf32>
    %339 = vector.shape_cast %338 : vector<1x1x128xf32> to vector<1x128xf32>
    %340 = vector.broadcast %339 : vector<1x128xf32> to vector<8x128xf32>
    %341 = arith.addf %337, %340 : vector<8x128xf32>
    %342 = arith.addf %291, %341 : vector<8x128xf32>
    %c1_151 = arith.constant 1 : index
    %c0_152 = arith.constant 0 : index
    %c0_153 = arith.constant 0 : index
    %c0_154 = arith.constant 0 : index
    %343 = vector.load %arg19[%c1_151, %c0_152, %c0_153, %c0_154] : memref<2x1x8x128xf32, #tpu.memory_space<vmem>>, vector<1x1x8x128xf32>
    %344 = vector.shape_cast %343 : vector<1x1x8x128xf32> to vector<8x128xf32>
    %345 = vector.shape_cast %342 : vector<8x128xf32> to vector<1x1x8x128xf32>
    tpu.vector_store %arg19[%c1_151, %c0_152, %c0_153, %c0_154], %345 {strides = array<i32>} : memref<2x1x8x128xf32, #tpu.memory_space<vmem>>, vector<1x1x8x128xf32>,
    %c0_155 = arith.constant 0 : index
    %c0_156 = arith.constant 0 : index
    %346 = vector.load %arg15[%c0_155, %c0_156] : memref<1x128xf32, #tpu.memory_space<vmem>>, vector<1x128xf32>
    %c0_157 = arith.constant 0 : index
    %c0_158 = arith.constant 0 : index
    %347 = vector.load %arg16[%c0_157, %c0_158] : memref<1x128xf32, #tpu.memory_space<vmem>>, vector<1x128xf32>
    %cst_159 = arith.constant dense<0.000000e+00> : vector<8xf32>
    %348 = vector.multi_reduction <add>, %342, %cst_159 [1] : vector<8x128xf32> to vector<8xf32>
    %349 = vector.shape_cast %348 : vector<8xf32> to vector<8x1xf32>
    %cst_160 = arith.constant 1.280000e+02 : f32
    %350 = vector.broadcast %cst_160 : f32 to vector<8x1xf32>
    %351 = arith.divf %349, %350 : vector<8x1xf32>
    %352 = vector.broadcast %351 : vector<8x1xf32> to vector<8x128xf32>
    %353 = arith.subf %342, %352 : vector<8x128xf32>
    %354 = arith.mulf %353, %353 : vector<8x128xf32>
    %cst_161 = arith.constant dense<0.000000e+00> : vector<8xf32>
    %355 = vector.multi_reduction <add>, %354, %cst_161 [1] : vector<8x128xf32> to vector<8xf32>
    %356 = vector.shape_cast %355 : vector<8xf32> to vector<8x1xf32>
    %cst_162 = arith.constant 1.280000e+02 : f32
    %357 = vector.broadcast %cst_162 : f32 to vector<8x1xf32>
    %358 = arith.divf %356, %357 : vector<8x1xf32>
    %359 = vector.broadcast %351 : vector<8x1xf32> to vector<8x128xf32>
    %360 = arith.subf %342, %359 : vector<8x128xf32>
    %cst_163 = arith.constant 9.99999974E-6 : f32
    %361 = vector.broadcast %cst_163 : f32 to vector<8x1xf32>
    %362 = arith.addf %358, %361 : vector<8x1xf32>
    %363 = math.rsqrt %362 : vector<8x1xf32>
    %364 = vector.broadcast %363 : vector<8x1xf32> to vector<8x128xf32>
    %365 = arith.mulf %360, %364 : vector<8x128xf32>
    %366 = vector.broadcast %346 : vector<1x128xf32> to vector<8x128xf32>
    %367 = arith.mulf %365, %366 : vector<8x128xf32>
    %368 = vector.broadcast %347 : vector<1x128xf32> to vector<8x128xf32>
    %369 = arith.addf %367, %368 : vector<8x128xf32>
    %c0_164 = arith.constant 0 : index
    %c0_165 = arith.constant 0 : index
    %370 = vector.load %arg17[%c0_164, %c0_165] : memref<128x4096xf32, #tpu.memory_space<vmem>>, vector<128x4096xf32>
    %cst_166 = arith.constant dense<0.000000e+00> : vector<8x4096xf32>
    %371 = tpu.matmul %369, %370, %cst_166 {dimension_numbers = #tpu.dot_dimension_numbers<[1], [0], [0], [1], [0, 0, 1, 1], [], []>} : vector<8x128xf32>, vector<128x4096xf32>, vector<8x4096xf32> -> vector<8x4096xf32>
    %c0_167 = arith.constant 0 : index
    %c0_168 = arith.constant 0 : index
    %372 = vector.load %arg18[%c0_167, %c0_168] : memref<1x4096xf32, #tpu.memory_space<vmem>>, vector<1x4096xf32>
    %373 = vector.broadcast %372 : vector<1x4096xf32> to vector<8x4096xf32>
    %374 = arith.addf %371, %373 : vector<8x4096xf32>
    %c0_169 = arith.constant 0 : index
    %c0_170 = arith.constant 0 : index
    %c0_171 = arith.constant 0 : index
    %375 = vector.load %arg20[%c0_169, %c0_170, %c0_171] : memref<1x8x4096xf32, #tpu.memory_space<vmem>>, vector<1x8x4096xf32>
    %376 = vector.shape_cast %375 : vector<1x8x4096xf32> to vector<8x4096xf32>
    %377 = vector.shape_cast %374 : vector<8x4096xf32> to vector<1x8x4096xf32>
    tpu.vector_store %arg20[%c0_169, %c0_170, %c0_171], %377 {strides = array<i32>} : memref<1x8x4096xf32, #tpu.memory_space<vmem>>, vector<1x8x4096xf32>,
    return
  }
  func.func @transform_0(%arg0: i32) -> (i32, i32, i32) {
    %c0_i32 = arith.constant 0 : i32
    %c0_i32_0 = arith.constant 0 : i32
    %c0_i32_1 = arith.constant 0 : i32
    return %arg0, %c0_i32, %c0_i32_0 : i32, i32, i32
  }
  func.func @transform_1(%arg0: i32) -> (i32, i32) {
    %c0_i32 = arith.constant 0 : i32
    %c0_i32_0 = arith.constant 0 : i32
    %c0_i32_1 = arith.constant 0 : i32
    return %c0_i32, %c0_i32_0 : i32, i32
  }
  func.func @transform_2(%arg0: i32) -> (i32, i32) {
    %c0_i32 = arith.constant 0 : i32
    %c0_i32_0 = arith.constant 0 : i32
    %c0_i32_1 = arith.constant 0 : i32
    return %c0_i32, %c0_i32_0 : i32, i32
  }
  func.func @transform_3(%arg0: i32) -> (i32, i32, i32) {
    %c0_i32 = arith.constant 0 : i32
    %c0_i32_0 = arith.constant 0 : i32
    %c0_i32_1 = arith.constant 0 : i32
    %c0_i32_2 = arith.constant 0 : i32
    return %c0_i32, %c0_i32_0, %c0_i32_1 : i32, i32, i32
  }
  func.func @transform_4(%arg0: i32) -> (i32, i32, i32) {
    %c0_i32 = arith.constant 0 : i32
    %c0_i32_0 = arith.constant 0 : i32
    %c0_i32_1 = arith.constant 0 : i32
    %c0_i32_2 = arith.constant 0 : i32
    return %c0_i32, %c0_i32_0, %c0_i32_1 : i32, i32, i32
  }
  func.func @transform_5(%arg0: i32) -> (i32, i32, i32) {
    %c0_i32 = arith.constant 0 : i32
    %c0_i32_0 = arith.constant 0 : i32
    %c0_i32_1 = arith.constant 0 : i32
    %c0_i32_2 = arith.constant 0 : i32
    return %c0_i32, %c0_i32_0, %c0_i32_1 : i32, i32, i32
  }
  func.func @transform_6(%arg0: i32) -> (i32, i32, i32) {
    %c0_i32 = arith.constant 0 : i32
    %c0_i32_0 = arith.constant 0 : i32
    %c0_i32_1 = arith.constant 0 : i32
    %c0_i32_2 = arith.constant 0 : i32
    return %c0_i32, %c0_i32_0, %c0_i32_1 : i32, i32, i32
  }
  func.func @transform_7(%arg0: i32) -> (i32, i32, i32) {
    %c0_i32 = arith.constant 0 : i32
    %c0_i32_0 = arith.constant 0 : i32
    %c0_i32_1 = arith.constant 0 : i32
    %c0_i32_2 = arith.constant 0 : i32
    return %c0_i32, %c0_i32_0, %c0_i32_1 : i32, i32, i32
  }
  func.func @transform_8(%arg0: i32) -> (i32, i32, i32) {
    %c0_i32 = arith.constant 0 : i32
    %c0_i32_0 = arith.constant 0 : i32
    %c0_i32_1 = arith.constant 0 : i32
    %c0_i32_2 = arith.constant 0 : i32
    return %c0_i32, %c0_i32_0, %c0_i32_1 : i32, i32, i32
  }
  func.func @transform_9(%arg0: i32) -> (i32, i32, i32) {
    %c0_i32 = arith.constant 0 : i32
    %c0_i32_0 = arith.constant 0 : i32
    %c0_i32_1 = arith.constant 0 : i32
    %c0_i32_2 = arith.constant 0 : i32
    return %c0_i32, %c0_i32_0, %c0_i32_1 : i32, i32, i32
  }
  func.func @transform_10(%arg0: i32) -> (i32, i32, i32) {
    %c0_i32 = arith.constant 0 : i32
    %c0_i32_0 = arith.constant 0 : i32
    %c0_i32_1 = arith.constant 0 : i32
    %c0_i32_2 = arith.constant 0 : i32
    return %c0_i32, %c0_i32_0, %c0_i32_1 : i32, i32, i32
  }
  func.func @transform_11(%arg0: i32) -> (i32, i32, i32) {
    %c0_i32 = arith.constant 0 : i32
    %c0_i32_0 = arith.constant 0 : i32
    %c0_i32_1 = arith.constant 0 : i32
    %c0_i32_2 = arith.constant 0 : i32
    return %c0_i32, %c0_i32_0, %c0_i32_1 : i32, i32, i32
  }
  func.func @transform_12(%arg0: i32) -> (i32, i32, i32) {
    %c0_i32 = arith.constant 0 : i32
    %c0_i32_0 = arith.constant 0 : i32
    %c0_i32_1 = arith.constant 0 : i32
    %c0_i32_2 = arith.constant 0 : i32
    return %c0_i32, %c0_i32_0, %c0_i32_1 : i32, i32, i32
  }
  func.func @transform_13(%arg0: i32) -> (i32, i32, i32) {
    %c0_i32 = arith.constant 0 : i32
    %c0_i32_0 = arith.constant 0 : i32
    %c0_i32_1 = arith.constant 0 : i32
    %c0_i32_2 = arith.constant 0 : i32
    return %c0_i32, %c0_i32_0, %c0_i32_1 : i32, i32, i32
  }
  func.func @transform_14(%arg0: i32) -> (i32, i32) {
    %c0_i32 = arith.constant 0 : i32
    %c0_i32_0 = arith.constant 0 : i32
    %c0_i32_1 = arith.constant 0 : i32
    return %c0_i32, %c0_i32_0 : i32, i32
  }
  func.func @transform_15(%arg0: i32) -> (i32, i32) {
    %c0_i32 = arith.constant 0 : i32
    %c0_i32_0 = arith.constant 0 : i32
    %c0_i32_1 = arith.constant 0 : i32
    return %c0_i32, %c0_i32_0 : i32, i32
  }
  func.func @transform_16(%arg0: i32) -> (i32, i32) {
    %c0_i32 = arith.constant 0 : i32
    %c0_i32_0 = arith.constant 0 : i32
    %c0_i32_1 = arith.constant 0 : i32
    return %c0_i32, %c0_i32_0 : i32, i32
  }
  func.func @transform_17(%arg0: i32) -> (i32, i32) {
    %c0_i32 = arith.constant 0 : i32
    %c0_i32_0 = arith.constant 0 : i32
    %c0_i32_1 = arith.constant 0 : i32
    return %c0_i32, %c0_i32_0 : i32, i32
  }
  func.func @transform_18(%arg0: i32) -> (i32, i32, i32, i32) {
    %c0_i32 = arith.constant 0 : i32
    %c0_i32_0 = arith.constant 0 : i32
    %c0_i32_1 = arith.constant 0 : i32
    %c0_i32_2 = arith.constant 0 : i32
    return %c0_i32, %arg0, %c0_i32_0, %c0_i32_1 : i32, i32, i32, i32
  }
  func.func @transform_19(%arg0: i32) -> (i32, i32, i32) {
    %c0_i32 = arith.constant 0 : i32
    %c0_i32_0 = arith.constant 0 : i32
    %c0_i32_1 = arith.constant 0 : i32
    return %arg0, %c0_i32, %c0_i32_0 : i32, i32, i32
  }
}

</mosaic_0001>

<bundles_post_ra>
// kernel: vita_forward.1
= control target key start
LH: loop header
LB: loop body
LE: loop exit
PB: predicated region body
PF: predicated region fallthrough
CT: control target
= control target key end

     0   :  { %s14299_s0 = inlined_call_operand.vmem [shape: f32[2,8,4096], index: 0, kind: input, shape index: {}]   ;;  %s14300_s1 = inlined_call_operand.vmem [shape: f32[4096,128], index: 1, kind: input, shape index: {}]   ;;  %s14301_s2 = inlined_call_operand.vmem [shape: f32[8,128], index: 2, kind: input, shape index: {}]   ;;  %s14302_s3 = inlined_call_operand.vmem [shape: f32[2,1,128], index: 3, kind: input, shape index: {}]   ;;  %s14303_s4 = inlined_call_operand.vmem [shape: f32[2,1,128], index: 4, kind: input, shape index: {}]   ;;  %s14304_s5 = inlined_call_operand.vmem [shape: f32[2,128,384], index: 5, kind: input, shape index: {}]   ;;  %s14305_s6 = inlined_call_operand.vmem [shape: f32[2,128,128], index: 6, kind: input, shape index: {}]   ;;  %s14306_s7 = inlined_call_operand.vmem [shape: f32[2,1,128], index: 7, kind: input, shape index: {}]   ;;  %s14307_s8 = inlined_call_operand.vmem [shape: f32[2,1,128], index: 8, kind: input, shape index: {}]   ;;  %s14308_s9 = inlined_call_operand.vmem [shape: f32[2,1,128], index: 9, kind: input, shape index: {}]   ;;  %s14309_s10 = inlined_call_operand.vmem [shape: f32[2,128,256], index: 10, kind: input, shape index: {}]   ;;  %s14310_s11 = inlined_call_operand.vmem [shape: f32[2,1,256], index: 11, kind: input, shape index: {}]   ;;  %s14311_s12 = inlined_call_operand.vmem [shape: f32[2,256,128], index: 12, kind: input, shape index: {}]   ;;  %s14312_s13 = inlined_call_operand.vmem [shape: f32[2,1,128], index: 13, kind: input, shape index: {}]   ;;  %s14313_s14 = inlined_call_operand.vmem [shape: f32[1,128], index: 14, kind: input, shape index: {}]   ;;  %s14314_s15 = inlined_call_operand.vmem [shape: f32[1,128], index: 15, kind: input, shape index: {}]   ;;  %s14315_s16 = inlined_call_operand.vmem [shape: f32[128,4096], index: 16, kind: input, shape index: {}]   ;;  %s14316_s17 = inlined_call_operand.vmem [shape: f32[1,4096], index: 17, kind: input, shape index: {}]   ;;  %s14317_s18 = inlined_call_operand.vmem [shape: f32[2,2,8,128], index: 18, kind: output, shape index: {0}]   ;;  %s14318_s19 = inlined_call_operand.vmem [shape: f32[2,8,4096], index: 19, kind: output, shape index: {1}]  }
   0x1   :  { %14331 = sst [smem:[#allocation8_spill]] %s14299_s0 }
   0x2   :  { %14332 = sst [smem:[#allocation9_spill]] %s14300_s1 }
   0x3   :  { %14333 = sst [smem:[#allocation10_spill]] %s14301_s2 }
   0x4   :  { %14334 = sst [smem:[#allocation11_spill]] %s14302_s3 }
   0x5   :  { %14335 = sst [smem:[#allocation12_spill]] %s14317_s18 }
   0x6   :  { %s9895_s0 = smov 0   ;;  %s9897_s30 = smov 0  }
   0x7   :  { %s9899_s20 = smov 0  }
   0x8 LB: > { %14336 = sst [smem:[#allocation3_spill]] %s9783_s30  ;;  %s9908_s21 = sadd.s32 4294967295, %s9787_s20   ;;  %s9787_s20 = sphi %s9899_s20, %s14352_s20   ;;  %s9783_s30 = sphi %s9897_s30, %s14354_s30   ;;  %s9779_s0 = sphi %s9895_s0, %s14353_s0  }
   0x9   : > { %14337 = sst [smem:[#allocation4_spill]] %s9908_s21  ;;  %s9910_s1 = sadd.s32 1, %s9787_s20  }
   0xa   : > { %14338 = sst [smem:[#allocation5_spill]] %s9910_s1  ;;  %s417_s22 = ssub.s32 %s9787_s20, %s9910_s1 }
   0xb   : > { %s420_s2 = sadd.s32 1, %s9783_s30  ;;  %p418_p0 = scmp.eq.s32.totalorder %s417_s22, 0 }
   0xc   : > { %p430_p1 = scmp.ne.s32.totalorder %s9783_s30, %s9779_s0  ;;  %p431_p2 = scmp.eq.s32.totalorder %s9908_s21, 1 }
   0xd   : > { %p7205_p3 = scmp.ge.s32.totalorder %s9787_s20, 1  ;;  %p540_p5 = scmp.lt.s32.totalorder %s9787_s20, 3 }
   0xe   : > { %s9918_s23 = scalar_select %p418_p0, %s9783_s30, %s420_s2  }
   0xf   : > { %p9920_p4 = por %p431_p2, %p430_p1  ;;  %p541_p6 = pnand %p7205_p3, %p540_p5 }
  0x10   : > { %14339 = sst [smem:[#allocation6_spill]] %s9918_s23  ;;  %s14342_s26 = sld [smem:[#allocation9_spill]] (!%p541_p6)  ;;  %vm9791_vm0 = vmmov (!%p541_p6), 0   ;;  %vm2508_vm1 = vcmask (!%p541_p6), 261120   ;;  %vm2585_vm2 = vcmask (!%p541_p6), 64512  }
  0x11   : > { %s14340_s24 = scalar_select %p9920_p4, 1, 0 }
  0x12   : > { %544 = sbr.rel (%p541_p6) target bundleno = 8519 (0x2147), region = 92  ;;  %p600_p7 = scmp.lt.s32.totalorder (!%p541_p6), %s9908_s21, 1 }
  0x13   : > { %14341 = sst [smem:[#allocation7_spill]] %s14340_s24  ;;  %s14344_s2 = sld [smem:[#allocation10_spill]] (!%p541_p6) }
  0x14   : > { %s14345_s25 = sld [smem:[#allocation11_spill]] (!%p541_p6)  ;;  %s9792_s29 = smov (!%p541_p6), 96  }
  0x15   : > { %s14327_s3 = smov (!%p541_p6), 32   ;;  %s14347_s22 = smov (!%p541_p6), 32  }
  0x16   : > { %v658_v0 = vld [vmem:[%s14342_s26 + $0x80] sm:$0xff] (!%p541_p6)  ;;  %v659_v1 = vld [vmem:[%s14342_s26 + $0x88] sm:$0xff] (!%p541_p6)  ;;  %v660_v11 = vld [vmem:[%s14342_s26 + $0x90] sm:$0xff] (!%p541_p6) }
  0x17   : > { %v642_v2 = vld [vmem:[%s14342_s26] sm:$0xff] (!%p541_p6)  ;;  %v8373_v3 = vpack.c.bf16 (!%p541_p6), %v659_v1, %v658_v0  ;;  %v643_v4 = vld [vmem:[%s14342_s26 + $0x8] sm:$0xff] (!%p541_p6)  ;;  %v661_v13 = vld [vmem:[%s14342_s26 + $0x98] sm:$0xff] (!%p541_p6) }
  0x18   : > { %v690_v5 = vld [vmem:[%s14342_s26 + $0x180] sm:$0xff] (!%p541_p6)  ;;  %v691_v6 = vld [vmem:[%s14342_s26 + $0x188] sm:$0xff] (!%p541_p6)  ;;  %v8375_v7 = vpack.c.bf16 (!%p541_p6), %v643_v4, %v642_v2  ;;  %v644_v14 = vld [vmem:[%s14342_s26 + $0x10] sm:$0xff] (!%p541_p6)  ;;  %v8377_v16 = vpack.c.bf16 (!%p541_p6), %v661_v13, %v660_v11 }
  0x19   : > { %v8405_v8 = vpack.c.bf16 %v691_v6, %v690_v5  ;;  %v674_v9 = vld [vmem:[%s14342_s26 + $0x100] sm:$0xff]  ;;  %v675_v10 = vld [vmem:[%s14342_s26 + $0x108] sm:$0xff]  ;;  %8374 = vmatprep.subr.bf16.mxu0 %v8373_v3  ;;  %v645_v15 = vld [vmem:[%s14342_s26 + $0x18] sm:$0xff]  ;;  %s10030_s27 = scalar_select %p600_p7, %s9908_s21, 1 }
  0x1a   : > { %v8407_v12 = vpack.c.bf16 %v675_v10, %v674_v9  ;;  %8376 = vmatpush3.bf16.msra.mxu0 %v8375_v7  ;;  %v8379_v17 = vpack.c.bf16 %v645_v15, %v644_v14  ;;  %v692_v18 = vld [vmem:[%s14342_s26 + $0x190] sm:$0xff]  ;;  %v693_v19 = vld [vmem:[%s14342_s26 + $0x198] sm:$0xff]  ;;  %v662_v23 = vld [vmem:[%s14342_s26 + $0xa0] sm:$0xff]  ;;  %s14343_s21 = sld [smem:[#allocation8_spill]] }
  0x1b   : > { %8406 = vmatprep.subr.bf16.mxu1 %v8405_v8  ;;  %v676_v20 = vld [vmem:[%s14342_s26 + $0x110] sm:$0xff]  ;;  %v8409_v21 = vpack.c.bf16 %v693_v19, %v692_v18  ;;  %v677_v22 = vld [vmem:[%s14342_s26 + $0x118] sm:$0xff]  ;;  %v663_v24 = vld [vmem:[%s14342_s26 + $0xa8] sm:$0xff]  ;;  %8378 = vmatprep.subr.bf16.mxu0 %v8377_v16  ;;  %s14326_s18 = sshll.u32 %s10030_s27, 8 }
  0x1c   : > { %8408 = vmatpush3.bf16.msra.mxu1 %v8407_v12  ;;  %v8411_v25 = vpack.c.bf16 %v677_v22, %v676_v20  ;;  %v8381_v26 = vpack.c.bf16 %v663_v24, %v662_v23  ;;  %v646_v27 = vld [vmem:[%s14342_s26 + $0x20] sm:$0xff]  ;;  %v647_v28 = vld [vmem:[%s14342_s26 + $0x28] sm:$0xff]  ;;  %v664_v35 = vld [vmem:[%s14342_s26 + $0xb0] sm:$0xff] }
  0x1d   : > { %v694_v29 = vld [vmem:[%s14342_s26 + $0x1a0] sm:$0xff]  ;;  %8410 = vmatprep.subr.bf16.mxu1 %v8409_v21  ;;  %v695_v30 = vld [vmem:[%s14342_s26 + $0x1a8] sm:$0xff]  ;;  %v8383_v33 = vpack.c.bf16 %v647_v28, %v646_v27  ;;  %v665_v36 = vld [vmem:[%s14342_s26 + $0xb8] sm:$0xff] }
  0x1e   : > { %v678_v31 = vld [vmem:[%s14342_s26 + $0x120] sm:$0xff]  ;;  %v679_v32 = vld [vmem:[%s14342_s26 + $0x128] sm:$0xff]  ;;  %8380 = vmatpush3.bf16.msra.mxu0 %v8379_v17  ;;  %v8413_v34 = vpack.c.bf16 %v695_v30, %v694_v29  ;;  %v648_v37 = vld [vmem:[%s14342_s26 + $0x30] sm:$0xff]  ;;  %v8385_v39 = vpack.c.bf16 %v665_v36, %v664_v35 }
  0x1f   : > { %8382 = vmatprep.subr.bf16.mxu0 %v8381_v26  ;;  %v8415_v38 = vpack.c.bf16 %v679_v32, %v678_v31  ;;  %v649_v40 = vld [vmem:[%s14342_s26 + $0x38] sm:$0xff]  ;;  %v696_v41 = vld [vmem:[%s14342_s26 + $0x1b0] sm:$0xff]  ;;  %v666_v46 = vld [vmem:[%s14342_s26 + $0xc0] sm:$0xff] }
  0x20   : > { %8412 = vmatpush3.bf16.msra.mxu1 %v8411_v25  ;;  %v697_v42 = vld [vmem:[%s14342_s26 + $0x1b8] sm:$0xff]  ;;  %v680_v44 = vld [vmem:[%s14342_s26 + $0x130] sm:$0xff]  ;;  %v667_v47 = vld [vmem:[%s14342_s26 + $0xc8] sm:$0xff]  ;;  %v8387_v48 = vpack.c.bf16 %v649_v40, %v648_v37  ;;  %s10086_s30 = scalar_lea.vmem %s14343_s21, %s14326_s18  ;;  %s14329_s21 = smov 64  }
  0x21   : > { %8414 = vmatprep.subr.bf16.mxu1 %v8413_v34  ;;  %v8417_v43 = vpack.c.bf16 %v697_v42, %v696_v41  ;;  %v681_v45 = vld [vmem:[%s14342_s26 + $0x138] sm:$0xff]  ;;  %v698_v49 = vld [vmem:[%s14342_s26 + $0x1c0] sm:$0xff]  ;;  %v699_v50 = vld [vmem:[%s14342_s26 + $0x1c8] sm:$0xff]  ;;  %v8389_v52 = vpack.c.bf16 %v667_v47, %v666_v46  ;;  %s14346_s18 = smov 64  }
  0x22   : > { %8384 = vmatpush3.bf16.msra.mxu0 %v8383_v33  ;;  %v8419_v51 = vpack.c.bf16 %v681_v45, %v680_v44  ;;  %v650_v53 = vld [vmem:[%s14342_s26 + $0x40] sm:$0xff]  ;;  %v651_v54 = vld [vmem:[%s14342_s26 + $0x48] sm:$0xff]  ;;  %v8421_v56 = vpack.c.bf16 %v699_v50, %v698_v49  ;;  %v668_v58 = vld [vmem:[%s14342_s26 + $0xd0] sm:$0xff] }
  0x23   : > { %8386 = vmatprep.subr.bf16.mxu0 %v8385_v39  ;;  %v682_v55 = vld [vmem:[%s14342_s26 + $0x140] sm:$0xff]  ;;  %v683_v57 = vld [vmem:[%s14342_s26 + $0x148] sm:$0xff]  ;;  %v669_v59 = vld [vmem:[%s14342_s26 + $0xd8] sm:$0xff]  ;;  %v8391_v62 = vpack.c.bf16 %v651_v54, %v650_v53 }
  0x24   : > { %8416 = vmatpush3.bf16.msra.mxu1 %v8415_v38  ;;  %v700_v60 = vld [vmem:[%s14342_s26 + $0x1d0] sm:$0xff]  ;;  %v701_v61 = vld [vmem:[%s14342_s26 + $0x1d8] sm:$0xff]  ;;  %v8423_v63 = vpack.c.bf16 %v683_v57, %v682_v55  ;;  %v8393_v0 = vpack.c.bf16 %v669_v59, %v668_v58  ;;  %v670_v6 = vld [vmem:[%s14342_s26 + $0xe0] sm:$0xff] }
  0x25   : > { %8418 = vmatprep.subr.bf16.mxu1 %v8417_v43  ;;  %v652_v1 = vld [vmem:[%s14342_s26 + $0x50] sm:$0xff]  ;;  %v653_v2 = vld [vmem:[%s14342_s26 + $0x58] sm:$0xff]  ;;  %v8425_v4 = vpack.c.bf16 %v701_v61, %v700_v60  ;;  %v671_v7 = vld [vmem:[%s14342_s26 + $0xe8] sm:$0xff] }
  0x26   : > { %8388 = vmatpush3.bf16.msra.mxu0 %v8387_v48  ;;  %v684_v3 = vld [vmem:[%s14342_s26 + $0x150] sm:$0xff]  ;;  %v685_v5 = vld [vmem:[%s14342_s26 + $0x158] sm:$0xff]  ;;  %v702_v8 = vld [vmem:[%s14342_s26 + $0x1e0] sm:$0xff]  ;;  %v8395_v10 = vpack.c.bf16 %v653_v2, %v652_v1  ;;  %v8397_v14 = vpack.c.bf16 %v671_v7, %v670_v6 }
  0x27   : > { %8390 = vmatprep.subr.bf16.mxu0 %v8389_v52  ;;  %v703_v9 = vld [vmem:[%s14342_s26 + $0x1e8] sm:$0xff]  ;;  %v654_v11 = vld [vmem:[%s14342_s26 + $0x60] sm:$0xff]  ;;  %v8427_v13 = vpack.c.bf16 %v685_v5, %v684_v3  ;;  %v672_v19 = vld [vmem:[%s14342_s26 + $0xf0] sm:$0xff] }
  0x28   : > { %8420 = vmatpush3.bf16.msra.mxu1 %v8419_v51  ;;  %v655_v12 = vld [vmem:[%s14342_s26 + $0x68] sm:$0xff]  ;;  %v686_v15 = vld [vmem:[%s14342_s26 + $0x160] sm:$0xff]  ;;  %v8429_v18 = vpack.c.bf16 %v703_v9, %v702_v8  ;;  %v673_v20 = vld [vmem:[%s14342_s26 + $0xf8] sm:$0xff] }
  0x29   : > { %8422 = vmatprep.subr.bf16.mxu1 %v8421_v56  ;;  %v687_v16 = vld [vmem:[%s14342_s26 + $0x168] sm:$0xff]  ;;  %v613_v21 = vld [vmem:[%s10086_s30 + $0x18] sm:$0xff]  ;;  %v704_v22 = vld [vmem:[%s14342_s26 + $0x1f0] sm:$0xff]  ;;  %v8399_v24 = vpack.c.bf16 %v655_v12, %v654_v11  ;;  %v8401_v26 = vpack.c.bf16 %v673_v20, %v672_v19 }
  0x2a   : > { %8392 = vmatpush3.bf16.msra.mxu0 %v8391_v62  ;;  %v611_v17 = vld [vmem:[%s10086_s30 + $0x8] sm:$0xff]  ;;  %v705_v23 = vld [vmem:[%s14342_s26 + $0x1f8] sm:$0xff]  ;;  %1289 = vmatprep.mubr.f32.mxu1 %v613_v21  ;;  %v8431_v25 = vpack.c.bf16 %v687_v16, %v686_v15  ;;  %v656_v27 = vld [vmem:[%s14342_s26 + $0x70] sm:$0xff] }
  0x2b   : > { %8394 = vmatprep.subr.bf16.mxu0 %v8393_v0  ;;  %1219 = vmatprep.mubr.f32.mxu0 %v611_v17  ;;  %v657_v28 = vld [vmem:[%s14342_s26 + $0x78] sm:$0xff]  ;;  %v688_v29 = vld [vmem:[%s14342_s26 + $0x170] sm:$0xff]  ;;  %v8433_v30 = vpack.c.bf16 %v705_v23, %v704_v22  ;;  %v722_v32 = vld [vmem:[%s14342_s26 + $0x280] sm:$0xff] }
  0x2c   : > { %8424 = vmatpush3.bf16.msra.mxu1 %v8423_v63  ;;  %v689_v31 = vld [vmem:[%s14342_s26 + $0x178] sm:$0xff]  ;;  %v723_v33 = vld [vmem:[%s14342_s26 + $0x288] sm:$0xff]  ;;  %v754_v34 = vld [vmem:[%s14342_s26 + $0x380] sm:$0xff]  ;;  %v8403_v36 = vpack.c.bf16 %v657_v28, %v656_v27 }
  0x2d   : > { %8426 = vmatprep.subr.bf16.mxu1 %v8425_v4  ;;  %v755_v35 = vld [vmem:[%s14342_s26 + $0x388] sm:$0xff]  ;;  %v8435_v37 = vpack.c.bf16 %v689_v31, %v688_v29  ;;  %v8437_v38 = vpack.c.bf16 %v723_v33, %v722_v32  ;;  %v706_v39 = vld [vmem:[%s14342_s26 + $0x200] sm:$0xff]  ;;  %v724_v44 = vld [vmem:[%s14342_s26 + $0x290] sm:$0xff] }
  0x2e   : > { %8396 = vmatpush3.bf16.msra.mxu0 %v8395_v10  ;;  %v707_v40 = vld [vmem:[%s14342_s26 + $0x208] sm:$0xff]  ;;  %v738_v41 = vld [vmem:[%s14342_s26 + $0x300] sm:$0xff]  ;;  %v8469_v42 = vpack.c.bf16 %v755_v35, %v754_v34  ;;  %v725_v45 = vld [vmem:[%s14342_s26 + $0x298] sm:$0xff] }
  0x2f   : > { %8398 = vmatprep.subr.bf16.mxu0 %v8397_v14  ;;  %v739_v43 = vld [vmem:[%s14342_s26 + $0x308] sm:$0xff]  ;;  %v756_v46 = vld [vmem:[%s14342_s26 + $0x390] sm:$0xff]  ;;  %v757_v47 = vld [vmem:[%s14342_s26 + $0x398] sm:$0xff]  ;;  %v8439_v49 = vpack.c.bf16 %v707_v40, %v706_v39  ;;  %v8441_v52 = vpack.c.bf16 %v725_v45, %v724_v44 }
  0x30   : > { %8428 = vmatpush3.bf16.msra.mxu1 %v8427_v13  ;;  %v610_v48 = vld [vmem:[%s10086_s30] sm:$0xff]  ;;  %v612_v50 = vld [vmem:[%s10086_s30 + $0x10] sm:$0xff]  ;;  %v8471_v51 = vpack.c.bf16 %v739_v43, %v738_v41  ;;  %v709_v54 = vld [vmem:[%s14342_s26 + $0x218] sm:$0xff]  ;;  %v8473_v56 = vpack.c.bf16 %v757_v47, %v756_v46 }
  0x31   : > { %8430 = vmatprep.subr.bf16.mxu1 %v8429_v18  ;;  %v708_v53 = vld [vmem:[%s14342_s26 + $0x210] sm:$0xff]  ;;  %v741_v57 = vld [vmem:[%s14342_s26 + $0x318] sm:$0xff]  ;;  %v726_v58 = vld [vmem:[%s14342_s26 + $0x2a0] sm:$0xff] }
  0x32   : > { %8400 = vmatpush3.bf16.msra.mxu0 %v8399_v24  ;;  %v740_v55 = vld [vmem:[%s14342_s26 + $0x310] sm:$0xff]  ;;  %v727_v59 = vld [vmem:[%s14342_s26 + $0x2a8] sm:$0xff]  ;;  %v758_v60 = vld [vmem:[%s14342_s26 + $0x3a0] sm:$0xff]  ;;  %v8443_v62 = vpack.c.bf16 %v709_v54, %v708_v53 }
  0x33   : > { %8402 = vmatprep.subr.bf16.mxu0 %v8401_v26  ;;  %v759_v61 = vld [vmem:[%s14342_s26 + $0x3a8] sm:$0xff]  ;;  %v8475_v63 = vpack.c.bf16 %v741_v57, %v740_v55  ;;  %v8445_v0 = vpack.c.bf16 %v727_v59, %v726_v58  ;;  %v710_v1 = vld [vmem:[%s14342_s26 + $0x220] sm:$0xff]  ;;  %v728_v6 = vld [vmem:[%s14342_s26 + $0x2b0] sm:$0xff] }
  0x34   : > { %8432 = vmatpush3.bf16.msra.mxu1 %v8431_v25  ;;  %v711_v2 = vld [vmem:[%s14342_s26 + $0x228] sm:$0xff]  ;;  %v742_v3 = vld [vmem:[%s14342_s26 + $0x320] sm:$0xff]  ;;  %v8477_v4 = vpack.c.bf16 %v759_v61, %v758_v60  ;;  %v729_v7 = vld [vmem:[%s14342_s26 + $0x2b8] sm:$0xff] }
  0x35   : > { %8434 = vmatprep.subr.bf16.mxu1 %v8433_v30  ;;  %v743_v5 = vld [vmem:[%s14342_s26 + $0x328] sm:$0xff]  ;;  %v760_v8 = vld [vmem:[%s14342_s26 + $0x3b0] sm:$0xff]  ;;  %v761_v9 = vld [vmem:[%s14342_s26 + $0x3b8] sm:$0xff]  ;;  %v8447_v10 = vpack.c.bf16 %v711_v2, %v710_v1  ;;  %v8449_v12 = vpack.c.bf16 %v729_v7, %v728_v6 }
  0x36   : > { %8404 = vmatpush3.bf16.msra.mxu0 %v8403_v36  ;;  %v8479_v11 = vpack.c.bf16 %v743_v5, %v742_v3  ;;  %v712_v13 = vld [vmem:[%s14342_s26 + $0x230] sm:$0xff]  ;;  %v713_v14 = vld [vmem:[%s14342_s26 + $0x238] sm:$0xff]  ;;  %v8481_v16 = vpack.c.bf16 %v761_v9, %v760_v8  ;;  %v730_v18 = vld [vmem:[%s14342_s26 + $0x2c0] sm:$0xff] }
  0x37   : > { %8438 = vmatprep.subr.bf16.mxu0 %v8437_v38  ;;  %v744_v15 = vld [vmem:[%s14342_s26 + $0x330] sm:$0xff]  ;;  %v745_v17 = vld [vmem:[%s14342_s26 + $0x338] sm:$0xff]  ;;  %v731_v19 = vld [vmem:[%s14342_s26 + $0x2c8] sm:$0xff]  ;;  %v8451_v22 = vpack.c.bf16 %v713_v14, %v712_v13 }
  0x38   : > { %8436 = vmatpush3.bf16.msra.mxu1 %v8435_v37  ;;  %v762_v20 = vld [vmem:[%s14342_s26 + $0x3c0] sm:$0xff]  ;;  %v763_v21 = vld [vmem:[%s14342_s26 + $0x3c8] sm:$0xff]  ;;  %v8483_v25 = vpack.c.bf16 %v745_v17, %v744_v15  ;;  %v8453_v26 = vpack.c.bf16 %v731_v19, %v730_v18  ;;  %v617_v29 = vld [vmem:[%s10086_s30 + $0x38] sm:$0xff] }
  0x39   : > { %8470 = vmatprep.subr.bf16.mxu1 %v8469_v42  ;;  %1220 = vmatmul.mubr.f32.vlgmr.msra.gmra.mrb[0].mxu0 %v610_v48  ;;  %v714_v23 = vld [vmem:[%s14342_s26 + $0x240] sm:$0xff]  ;;  %v615_v24 = vld [vmem:[%s10086_s30 + $0x28] sm:$0xff]  ;;  %v8485_v30 = vpack.c.bf16 %v763_v21, %v762_v20  ;;  %v732_v32 = vld [vmem:[%s14342_s26 + $0x2d0] sm:$0xff] }
  0x3a   : > { %8440 = vmatpush3.bf16.msra.mxu0 %v8439_v49  ;;  %v715_v27 = vld [vmem:[%s14342_s26 + $0x248] sm:$0xff]  ;;  %v746_v28 = vld [vmem:[%s14342_s26 + $0x340] sm:$0xff]  ;;  %v733_v33 = vld [vmem:[%s14342_s26 + $0x2d8] sm:$0xff]  ;;  %1359 = vmatprep.mubr.f32.mxu0 %v615_v24 }
  0x3b   : > { %1290 = vmatmul.mubr.f32.vlgmr.msra.gmra.mrb[0].mxu1 %v612_v50  ;;  %8442 = vmatprep.subr.bf16.mxu0 %v8441_v52  ;;  %v747_v31 = vld [vmem:[%s14342_s26 + $0x348] sm:$0xff]  ;;  %v764_v34 = vld [vmem:[%s14342_s26 + $0x3d0] sm:$0xff]  ;;  %v765_v35 = vld [vmem:[%s14342_s26 + $0x3d8] sm:$0xff]  ;;  %v8455_v36 = vpack.c.bf16 %v715_v27, %v714_v23  ;;  %v8457_v38 = vpack.c.bf16 %v733_v33, %v732_v32 }
  0x3c   : > { %8472 = vmatpush3.bf16.msra.mxu1 %v8471_v51  ;;  %1429 = vmatprep.mubr.f32.mxu1 %v617_v29  ;;  %v8487_v37 = vpack.c.bf16 %v747_v31, %v746_v28  ;;  %v716_v39 = vld [vmem:[%s14342_s26 + $0x250] sm:$0xff]  ;;  %v717_v40 = vld [vmem:[%s14342_s26 + $0x258] sm:$0xff]  ;;  %v8489_v42 = vpack.c.bf16 %v765_v35, %v764_v34  ;;  %v734_v44 = vld [vmem:[%s14342_s26 + $0x2e0] sm:$0xff] }
  0x3d   : > { %8474 = vmatprep.subr.bf16.mxu1 %v8473_v56  ;;  %v748_v41 = vld [vmem:[%s14342_s26 + $0x350] sm:$0xff]  ;;  %v749_v43 = vld [vmem:[%s14342_s26 + $0x358] sm:$0xff]  ;;  %v735_v45 = vld [vmem:[%s14342_s26 + $0x2e8] sm:$0xff]  ;;  %v8459_v48 = vpack.c.bf16 %v717_v40, %v716_v39 }
  0x3e   : > { %8444 = vmatpush3.bf16.msra.mxu0 %v8443_v62  ;;  %v766_v46 = vld [vmem:[%s14342_s26 + $0x3e0] sm:$0xff]  ;;  %v767_v47 = vld [vmem:[%s14342_s26 + $0x3e8] sm:$0xff]  ;;  %v8491_v49 = vpack.c.bf16 %v749_v43, %v748_v41  ;;  %v8461_v50 = vpack.c.bf16 %v735_v45, %v734_v44  ;;  %v736_v56 = vld [vmem:[%s14342_s26 + $0x2f0] sm:$0xff] }
  0x3f   : > { %8446 = vmatprep.subr.bf16.mxu0 %v8445_v0  ;;  %v718_v51 = vld [vmem:[%s14342_s26 + $0x260] sm:$0xff]  ;;  %v719_v52 = vld [vmem:[%s14342_s26 + $0x268] sm:$0xff]  ;;  %v8493_v54 = vpack.c.bf16 %v767_v47, %v766_v46  ;;  %v737_v57 = vld [vmem:[%s14342_s26 + $0x2f8] sm:$0xff] }
  0x40   : > { %8476 = vmatpush3.bf16.msra.mxu1 %v8475_v63  ;;  %v750_v53 = vld [vmem:[%s14342_s26 + $0x360] sm:$0xff]  ;;  %v751_v55 = vld [vmem:[%s14342_s26 + $0x368] sm:$0xff]  ;;  %v768_v58 = vld [vmem:[%s14342_s26 + $0x3f0] sm:$0xff]  ;;  %v8463_v60 = vpack.c.bf16 %v719_v52, %v718_v51  ;;  %v8465_v62 = vpack.c.bf16 %v737_v57, %v736_v56 }
  0x41   : > { %8478 = vmatprep.subr.bf16.mxu1 %v8477_v4  ;;  %v769_v59 = vld [vmem:[%s14342_s26 + $0x3f8] sm:$0xff]  ;;  %v8495_v61 = vpack.c.bf16 %v751_v55, %v750_v53  ;;  %v720_v63 = vld [vmem:[%s14342_s26 + $0x270] sm:$0xff]  ;;  %v786_v4 = vld [vmem:[%s14342_s26 + $0x480] sm:$0xff] }
  0x42   : > { %8448 = vmatpush3.bf16.msra.mxu0 %v8447_v10  ;;  %v721_v0 = vld [vmem:[%s14342_s26 + $0x278] sm:$0xff]  ;;  %v752_v1 = vld [vmem:[%s14342_s26 + $0x370] sm:$0xff]  ;;  %v8497_v2 = vpack.c.bf16 %v769_v59, %v768_v58  ;;  %v787_v5 = vld [vmem:[%s14342_s26 + $0x488] sm:$0xff] }
  0x43   : > { %8450 = vmatprep.subr.bf16.mxu0 %v8449_v12  ;;  %v753_v3 = vld [vmem:[%s14342_s26 + $0x378] sm:$0xff]  ;;  %v818_v6 = vld [vmem:[%s14342_s26 + $0x580] sm:$0xff]  ;;  %v819_v7 = vld [vmem:[%s14342_s26 + $0x588] sm:$0xff]  ;;  %v8467_v8 = vpack.c.bf16 %v721_v0, %v720_v63  ;;  %v8501_v10 = vpack.c.bf16 %v787_v5, %v786_v4 }
  0x44   : > { %8480 = vmatpush3.bf16.msra.mxu1 %v8479_v11  ;;  %v8499_v9 = vpack.c.bf16 %v753_v3, %v752_v1  ;;  %v770_v11 = vld [vmem:[%s14342_s26 + $0x400] sm:$0xff]  ;;  %v771_v12 = vld [vmem:[%s14342_s26 + $0x408] sm:$0xff]  ;;  %v8533_v14 = vpack.c.bf16 %v819_v7, %v818_v6  ;;  %v789_v17 = vld [vmem:[%s14342_s26 + $0x498] sm:$0xff] }
  0x45   : > { %8482 = vmatprep.subr.bf16.mxu1 %v8481_v16  ;;  %v802_v13 = vld [vmem:[%s14342_s26 + $0x500] sm:$0xff]  ;;  %v803_v15 = vld [vmem:[%s14342_s26 + $0x508] sm:$0xff]  ;;  %v788_v16 = vld [vmem:[%s14342_s26 + $0x490] sm:$0xff]  ;;  %v8503_v21 = vpack.c.bf16 %v771_v12, %v770_v11 }
  0x46   : > { %8452 = vmatpush3.bf16.msra.mxu0 %v8451_v22  ;;  %v820_v18 = vld [vmem:[%s14342_s26 + $0x590] sm:$0xff]  ;;  %v821_v19 = vld [vmem:[%s14342_s26 + $0x598] sm:$0xff]  ;;  %v614_v20 = vld [vmem:[%s10086_s30 + $0x20] sm:$0xff]  ;;  %v8535_v23 = vpack.c.bf16 %v803_v15, %v802_v13  ;;  %v8505_v24 = vpack.c.bf16 %v789_v17, %v788_v16 }
  0x47   : > { %8454 = vmatprep.subr.bf16.mxu0 %v8453_v26  ;;  %v616_v22 = vld [vmem:[%s10086_s30 + $0x30] sm:$0xff]  ;;  %v773_v26 = vld [vmem:[%s14342_s26 + $0x418] sm:$0xff]  ;;  %v8537_v28 = vpack.c.bf16 %v821_v19, %v820_v18  ;;  %v791_v31 = vld [vmem:[%s14342_s26 + $0x4a8] sm:$0xff] }
  0x48   : > { %8484 = vmatpush3.bf16.msra.mxu1 %v8483_v25  ;;  %v772_v25 = vld [vmem:[%s14342_s26 + $0x410] sm:$0xff]  ;;  %v805_v29 = vld [vmem:[%s14342_s26 + $0x518] sm:$0xff]  ;;  %v822_v32 = vld [vmem:[%s14342_s26 + $0x5a0] sm:$0xff] }
  0x49   : > { %8486 = vmatprep.subr.bf16.mxu1 %v8485_v30  ;;  %v804_v27 = vld [vmem:[%s14342_s26 + $0x510] sm:$0xff]  ;;  %v790_v30 = vld [vmem:[%s14342_s26 + $0x4a0] sm:$0xff]  ;;  %v823_v33 = vld [vmem:[%s14342_s26 + $0x5a8] sm:$0xff]  ;;  %v8507_v35 = vpack.c.bf16 %v773_v26, %v772_v25 }
  0x4a   : > { %8456 = vmatpush3.bf16.msra.mxu0 %v8455_v36  ;;  %v619_v34 = vld [vmem:[%s10086_s30 + $0x48] sm:$0xff]  ;;  %v621_v36 = vld [vmem:[%s10086_s30 + $0x58] sm:$0xff]  ;;  %v774_v39 = vld [vmem:[%s14342_s26 + $0x420] sm:$0xff] }
  0x4b   : > { %8458 = vmatprep.subr.bf16.mxu0 %v8457_v38  ;;  %v8509_v38 = vpack.c.bf16 %v791_v31, %v790_v30  ;;  %v775_v40 = vld [vmem:[%s14342_s26 + $0x428] sm:$0xff]  ;;  %v806_v41 = vld [vmem:[%s14342_s26 + $0x520] sm:$0xff]  ;;  %v792_v44 = vld [vmem:[%s14342_s26 + $0x4b0] sm:$0xff] }
  0x4c   : > { %8488 = vmatpush3.bf16.msra.mxu1 %v8487_v37  ;;  %v8539_v37 = vpack.c.bf16 %v805_v29, %v804_v27  ;;  %v807_v43 = vld [vmem:[%s14342_s26 + $0x528] sm:$0xff]  ;;  %v793_v45 = vld [vmem:[%s14342_s26 + $0x4b8] sm:$0xff]  ;;  %v824_v46 = vld [vmem:[%s14342_s26 + $0x5b0] sm:$0xff] }
  0x4d   : > { %8490 = vmatprep.subr.bf16.mxu1 %v8489_v42  ;;  %v8541_v42 = vpack.c.bf16 %v823_v33, %v822_v32  ;;  %v825_v47 = vld [vmem:[%s14342_s26 + $0x5b8] sm:$0xff]  ;;  %v776_v51 = vld [vmem:[%s14342_s26 + $0x430] sm:$0xff]  ;;  %v794_v56 = vld [vmem:[%s14342_s26 + $0x4c0] sm:$0xff] }
  0x4e   : > { %8460 = vmatpush3.bf16.msra.mxu0 %v8459_v48  ;;  %v8511_v48 = vpack.c.bf16 %v775_v40, %v774_v39  ;;  %v777_v52 = vld [vmem:[%s14342_s26 + $0x438] sm:$0xff]  ;;  %v808_v53 = vld [vmem:[%s14342_s26 + $0x530] sm:$0xff]  ;;  %v795_v57 = vld [vmem:[%s14342_s26 + $0x4c8] sm:$0xff] }
  0x4f   : > { %8462 = vmatprep.subr.bf16.mxu0 %v8461_v50  ;;  %v8513_v50 = vpack.c.bf16 %v793_v45, %v792_v44  ;;  %v809_v55 = vld [vmem:[%s14342_s26 + $0x538] sm:$0xff]  ;;  %v826_v58 = vld [vmem:[%s14342_s26 + $0x5c0] sm:$0xff]  ;;  %v827_v59 = vld [vmem:[%s14342_s26 + $0x5c8] sm:$0xff] }
  0x50   : > { %8492 = vmatpush3.bf16.msra.mxu1 %v8491_v49  ;;  %v8543_v49 = vpack.c.bf16 %v807_v43, %v806_v41  ;;  %v778_v63 = vld [vmem:[%s14342_s26 + $0x440] sm:$0xff]  ;;  %v779_v0 = vld [vmem:[%s14342_s26 + $0x448] sm:$0xff]  ;;  %v796_v4 = vld [vmem:[%s14342_s26 + $0x4d0] sm:$0xff] }
  0x51   : > { %8494 = vmatprep.subr.bf16.mxu1 %v8493_v54  ;;  %v8545_v54 = vpack.c.bf16 %v825_v47, %v824_v46  ;;  %v810_v1 = vld [vmem:[%s14342_s26 + $0x540] sm:$0xff]  ;;  %v811_v3 = vld [vmem:[%s14342_s26 + $0x548] sm:$0xff]  ;;  %v797_v5 = vld [vmem:[%s14342_s26 + $0x4d8] sm:$0xff] }
  0x52   : > { %8464 = vmatpush3.bf16.msra.mxu0 %v8463_v60  ;;  %v8515_v60 = vpack.c.bf16 %v777_v52, %v776_v51  ;;  %v828_v6 = vld [vmem:[%s14342_s26 + $0x5d0] sm:$0xff]  ;;  %v829_v7 = vld [vmem:[%s14342_s26 + $0x5d8] sm:$0xff]  ;;  %v798_v16 = vld [vmem:[%s14342_s26 + $0x4e0] sm:$0xff] }
  0x53   : > { %8466 = vmatprep.subr.bf16.mxu0 %v8465_v62  ;;  %v8517_v62 = vpack.c.bf16 %v795_v57, %v794_v56  ;;  %v780_v11 = vld [vmem:[%s14342_s26 + $0x450] sm:$0xff]  ;;  %v781_v12 = vld [vmem:[%s14342_s26 + $0x458] sm:$0xff]  ;;  %v799_v17 = vld [vmem:[%s14342_s26 + $0x4e8] sm:$0xff] }
  0x54   : > { %8496 = vmatpush3.bf16.msra.mxu1 %v8495_v61  ;;  %v8547_v61 = vpack.c.bf16 %v809_v55, %v808_v53  ;;  %v812_v13 = vld [vmem:[%s14342_s26 + $0x550] sm:$0xff]  ;;  %v813_v15 = vld [vmem:[%s14342_s26 + $0x558] sm:$0xff]  ;;  %v830_v18 = vld [vmem:[%s14342_s26 + $0x5e0] sm:$0xff] }
  0x55   : > { %8498 = vmatprep.subr.bf16.mxu1 %v8497_v2  ;;  %v8549_v2 = vpack.c.bf16 %v827_v59, %v826_v58  ;;  %v831_v19 = vld [vmem:[%s14342_s26 + $0x5e8] sm:$0xff]  ;;  %v814_v25 = vld [vmem:[%s14342_s26 + $0x560] sm:$0xff]  ;;  %v801_v29 = vld [vmem:[%s14342_s26 + $0x4f8] sm:$0xff] }
  0x56   : > { %8468 = vmatpush3.bf16.msra.mxu0 %v8467_v8  ;;  %v8519_v8 = vpack.c.bf16 %v779_v0, %v778_v63  ;;  %v8557_v26 = vpack.c.bf16 %v831_v19, %v830_v18  ;;  %v815_v27 = vld [vmem:[%s14342_s26 + $0x568] sm:$0xff]  ;;  %v832_v30 = vld [vmem:[%s14342_s26 + $0x5f0] sm:$0xff]  ;;  %v833_v31 = vld [vmem:[%s14342_s26 + $0x5f8] sm:$0xff] }
  0x57   : > { %8502 = vmatprep.subr.bf16.mxu0 %v8501_v10  ;;  %v8521_v10 = vpack.c.bf16 %v797_v5, %v796_v4  ;;  %v8559_v33 = vpack.c.bf16 %v815_v27, %v814_v25  ;;  %v817_v39 = vld [vmem:[%s14342_s26 + $0x578] sm:$0xff]  ;;  %v850_v40 = vld [vmem:[%s14342_s26 + $0x680] sm:$0xff]  ;;  %v851_v41 = vld [vmem:[%s14342_s26 + $0x688] sm:$0xff] }
  0x58   : > { %8500 = vmatpush3.bf16.msra.mxu1 %v8499_v9  ;;  %v8551_v9 = vpack.c.bf16 %v811_v3, %v810_v1  ;;  %v883_v43 = vld [vmem:[%s14342_s26 + $0x788] sm:$0xff]  ;;  %v8565_v46 = vpack.c.bf16 %v851_v41, %v850_v40  ;;  %v834_v47 = vld [vmem:[%s14342_s26 + $0x600] sm:$0xff]  ;;  %v852_v52 = vld [vmem:[%s14342_s26 + $0x690] sm:$0xff] }
  0x59   : > { %8534 = vmatprep.subr.bf16.mxu1 %v8533_v14  ;;  %1360 = vmatmul.mubr.f32.vlgmr.msra.gmra.mrb[2].mxu0 %v614_v20  ;;  %v8553_v14 = vpack.c.bf16 %v829_v7, %v828_v6  ;;  %v8523_v20 = vpack.c.bf16 %v781_v12, %v780_v11  ;;  %v867_v51 = vld [vmem:[%s14342_s26 + $0x708] sm:$0xff]  ;;  %v853_v53 = vld [vmem:[%s14342_s26 + $0x698] sm:$0xff]  ;;  %v618_v56 = vld [vmem:[%s10086_s30 + $0x40] sm:$0xff] }
  0x5a   : > { %8504 = vmatpush3.bf16.msra.mxu0 %v8503_v21  ;;  %1499 = vmatprep.mubr.f32.mxu0 %v619_v34  ;;  %v8555_v21 = vpack.c.bf16 %v813_v15, %v812_v13  ;;  %v885_v55 = vld [vmem:[%s14342_s26 + $0x798] sm:$0xff]  ;;  %v620_v58 = vld [vmem:[%s10086_s30 + $0x50] sm:$0xff]  ;;  %v855_v3 = vld [vmem:[%s14342_s26 + $0x6a8] sm:$0xff] }
  0x5b   : > { %1430 = vmatmul.mubr.f32.vlgmr.msra.gmra.mrb[2].mxu1 %v616_v22  ;;  %8506 = vmatprep.subr.bf16.mxu0 %v8505_v24  ;;  %v8525_v22 = vpack.c.bf16 %v799_v17, %v798_v16  ;;  %v783_v24 = vld [vmem:[%s14342_s26 + $0x468] sm:$0xff]  ;;  %v868_v63 = vld [vmem:[%s14342_s26 + $0x710] sm:$0xff]  ;;  %v869_v1 = vld [vmem:[%s14342_s26 + $0x718] sm:$0xff] }
  0x5c   : > { %8536 = vmatpush3.bf16.msra.mxu1 %v8535_v23  ;;  %1569 = vmatprep.mubr.f32.mxu1 %v621_v36  ;;  %v782_v23 = vld [vmem:[%s14342_s26 + $0x460] sm:$0xff]  ;;  %v785_v36 = vld [vmem:[%s14342_s26 + $0x478] sm:$0xff]  ;;  %v887_v5 = vld [vmem:[%s14342_s26 + $0x7a8] sm:$0xff] }
  0x5d   : > { %8538 = vmatprep.subr.bf16.mxu1 %v8537_v28  ;;  %v800_v28 = vld [vmem:[%s14342_s26 + $0x4f0] sm:$0xff]  ;;  %v8527_v32 = vpack.c.bf16 %v783_v24, %v782_v23  ;;  %v886_v4 = vld [vmem:[%s14342_s26 + $0x7a0] sm:$0xff]  ;;  %v623_v6 = vld [vmem:[%s10086_s30 + $0x68] sm:$0xff] }
  0x5e   : > { %8508 = vmatpush3.bf16.msra.mxu0 %v8507_v35  ;;  %v8529_v34 = vpack.c.bf16 %v801_v29, %v800_v28  ;;  %v784_v35 = vld [vmem:[%s14342_s26 + $0x470] sm:$0xff]  ;;  %v838_v11 = vld [vmem:[%s14342_s26 + $0x620] sm:$0xff]  ;;  %v839_v12 = vld [vmem:[%s14342_s26 + $0x628] sm:$0xff] }
  0x5f   : > { %8510 = vmatprep.subr.bf16.mxu0 %v8509_v38  ;;  %v8561_v38 = vpack.c.bf16 %v833_v31, %v832_v30  ;;  %v8531_v44 = vpack.c.bf16 %v785_v36, %v784_v35  ;;  %v870_v13 = vld [vmem:[%s14342_s26 + $0x720] sm:$0xff]  ;;  %v871_v15 = vld [vmem:[%s14342_s26 + $0x728] sm:$0xff]  ;;  %v856_v16 = vld [vmem:[%s14342_s26 + $0x6b0] sm:$0xff] }
  0x60   : > { %8540 = vmatpush3.bf16.msra.mxu1 %v8539_v37  ;;  %v816_v37 = vld [vmem:[%s14342_s26 + $0x570] sm:$0xff]  ;;  %v857_v17 = vld [vmem:[%s14342_s26 + $0x6b8] sm:$0xff]  ;;  %v858_v28 = vld [vmem:[%s14342_s26 + $0x6c0] sm:$0xff] }
  0x61   : > { %8542 = vmatprep.subr.bf16.mxu1 %v8541_v42  ;;  %v882_v42 = vld [vmem:[%s14342_s26 + $0x780] sm:$0xff]  ;;  %v8563_v45 = vpack.c.bf16 %v817_v39, %v816_v37  ;;  %v888_v18 = vld [vmem:[%s14342_s26 + $0x7b0] sm:$0xff]  ;;  %v889_v19 = vld [vmem:[%s14342_s26 + $0x7b8] sm:$0xff] }
  0x62   : > { %8512 = vmatpush3.bf16.msra.mxu0 %v8511_v48  ;;  %v835_v48 = vld [vmem:[%s14342_s26 + $0x608] sm:$0xff]  ;;  %v840_v23 = vld [vmem:[%s14342_s26 + $0x630] sm:$0xff]  ;;  %v841_v24 = vld [vmem:[%s14342_s26 + $0x638] sm:$0xff] }
  0x63   : > { %8514 = vmatprep.subr.bf16.mxu0 %v8513_v50  ;;  %v8597_v50 = vpack.c.bf16 %v883_v43, %v882_v42  ;;  %v8567_v57 = vpack.c.bf16 %v835_v48, %v834_v47  ;;  %v872_v25 = vld [vmem:[%s14342_s26 + $0x730] sm:$0xff]  ;;  %v873_v27 = vld [vmem:[%s14342_s26 + $0x738] sm:$0xff]  ;;  %v859_v29 = vld [vmem:[%s14342_s26 + $0x6c8] sm:$0xff] }
  0x64   : > { %8544 = vmatpush3.bf16.msra.mxu1 %v8543_v49  ;;  %v866_v49 = vld [vmem:[%s14342_s26 + $0x700] sm:$0xff]  ;;  %v891_v31 = vld [vmem:[%s14342_s26 + $0x7c8] sm:$0xff]  ;;  %v860_v40 = vld [vmem:[%s14342_s26 + $0x6d0] sm:$0xff] }
  0x65   : > { %8546 = vmatprep.subr.bf16.mxu1 %v8545_v54  ;;  %v884_v54 = vld [vmem:[%s14342_s26 + $0x790] sm:$0xff]  ;;  %v8599_v59 = vpack.c.bf16 %v867_v51, %v866_v49  ;;  %v890_v30 = vld [vmem:[%s14342_s26 + $0x7c0] sm:$0xff]  ;;  %v843_v36 = vld [vmem:[%s14342_s26 + $0x648] sm:$0xff] }
  0x66   : > { %8516 = vmatpush3.bf16.msra.mxu0 %v8515_v60  ;;  %v8569_v60 = vpack.c.bf16 %v853_v53, %v852_v52  ;;  %v8601_v0 = vpack.c.bf16 %v885_v55, %v884_v54  ;;  %v842_v35 = vld [vmem:[%s14342_s26 + $0x640] sm:$0xff]  ;;  %v875_v39 = vld [vmem:[%s14342_s26 + $0x748] sm:$0xff]  ;;  %v861_v41 = vld [vmem:[%s14342_s26 + $0x6d8] sm:$0xff] }
  0x67   : > { %8518 = vmatprep.subr.bf16.mxu0 %v8517_v62  ;;  %v837_v62 = vld [vmem:[%s14342_s26 + $0x618] sm:$0xff]  ;;  %v874_v37 = vld [vmem:[%s14342_s26 + $0x740] sm:$0xff]  ;;  %v892_v42 = vld [vmem:[%s14342_s26 + $0x7d0] sm:$0xff] }
  0x68   : > { %8548 = vmatpush3.bf16.msra.mxu1 %v8547_v61  ;;  %v836_v61 = vld [vmem:[%s14342_s26 + $0x610] sm:$0xff]  ;;  %v893_v43 = vld [vmem:[%s14342_s26 + $0x7d8] sm:$0xff]  ;;  %v862_v52 = vld [vmem:[%s14342_s26 + $0x6e0] sm:$0xff] }
  0x69   : > { %8550 = vmatprep.subr.bf16.mxu1 %v8549_v2  ;;  %v854_v2 = vld [vmem:[%s14342_s26 + $0x6a0] sm:$0xff]  ;;  %v8571_v7 = vpack.c.bf16 %v837_v62, %v836_v61  ;;  %v844_v47 = vld [vmem:[%s14342_s26 + $0x650] sm:$0xff]  ;;  %v845_v48 = vld [vmem:[%s14342_s26 + $0x658] sm:$0xff] }
  0x6a   : > { %8520 = vmatpush3.bf16.msra.mxu0 %v8519_v8  ;;  %v625_v8 = vld [vmem:[%s10086_s30 + $0x78] sm:$0xff]  ;;  %v876_v49 = vld [vmem:[%s14342_s26 + $0x750] sm:$0xff]  ;;  %v863_v53 = vld [vmem:[%s14342_s26 + $0x6e8] sm:$0xff] }
  0x6b   : > { %8522 = vmatprep.subr.bf16.mxu0 %v8521_v10  ;;  %v8573_v10 = vpack.c.bf16 %v855_v3, %v854_v2  ;;  %v877_v51 = vld [vmem:[%s14342_s26 + $0x758] sm:$0xff]  ;;  %v894_v54 = vld [vmem:[%s14342_s26 + $0x7e0] sm:$0xff]  ;;  %v895_v55 = vld [vmem:[%s14342_s26 + $0x7e8] sm:$0xff] }
  0x6c   : > { %8552 = vmatpush3.bf16.msra.mxu1 %v8551_v9  ;;  %v8603_v9 = vpack.c.bf16 %v869_v1, %v868_v63  ;;  %v878_v61 = vld [vmem:[%s14342_s26 + $0x760] sm:$0xff]  ;;  %v8621_v62 = vpack.c.bf16 %v895_v55, %v894_v54  ;;  %v879_v63 = vld [vmem:[%s14342_s26 + $0x768] sm:$0xff]  ;;  %v865_v1 = vld [vmem:[%s14342_s26 + $0x6f8] sm:$0xff] }
  0x6d   : > { %8554 = vmatprep.subr.bf16.mxu1 %v8553_v14  ;;  %v8605_v14 = vpack.c.bf16 %v887_v5, %v886_v4  ;;  %v896_v2 = vld [vmem:[%s14342_s26 + $0x7f0] sm:$0xff]  ;;  %v897_v3 = vld [vmem:[%s14342_s26 + $0x7f8] sm:$0xff]  ;;  %v8623_v5 = vpack.c.bf16 %v879_v63, %v878_v61 }
  0x6e   : > { %8524 = vmatpush3.bf16.msra.mxu0 %v8523_v20  ;;  %v8575_v20 = vpack.c.bf16 %v839_v12, %v838_v11  ;;  %v881_v11 = vld [vmem:[%s14342_s26 + $0x778] sm:$0xff]  ;;  %v914_v12 = vld [vmem:[%s14342_s26 + $0x880] sm:$0xff]  ;;  %v952_v54 = vld [vmem:[%s14342_s26 + $0x9b0] sm:$0xff] }
  0x6f   : > { %8526 = vmatprep.subr.bf16.mxu0 %v8525_v22  ;;  %v8577_v22 = vpack.c.bf16 %v857_v17, %v856_v16  ;;  %v953_v55 = vld [vmem:[%s14342_s26 + $0x9b8] sm:$0xff]  ;;  %v936_v61 = vld [vmem:[%s14342_s26 + $0x930] sm:$0xff] }
  0x70   : > { %8556 = vmatpush3.bf16.msra.mxu1 %v8555_v21  ;;  %v8607_v21 = vpack.c.bf16 %v871_v15, %v870_v13  ;;  %v915_v13 = vld [vmem:[%s14342_s26 + $0x888] sm:$0xff]  ;;  %v937_v63 = vld [vmem:[%s14342_s26 + $0x938] sm:$0xff] }
  0x71   : > { %8558 = vmatprep.subr.bf16.mxu1 %v8557_v26  ;;  %v8609_v26 = vpack.c.bf16 %v889_v19, %v888_v18  ;;  %v947_v15 = vld [vmem:[%s14342_s26 + $0x988] sm:$0xff]  ;;  %v8629_v18 = vpack.c.bf16 %v915_v13, %v914_v12  ;;  %v898_v19 = vld [vmem:[%s14342_s26 + $0x800] sm:$0xff]  ;;  %v924_v12 = vld [vmem:[%s14342_s26 + $0x8d0] sm:$0xff] }
  0x72   : > { %8528 = vmatpush3.bf16.msra.mxu0 %v8527_v32  ;;  %v8579_v32 = vpack.c.bf16 %v841_v24, %v840_v23  ;;  %v931_v23 = vld [vmem:[%s14342_s26 + $0x908] sm:$0xff]  ;;  %v916_v24 = vld [vmem:[%s14342_s26 + $0x890] sm:$0xff]  ;;  %v925_v13 = vld [vmem:[%s14342_s26 + $0x8d8] sm:$0xff] }
  0x73   : > { %8530 = vmatprep.subr.bf16.mxu0 %v8529_v34  ;;  %v8581_v34 = vpack.c.bf16 %v859_v29, %v858_v28  ;;  %v622_v28 = vld [vmem:[%s10086_s30 + $0x60] sm:$0xff] }
  0x74   : > { %8560 = vmatpush3.bf16.msra.mxu1 %v8559_v33  ;;  %v8611_v33 = vpack.c.bf16 %v873_v27, %v872_v25  ;;  %v917_v25 = vld [vmem:[%s14342_s26 + $0x898] sm:$0xff] }
  0x75   : > { %8562 = vmatprep.subr.bf16.mxu1 %v8561_v38  ;;  %v8613_v38 = vpack.c.bf16 %v891_v31, %v890_v30  ;;  %v949_v27 = vld [vmem:[%s14342_s26 + $0x998] sm:$0xff]  ;;  %v624_v30 = vld [vmem:[%s10086_s30 + $0x70] sm:$0xff] }
  0x76   : > { %8532 = vmatpush3.bf16.msra.mxu0 %v8531_v44  ;;  %v8583_v44 = vpack.c.bf16 %v843_v36, %v842_v35  ;;  %v932_v35 = vld [vmem:[%s14342_s26 + $0x910] sm:$0xff] }
  0x77   : > { %8566 = vmatprep.subr.bf16.mxu0 %v8565_v46  ;;  %v8585_v46 = vpack.c.bf16 %v861_v41, %v860_v40  ;;  %v950_v40 = vld [vmem:[%s14342_s26 + $0x9a0] sm:$0xff]  ;;  %v951_v41 = vld [vmem:[%s14342_s26 + $0x9a8] sm:$0xff] }
  0x78   : > { %8564 = vmatpush3.bf16.msra.mxu1 %v8563_v45  ;;  %v8615_v45 = vpack.c.bf16 %v875_v39, %v874_v37  ;;  %v933_v37 = vld [vmem:[%s14342_s26 + $0x918] sm:$0xff]  ;;  %v919_v39 = vld [vmem:[%s14342_s26 + $0x8a8] sm:$0xff] }
  0x79   : > { %8598 = vmatprep.subr.bf16.mxu1 %v8597_v50  ;;  %1500 = vmatmul.mubr.f32.vlgmr.msra.gmra.mrb[4].mxu0 %v618_v56  ;;  %v8617_v50 = vpack.c.bf16 %v893_v43, %v892_v42  ;;  %v8587_v56 = vpack.c.bf16 %v845_v48, %v844_v47  ;;  %v627_v42 = vld [vmem:[%s10086_s30 + $0x88] sm:$0xff]  ;;  %v902_v47 = vld [vmem:[%s14342_s26 + $0x820] sm:$0xff] }
  0x7a   : > { %8568 = vmatpush3.bf16.msra.mxu0 %v8567_v57  ;;  %1639 = vmatprep.mubr.f32.mxu0 %v623_v6  ;;  %v8619_v57 = vpack.c.bf16 %v877_v51, %v876_v49  ;;  %v903_v48 = vld [vmem:[%s14342_s26 + $0x828] sm:$0xff]  ;;  %v934_v49 = vld [vmem:[%s14342_s26 + $0x920] sm:$0xff] }
  0x7b   : > { %1570 = vmatmul.mubr.f32.vlgmr.msra.gmra.mrb[4].mxu1 %v620_v58  ;;  %8570 = vmatprep.subr.bf16.mxu0 %v8569_v60  ;;  %v8589_v58 = vpack.c.bf16 %v863_v53, %v862_v52  ;;  %v847_v60 = vld [vmem:[%s14342_s26 + $0x668] sm:$0xff]  ;;  %v920_v52 = vld [vmem:[%s14342_s26 + $0x8b0] sm:$0xff]  ;;  %v921_v53 = vld [vmem:[%s14342_s26 + $0x8b8] sm:$0xff] }
  0x7c   : > { %8600 = vmatpush3.bf16.msra.mxu1 %v8599_v59  ;;  %1709 = vmatprep.mubr.f32.mxu1 %v625_v8  ;;  %v846_v59 = vld [vmem:[%s14342_s26 + $0x660] sm:$0xff]  ;;  %v849_v8 = vld [vmem:[%s14342_s26 + $0x678] sm:$0xff]  ;;  %v935_v51 = vld [vmem:[%s14342_s26 + $0x928] sm:$0xff] }
  0x7d   : > { %8602 = vmatprep.subr.bf16.mxu1 %v8601_v0  ;;  %v864_v0 = vld [vmem:[%s14342_s26 + $0x6f0] sm:$0xff]  ;;  %v8591_v4 = vpack.c.bf16 %v847_v60, %v846_v59  ;;  %v905_v60 = vld [vmem:[%s14342_s26 + $0x838] sm:$0xff] }
  0x7e   : > { %8572 = vmatpush3.bf16.msra.mxu0 %v8571_v7  ;;  %v8593_v6 = vpack.c.bf16 %v865_v1, %v864_v0  ;;  %v848_v7 = vld [vmem:[%s14342_s26 + $0x670] sm:$0xff]  ;;  %v922_v0 = vld [vmem:[%s14342_s26 + $0x8c0] sm:$0xff]  ;;  %v923_v1 = vld [vmem:[%s14342_s26 + $0x8c8] sm:$0xff] }
  0x7f   : > { %8574 = vmatprep.subr.bf16.mxu0 %v8573_v10  ;;  %v8625_v10 = vpack.c.bf16 %v897_v3, %v896_v2  ;;  %v8595_v16 = vpack.c.bf16 %v849_v8, %v848_v7  ;;  %v904_v59 = vld [vmem:[%s14342_s26 + $0x830] sm:$0xff]  ;;  %v954_v2 = vld [vmem:[%s14342_s26 + $0x9c0] sm:$0xff]  ;;  %v955_v3 = vld [vmem:[%s14342_s26 + $0x9c8] sm:$0xff] }
  0x80   : > { %8604 = vmatpush3.bf16.msra.mxu1 %v8603_v9  ;;  %v880_v9 = vld [vmem:[%s14342_s26 + $0x770] sm:$0xff]  ;;  %v906_v7 = vld [vmem:[%s14342_s26 + $0x840] sm:$0xff]  ;;  %v907_v8 = vld [vmem:[%s14342_s26 + $0x848] sm:$0xff] }
  0x81   : > { %8606 = vmatprep.subr.bf16.mxu1 %v8605_v14  ;;  %v946_v14 = vld [vmem:[%s14342_s26 + $0x980] sm:$0xff]  ;;  %v8627_v17 = vpack.c.bf16 %v881_v11, %v880_v9  ;;  %v939_v11 = vld [vmem:[%s14342_s26 + $0x948] sm:$0xff] }
  0x82   : > { %8576 = vmatpush3.bf16.msra.mxu0 %v8575_v20  ;;  %v899_v20 = vld [vmem:[%s14342_s26 + $0x808] sm:$0xff]  ;;  %v938_v9 = vld [vmem:[%s14342_s26 + $0x940] sm:$0xff] }
  0x83   : > { %8578 = vmatprep.subr.bf16.mxu0 %v8577_v22  ;;  %v8661_v22 = vpack.c.bf16 %v947_v15, %v946_v14  ;;  %v8631_v29 = vpack.c.bf16 %v899_v20, %v898_v19  ;;  %v956_v14 = vld [vmem:[%s14342_s26 + $0x9d0] sm:$0xff]  ;;  %v957_v15 = vld [vmem:[%s14342_s26 + $0x9d8] sm:$0xff] }
  0x84   : > { %8608 = vmatpush3.bf16.msra.mxu1 %v8607_v21  ;;  %v930_v21 = vld [vmem:[%s14342_s26 + $0x900] sm:$0xff]  ;;  %v908_v19 = vld [vmem:[%s14342_s26 + $0x850] sm:$0xff]  ;;  %v909_v20 = vld [vmem:[%s14342_s26 + $0x858] sm:$0xff] }
  0x85   : > { %8610 = vmatprep.subr.bf16.mxu1 %v8609_v26  ;;  %v948_v26 = vld [vmem:[%s14342_s26 + $0x990] sm:$0xff]  ;;  %v8663_v31 = vpack.c.bf16 %v931_v23, %v930_v21  ;;  %v941_v23 = vld [vmem:[%s14342_s26 + $0x958] sm:$0xff] }
  0x86   : > { %8580 = vmatpush3.bf16.msra.mxu0 %v8579_v32  ;;  %v8633_v32 = vpack.c.bf16 %v917_v25, %v916_v24  ;;  %v8665_v36 = vpack.c.bf16 %v949_v27, %v948_v26  ;;  %v940_v21 = vld [vmem:[%s14342_s26 + $0x950] sm:$0xff]  ;;  %v926_v24 = vld [vmem:[%s14342_s26 + $0x8e0] sm:$0xff]  ;;  %v927_v25 = vld [vmem:[%s14342_s26 + $0x8e8] sm:$0xff] }
  0x87   : > { %8582 = vmatprep.subr.bf16.mxu0 %v8581_v34  ;;  %v901_v34 = vld [vmem:[%s14342_s26 + $0x818] sm:$0xff]  ;;  %v958_v26 = vld [vmem:[%s14342_s26 + $0x9e0] sm:$0xff]  ;;  %v959_v27 = vld [vmem:[%s14342_s26 + $0x9e8] sm:$0xff] }
  0x88   : > { %8612 = vmatpush3.bf16.msra.mxu1 %v8611_v33  ;;  %v900_v33 = vld [vmem:[%s14342_s26 + $0x810] sm:$0xff] }
  0x89   : > { %8614 = vmatprep.subr.bf16.mxu1 %v8613_v38  ;;  %v918_v38 = vld [vmem:[%s14342_s26 + $0x8a0] sm:$0xff]  ;;  %v8635_v43 = vpack.c.bf16 %v901_v34, %v900_v33  ;;  %v8685_v34 = vpack.c.bf16 %v959_v27, %v958_v26  ;;  %v1016_v26 = vld [vmem:[%s14342_s26 + $0xbb0] sm:$0xff]  ;;  %v1017_v27 = vld [vmem:[%s14342_s26 + $0xbb8] sm:$0xff] }
  0x8a   : > { %8584 = vmatpush3.bf16.msra.mxu0 %v8583_v44  ;;  %v629_v44 = vld [vmem:[%s10086_s30 + $0x98] sm:$0xff]  ;;  %v942_v33 = vld [vmem:[%s14342_s26 + $0x960] sm:$0xff] }
  0x8b   : > { %8586 = vmatprep.subr.bf16.mxu0 %v8585_v46  ;;  %v8637_v46 = vpack.c.bf16 %v919_v39, %v918_v38  ;;  %v960_v38 = vld [vmem:[%s14342_s26 + $0x9f0] sm:$0xff]  ;;  %v961_v39 = vld [vmem:[%s14342_s26 + $0x9f8] sm:$0xff] }
  0x8c   : > { %8616 = vmatpush3.bf16.msra.mxu1 %v8615_v45  ;;  %v8667_v45 = vpack.c.bf16 %v933_v37, %v932_v35  ;;  %v943_v35 = vld [vmem:[%s14342_s26 + $0x968] sm:$0xff]  ;;  %v929_v37 = vld [vmem:[%s14342_s26 + $0x8f8] sm:$0xff] }
  0x8d   : > { %8618 = vmatprep.subr.bf16.mxu1 %v8617_v50  ;;  %v8669_v50 = vpack.c.bf16 %v951_v41, %v950_v40  ;;  %v8687_v41 = vpack.c.bf16 %v943_v35, %v942_v33  ;;  %v1000_v33 = vld [vmem:[%s14342_s26 + $0xb30] sm:$0xff]  ;;  %v1001_v35 = vld [vmem:[%s14342_s26 + $0xb38] sm:$0xff] }
  0x8e   : > { %8588 = vmatpush3.bf16.msra.mxu0 %v8587_v56  ;;  %v8639_v56 = vpack.c.bf16 %v903_v48, %v902_v47  ;;  %v945_v47 = vld [vmem:[%s14342_s26 + $0x978] sm:$0xff]  ;;  %v978_v48 = vld [vmem:[%s14342_s26 + $0xa80] sm:$0xff] }
  0x8f   : > { %8590 = vmatprep.subr.bf16.mxu0 %v8589_v58  ;;  %v8641_v58 = vpack.c.bf16 %v921_v53, %v920_v52 }
  0x90   : > { %8620 = vmatpush3.bf16.msra.mxu1 %v8619_v57  ;;  %v8671_v57 = vpack.c.bf16 %v935_v51, %v934_v49  ;;  %v979_v49 = vld [vmem:[%s14342_s26 + $0xa88] sm:$0xff] }
  0x91   : > { %8622 = vmatprep.subr.bf16.mxu1 %v8621_v62  ;;  %v8673_v62 = vpack.c.bf16 %v953_v55, %v952_v54  ;;  %v1011_v51 = vld [vmem:[%s14342_s26 + $0xb88] sm:$0xff]  ;;  %v8693_v54 = vpack.c.bf16 %v979_v49, %v978_v48  ;;  %v962_v55 = vld [vmem:[%s14342_s26 + $0xa00] sm:$0xff]  ;;  %v988_v48 = vld [vmem:[%s14342_s26 + $0xad0] sm:$0xff] }
  0x92   : > { %8592 = vmatpush3.bf16.msra.mxu0 %v8591_v4  ;;  %v8643_v4 = vpack.c.bf16 %v905_v60, %v904_v59  ;;  %v995_v59 = vld [vmem:[%s14342_s26 + $0xb08] sm:$0xff]  ;;  %v980_v60 = vld [vmem:[%s14342_s26 + $0xa90] sm:$0xff]  ;;  %v989_v49 = vld [vmem:[%s14342_s26 + $0xad8] sm:$0xff] }
  0x93   : > { %8594 = vmatprep.subr.bf16.mxu0 %v8593_v6  ;;  %v8645_v6 = vpack.c.bf16 %v923_v1, %v922_v0  ;;  %v626_v0 = vld [vmem:[%s10086_s30 + $0x80] sm:$0xff] }
  0x94   : > { %8624 = vmatpush3.bf16.msra.mxu1 %v8623_v5  ;;  %v8675_v5 = vpack.c.bf16 %v937_v63, %v936_v61  ;;  %v981_v61 = vld [vmem:[%s14342_s26 + $0xa98] sm:$0xff] }
  0x95   : > { %8626 = vmatprep.subr.bf16.mxu1 %v8625_v10  ;;  %v8677_v10 = vpack.c.bf16 %v955_v3, %v954_v2  ;;  %v1013_v63 = vld [vmem:[%s14342_s26 + $0xb98] sm:$0xff]  ;;  %v628_v2 = vld [vmem:[%s10086_s30 + $0x90] sm:$0xff] }
  0x96   : > { %8596 = vmatpush3.bf16.msra.mxu0 %v8595_v16  ;;  %v8647_v16 = vpack.c.bf16 %v907_v8, %v906_v7  ;;  %v996_v7 = vld [vmem:[%s14342_s26 + $0xb10] sm:$0xff] }
  0x97   : > { %8630 = vmatprep.subr.bf16.mxu0 %v8629_v18  ;;  %v8649_v18 = vpack.c.bf16 %v925_v13, %v924_v12  ;;  %v1014_v12 = vld [vmem:[%s14342_s26 + $0xba0] sm:$0xff]  ;;  %v1015_v13 = vld [vmem:[%s14342_s26 + $0xba8] sm:$0xff] }
  0x98   : > { %8628 = vmatpush3.bf16.msra.mxu1 %v8627_v17  ;;  %v8679_v17 = vpack.c.bf16 %v939_v11, %v938_v9  ;;  %v997_v9 = vld [vmem:[%s14342_s26 + $0xb18] sm:$0xff]  ;;  %v983_v11 = vld [vmem:[%s14342_s26 + $0xaa8] sm:$0xff] }
  0x99   : > { %8662 = vmatprep.subr.bf16.mxu1 %v8661_v22  ;;  %1640 = vmatmul.mubr.f32.vlgmr.msra.gmra.mrb[6].mxu0 %v622_v28  ;;  %v8681_v22 = vpack.c.bf16 %v957_v15, %v956_v14  ;;  %v8651_v28 = vpack.c.bf16 %v909_v20, %v908_v19  ;;  %v631_v14 = vld [vmem:[%s10086_s30 + $0xa8] sm:$0xff]  ;;  %v966_v19 = vld [vmem:[%s14342_s26 + $0xa20] sm:$0xff] }
  0x9a   : > { %8632 = vmatpush3.bf16.msra.mxu0 %v8631_v29  ;;  %1779 = vmatprep.mubr.f32.mxu0 %v627_v42  ;;  %v8683_v29 = vpack.c.bf16 %v941_v23, %v940_v21  ;;  %v967_v20 = vld [vmem:[%s14342_s26 + $0xa28] sm:$0xff]  ;;  %v998_v21 = vld [vmem:[%s14342_s26 + $0xb20] sm:$0xff] }
  0x9b   : > { %1710 = vmatmul.mubr.f32.vlgmr.msra.gmra.mrb[6].mxu1 %v624_v30  ;;  %8634 = vmatprep.subr.bf16.mxu0 %v8633_v32  ;;  %v8653_v30 = vpack.c.bf16 %v927_v25, %v926_v24  ;;  %v911_v32 = vld [vmem:[%s14342_s26 + $0x868] sm:$0xff]  ;;  %v984_v24 = vld [vmem:[%s14342_s26 + $0xab0] sm:$0xff]  ;;  %v985_v25 = vld [vmem:[%s14342_s26 + $0xab8] sm:$0xff] }
  0x9c   : > { %8664 = vmatpush3.bf16.msra.mxu1 %v8663_v31  ;;  %1849 = vmatprep.mubr.f32.mxu1 %v629_v44  ;;  %v910_v31 = vld [vmem:[%s14342_s26 + $0x860] sm:$0xff]  ;;  %v913_v44 = vld [vmem:[%s14342_s26 + $0x878] sm:$0xff]  ;;  %v999_v23 = vld [vmem:[%s14342_s26 + $0xb28] sm:$0xff] }
  0x9d   : > { %8666 = vmatprep.subr.bf16.mxu1 %v8665_v36  ;;  %v928_v36 = vld [vmem:[%s14342_s26 + $0x8f0] sm:$0xff]  ;;  %v8655_v40 = vpack.c.bf16 %v911_v32, %v910_v31  ;;  %v969_v32 = vld [vmem:[%s14342_s26 + $0xa38] sm:$0xff] }
  0x9e   : > { %8636 = vmatpush3.bf16.msra.mxu0 %v8635_v43  ;;  %v8657_v42 = vpack.c.bf16 %v929_v37, %v928_v36  ;;  %v912_v43 = vld [vmem:[%s14342_s26 + $0x870] sm:$0xff]  ;;  %v986_v36 = vld [vmem:[%s14342_s26 + $0xac0] sm:$0xff]  ;;  %v987_v37 = vld [vmem:[%s14342_s26 + $0xac8] sm:$0xff] }
  0x9f   : > { %8638 = vmatprep.subr.bf16.mxu0 %v8637_v46  ;;  %v8689_v46 = vpack.c.bf16 %v961_v39, %v960_v38  ;;  %v8659_v52 = vpack.c.bf16 %v913_v44, %v912_v43  ;;  %v968_v31 = vld [vmem:[%s14342_s26 + $0xa30] sm:$0xff]  ;;  %v1018_v38 = vld [vmem:[%s14342_s26 + $0xbc0] sm:$0xff]  ;;  %v1019_v39 = vld [vmem:[%s14342_s26 + $0xbc8] sm:$0xff] }
  0xa0   : > { %8668 = vmatpush3.bf16.msra.mxu1 %v8667_v45  ;;  %v944_v45 = vld [vmem:[%s14342_s26 + $0x970] sm:$0xff]  ;;  %v970_v43 = vld [vmem:[%s14342_s26 + $0xa40] sm:$0xff]  ;;  %v971_v44 = vld [vmem:[%s14342_s26 + $0xa48] sm:$0xff] }
  0xa1   : > { %8670 = vmatprep.subr.bf16.mxu1 %v8669_v50  ;;  %v1010_v50 = vld [vmem:[%s14342_s26 + $0xb80] sm:$0xff]  ;;  %v8691_v53 = vpack.c.bf16 %v945_v47, %v944_v45  ;;  %v1003_v47 = vld [vmem:[%s14342_s26 + $0xb48] sm:$0xff] }
  0xa2   : > { %8640 = vmatpush3.bf16.msra.mxu0 %v8639_v56  ;;  %v963_v56 = vld [vmem:[%s14342_s26 + $0xa08] sm:$0xff]  ;;  %v1002_v45 = vld [vmem:[%s14342_s26 + $0xb40] sm:$0xff] }
  0xa3   : > { %8642 = vmatprep.subr.bf16.mxu0 %v8641_v58  ;;  %v8725_v58 = vpack.c.bf16 %v1011_v51, %v1010_v50  ;;  %v8695_v1 = vpack.c.bf16 %v963_v56, %v962_v55  ;;  %v1020_v50 = vld [vmem:[%s14342_s26 + $0xbd0] sm:$0xff]  ;;  %v1021_v51 = vld [vmem:[%s14342_s26 + $0xbd8] sm:$0xff] }
  0xa4   : > { %8672 = vmatpush3.bf16.msra.mxu1 %v8671_v57  ;;  %v994_v57 = vld [vmem:[%s14342_s26 + $0xb00] sm:$0xff]  ;;  %v972_v55 = vld [vmem:[%s14342_s26 + $0xa50] sm:$0xff]  ;;  %v973_v56 = vld [vmem:[%s14342_s26 + $0xa58] sm:$0xff] }
  0xa5   : > { %8674 = vmatprep.subr.bf16.mxu1 %v8673_v62  ;;  %v1012_v62 = vld [vmem:[%s14342_s26 + $0xb90] sm:$0xff]  ;;  %v8727_v3 = vpack.c.bf16 %v995_v59, %v994_v57  ;;  %v1005_v59 = vld [vmem:[%s14342_s26 + $0xb58] sm:$0xff] }
  0xa6   : > { %8644 = vmatpush3.bf16.msra.mxu0 %v8643_v4  ;;  %v8697_v4 = vpack.c.bf16 %v981_v61, %v980_v60  ;;  %v8729_v8 = vpack.c.bf16 %v1013_v63, %v1012_v62  ;;  %v1004_v57 = vld [vmem:[%s14342_s26 + $0xb50] sm:$0xff]  ;;  %v990_v60 = vld [vmem:[%s14342_s26 + $0xae0] sm:$0xff]  ;;  %v991_v61 = vld [vmem:[%s14342_s26 + $0xae8] sm:$0xff] }
  0xa7   : > { %8646 = vmatprep.subr.bf16.mxu0 %v8645_v6  ;;  %v965_v6 = vld [vmem:[%s14342_s26 + $0xa18] sm:$0xff]  ;;  %v1022_v62 = vld [vmem:[%s14342_s26 + $0xbe0] sm:$0xff]  ;;  %v1023_v63 = vld [vmem:[%s14342_s26 + $0xbe8] sm:$0xff] }
  0xa8   : > { %8676 = vmatpush3.bf16.msra.mxu1 %v8675_v5  ;;  %v964_v5 = vld [vmem:[%s14342_s26 + $0xa10] sm:$0xff] }
  0xa9   : > { %8678 = vmatprep.subr.bf16.mxu1 %v8677_v10  ;;  %v982_v10 = vld [vmem:[%s14342_s26 + $0xaa0] sm:$0xff]  ;;  %v8699_v15 = vpack.c.bf16 %v965_v6, %v964_v5  ;;  %v8749_v6 = vpack.c.bf16 %v1023_v63, %v1022_v62  ;;  %v1080_v62 = vld [vmem:[%s14342_s26 + $0xdb0] sm:$0xff]  ;;  %v1081_v63 = vld [vmem:[%s14342_s26 + $0xdb8] sm:$0xff] }
  0xaa   : > { %8648 = vmatpush3.bf16.msra.mxu0 %v8647_v16  ;;  %v633_v16 = vld [vmem:[%s10086_s30 + $0xb8] sm:$0xff]  ;;  %v1006_v5 = vld [vmem:[%s14342_s26 + $0xb60] sm:$0xff] }
  0xab   : > { %8650 = vmatprep.subr.bf16.mxu0 %v8649_v18  ;;  %v8701_v18 = vpack.c.bf16 %v983_v11, %v982_v10  ;;  %v1024_v10 = vld [vmem:[%s14342_s26 + $0xbf0] sm:$0xff]  ;;  %v1025_v11 = vld [vmem:[%s14342_s26 + $0xbf8] sm:$0xff] }
  0xac   : > { %8680 = vmatpush3.bf16.msra.mxu1 %v8679_v17  ;;  %v8731_v17 = vpack.c.bf16 %v997_v9, %v996_v7  ;;  %v1007_v7 = vld [vmem:[%s14342_s26 + $0xb68] sm:$0xff]  ;;  %v993_v9 = vld [vmem:[%s14342_s26 + $0xaf8] sm:$0xff] }
  0xad   : > { %8682 = vmatprep.subr.bf16.mxu1 %v8681_v22  ;;  %v8733_v22 = vpack.c.bf16 %v1015_v13, %v1014_v12  ;;  %v8751_v13 = vpack.c.bf16 %v1007_v7, %v1006_v5  ;;  %v1064_v5 = vld [vmem:[%s14342_s26 + $0xd30] sm:$0xff]  ;;  %v1065_v7 = vld [vmem:[%s14342_s26 + $0xd38] sm:$0xff] }
  0xae   : > { %8652 = vmatpush3.bf16.msra.mxu0 %v8651_v28  ;;  %v8703_v28 = vpack.c.bf16 %v967_v20, %v966_v19  ;;  %v1009_v19 = vld [vmem:[%s14342_s26 + $0xb78] sm:$0xff]  ;;  %v1042_v20 = vld [vmem:[%s14342_s26 + $0xc80] sm:$0xff] }
  0xaf   : > { %8654 = vmatprep.subr.bf16.mxu0 %v8653_v30  ;;  %v8705_v30 = vpack.c.bf16 %v985_v25, %v984_v24 }
  0xb0   : > { %8684 = vmatpush3.bf16.msra.mxu1 %v8683_v29  ;;  %v8735_v29 = vpack.c.bf16 %v999_v23, %v998_v21  ;;  %v1043_v21 = vld [vmem:[%s14342_s26 + $0xc88] sm:$0xff] }
  0xb1   : > { %8686 = vmatprep.subr.bf16.mxu1 %v8685_v34  ;;  %v8737_v34 = vpack.c.bf16 %v1017_v27, %v1016_v26  ;;  %v1075_v23 = vld [vmem:[%s14342_s26 + $0xd88] sm:$0xff]  ;;  %v8757_v26 = vpack.c.bf16 %v1043_v21, %v1042_v20  ;;  %v1026_v27 = vld [vmem:[%s14342_s26 + $0xc00] sm:$0xff]  ;;  %v1052_v20 = vld [vmem:[%s14342_s26 + $0xcd0] sm:$0xff] }
  0xb2   : > { %8656 = vmatpush3.bf16.msra.mxu0 %v8655_v40  ;;  %v8707_v40 = vpack.c.bf16 %v969_v32, %v968_v31  ;;  %v1059_v31 = vld [vmem:[%s14342_s26 + $0xd08] sm:$0xff]  ;;  %v1044_v32 = vld [vmem:[%s14342_s26 + $0xc90] sm:$0xff]  ;;  %v1053_v21 = vld [vmem:[%s14342_s26 + $0xcd8] sm:$0xff] }
  0xb3   : > { %8658 = vmatprep.subr.bf16.mxu0 %v8657_v42  ;;  %v8709_v42 = vpack.c.bf16 %v987_v37, %v986_v36  ;;  %v630_v36 = vld [vmem:[%s10086_s30 + $0xa0] sm:$0xff] }
  0xb4   : > { %8688 = vmatpush3.bf16.msra.mxu1 %v8687_v41  ;;  %v8739_v41 = vpack.c.bf16 %v1001_v35, %v1000_v33  ;;  %v1045_v33 = vld [vmem:[%s14342_s26 + $0xc98] sm:$0xff] }
  0xb5   : > { %8690 = vmatprep.subr.bf16.mxu1 %v8689_v46  ;;  %v8741_v46 = vpack.c.bf16 %v1019_v39, %v1018_v38  ;;  %v1077_v35 = vld [vmem:[%s14342_s26 + $0xd98] sm:$0xff]  ;;  %v632_v38 = vld [vmem:[%s10086_s30 + $0xb0] sm:$0xff] }
  0xb6   : > { %8660 = vmatpush3.bf16.msra.mxu0 %v8659_v52  ;;  %v8711_v52 = vpack.c.bf16 %v971_v44, %v970_v43  ;;  %v1060_v43 = vld [vmem:[%s14342_s26 + $0xd10] sm:$0xff] }
  0xb7   : > { %8694 = vmatprep.subr.bf16.mxu0 %v8693_v54  ;;  %v8713_v54 = vpack.c.bf16 %v989_v49, %v988_v48  ;;  %v1078_v48 = vld [vmem:[%s14342_s26 + $0xda0] sm:$0xff]  ;;  %v1079_v49 = vld [vmem:[%s14342_s26 + $0xda8] sm:$0xff] }
  0xb8   : > { %8692 = vmatpush3.bf16.msra.mxu1 %v8691_v53  ;;  %v8743_v53 = vpack.c.bf16 %v1003_v47, %v1002_v45  ;;  %v1061_v45 = vld [vmem:[%s14342_s26 + $0xd18] sm:$0xff]  ;;  %v1047_v47 = vld [vmem:[%s14342_s26 + $0xca8] sm:$0xff] }
  0xb9   : > { %8726 = vmatprep.subr.bf16.mxu1 %v8725_v58  ;;  %1780 = vmatmul.mubr.f32.vlgmr.msra.gmra.mrb[8].mxu0 %v626_v0  ;;  %v8745_v58 = vpack.c.bf16 %v1021_v51, %v1020_v50  ;;  %v8715_v0 = vpack.c.bf16 %v973_v56, %v972_v55  ;;  %v635_v50 = vld [vmem:[%s10086_s30 + $0xc8] sm:$0xff]  ;;  %v1030_v55 = vld [vmem:[%s14342_s26 + $0xc20] sm:$0xff] }
  0xba   : > { %8696 = vmatpush3.bf16.msra.mxu0 %v8695_v1  ;;  %1919 = vmatprep.mubr.f32.mxu0 %v631_v14  ;;  %v8747_v1 = vpack.c.bf16 %v1005_v59, %v1004_v57  ;;  %v1031_v56 = vld [vmem:[%s14342_s26 + $0xc28] sm:$0xff]  ;;  %v1062_v57 = vld [vmem:[%s14342_s26 + $0xd20] sm:$0xff] }
  0xbb   : > { %1850 = vmatmul.mubr.f32.vlgmr.msra.gmra.mrb[8].mxu1 %v628_v2  ;;  %8698 = vmatprep.subr.bf16.mxu0 %v8697_v4  ;;  %v8717_v2 = vpack.c.bf16 %v991_v61, %v990_v60  ;;  %v975_v4 = vld [vmem:[%s14342_s26 + $0xa68] sm:$0xff]  ;;  %v1048_v60 = vld [vmem:[%s14342_s26 + $0xcb0] sm:$0xff]  ;;  %v1049_v61 = vld [vmem:[%s14342_s26 + $0xcb8] sm:$0xff] }
  0xbc   : > { %8728 = vmatpush3.bf16.msra.mxu1 %v8727_v3  ;;  %1989 = vmatprep.mubr.f32.mxu1 %v633_v16  ;;  %v974_v3 = vld [vmem:[%s14342_s26 + $0xa60] sm:$0xff]  ;;  %v977_v16 = vld [vmem:[%s14342_s26 + $0xa78] sm:$0xff]  ;;  %v1063_v59 = vld [vmem:[%s14342_s26 + $0xd28] sm:$0xff] }
  0xbd   : > { %8730 = vmatprep.subr.bf16.mxu1 %v8729_v8  ;;  %v992_v8 = vld [vmem:[%s14342_s26 + $0xaf0] sm:$0xff]  ;;  %v8719_v12 = vpack.c.bf16 %v975_v4, %v974_v3  ;;  %v1033_v4 = vld [vmem:[%s14342_s26 + $0xc38] sm:$0xff] }
  0xbe   : > { %8700 = vmatpush3.bf16.msra.mxu0 %v8699_v15  ;;  %v8721_v14 = vpack.c.bf16 %v993_v9, %v992_v8  ;;  %v976_v15 = vld [vmem:[%s14342_s26 + $0xa70] sm:$0xff]  ;;  %v1050_v8 = vld [vmem:[%s14342_s26 + $0xcc0] sm:$0xff]  ;;  %v1051_v9 = vld [vmem:[%s14342_s26 + $0xcc8] sm:$0xff] }
  0xbf   : > { %8702 = vmatprep.subr.bf16.mxu0 %v8701_v18  ;;  %v8753_v18 = vpack.c.bf16 %v1025_v11, %v1024_v10  ;;  %v8723_v24 = vpack.c.bf16 %v977_v16, %v976_v15  ;;  %v1032_v3 = vld [vmem:[%s14342_s26 + $0xc30] sm:$0xff]  ;;  %v1082_v10 = vld [vmem:[%s14342_s26 + $0xdc0] sm:$0xff]  ;;  %v1083_v11 = vld [vmem:[%s14342_s26 + $0xdc8] sm:$0xff] }
  0xc0   : > { %8732 = vmatpush3.bf16.msra.mxu1 %v8731_v17  ;;  %v1008_v17 = vld [vmem:[%s14342_s26 + $0xb70] sm:$0xff]  ;;  %v1034_v15 = vld [vmem:[%s14342_s26 + $0xc40] sm:$0xff]  ;;  %v1035_v16 = vld [vmem:[%s14342_s26 + $0xc48] sm:$0xff] }
  0xc1   : > { %8734 = vmatprep.subr.bf16.mxu1 %v8733_v22  ;;  %v1074_v22 = vld [vmem:[%s14342_s26 + $0xd80] sm:$0xff]  ;;  %v8755_v25 = vpack.c.bf16 %v1009_v19, %v1008_v17  ;;  %v1067_v19 = vld [vmem:[%s14342_s26 + $0xd48] sm:$0xff] }
  0xc2   : > { %8704 = vmatpush3.bf16.msra.mxu0 %v8703_v28  ;;  %v1027_v28 = vld [vmem:[%s14342_s26 + $0xc08] sm:$0xff]  ;;  %v1066_v17 = vld [vmem:[%s14342_s26 + $0xd40] sm:$0xff] }
  0xc3   : > { %8706 = vmatprep.subr.bf16.mxu0 %v8705_v30  ;;  %v8789_v30 = vpack.c.bf16 %v1075_v23, %v1074_v22  ;;  %v8759_v37 = vpack.c.bf16 %v1027_v28, %v1026_v27  ;;  %v1084_v22 = vld [vmem:[%s14342_s26 + $0xdd0] sm:$0xff]  ;;  %v1085_v23 = vld [vmem:[%s14342_s26 + $0xdd8] sm:$0xff] }
  0xc4   : > { %8736 = vmatpush3.bf16.msra.mxu1 %v8735_v29  ;;  %v1058_v29 = vld [vmem:[%s14342_s26 + $0xd00] sm:$0xff]  ;;  %v1036_v27 = vld [vmem:[%s14342_s26 + $0xc50] sm:$0xff]  ;;  %v1037_v28 = vld [vmem:[%s14342_s26 + $0xc58] sm:$0xff] }
  0xc5   : > { %8738 = vmatprep.subr.bf16.mxu1 %v8737_v34  ;;  %v1076_v34 = vld [vmem:[%s14342_s26 + $0xd90] sm:$0xff]  ;;  %v8791_v39 = vpack.c.bf16 %v1059_v31, %v1058_v29  ;;  %v1069_v31 = vld [vmem:[%s14342_s26 + $0xd58] sm:$0xff] }
  0xc6   : > { %8708 = vmatpush3.bf16.msra.mxu0 %v8707_v40  ;;  %v8761_v40 = vpack.c.bf16 %v1045_v33, %v1044_v32  ;;  %v8793_v44 = vpack.c.bf16 %v1077_v35, %v1076_v34  ;;  %v1068_v29 = vld [vmem:[%s14342_s26 + $0xd50] sm:$0xff]  ;;  %v1054_v32 = vld [vmem:[%s14342_s26 + $0xce0] sm:$0xff]  ;;  %v1055_v33 = vld [vmem:[%s14342_s26 + $0xce8] sm:$0xff] }
  0xc7   : > { %8710 = vmatprep.subr.bf16.mxu0 %v8709_v42  ;;  %v1029_v42 = vld [vmem:[%s14342_s26 + $0xc18] sm:$0xff]  ;;  %v1086_v34 = vld [vmem:[%s14342_s26 + $0xde0] sm:$0xff]  ;;  %v1087_v35 = vld [vmem:[%s14342_s26 + $0xde8] sm:$0xff] }
  0xc8   : > { %8740 = vmatpush3.bf16.msra.mxu1 %v8739_v41  ;;  %v1028_v41 = vld [vmem:[%s14342_s26 + $0xc10] sm:$0xff] }
  0xc9   : > { %8742 = vmatprep.subr.bf16.mxu1 %v8741_v46  ;;  %v1046_v46 = vld [vmem:[%s14342_s26 + $0xca0] sm:$0xff]  ;;  %v8763_v51 = vpack.c.bf16 %v1029_v42, %v1028_v41  ;;  %v8813_v42 = vpack.c.bf16 %v1087_v35, %v1086_v34  ;;  %v1144_v34 = vld [vmem:[%s14342_s26 + $0xfb0] sm:$0xff]  ;;  %v1145_v35 = vld [vmem:[%s14342_s26 + $0xfb8] sm:$0xff] }
  0xca   : > { %8712 = vmatpush3.bf16.msra.mxu0 %v8711_v52  ;;  %v637_v52 = vld [vmem:[%s10086_s30 + $0xd8] sm:$0xff]  ;;  %v1070_v41 = vld [vmem:[%s14342_s26 + $0xd60] sm:$0xff] }
  0xcb   : > { %8714 = vmatprep.subr.bf16.mxu0 %v8713_v54  ;;  %v8765_v54 = vpack.c.bf16 %v1047_v47, %v1046_v46  ;;  %v1088_v46 = vld [vmem:[%s14342_s26 + $0xdf0] sm:$0xff]  ;;  %v1089_v47 = vld [vmem:[%s14342_s26 + $0xdf8] sm:$0xff] }
  0xcc   : > { %8744 = vmatpush3.bf16.msra.mxu1 %v8743_v53  ;;  %v8795_v53 = vpack.c.bf16 %v1061_v45, %v1060_v43  ;;  %v1071_v43 = vld [vmem:[%s14342_s26 + $0xd68] sm:$0xff]  ;;  %v1057_v45 = vld [vmem:[%s14342_s26 + $0xcf8] sm:$0xff] }
  0xcd   : > { %8746 = vmatprep.subr.bf16.mxu1 %v8745_v58  ;;  %v8797_v58 = vpack.c.bf16 %v1079_v49, %v1078_v48  ;;  %v8815_v49 = vpack.c.bf16 %v1071_v43, %v1070_v41  ;;  %v1128_v41 = vld [vmem:[%s14342_s26 + $0xf30] sm:$0xff]  ;;  %v1129_v43 = vld [vmem:[%s14342_s26 + $0xf38] sm:$0xff] }
  0xce   : > { %8716 = vmatpush3.bf16.msra.mxu0 %v8715_v0  ;;  %v8767_v0 = vpack.c.bf16 %v1031_v56, %v1030_v55  ;;  %v1073_v55 = vld [vmem:[%s14342_s26 + $0xd78] sm:$0xff]  ;;  %v1106_v56 = vld [vmem:[%s14342_s26 + $0xe80] sm:$0xff] }
  0xcf   : > { %8718 = vmatprep.subr.bf16.mxu0 %v8717_v2  ;;  %v8769_v2 = vpack.c.bf16 %v1049_v61, %v1048_v60 }
  0xd0   : > { %8748 = vmatpush3.bf16.msra.mxu1 %v8747_v1  ;;  %v8799_v1 = vpack.c.bf16 %v1063_v59, %v1062_v57  ;;  %v1107_v57 = vld [vmem:[%s14342_s26 + $0xe88] sm:$0xff] }
  0xd1   : > { %8750 = vmatprep.subr.bf16.mxu1 %v8749_v6  ;;  %v8801_v6 = vpack.c.bf16 %v1081_v63, %v1080_v62  ;;  %v1139_v59 = vld [vmem:[%s14342_s26 + $0xf88] sm:$0xff]  ;;  %v8821_v62 = vpack.c.bf16 %v1107_v57, %v1106_v56  ;;  %v1090_v63 = vld [vmem:[%s14342_s26 + $0xe00] sm:$0xff]  ;;  %v1116_v56 = vld [vmem:[%s14342_s26 + $0xed0] sm:$0xff] }
  0xd2   : > { %8720 = vmatpush3.bf16.msra.mxu0 %v8719_v12  ;;  %v8771_v12 = vpack.c.bf16 %v1033_v4, %v1032_v3  ;;  %v1123_v3 = vld [vmem:[%s14342_s26 + $0xf08] sm:$0xff]  ;;  %v1108_v4 = vld [vmem:[%s14342_s26 + $0xe90] sm:$0xff]  ;;  %v1117_v57 = vld [vmem:[%s14342_s26 + $0xed8] sm:$0xff] }
  0xd3   : > { %8722 = vmatprep.subr.bf16.mxu0 %v8721_v14  ;;  %v8773_v14 = vpack.c.bf16 %v1051_v9, %v1050_v8  ;;  %v634_v8 = vld [vmem:[%s10086_s30 + $0xc0] sm:$0xff] }
  0xd4   : > { %8752 = vmatpush3.bf16.msra.mxu1 %v8751_v13  ;;  %v8803_v13 = vpack.c.bf16 %v1065_v7, %v1064_v5  ;;  %v1109_v5 = vld [vmem:[%s14342_s26 + $0xe98] sm:$0xff] }
  0xd5   : > { %8754 = vmatprep.subr.bf16.mxu1 %v8753_v18  ;;  %v8805_v18 = vpack.c.bf16 %v1083_v11, %v1082_v10  ;;  %v1141_v7 = vld [vmem:[%s14342_s26 + $0xf98] sm:$0xff]  ;;  %v636_v10 = vld [vmem:[%s10086_s30 + $0xd0] sm:$0xff] }
  0xd6   : > { %8724 = vmatpush3.bf16.msra.mxu0 %v8723_v24  ;;  %v8775_v24 = vpack.c.bf16 %v1035_v16, %v1034_v15  ;;  %v1124_v15 = vld [vmem:[%s14342_s26 + $0xf10] sm:$0xff] }
  0xd7   : > { %8758 = vmatprep.subr.bf16.mxu0 %v8757_v26  ;;  %v8777_v26 = vpack.c.bf16 %v1053_v21, %v1052_v20  ;;  %v1142_v20 = vld [vmem:[%s14342_s26 + $0xfa0] sm:$0xff]  ;;  %v1143_v21 = vld [vmem:[%s14342_s26 + $0xfa8] sm:$0xff] }
  0xd8   : > { %8756 = vmatpush3.bf16.msra.mxu1 %v8755_v25  ;;  %v8807_v25 = vpack.c.bf16 %v1067_v19, %v1066_v17  ;;  %v1125_v17 = vld [vmem:[%s14342_s26 + $0xf18] sm:$0xff]  ;;  %v1111_v19 = vld [vmem:[%s14342_s26 + $0xea8] sm:$0xff] }
  0xd9   : > { %8790 = vmatprep.subr.bf16.mxu1 %v8789_v30  ;;  %1920 = vmatmul.mubr.f32.vlgmr.msra.gmra.mrb[10].mxu0 %v630_v36  ;;  %v8809_v30 = vpack.c.bf16 %v1085_v23, %v1084_v22  ;;  %v8779_v36 = vpack.c.bf16 %v1037_v28, %v1036_v27  ;;  %v639_v22 = vld [vmem:[%s10086_s30 + $0xe8] sm:$0xff]  ;;  %v1094_v27 = vld [vmem:[%s14342_s26 + $0xe20] sm:$0xff] }
  0xda   : > { %8760 = vmatpush3.bf16.msra.mxu0 %v8759_v37  ;;  %2059 = vmatprep.mubr.f32.mxu0 %v635_v50  ;;  %v8811_v37 = vpack.c.bf16 %v1069_v31, %v1068_v29  ;;  %v1095_v28 = vld [vmem:[%s14342_s26 + $0xe28] sm:$0xff]  ;;  %v1126_v29 = vld [vmem:[%s14342_s26 + $0xf20] sm:$0xff] }
  0xdb   : > { %1990 = vmatmul.mubr.f32.vlgmr.msra.gmra.mrb[10].mxu1 %v632_v38  ;;  %8762 = vmatprep.subr.bf16.mxu0 %v8761_v40  ;;  %v8781_v38 = vpack.c.bf16 %v1055_v33, %v1054_v32  ;;  %v1039_v40 = vld [vmem:[%s14342_s26 + $0xc68] sm:$0xff]  ;;  %v1112_v32 = vld [vmem:[%s14342_s26 + $0xeb0] sm:$0xff]  ;;  %v1113_v33 = vld [vmem:[%s14342_s26 + $0xeb8] sm:$0xff] }
  0xdc   : > { %8792 = vmatpush3.bf16.msra.mxu1 %v8791_v39  ;;  %2129 = vmatprep.mubr.f32.mxu1 %v637_v52  ;;  %v1038_v39 = vld [vmem:[%s14342_s26 + $0xc60] sm:$0xff]  ;;  %v1041_v52 = vld [vmem:[%s14342_s26 + $0xc78] sm:$0xff]  ;;  %v1127_v31 = vld [vmem:[%s14342_s26 + $0xf28] sm:$0xff] }
  0xdd   : > { %8794 = vmatprep.subr.bf16.mxu1 %v8793_v44  ;;  %v1056_v44 = vld [vmem:[%s14342_s26 + $0xcf0] sm:$0xff]  ;;  %v8783_v48 = vpack.c.bf16 %v1039_v40, %v1038_v39  ;;  %v1097_v40 = vld [vmem:[%s14342_s26 + $0xe38] sm:$0xff] }
  0xde   : > { %8764 = vmatpush3.bf16.msra.mxu0 %v8763_v51  ;;  %v8785_v50 = vpack.c.bf16 %v1057_v45, %v1056_v44  ;;  %v1040_v51 = vld [vmem:[%s14342_s26 + $0xc70] sm:$0xff]  ;;  %v1114_v44 = vld [vmem:[%s14342_s26 + $0xec0] sm:$0xff]  ;;  %v1115_v45 = vld [vmem:[%s14342_s26 + $0xec8] sm:$0xff] }
  0xdf   : > { %8766 = vmatprep.subr.bf16.mxu0 %v8765_v54  ;;  %v8817_v54 = vpack.c.bf16 %v1089_v47, %v1088_v46  ;;  %v8787_v60 = vpack.c.bf16 %v1041_v52, %v1040_v51  ;;  %v1096_v39 = vld [vmem:[%s14342_s26 + $0xe30] sm:$0xff]  ;;  %v1146_v46 = vld [vmem:[%s14342_s26 + $0xfc0] sm:$0xff]  ;;  %v1147_v47 = vld [vmem:[%s14342_s26 + $0xfc8] sm:$0xff] }
  0xe0   : > { %8796 = vmatpush3.bf16.msra.mxu1 %v8795_v53  ;;  %v1072_v53 = vld [vmem:[%s14342_s26 + $0xd70] sm:$0xff]  ;;  %v1098_v51 = vld [vmem:[%s14342_s26 + $0xe40] sm:$0xff]  ;;  %v1099_v52 = vld [vmem:[%s14342_s26 + $0xe48] sm:$0xff] }
  0xe1   : > { %8798 = vmatprep.subr.bf16.mxu1 %v8797_v58  ;;  %v1138_v58 = vld [vmem:[%s14342_s26 + $0xf80] sm:$0xff]  ;;  %v8819_v61 = vpack.c.bf16 %v1073_v55, %v1072_v53  ;;  %v1131_v55 = vld [vmem:[%s14342_s26 + $0xf48] sm:$0xff] }
  0xe2   : > { %8768 = vmatpush3.bf16.msra.mxu0 %v8767_v0  ;;  %v1091_v0 = vld [vmem:[%s14342_s26 + $0xe08] sm:$0xff]  ;;  %v1130_v53 = vld [vmem:[%s14342_s26 + $0xf40] sm:$0xff] }
  0xe3   : > { %8770 = vmatprep.subr.bf16.mxu0 %v8769_v2  ;;  %v8853_v2 = vpack.c.bf16 %v1139_v59, %v1138_v58  ;;  %v8823_v9 = vpack.c.bf16 %v1091_v0, %v1090_v63  ;;  %v1148_v58 = vld [vmem:[%s14342_s26 + $0xfd0] sm:$0xff]  ;;  %v1149_v59 = vld [vmem:[%s14342_s26 + $0xfd8] sm:$0xff] }
  0xe4   : > { %8800 = vmatpush3.bf16.msra.mxu1 %v8799_v1  ;;  %v1122_v1 = vld [vmem:[%s14342_s26 + $0xf00] sm:$0xff]  ;;  %v1100_v63 = vld [vmem:[%s14342_s26 + $0xe50] sm:$0xff]  ;;  %v1101_v0 = vld [vmem:[%s14342_s26 + $0xe58] sm:$0xff] }
  0xe5   : > { %8802 = vmatprep.subr.bf16.mxu1 %v8801_v6  ;;  %v1140_v6 = vld [vmem:[%s14342_s26 + $0xf90] sm:$0xff]  ;;  %v8855_v11 = vpack.c.bf16 %v1123_v3, %v1122_v1  ;;  %v1133_v3 = vld [vmem:[%s14342_s26 + $0xf58] sm:$0xff] }
  0xe6   : > { %8772 = vmatpush3.bf16.msra.mxu0 %v8771_v12  ;;  %v8825_v12 = vpack.c.bf16 %v1109_v5, %v1108_v4  ;;  %v8857_v16 = vpack.c.bf16 %v1141_v7, %v1140_v6  ;;  %v1132_v1 = vld [vmem:[%s14342_s26 + $0xf50] sm:$0xff]  ;;  %v1118_v4 = vld [vmem:[%s14342_s26 + $0xee0] sm:$0xff]  ;;  %v1119_v5 = vld [vmem:[%s14342_s26 + $0xee8] sm:$0xff] }
  0xe7   : > { %8774 = vmatprep.subr.bf16.mxu0 %v8773_v14  ;;  %v1093_v14 = vld [vmem:[%s14342_s26 + $0xe18] sm:$0xff]  ;;  %v1150_v6 = vld [vmem:[%s14342_s26 + $0xfe0] sm:$0xff]  ;;  %v1151_v7 = vld [vmem:[%s14342_s26 + $0xfe8] sm:$0xff] }
  0xe8   : > { %8804 = vmatpush3.bf16.msra.mxu1 %v8803_v13  ;;  %v1092_v13 = vld [vmem:[%s14342_s26 + $0xe10] sm:$0xff] }
  0xe9   : > { %8806 = vmatprep.subr.bf16.mxu1 %v8805_v18  ;;  %v1110_v18 = vld [vmem:[%s14342_s26 + $0xea0] sm:$0xff]  ;;  %v8827_v23 = vpack.c.bf16 %v1093_v14, %v1092_v13 }
  0xea   : > { %8776 = vmatpush3.bf16.msra.mxu0 %v8775_v24  ;;  %v641_v24 = vld [vmem:[%s10086_s30 + $0xf8] sm:$0xff]  ;;  %v1134_v13 = vld [vmem:[%s14342_s26 + $0xf60] sm:$0xff] }
  0xeb   : > { %8778 = vmatprep.subr.bf16.mxu0 %v8777_v26  ;;  %v8829_v26 = vpack.c.bf16 %v1111_v19, %v1110_v18  ;;  %v1121_v18 = vld [vmem:[%s14342_s26 + $0xef8] sm:$0xff]  ;;  %v1154_v19 = vld [vmem:[%s14344_s2] sm:$0xff]  ;;  %s590_s2 = sand.u32 1, %s9779_s0  }
  0xec   : > { %8808 = vmatpush3.bf16.msra.mxu1 %v8807_v25  ;;  %v8859_v25 = vpack.c.bf16 %v1125_v17, %v1124_v15  ;;  %v8877_v15 = vpack.c.bf16 %v1151_v7, %v1150_v6  ;;  %v1120_v17 = vld [vmem:[%s14342_s26 + $0xef0] sm:$0xff]  ;;  %s7206_s20 = sshll.u32 %s590_s2, 4  ;;  %s14351_s2 = sld [smem:[#allocation12_spill]] (%p9920_p4) }
  0xed   : > { %8810 = vmatprep.subr.bf16.mxu1 %v8809_v30  ;;  %v8861_v30 = vpack.c.bf16 %v1143_v21, %v1142_v20  ;;  %s12058_s28 = scalar_lea.vmem [#allocation2], %s7206_s20 }
  0xee   : > { %8780 = vmatpush3.bf16.msra.mxu0 %v8779_v36  ;;  %v8831_v36 = vpack.c.bf16 %v1095_v28, %v1094_v27 }
  0xef   : > { %8782 = vmatprep.subr.bf16.mxu0 %v8781_v38  ;;  %v8833_v38 = vpack.c.bf16 %v1113_v33, %v1112_v32 }
  0xf0   : > { %8812 = vmatpush3.bf16.msra.mxu1 %v8811_v37  ;;  %v8863_v37 = vpack.c.bf16 %v1127_v31, %v1126_v29  ;;  %v8849_v29 = vpack.c.bf16 %v1121_v18, %v1120_v17  ;;  %v1105_v31 = vld [vmem:[%s14342_s26 + $0xe78] sm:$0xff] }
  0xf1   : > { %8814 = vmatprep.subr.bf16.mxu1 %v8813_v42  ;;  %v8865_v42 = vpack.c.bf16 %v1145_v35, %v1144_v34  ;;  %v1136_v34 = vld [vmem:[%s14342_s26 + $0xf70] sm:$0xff]  ;;  %v1137_v35 = vld [vmem:[%s14342_s26 + $0xf78] sm:$0xff] }
  0xf2   : > { %8784 = vmatpush3.bf16.msra.mxu0 %v8783_v48  ;;  %v8835_v48 = vpack.c.bf16 %v1097_v40, %v1096_v39  ;;  %v638_v39 = vld [vmem:[%s10086_s30 + $0xe0] sm:$0xff]  ;;  %v640_v40 = vld [vmem:[%s10086_s30 + $0xf0] sm:$0xff] }
  0xf3   : > { %8786 = vmatprep.subr.bf16.mxu0 %v8785_v50  ;;  %v8837_v50 = vpack.c.bf16 %v1115_v45, %v1114_v44 }
  0xf4   : > { %8816 = vmatpush3.bf16.msra.mxu1 %v8815_v49  ;;  %v8867_v49 = vpack.c.bf16 %v1129_v43, %v1128_v41 }
  0xf5   : > { %8818 = vmatprep.subr.bf16.mxu1 %v8817_v54  ;;  %v8869_v54 = vpack.c.bf16 %v1147_v47, %v1146_v46 }
  0xf6   : > { %8788 = vmatpush3.bf16.msra.mxu0 %v8787_v60  ;;  %v8839_v60 = vpack.c.bf16 %v1099_v52, %v1098_v51 }
  0xf7   : > { %8822 = vmatprep.subr.bf16.mxu0 %v8821_v62  ;;  %v8841_v62 = vpack.c.bf16 %v1117_v57, %v1116_v56 }
  0xf8   : > { %8820 = vmatpush3.bf16.msra.mxu1 %v8819_v61  ;;  %v8871_v61 = vpack.c.bf16 %v1131_v55, %v1130_v53 }
  0xf9   : > { %8854 = vmatprep.subr.bf16.mxu1 %v8853_v2  ;;  %2060 = vmatmul.mubr.f32.vlgmr.msra.gmra.mrb[12].mxu0 %v634_v8  ;;  %v8873_v2 = vpack.c.bf16 %v1149_v59, %v1148_v58  ;;  %v8843_v8 = vpack.c.bf16 %v1101_v0, %v1100_v63 }
  0xfa   : > { %8824 = vmatpush3.bf16.msra.mxu0 %v8823_v9  ;;  %2199 = vmatprep.mubr.f32.mxu0 %v639_v22  ;;  %v8875_v9 = vpack.c.bf16 %v1133_v3, %v1132_v1  ;;  %v1152_v22 = vld [vmem:[%s14342_s26 + $0xff0] sm:$0xff] }
  0xfb   : > { %2130 = vmatmul.mubr.f32.vlgmr.msra.gmra.mrb[12].mxu1 %v636_v10  ;;  %8826 = vmatprep.subr.bf16.mxu0 %v8825_v12  ;;  %v8845_v10 = vpack.c.bf16 %v1119_v5, %v1118_v4  ;;  %v1103_v12 = vld [vmem:[%s14342_s26 + $0xe68] sm:$0xff] }
  0xfc   : > { %8856 = vmatpush3.bf16.msra.mxu1 %v8855_v11  ;;  %2269 = vmatprep.mubr.f32.mxu1 %v641_v24  ;;  %v1102_v11 = vld [vmem:[%s14342_s26 + $0xe60] sm:$0xff] }
  0xfd   : > { %8858 = vmatprep.subr.bf16.mxu1 %v8857_v16  ;;  %v1135_v16 = vld [vmem:[%s14342_s26 + $0xf68] sm:$0xff] }
  0xfe   : > { %8828 = vmatpush3.bf16.msra.mxu0 %v8827_v23  ;;  %v1153_v23 = vld [vmem:[%s14342_s26 + $0xff8] sm:$0xff]  ;;  %v8879_v28 = vpack.c.bf16 %v1135_v16, %v1134_v13 }
  0xff   : > { %8830 = vmatprep.subr.bf16.mxu0 %v8829_v26  ;;  %v8847_v26 = vpack.c.bf16 %v1103_v12, %v1102_v11  ;;  %v8881_v33 = vpack.c.bf16 %v1153_v23, %v1152_v22 }
 0x100   : > { %8860 = vmatpush3.bf16.msra.mxu1 %v8859_v25 }
 0x101   : > { %8862 = vmatprep.subr.bf16.mxu1 %v8861_v30  ;;  %v1104_v30 = vld [vmem:[%s14342_s26 + $0xe70] sm:$0xff] }
 0x102   : > { %8832 = vmatpush3.bf16.msra.mxu0 %v8831_v36 }
 0x103   : > { %8834 = vmatprep.subr.bf16.mxu0 %v8833_v38  ;;  %v8883_v38 = vpack.c.bf16 %v1137_v35, %v1136_v34  ;;  %v2307_v34 = vld [vmem:[%s14304_s5 + $0x20] sm:$0xff] }
 0x104   : > { %8864 = vmatpush3.bf16.msra.mxu1 %v8863_v37  ;;  %v8851_v37 = vpack.c.bf16 %v1105_v31, %v1104_v30  ;;  %v2303_v35 = vld [vmem:[%s14304_s5] sm:$0xff] }
 0x105   : > { %8866 = vmatprep.subr.bf16.mxu1 %v8865_v42 }
 0x106   : > { %8836 = vmatpush3.bf16.msra.mxu0 %v8835_v48 }
 0x107   : > { %8838 = vmatprep.subr.bf16.mxu0 %v8837_v50 }
 0x108   : > { %8868 = vmatpush3.bf16.msra.mxu1 %v8867_v49 }
 0x109   : > { %8870 = vmatprep.subr.bf16.mxu1 %v8869_v54 }
 0x10a   : > { %8840 = vmatpush3.bf16.msra.mxu0 %v8839_v60 }
 0x10b   : > { %8842 = vmatprep.subr.bf16.mxu0 %v8841_v62 }
 0x10c   : > { %8872 = vmatpush3.bf16.msra.mxu1 %v8871_v61  ;;  %v7431_v14 = vpop.f32.mrb[0].mxu0 }
 0x10d   : > { %8874 = vmatprep.subr.bf16.mxu1 %v8873_v2  ;;  %v7432_v20 = vpop.f32.mrb[1].mxu0 }
 0x10e   : > { %v7466_v21 = vpop.f32.mrb[0].mxu1  ;;  %v7433_v24 = vadd.f32 %v7432_v20, %v7431_v14  ;;  %8844 = vmatpush3.bf16.msra.mxu0 %v8843_v8 }
 0x10f   : > { %v7467_v25 = vpop.f32.mrb[1].mxu1  ;;  %8846 = vmatprep.subr.bf16.mxu0 %v8845_v10 }
 0x110   : > { %v7468_v27 = vadd.f32 %v7467_v25, %v7466_v21  ;;  %8876 = vmatpush3.bf16.msra.mxu1 %v8875_v9  ;;  %v1222_v32 = vadd.f32 %v7433_v24, %v1154_v19 }
 0x111   : > { %8878 = vmatprep.subr.bf16.mxu1 %v8877_v15 }
 0x112   : > { %v1292_v36 = vadd.f32 %v7468_v27, %v1222_v32  ;;  %8848 = vmatpush3.bf16.msra.mxu0 %v8847_v26 }
 0x113   : > { %8850 = vmatprep.subr.bf16.mxu0 %v8849_v29 }
 0x114   : > { %8880 = vmatpush3.bf16.msra.mxu1 %v8879_v28 }
 0x115   : > { %8882 = vmatprep.subr.bf16.mxu1 %v8881_v33  ;;  %v2304_v33 = vld [vmem:[%s14304_s5 + $0x8] sm:$0xff] }
 0x116   : > { %8852 = vmatpush3.bf16.msra.mxu0 %v8851_v37  ;;  %v9789_v37 = vmov 0.0|0.0  }
 0x118   : > { %8884 = vmatpush3.bf16.msra.mxu1 %v8883_v38  ;;  %v2306_v38 = vld [vmem:[%s14304_s5 + $0x18] sm:$0xff] }
 0x119   : > { %2200 = vmatmul.mubr.f32.vlgmr.msra.gmra.mrb[14].mxu0 %v638_v39  ;;  %8917 = vmatprep.subr.bf16.mxu1 %v9789_v37  ;;  %v2305_v39 = vld [vmem:[%s14304_s5 + $0x10] sm:$0xff] }
 0x11b   : > { %2270 = vmatmul.mubr.f32.vlgmr.msra.gmra.mrb[14].mxu1 %v640_v40  ;;  %v2308_v40 = vld [vmem:[%s14304_s5 + $0x28] sm:$0xff] }
 0x12c   : > { %v7501_v41 = vpop.f32.mrb[2].mxu0 }
 0x12d   : > { %v7502_v42 = vpop.f32.mrb[3].mxu0 }
 0x12e   : > { %v7536_v43 = vpop.f32.mrb[2].mxu1  ;;  %v7503_v44 = vadd.f32 %v7502_v42, %v7501_v41  ;;  %v8887_v41 = vpack.c.bf16 %v2306_v38, %v2303_v35  ;;  %v8918_v42 = vpack.c.bf16 %v2308_v40, %v2305_v39  ;;  %v2341_v35 = vld [vmem:[%s14304_s5 + $0x130] sm:$0xff]  ;;  %v2346_v38 = vld [vmem:[%s14304_s5 + $0x158] sm:$0xff] }
 0x12f   : > { %v7537_v45 = vpop.f32.mrb[3].mxu1  ;;  %v2349_v39 = vld [vmem:[%s14304_s5 + $0x170] sm:$0xff] }
 0x130   : > { %v7538_v46 = vadd.f32 %v7537_v45, %v7536_v43  ;;  %v1362_v47 = vadd.f32 %v7503_v44, %v1292_v36  ;;  %v8885_v36 = vpack.c.bf16 %v2307_v34, %v2304_v33  ;;  %v2310_v43 = vld [vmem:[%s14304_s5 + $0x38] sm:$0xff]  ;;  %v2313_v44 = vld [vmem:[%s14304_s5 + $0x50] sm:$0xff]  ;;  %8919 = vmatpush3.bf16.msra.mxu1 %v8918_v42  ;;  %v2339_v33 = vld [vmem:[%s14304_s5 + $0x120] sm:$0xff]  ;;  %v8913_v42 = vpack.c.bf16 %v2349_v39, %v2346_v38 }
 0x131   : > { %v2309_v45 = vld [vmem:[%s14304_s5 + $0x30] sm:$0xff]  ;;  %8920 = vmatprep.subr.bf16.mxu1 %v9789_v37  ;;  %v2342_v34 = vld [vmem:[%s14304_s5 + $0x138] sm:$0xff] }
 0x132   : > { %v1432_v48 = vadd.f32 %v7538_v46, %v1362_v47  ;;  %8886 = vmatprep.subr.bf16.mxu0 %v8885_v36  ;;  %v8889_v46 = vpack.c.bf16 %v2313_v44, %v2310_v43  ;;  %v2312_v47 = vld [vmem:[%s14304_s5 + $0x48] sm:$0xff]  ;;  %v8911_v40 = vpack.c.bf16 %v2342_v34, %v2339_v33  ;;  %v2345_v43 = vld [vmem:[%s14304_s5 + $0x150] sm:$0xff] }
 0x133   : > { %8888 = vmatpush1.bf16.msra.mxu0 %v8887_v41  ;;  %v2344_v36 = vld [vmem:[%s14304_s5 + $0x148] sm:$0xff]  ;;  %v2494_v34 = vld [vmem:[%s14305_s6 + $0x10] sm:$0xff] }
 0x134   : > { %8890 = vmatprep.subr.bf16.mxu0 %v8889_v46  ;;  %v8936_v41 = vpack.c.bf16 %v2344_v36, %v2341_v35  ;;  %v2348_v44 = vld [vmem:[%s14304_s5 + $0x168] sm:$0xff]  ;;  %v2350_v46 = vld [vmem:[%s14304_s5 + $0x178] sm:$0xff] }
 0x135   : > { %v2495_v35 = vld [vmem:[%s14305_s6 + $0x18] sm:$0xff] }
 0x136   : > { %v8951_v36 = vpack.c.bf16 %v2495_v35, %v2494_v34  ;;  %v7229_v35 = vld [vmem:[%s14306_s7] ss:$0 sm:$0xff] }
 0x14c   : > { %v7571_v49 = vpop.f32.mrb[4].mxu0 }
 0x14d   : > { %v7572_v50 = vpop.f32.mrb[5].mxu0 }
 0x14e   : > { %v7606_v51 = vpop.f32.mrb[4].mxu1  ;;  %v7573_v52 = vadd.f32 %v7572_v50, %v7571_v49  ;;  %v2314_v49 = vld [vmem:[%s14304_s5 + $0x58] sm:$0xff]  ;;  %v8891_v50 = vpack.c.bf16 %v2312_v47, %v2309_v45  ;;  %v2347_v45 = vld [vmem:[%s14304_s5 + $0x160] sm:$0xff]  ;;  %v8915_v47 = vpack.c.bf16 %v2348_v44, %v2345_v43 }
 0x14f   : > { %v7607_v53 = vpop.f32.mrb[5].mxu1 }
 0x150   : > { %v7608_v54 = vadd.f32 %v7607_v53, %v7606_v51  ;;  %v1502_v55 = vadd.f32 %v7573_v52, %v1432_v48  ;;  %v2311_v48 = vld [vmem:[%s14304_s5 + $0x40] sm:$0xff]  ;;  %v2316_v52 = vld [vmem:[%s14304_s5 + $0x68] sm:$0xff]  ;;  %8892 = vmatpush1.bf16.msra.mxu0 %v8891_v50 }
 0x151   : > { %v8921_v51 = vpack.c.bf16 %v2314_v49, %v2311_v48  ;;  %v2319_v53 = vld [vmem:[%s14304_s5 + $0x80] sm:$0xff]  ;;  %v8939_v48 = vpack.c.bf16 %v2350_v46, %v2347_v45 }
 0x152   : > { %v1572_v56 = vadd.f32 %v7608_v54, %v1502_v55  ;;  %v2315_v54 = vld [vmem:[%s14304_s5 + $0x60] sm:$0xff]  ;;  %v8893_v55 = vpack.c.bf16 %v2319_v53, %v2316_v52 }
 0x153   : > { %8922 = vmatpush3.bf16.msra.mxu1 %v8921_v51  ;;  %v7211_v53 = vld [vmem:[%s14345_s25] ss:$0 sm:$0xff] }
 0x154   : > { %8894 = vmatprep.subr.bf16.mxu0 %v8893_v55  ;;  %8923 = vmatprep.subr.bf16.mxu1 %v9789_v37  ;;  %v7212_v55 = vld [vmem:[%s14303_s4] ss:$0 sm:$0xff] }
 0x16c   : > { %v7641_v57 = vpop.f32.mrb[6].mxu0 }
 0x16d   : > { %v7642_v58 = vpop.f32.mrb[7].mxu0 }
 0x16e   : > { %v7676_v59 = vpop.f32.mrb[6].mxu1  ;;  %v7643_v60 = vadd.f32 %v7642_v58, %v7641_v57  ;;  %v2317_v57 = vld [vmem:[%s14304_s5 + $0x70] sm:$0xff]  ;;  %v2320_v58 = vld [vmem:[%s14304_s5 + $0x88] sm:$0xff] }
 0x16f   : > { %v7677_v61 = vpop.f32.mrb[7].mxu1 }
 0x170   : > { %v7678_v62 = vadd.f32 %v7677_v61, %v7676_v59  ;;  %v1642_v63 = vadd.f32 %v7643_v60, %v1572_v56  ;;  %v2318_v56 = vld [vmem:[%s14304_s5 + $0x78] sm:$0xff]  ;;  %v8924_v60 = vpack.c.bf16 %v2320_v58, %v2317_v57 }
 0x171   : > { %v8895_v59 = vpack.c.bf16 %v2318_v56, %v2315_v54 }
 0x172   : > { %v1712_v0 = vadd.f32 %v7678_v62, %v1642_v63  ;;  %8925 = vmatpush3.bf16.msra.mxu1 %v8924_v60 }
 0x173   : > { %8896 = vmatpush1.bf16.msra.mxu0 %v8895_v59  ;;  %8926 = vmatprep.subr.bf16.mxu1 %v9789_v37 }
 0x18c   : > { %v7711_v1 = vpop.f32.mrb[8].mxu0 }
 0x18d   : > { %v7712_v2 = vpop.f32.mrb[9].mxu0 }
 0x18e   : > { %v7746_v3 = vpop.f32.mrb[8].mxu1  ;;  %v7713_v4 = vadd.f32 %v7712_v2, %v7711_v1  ;;  %v2322_v1 = vld [vmem:[%s14304_s5 + $0x98] sm:$0xff]  ;;  %v2325_v2 = vld [vmem:[%s14304_s5 + $0xb0] sm:$0xff] }
 0x18f   : > { %v7747_v5 = vpop.f32.mrb[9].mxu1 }
 0x190   : > { %v7748_v6 = vadd.f32 %v7747_v5, %v7746_v3  ;;  %v1782_v7 = vadd.f32 %v7713_v4, %v1712_v0  ;;  %v8897_v3 = vpack.c.bf16 %v2325_v2, %v2322_v1  ;;  %v2321_v4 = vld [vmem:[%s14304_s5 + $0x90] sm:$0xff]  ;;  %v2324_v5 = vld [vmem:[%s14304_s5 + $0xa8] sm:$0xff] }
 0x192   : > { %v1852_v8 = vadd.f32 %v7748_v6, %v1782_v7  ;;  %v2323_v6 = vld [vmem:[%s14304_s5 + $0xa0] sm:$0xff]  ;;  %v8899_v7 = vpack.c.bf16 %v2324_v5, %v2321_v4  ;;  %8898 = vmatprep.subr.bf16.mxu0 %v8897_v3 }
 0x194   : > { %8900 = vmatpush1.bf16.msra.mxu0 %v8899_v7 }
 0x1ac   : > { %v7781_v9 = vpop.f32.mrb[10].mxu0 }
 0x1ad   : > { %v7782_v10 = vpop.f32.mrb[11].mxu0 }
 0x1ae   : > { %v7816_v11 = vpop.f32.mrb[10].mxu1  ;;  %v7783_v12 = vadd.f32 %v7782_v10, %v7781_v9  ;;  %v2328_v10 = vld [vmem:[%s14304_s5 + $0xc8] sm:$0xff] }
 0x1af   : > { %v7817_v13 = vpop.f32.mrb[11].mxu1 }
 0x1b0   : > { %v7818_v14 = vadd.f32 %v7817_v13, %v7816_v11  ;;  %v1922_v15 = vadd.f32 %v7783_v12, %v1852_v8  ;;  %v2326_v8 = vld [vmem:[%s14304_s5 + $0xb8] sm:$0xff]  ;;  %v2331_v11 = vld [vmem:[%s14304_s5 + $0xe0] sm:$0xff] }
 0x1b1   : > { %v8927_v9 = vpack.c.bf16 %v2326_v8, %v2323_v6  ;;  %v8901_v12 = vpack.c.bf16 %v2331_v11, %v2328_v10  ;;  %v2327_v13 = vld [vmem:[%s14304_s5 + $0xc0] sm:$0xff] }
 0x1b2   : > { %v1992_v16 = vadd.f32 %v7818_v14, %v1922_v15  ;;  %v2330_v14 = vld [vmem:[%s14304_s5 + $0xd8] sm:$0xff]  ;;  %v2329_v15 = vld [vmem:[%s14304_s5 + $0xd0] sm:$0xff] }
 0x1b3   : > { %8928 = vmatpush3.bf16.msra.mxu1 %v8927_v9  ;;  %8902 = vmatprep.subr.bf16.mxu0 %v8901_v12 }
 0x1b4   : > { %8929 = vmatprep.subr.bf16.mxu1 %v9789_v37 }
 0x1cc   : > { %v7851_v17 = vpop.f32.mrb[12].mxu0 }
 0x1cd   : > { %v7852_v18 = vpop.f32.mrb[13].mxu0 }
 0x1ce   : > { %v7886_v19 = vpop.f32.mrb[12].mxu1  ;;  %v7853_v20 = vadd.f32 %v7852_v18, %v7851_v17  ;;  %v2332_v17 = vld [vmem:[%s14304_s5 + $0xe8] sm:$0xff]  ;;  %v2334_v18 = vld [vmem:[%s14304_s5 + $0xf8] sm:$0xff] }
 0x1cf   : > { %v7887_v21 = vpop.f32.mrb[13].mxu1 }
 0x1d0   : > { %v7888_v22 = vadd.f32 %v7887_v21, %v7886_v19  ;;  %v2062_v23 = vadd.f32 %v7853_v20, %v1992_v16  ;;  %v8903_v16 = vpack.c.bf16 %v2330_v14, %v2327_v13  ;;  %v2337_v19 = vld [vmem:[%s14304_s5 + $0x110] sm:$0xff]  ;;  %v8930_v20 = vpack.c.bf16 %v2332_v17, %v2329_v15 }
 0x1d1   : > { %v8905_v21 = vpack.c.bf16 %v2337_v19, %v2334_v18  ;;  %v2496_v19 = vld [vmem:[%s14305_s6 + $0x20] sm:$0xff] }
 0x1d2   : > { %v2132_v24 = vadd.f32 %v7888_v22, %v2062_v23  ;;  %v2333_v22 = vld [vmem:[%s14304_s5 + $0xf0] sm:$0xff]  ;;  %v2336_v23 = vld [vmem:[%s14304_s5 + $0x108] sm:$0xff]  ;;  %8904 = vmatpush1.bf16.msra.mxu0 %v8903_v16  ;;  %8931 = vmatpush3.bf16.msra.mxu1 %v8930_v20 }
 0x1d3   : > { %8906 = vmatprep.subr.bf16.mxu0 %v8905_v21  ;;  %8932 = vmatprep.subr.bf16.mxu1 %v9789_v37  ;;  %v2497_v20 = vld [vmem:[%s14305_s6 + $0x28] sm:$0xff]  ;;  %v2498_v21 = vld [vmem:[%s14305_s6 + $0x30] sm:$0xff] }
 0x1ec   : > { %v7921_v25 = vpop.f32.mrb[14].mxu0 }
 0x1ed   : > { %v7922_v26 = vpop.f32.mrb[15].mxu0 }
 0x1ee   : > { %v7956_v27 = vpop.f32.mrb[14].mxu1  ;;  %v7923_v28 = vadd.f32 %v7922_v26, %v7921_v25  ;;  %v9790_v25 = vmov 0.0   ;;  %v8907_v26 = vpack.c.bf16 %v2336_v23, %v2333_v22  ;;  %v8942_v22 = vpack.c.bf16 %v2497_v20, %v2496_v19  ;;  %v2499_v23 = vld [vmem:[%s14305_s6 + $0x38] sm:$0xff] }
 0x1ef   : > { %v7957_v29 = vpop.f32.mrb[15].mxu1  ;;  %2415 = vmatprep.mubr.f32.mxu0 %v9790_v25  ;;  %8167 = vmatprep.mubr.msk.f32.mxu1 %vm9791_vm0, %v9790_v25  ;;  %v2507_v20 = vld [vmem:[%s14305_s6 + $0x78] sm:$0xff] }
 0x1f0   : > { %v7958_v30 = vadd.f32 %v7957_v29, %v7956_v27  ;;  %v2202_v31 = vadd.f32 %v7923_v28, %v2132_v24  ;;  %v2335_v24 = vld [vmem:[%s14304_s5 + $0x100] sm:$0xff]  ;;  %v2338_v27 = vld [vmem:[%s14304_s5 + $0x118] sm:$0xff]  ;;  %v2340_v28 = vld [vmem:[%s14304_s5 + $0x128] sm:$0xff]  ;;  %8908 = vmatpush1.bf16.msra.mxu0 %v8907_v26 }
 0x1f1   : > { %v2343_v29 = vld [vmem:[%s14304_s5 + $0x140] sm:$0xff] }
 0x1f2   : > { %v11509_v32 = vadd.f32 %v7958_v30, %v2202_v31  ;;  %v8933_v30 = vpack.c.bf16 %v2338_v27, %v2335_v24  ;;  %v8909_v31 = vpack.c.bf16 %v2343_v29, %v2340_v28  ;;  %v8945_v24 = vpack.c.bf16 %v2499_v23, %v2498_v21  ;;  %v2492_v28 = vld [vmem:[%s14305_s6] sm:$0xff]  ;;  %v2493_v29 = vld [vmem:[%s14305_s6 + $0x8] sm:$0xff] }
 0x1f4   : > { %2277 = vadd.xlane.f32.xlu0 %v11509_v32  ;;  %8934 = vmatpush3.bf16.msra.mxu1 %v8933_v30 }
 0x1f5   : > { %8910 = vmatprep.subr.bf16.mxu0 %v8909_v31  ;;  %8935 = vmatprep.subr.bf16.mxu1 %v9789_v37  ;;  %v8948_v31 = vpack.c.bf16 %v2493_v29, %v2492_v28 }
 0x1f6   : > { %8912 = vmatpush1.bf16.msra.mxu0 %v8911_v40 }
 0x1f7   : > { %8914 = vmatprep.subr.bf16.mxu0 %v8913_v42 }
 0x1f8   : > { %8937 = vmatpush3.bf16.msra.mxu1 %v8936_v41 }
 0x1f9   : > { %8938 = vmatprep.subr.bf16.mxu1 %v9789_v37 }
 0x1fa   : > { %8916 = vmatpush1.bf16.msra.mxu0 %v8915_v47 }
 0x1fb   : > { %8180 = vmatprep.subr.mxu0 %v9790_v25 }
 0x1fc   : > { %8940 = vmatpush3.bf16.msra.mxu1 %v8939_v48 }
 0x1fd   : > { %8170 = vmatprep.subr.mxu1 %v9790_v25 }
 0x281   : > { %v2278_v61 = vpop.xlane.xlu0 %2277 }
 0x282   : > { %v2280_v62 = vmul.f32 0.0078125, %v2278_v61 }
 0x284   : > { %v11571_v63 = vsub.f32 %v11509_v32, %v2280_v62 }
 0x286   : > { %v2282_v0 = vmul.f32 %v11571_v63, %v11571_v63 }
 0x288   : > { %2283 = vadd.xlane.f32.xlu0 %v2282_v0 }
 0x315   : > { %v2284_v49 = vpop.xlane.xlu0 %2283 }
 0x316   : > { %v2285_v50 = vmul.f32 0.0078125, %v2284_v49 }
 0x318   : > { %v2286_v51 = vadd.f32 1e-05, %v2285_v50 }
 0x31a   : > { %9715 = vrsqrt.f32 %v2286_v51 }
 0x324   : > { %v9716_v52 = vpop.eup %9715 }
 0x325   : > { %v2288_v54 = vmul.f32 %v9716_v52, %v11571_v63 }
 0x327   : > { %v2295_v56 = vmul.f32 %v7211_v53, %v2288_v54 }
 0x329   : > { %v2302_v57 = vadd.f32 %v7212_v55, %v2295_v56 }
 0x32b   : > { %2416 = vmatmul.mubr.f32.vlgmr.msra.gmra.mrb[16].mxu0 %v2302_v57  ;;  %8168 = vmatmul.mubr.f32.vlgmr.msra.gmra.mrb[16].mxu1 %v2302_v57 }
 0x32c   : > { %8172 = vmatprep.mubr.msk.f32.mxu1 %vm9791_vm0, %v9790_v25  ;;  %8182 = vmatprep.mubr.msk.f32.mxu0 %vm9791_vm0, %v9790_v25 }
 0x3fe   : > { %v11685_v58 = vpop.f32.mrb[16].mxu0  ;;  %v11687_v59 = vpop.f32.mrb[16].mxu1 }
 0x3ff   : > { %v11689_v60 = vpop.f32.mrb[17].mxu0  ;;  %v8169_v61 = vpop.f32.mrb[17].mxu1 }
 0x400   : > { %2672 = vrot.lane.b32.xlu1 %v11689_v60, %s9792_s29  ;;  %8171 = vmatpush3.xpose.msk.msra.mxu1 %vm2508_vm1, %v11689_v60  ;;  %v2500_v61 = vld [vmem:[%s14305_s6 + $0x40] sm:$0xff] }
 0x401   : > { %8175 = vmatprep.subr.mxu1 %v9790_v25 }
 0x403   : > { %8173 = vmatmul.mubr.msk.f32.vlgmr.msra.gmra.mrb[18].mxu1 %vm2508_vm1, %v11685_v58 }
 0x404   : > { %2670 = vrot.lane.b32.xlu1 %v11685_v58, %s9792_s29  ;;  %8176 = vmatpush3.msra.mxu1 %v11687_v59 }
 0x405   : > { %8177 = vmatprep.mubr.msk.f32.mxu1 %vm9791_vm0, %v9790_v25  ;;  %8185 = vmatprep.subr.mxu1 %v9790_v25 }
 0x472   : > { %v2673_v62 = vpop.permute.xlu1 %2672 }
 0x473   : > { %8181 = vmatpush3.xpose.msk.msra.mxu0 %vm2508_vm1, %v2673_v62  ;;  %v2502_v62 = vld [vmem:[%s14305_s6 + $0x50] sm:$0xff] }
 0x474   : > { %8941 = vmatprep.subr.bf16.mxu0 %v9789_v37 }
 0x476   : > { %v2671_v63 = vpop.permute.xlu1 %2670 }
 0x477   : > { %8183 = vmatmul.mubr.msk.f32.vlgmr.msra.gmra.mrb[18].mxu0 %vm2508_vm1, %v2671_v63 }
 0x478   : > { %8198 = vmatprep.mubr.msk.f32.mxu0 %vm9791_vm0, %v9790_v25  ;;  %8943 = vmatpush3.bf16.msra.mxu0 %v8942_v22 }
 0x479   : > { %8944 = vmatprep.subr.bf16.mxu0 %v9789_v37 }
 0x47c   : > { %8946 = vmatpush3.bf16.msra.mxu0 %v8945_v24 }
 0x47d   : > { %8212 = vmatprep.subr.mxu0 %v9790_v25 }
 0x4d6   : > { %v2581_v0 = vpop.f32.mrb[18].mxu1 }
 0x4d7   : > { %v8174_v1 = vpop.f32.mrb[19].mxu1  ;;  %v2586_v2 = vsel %vm2585_vm2, %v2581_v0, -inf }
 0x4d8   : > { %2587 = vmax.xlane.f32.xlu0 %v2586_v2 }
 0x54a   : > { %v2744_v3 = vpop.f32.mrb[18].mxu0 }
 0x54b   : > { %v8184_v4 = vpop.f32.mrb[19].mxu0  ;;  %v2748_v5 = vsel %vm2585_vm2, %v2744_v3, -inf }
 0x54c   : > { %2749 = vmax.xlane.f32.xlu1 %v2748_v5 }
 0x55d   : > { %2982 = vrot.lane.b32.xlu1 %v11685_v58, %s14329_s21 }
 0x565   : > { %v2588_v6 = vpop.xlane.xlu0 %2587 }
 0x566   : > { %v2589_v7 = vsub.f32 %v2581_v0, %v2588_v6  ;;  %v2503_v0 = vld [vmem:[%s14305_s6 + $0x58] sm:$0xff] }
 0x567   : > { %v8957_v1 = vpack.c.bf16 %v2503_v0, %v2502_v62  ;;  %v3509_v62 = vld [vmem:[%s14309_s10 + $0x68] sm:$0xff] }
 0x568   : > { %v2590_v8 = vmul.f32 1.442695, %v2589_v7 }
 0x56a   : > { %9717 = vpow2.f32 %v2590_v8 }
 0x574   : > { %v9718_v9 = vpop.eup %9717 }
 0x575   : > { %v2592_v10 = vsel %vm2585_vm2, %v9718_v9, 0.0 }
 0x576   : > { %2593 = vadd.xlane.f32.xlu0 %v2592_v10 }
 0x5d9   : > { %v2750_v11 = vpop.xlane.xlu1 %2749 }
 0x5da   : > { %v2751_v12 = vsub.f32 %v2744_v3, %v2750_v11 }
 0x5dc   : > { %v2752_v13 = vmul.f32 1.442695, %v2751_v12 }
 0x5dd   : > { %v2983_v43 = vpop.permute.xlu1 %2982 }
 0x5de   : > { %9719 = vpow2.f32 %v2752_v13 }
 0x5e8   : > { %v9720_v14 = vpop.eup %9719 }
 0x5e9   : > { %v2754_v15 = vsel %vm2585_vm2, %v9720_v14, 0.0 }
 0x5ea   : > { %2755 = vadd.xlane.f32.xlu0 %v2754_v15 }
 0x600   : > { %2760 = vrot.lane.b32.xlu0 %v11687_v59, %s9792_s29 }
 0x603   : > { %v2594_v16 = vpop.xlane.xlu0 %2593 }
 0x604   : > { %9721 = vrcp.f32 %v2594_v16  ;;  %2984 = vrot.lane.b32.xlu0 %v11689_v60, %s14329_s21 }
 0x60e   : > { %v9722_v17 = vpop.eup %9721 }
 0x60f   : > { %v2596_v18 = vmul.f32 %v9722_v17, %v9718_v9  ;;  %v2504_v17 = vld [vmem:[%s14305_s6 + $0x60] sm:$0xff] }
 0x611   : > { %8178 = vmatmul.mubr.msk.f32.vlgmr.msra.gmra.mrb[20].mxu1 %vm2585_vm2, %v2596_v18  ;;  %v2505_v18 = vld [vmem:[%s14305_s6 + $0x68] sm:$0xff] }
 0x612   : > { %8187 = vmatprep.mubr.msk.f32.mxu1 %vm9791_vm0, %v9790_v25  ;;  %v8960_v19 = vpack.c.bf16 %v2505_v18, %v2504_v17  ;;  %v3520_v18 = vld [vmem:[%s14309_s10 + $0xc0] sm:$0xff] }
 0x677   : > { %v2756_v26 = vpop.xlane.xlu0 %2755 }
 0x678   : > { %9723 = vrcp.f32 %v2756_v26 }
 0x67b   : > { %v2761_v27 = vpop.permute.xlu0 %2760 }
 0x67c   : > { %8186 = vmatpush3.msra.mxu1 %v2761_v27 }
 0x67d   : > { %8947 = vmatprep.subr.bf16.mxu1 %v9789_v37 }
 0x67f   : > { %v2985_v41 = vpop.permute.xlu0 %2984 }
 0x682   : > { %v9724_v30 = vpop.eup %9723 }
 0x683   : > { %v2758_v33 = vmul.f32 %v9724_v30, %v9720_v14 }
 0x685   : > { %8188 = vmatmul.mubr.msk.f32.vlgmr.msra.gmra.mrb[22].mxu1 %vm2585_vm2, %v2758_v33 }
 0x686   : > { %8949 = vmatpush3.bf16.msra.mxu1 %v8948_v31  ;;  %8209 = vmatprep.mubr.msk.f32.mxu1 %vm9791_vm0, %v9790_v25 }
 0x687   : > { %8950 = vmatprep.subr.bf16.mxu1 %v9789_v37 }
 0x68a   : > { %8952 = vmatpush3.bf16.msra.mxu1 %v8951_v36 }
 0x68b   : > { %8217 = vmatprep.subr.mxu1 %v9790_v25 }
 0x6e4   : > { %v2666_v38 = vpop.f32.mrb[20].mxu1 }
 0x6e5   : > { %v8179_v39 = vpop.f32.mrb[21].mxu1  ;;  %8210 = vmatmul.mubr.msk.f32.vlgmr.msra.gmra.mrb[24].mxu1 %vm2508_vm1, %v2666_v38 }
 0x6e6   : > { %8219 = vmatprep.mubr.msk.f32.mxu1 %vm9791_vm0, %v9790_v25  ;;  %v3497_v39 = vld [vmem:[%s14309_s10 + $0x8] sm:$0xff] }
 0x758   : > { %v2832_v40 = vpop.f32.mrb[22].mxu1 }
 0x759   : > { %v8189_v42 = vpop.f32.mrb[23].mxu1  ;;  %8199 = vmatmul.mubr.msk.f32.vlgmr.msra.gmra.mrb[20].mxu0 %vm2508_vm1, %v2832_v40  ;;  %v3499_v40 = vld [vmem:[%s14309_s10 + $0x18] sm:$0xff] }
 0x75a   : > { %8213 = vmatpush3.xpose.msk.msra.mxu0 %vm2508_vm1, %v2985_v41  ;;  %8214 = vmatprep.mubr.msk.f32.mxu0 %vm9791_vm0, %v9790_v25  ;;  %v3496_v41 = vld [vmem:[%s14309_s10] sm:$0xff]  ;;  %v8965_v42 = vpack.c.bf16 %v3499_v40, %v3497_v39  ;;  %v3623_v39 = vld [vmem:[%s14311_s12 + $0x10] sm:$0xff]  ;;  %v3624_v40 = vld [vmem:[%s14311_s12 + $0x18] sm:$0xff] }
 0x75b   : > { %8953 = vmatprep.subr.bf16.mxu0 %v9789_v37 }
 0x75d   : > { %8215 = vmatmul.mubr.msk.f32.vlgmr.msra.gmra.mrb[22].mxu0 %vm2508_vm1, %v2983_v43  ;;  %v3501_v43 = vld [vmem:[%s14309_s10 + $0x28] sm:$0xff] }
 0x75e   : > { %8230 = vmatprep.mubr.msk.f32.mxu0 %vm9791_vm0, %v9790_v25 }
 0x7b8   : > { %v2978_v44 = vpop.f32.mrb[24].mxu1 }
 0x7b9   : > { %v8211_v45 = vpop.f32.mrb[25].mxu1 }
 0x82c   : > { %v2905_v46 = vpop.f32.mrb[20].mxu0 }
 0x82d   : > { %v11765_v47 = vadd.f32 %v2978_v44, %v2905_v46  ;;  %v8200_v48 = vpop.f32.mrb[21].mxu0  ;;  %v3503_v44 = vld [vmem:[%s14309_s10 + $0x38] sm:$0xff] }
 0x82e   : > { %v8969_v46 = vpack.c.bf16 %v3503_v44, %v3501_v43  ;;  %v3502_v48 = vld [vmem:[%s14309_s10 + $0x30] sm:$0xff]  ;;  %v3625_v44 = vld [vmem:[%s14311_s12 + $0x20] sm:$0xff] }
 0x830   : > { %v3056_v49 = vpop.f32.mrb[22].mxu0 }
 0x831   : > { %v8216_v50 = vpop.f32.mrb[23].mxu0  ;;  %v3060_v51 = vsel %vm2585_vm2, %v3056_v49, -inf }
 0x832   : > { %3061 = vmax.xlane.f32.xlu0 %v3060_v51  ;;  %v3507_v50 = vld [vmem:[%s14309_s10 + $0x58] sm:$0xff] }
 0x848   : > { %3071 = vrot.lane.b32.xlu0 %v11687_v59, %s14329_s21 }
 0x84c   : > { %3221 = vrot.lane.b32.xlu0 %v11685_v58, %s14327_s3  ;;  %v2501_v58 = vld [vmem:[%s14305_s6 + $0x48] sm:$0xff] }
 0x84d   : > { %v8954_v63 = vpack.c.bf16 %v2501_v58, %v2500_v61 }
 0x84f   : > { %8955 = vmatpush3.bf16.msra.mxu0 %v8954_v63  ;;  %v3511_v63 = vld [vmem:[%s14309_s10 + $0x78] sm:$0xff] }
 0x850   : > { %8956 = vmatprep.subr.bf16.mxu0 %v9789_v37  ;;  %v8977_v0 = vpack.c.bf16 %v3511_v63, %v3509_v62  ;;  %v3628_v62 = vld [vmem:[%s14311_s12 + $0x38] sm:$0xff] }
 0x853   : > { %8958 = vmatpush3.bf16.msra.mxu0 %v8957_v1  ;;  %v3508_v1 = vld [vmem:[%s14309_s10 + $0x60] sm:$0xff] }
 0x854   : > { %8959 = vmatprep.subr.bf16.mxu0 %v9789_v37 }
 0x8bf   : > { %v3062_v52 = vpop.xlane.xlu0 %3061 }
 0x8c0   : > { %v3063_v53 = vsub.f32 %v3056_v49, %v3062_v52  ;;  %v3505_v49 = vld [vmem:[%s14309_s10 + $0x48] sm:$0xff] }
 0x8c1   : > { %v8973_v52 = vpack.c.bf16 %v3507_v50, %v3505_v49 }
 0x8c2   : > { %v3064_v54 = vmul.f32 1.442695, %v3063_v53  ;;  %v3504_v53 = vld [vmem:[%s14309_s10 + $0x40] sm:$0xff] }
 0x8c3   : > { %v3072_v55 = vpop.permute.xlu0 %3071 }
 0x8c4   : > { %9725 = vpow2.f32 %v3064_v54  ;;  %8218 = vmatpush3.msra.mxu1 %v3072_v55  ;;  %v3506_v54 = vld [vmem:[%s14309_s10 + $0x50] sm:$0xff] }
 0x8c5   : > { %8233 = vmatprep.subr.mxu1 %v9790_v25  ;;  %v8975_v55 = vpack.c.bf16 %v3506_v54, %v3504_v53  ;;  %v7231_v53 = vld [vmem:[%s14308_s9] ss:$0 sm:$0xff] }
 0x8c7   : > { %v3222_v5 = vpop.permute.xlu0 %3221 }
 0x8ce   : > { %v9726_v56 = vpop.eup %9725 }
 0x8cf   : > { %v3066_v57 = vsel %vm2585_vm2, %v9726_v56, 0.0 }
 0x8d0   : > { %3067 = vadd.xlane.f32.xlu1 %v3066_v57 }
 0x8e1   : > { %3223 = vrot.lane.b32.xlu1 %v11689_v60, %s14327_s3 }
 0x95d   : > { %v3068_v60 = vpop.xlane.xlu1 %3067 }
 0x95e   : > { %9727 = vrcp.f32 %v3068_v60  ;;  %v3510_v60 = vld [vmem:[%s14309_s10 + $0x70] sm:$0xff] }
 0x961   : > { %v3224_v4 = vpop.permute.xlu1 %3223 }
 0x968   : > { %v9728_v2 = vpop.eup %9727 }
 0x969   : > { %v3070_v3 = vmul.f32 %v9728_v2, %v9726_v56  ;;  %v8979_v2 = vpack.c.bf16 %v3510_v60, %v3508_v1  ;;  %v3646_v1 = vld [vmem:[%s14311_s12 + $0xc8] sm:$0xff] }
 0x96b   : > { %8220 = vmatmul.mubr.msk.f32.vlgmr.msra.gmra.mrb[26].mxu1 %vm2585_vm2, %v3070_v3  ;;  %v3513_v3 = vld [vmem:[%s14309_s10 + $0x88] sm:$0xff] }
 0x96c   : > { %8234 = vmatpush3.xpose.msk.msra.mxu1 %vm2508_vm1, %v3224_v4  ;;  %8235 = vmatprep.mubr.msk.f32.mxu1 %vm9791_vm0, %v9790_v25  ;;  %v3515_v4 = vld [vmem:[%s14309_s10 + $0x98] sm:$0xff] }
 0x96d   : > { %8238 = vmatprep.subr.mxu1 %v9790_v25 }
 0x96f   : > { %8236 = vmatmul.mubr.msk.f32.vlgmr.msra.gmra.mrb[28].mxu1 %vm2508_vm1, %v3222_v5  ;;  %v8981_v5 = vpack.c.bf16 %v3515_v4, %v3513_v3  ;;  %v3630_v3 = vld [vmem:[%s14311_s12 + $0x48] sm:$0xff] }
 0x970   : > { %8240 = vmatprep.mubr.msk.f32.mxu1 %vm9791_vm0, %v9790_v25 }
 0xa3e   : > { %v3143_v6 = vpop.f32.mrb[26].mxu1 }
 0xa3f   : > { %v8221_v7 = vpop.f32.mrb[27].mxu1  ;;  %8231 = vmatmul.mubr.msk.f32.vlgmr.msra.gmra.mrb[24].mxu0 %vm2508_vm1, %v3143_v6  ;;  %v3512_v6 = vld [vmem:[%s14309_s10 + $0x80] sm:$0xff] }
 0xa40   : > { %8251 = vmatprep.mubr.msk.f32.mxu0 %vm9791_vm0, %v9790_v25  ;;  %8961 = vmatpush3.bf16.msra.mxu0 %v8960_v19  ;;  %v3514_v7 = vld [vmem:[%s14309_s10 + $0x90] sm:$0xff]  ;;  %v3525_v19 = vld [vmem:[%s14309_s10 + $0xe8] sm:$0xff] }
 0xa41   : > { %8962 = vmatprep.subr.bf16.mxu0 %v9789_v37 }
 0xa42   : > { %v3295_v8 = vpop.f32.mrb[28].mxu1 }
 0xa43   : > { %v8237_v9 = vpop.f32.mrb[29].mxu1  ;;  %v3299_v10 = vsel %vm2585_vm2, %v3295_v8, -inf }
 0xa44   : > { %3300 = vmax.xlane.f32.xlu0 %v3299_v10  ;;  %v8983_v9 = vpack.c.bf16 %v3514_v7, %v3512_v6  ;;  %v3519_v10 = vld [vmem:[%s14309_s10 + $0xb8] sm:$0xff] }
 0xa45   : > { %v3648_v6 = vld [vmem:[%s14311_s12 + $0xd8] sm:$0xff] }
 0xa5a   : > { %3310 = vrot.lane.b32.xlu0 %v11687_v59, %s14327_s3  ;;  %v2506_v59 = vld [vmem:[%s14305_s6 + $0x70] sm:$0xff]  ;;  %s14348_s3 = sshll.u32 %s10030_s27, 8 }
 0xa5b   : > { %v8963_v21 = vpack.c.bf16 %v2507_v20, %v2506_v59  ;;  %v3522_v59 = vld [vmem:[%s14309_s10 + $0xd0] sm:$0xff]  ;;  %v3527_v20 = vld [vmem:[%s14309_s10 + $0xf8] sm:$0xff]  ;;  %s14171_s23 = scalar_lea.vmem %s14318_s19, %s14348_s3  ;;  %s14350_s3 = sld [smem:[#allocation4_spill]] (%p9920_p4) }
 0xa5d   : > { %8964 = vmatpush3.bf16.msra.mxu0 %v8963_v21  ;;  %v8991_v21 = vpack.c.bf16 %v3522_v59, %v3520_v18  ;;  %v3652_v18 = vld [vmem:[%s14311_s12 + $0xf8] sm:$0xff] }
 0xa61   : > { %s7394_s21 = sshll.u32 (%p9920_p4), %s14350_s3, 3 }
 0xad1   : > { %v3301_v11 = vpop.xlane.xlu0 %3300 }
 0xad2   : > { %v3302_v12 = vsub.f32 %v3295_v8, %v3301_v11  ;;  %v3517_v8 = vld [vmem:[%s14309_s10 + $0xa8] sm:$0xff]  ;;  %v3516_v11 = vld [vmem:[%s14309_s10 + $0xa0] sm:$0xff] }
 0xad4   : > { %v3303_v13 = vmul.f32 1.442695, %v3302_v12  ;;  %v3518_v12 = vld [vmem:[%s14309_s10 + $0xb0] sm:$0xff] }
 0xad5   : > { %v3311_v14 = vpop.permute.xlu0 %3310 }
 0xad6   : > { %9729 = vpow2.f32 %v3303_v13  ;;  %8239 = vmatpush3.msra.mxu1 %v3311_v14  ;;  %v8985_v13 = vpack.c.bf16 %v3519_v10, %v3517_v8  ;;  %v3521_v14 = vld [vmem:[%s14309_s10 + $0xc8] sm:$0xff]  ;;  %v3631_v8 = vld [vmem:[%s14311_s12 + $0x50] sm:$0xff] }
 0xad7   : > { %8966 = vmatprep.subr.bf16.mxu1 %v8965_v42  ;;  %v3642_v42 = vld [vmem:[%s14311_s12 + $0xa8] sm:$0xff] }
 0xae0   : > { %v9730_v15 = vpop.eup %9729 }
 0xae1   : > { %v3305_v16 = vsel %vm2585_vm2, %v9730_v15, 0.0 }
 0xae2   : > { %3306 = vadd.xlane.f32.xlu1 %v3305_v16  ;;  %v8987_v16 = vpack.c.bf16 %v3518_v12, %v3516_v11  ;;  %v3649_v11 = vld [vmem:[%s14311_s12 + $0xe0] sm:$0xff]  ;;  %v3650_v12 = vld [vmem:[%s14311_s12 + $0xe8] sm:$0xff] }
 0xb12   : > { %v3216_v22 = vpop.f32.mrb[24].mxu0 }
 0xb13   : > { %v3220_v23 = vadd.f32 %v3216_v22, %v11765_v47  ;;  %v8232_v24 = vpop.f32.mrb[25].mxu0  ;;  %v3500_v47 = vld [vmem:[%s14309_s10 + $0x20] sm:$0xff]  ;;  %v8993_v22 = vpack.c.bf16 %v3527_v20, %v3525_v19  ;;  %v3635_v19 = vld [vmem:[%s14311_s12 + $0x70] sm:$0xff]  ;;  %v3636_v20 = vld [vmem:[%s14311_s12 + $0x78] sm:$0xff] }
 0xb14   : > { %v8971_v51 = vpack.c.bf16 %v3502_v48, %v3500_v47  ;;  %v3526_v24 = vld [vmem:[%s14309_s10 + $0xf0] sm:$0xff] }
 0xb6f   : > { %v3307_v26 = vpop.xlane.xlu1 %3306 }
 0xb70   : > { %9731 = vrcp.f32 %v3307_v26 }
 0xb7a   : > { %v9732_v27 = vpop.eup %9731 }
 0xb7b   : > { %v3309_v28 = vmul.f32 %v9732_v27, %v9730_v15  ;;  %v3523_v15 = vld [vmem:[%s14309_s10 + $0xd8] sm:$0xff]  ;;  %v3637_v27 = vld [vmem:[%s14311_s12 + $0x80] sm:$0xff] }
 0xb7c   : > { %v8989_v17 = vpack.c.bf16 %v3523_v15, %v3521_v14  ;;  %v3633_v14 = vld [vmem:[%s14311_s12 + $0x60] sm:$0xff]  ;;  %v3634_v15 = vld [vmem:[%s14311_s12 + $0x68] sm:$0xff] }
 0xb7d   : > { %8241 = vmatmul.mubr.msk.f32.vlgmr.msra.gmra.mrb[30].mxu1 %vm2585_vm2, %v3309_v28  ;;  %v3638_v28 = vld [vmem:[%s14311_s12 + $0x88] sm:$0xff] }
 0xb7e   : > { %3604 = vmatprep.mubr.f32.mxu1 %v9790_v25 }
 0xc50   : > { %v3382_v29 = vpop.f32.mrb[30].mxu1 }
 0xc51   : > { %v8242_v30 = vpop.f32.mrb[31].mxu1  ;;  %8252 = vmatmul.mubr.msk.f32.vlgmr.msra.gmra.mrb[26].mxu0 %vm2508_vm1, %v3382_v29  ;;  %v3621_v29 = vld [vmem:[%s14311_s12] sm:$0xff] }
 0xc52   : > { %v8997_v30 = vpack.c.bf16 %v3638_v28, %v3637_v27 }
 0xc54   : > { %8998 = vmatprep.subr.bf16.mxu0 %v8997_v30 }
 0xd24   : > { %v3455_v31 = vpop.f32.mrb[26].mxu0 }
 0xd25   : > { %v3459_v33 = vadd.f32 %v3455_v31, %v3220_v23  ;;  %v8253_v34 = vpop.f32.mrb[27].mxu0  ;;  %v3524_v23 = vld [vmem:[%s14309_s10 + $0xe0] sm:$0xff]  ;;  %v3622_v31 = vld [vmem:[%s14311_s12 + $0x8] sm:$0xff] }
 0xd26   : > { %v8995_v26 = vpack.c.bf16 %v3526_v24, %v3524_v23  ;;  %v3640_v34 = vld [vmem:[%s14311_s12 + $0x98] sm:$0xff] }
 0xd27   : > { %v3460_v36 = vadd.f32 %v3459_v33, %v11509_v32  ;;  %v3498_v32 = vld [vmem:[%s14309_s10 + $0x10] sm:$0xff] }
 0xd28   : > { %v8967_v45 = vpack.c.bf16 %v3498_v32, %v3496_v41  ;;  %v3639_v33 = vld [vmem:[%s14311_s12 + $0x90] sm:$0xff]  ;;  %v3641_v41 = vld [vmem:[%s14311_s12 + $0xa0] sm:$0xff]  ;;  %v9003_v32 = vpack.c.bf16 %v3624_v40, %v3623_v39 }
 0xd29   : > { %v11826_v38 = vadd.f32 %v7229_v35, %v3460_v36  ;;  %v8999_v35 = vpack.c.bf16 %v3622_v31, %v3621_v29  ;;  %v9001_v36 = vpack.c.bf16 %v3640_v34, %v3639_v33  ;;  %v9005_v43 = vpack.c.bf16 %v3642_v42, %v3641_v41 }
 0xd2a   : > { %8968 = vmatpush1.bf16.msra.mxu1 %v8967_v45  ;;  %v3626_v45 = vld [vmem:[%s14311_s12 + $0x28] sm:$0xff] }
 0xd2b   : > { %3471 = vadd.xlane.f32.xlu1 %v11826_v38  ;;  %8970 = vmatprep.subr.bf16.mxu1 %v8969_v46  ;;  %v9007_v46 = vpack.c.bf16 %v3626_v45, %v3625_v44 }
 0xd2c   : > { %9000 = vmatpush3.bf16.msra.mxu0 %v8999_v35 }
 0xd2d   : > { %9002 = vmatprep.subr.bf16.mxu0 %v9001_v36 }
 0xd2e   : > { %8972 = vmatpush1.bf16.msra.mxu1 %v8971_v51  ;;  %v7230_v51 = vld [vmem:[%s14307_s8] ss:$0 sm:$0xff] }
 0xd2f   : > { %8974 = vmatprep.subr.bf16.mxu1 %v8973_v52 }
 0xd30   : > { %9004 = vmatpush3.bf16.msra.mxu0 %v9003_v32 }
 0xd31   : > { %9006 = vmatprep.subr.bf16.mxu0 %v9005_v43 }
 0xd32   : > { %8976 = vmatpush1.bf16.msra.mxu1 %v8975_v55 }
 0xd33   : > { %8978 = vmatprep.subr.bf16.mxu1 %v8977_v0  ;;  %v3645_v0 = vld [vmem:[%s14311_s12 + $0xc0] sm:$0xff] }
 0xd34   : > { %9008 = vmatpush3.bf16.msra.mxu0 %v9007_v46  ;;  %v9013_v60 = vpack.c.bf16 %v3646_v1, %v3645_v0  ;;  %v7243_v0 = vld [vmem:[%s14304_s5 + $0x1b0] sm:$0xff] }
 0xd36   : > { %8980 = vmatpush1.bf16.msra.mxu1 %v8979_v2  ;;  %v3629_v2 = vld [vmem:[%s14311_s12 + $0x40] sm:$0xff] }
 0xd37   : > { %8982 = vmatprep.subr.bf16.mxu1 %v8981_v5  ;;  %v9015_v4 = vpack.c.bf16 %v3630_v3, %v3629_v2  ;;  %v3647_v5 = vld [vmem:[%s14311_s12 + $0xd0] sm:$0xff]  ;;  %v7245_v2 = vld [vmem:[%s14304_s5 + $0x1c0] sm:$0xff]  ;;  %v7248_v3 = vld [vmem:[%s14304_s5 + $0x1d8] sm:$0xff] }
 0xd38   : > { %v9017_v7 = vpack.c.bf16 %v3648_v6, %v3647_v5  ;;  %v9065_v5 = vpack.c.bf16 %v7248_v3, %v7245_v2  ;;  %v7250_v6 = vld [vmem:[%s14304_s5 + $0x1e8] sm:$0xff]  ;;  %v7281_v2 = vld [vmem:[%s14304_s5 + $0x2e0] sm:$0xff]  ;;  %v7284_v3 = vld [vmem:[%s14304_s5 + $0x2f8] sm:$0xff] }
 0xd3a   : > { %8984 = vmatpush1.bf16.msra.mxu1 %v8983_v9  ;;  %v3632_v9 = vld [vmem:[%s14311_s12 + $0x58] sm:$0xff] }
 0xd3b   : > { %8986 = vmatprep.subr.bf16.mxu1 %v8985_v13  ;;  %v9019_v10 = vpack.c.bf16 %v3632_v9, %v3631_v8  ;;  %v9021_v13 = vpack.c.bf16 %v3650_v12, %v3649_v11  ;;  %v7249_v8 = vld [vmem:[%s14304_s5 + $0x1e0] sm:$0xff]  ;;  %v7251_v11 = vld [vmem:[%s14304_s5 + $0x1f0] sm:$0xff]  ;;  %v7254_v12 = vld [vmem:[%s14304_s5 + $0x208] sm:$0xff] }
 0xd3e   : > { %8988 = vmatpush1.bf16.msra.mxu1 %v8987_v16  ;;  %v9023_v16 = vpack.c.bf16 %v3634_v15, %v3633_v14  ;;  %v9068_v14 = vpack.c.bf16 %v7254_v12, %v7251_v11  ;;  %v7236_v12 = vld [vmem:[%s14303_s4 + $0x1] ss:$0 sm:$0xff] }
 0xd3f   : > { %8990 = vmatprep.subr.bf16.mxu1 %v8989_v17  ;;  %v3651_v17 = vld [vmem:[%s14311_s12 + $0xf0] sm:$0xff] }
 0xd40   : > { %v9025_v59 = vpack.c.bf16 %v3652_v18, %v3651_v17 }
 0xd42   : > { %8992 = vmatpush1.bf16.msra.mxu1 %v8991_v21  ;;  %v9027_v21 = vpack.c.bf16 %v3636_v20, %v3635_v19  ;;  %v7259_v19 = vld [vmem:[%s14304_s5 + $0x230] sm:$0xff] }
 0xd43   : > { %8994 = vmatprep.subr.bf16.mxu1 %v8993_v22  ;;  %v3530_v22 = vlaneseq }
 0xd45   : > { %v12035_v23 = vshrl.u32 %v3530_v22, 7  ;;  %v7258_v22 = vld [vmem:[%s14304_s5 + $0x228] sm:$0xff] }
 0xd46   : > { %8996 = vmatpush1.bf16.msra.mxu1 %v8995_v26  ;;  %v3528_v26 = vld [vmem:[%s14310_s11] sm:$0x3] }
 0xd47   : > { %v12038_v24 = vsub.s32 0, %v12035_v23  ;;  %v12044_v27 = vsub.s32 1, %v12035_v23 }
 0xd49   : > { %v3533_v28 = vrot.slane %v3528_v26, %v12038_v24  ;;  %v3537_v29 = vrot.slane %v3528_v26, %v12044_v27  ;;  %v7257_v26 = vld [vmem:[%s14304_s5 + $0x220] sm:$0xff] }
 0xdb8   : > { %v3472_v56 = vpop.xlane.xlu1 %3471 }
 0xdb9   : > { %v3473_v57 = vmul.f32 0.0078125, %v3472_v56  ;;  %v3643_v56 = vld [vmem:[%s14311_s12 + $0xb0] sm:$0xff] }
 0xdbb   : > { %v11866_v61 = vsub.f32 %v11826_v38, %v3473_v57  ;;  %v3644_v57 = vld [vmem:[%s14311_s12 + $0xb8] sm:$0xff] }
 0xdbd   : > { %v3475_v58 = vmul.f32 %v11866_v61, %v11866_v61 }
 0xdbf   : > { %3476 = vadd.xlane.f32.xlu1 %v3475_v58  ;;  %v9009_v58 = vpack.c.bf16 %v3644_v57, %v3643_v56  ;;  %v7239_v56 = vld [vmem:[%s14304_s5 + $0x190] sm:$0xff]  ;;  %v7242_v57 = vld [vmem:[%s14304_s5 + $0x1a8] sm:$0xff] }
 0xdc1   : > { %9010 = vmatprep.subr.bf16.mxu0 %v9009_v58 }
 0xe4c   : > { %v3477_v47 = vpop.xlane.xlu1 %3476 }
 0xe4d   : > { %v3478_v48 = vmul.f32 0.0078125, %v3477_v47  ;;  %v7232_v47 = vld [vmem:[%s14312_s13] ss:$0 sm:$0xff] }
 0xe4f   : > { %v3479_v49 = vadd.f32 1e-05, %v3478_v48 }
 0xe51   : > { %9733 = vrsqrt.f32 %v3479_v49 }
 0xe5b   : > { %v9734_v50 = vpop.eup %9733 }
 0xe5c   : > { %v3481_v52 = vmul.f32 %v9734_v50, %v11866_v61  ;;  %v3627_v61 = vld [vmem:[%s14311_s12 + $0x30] sm:$0xff] }
 0xe5d   : > { %v9011_v63 = vpack.c.bf16 %v3628_v62, %v3627_v61  ;;  %v9062_v61 = vpack.c.bf16 %v7242_v57, %v7239_v56  ;;  %v7244_v62 = vld [vmem:[%s14304_s5 + $0x1b8] sm:$0xff]  ;;  %v7275_v56 = vld [vmem:[%s14304_s5 + $0x2b0] sm:$0xff]  ;;  %v7278_v57 = vld [vmem:[%s14304_s5 + $0x2c8] sm:$0xff] }
 0xe5e   : > { %v3488_v54 = vmul.f32 %v7230_v51, %v3481_v52  ;;  %v7238_v52 = vld [vmem:[%s14304_s5 + $0x188] sm:$0xff] }
 0xe5f   : > { %9012 = vmatpush3.bf16.msra.mxu0 %v9011_v63  ;;  %v7247_v63 = vld [vmem:[%s14304_s5 + $0x1d0] sm:$0xff] }
 0xe60   : > { %v3495_v55 = vadd.f32 %v7231_v53, %v3488_v54  ;;  %9014 = vmatprep.subr.bf16.mxu0 %v9013_v60  ;;  %v7241_v53 = vld [vmem:[%s14304_s5 + $0x1a0] sm:$0xff]  ;;  %v9033_v1 = vpack.c.bf16 %v7247_v63, %v7244_v62  ;;  %v7246_v60 = vld [vmem:[%s14304_s5 + $0x1c8] sm:$0xff]  ;;  %v9080_v63 = vpack.c.bf16 %v7278_v57, %v7275_v56 }
 0xe61   : > { %v9029_v54 = vpack.c.bf16 %v7241_v53, %v7238_v52  ;;  %v7277_v52 = vld [vmem:[%s14304_s5 + $0x2c0] sm:$0xff] }
 0xe62   : > { %3605 = vmatmul.mubr.f32.vlgmr.msra.gmra.mrb[32].mxu1 %v3495_v55  ;;  %v7240_v55 = vld [vmem:[%s14304_s5 + $0x198] sm:$0xff] }
 0xe63   : > { %3874 = vmatprep.mubr.f32.mxu1 %v9790_v25  ;;  %9016 = vmatpush3.bf16.msra.mxu0 %v9015_v4  ;;  %v9035_v4 = vpack.c.bf16 %v7246_v60, %v7243_v0  ;;  %v7282_v60 = vld [vmem:[%s14304_s5 + $0x2e8] sm:$0xff] }
 0xe64   : > { %9018 = vmatprep.subr.bf16.mxu0 %v9017_v7  ;;  %9030 = vmatprep.subr.bf16.mxu1 %v9029_v54  ;;  %v7253_v7 = vld [vmem:[%s14304_s5 + $0x200] sm:$0xff] }
 0xe65   : > { %v9037_v9 = vpack.c.bf16 %v7253_v7, %v7250_v6  ;;  %v7273_v54 = vld [vmem:[%s14304_s5 + $0x2a0] sm:$0xff] }
 0xe67   : > { %9020 = vmatpush3.bf16.msra.mxu0 %v9019_v10  ;;  %v7252_v10 = vld [vmem:[%s14304_s5 + $0x1f8] sm:$0xff] }
 0xe68   : > { %9022 = vmatprep.subr.bf16.mxu0 %v9021_v13  ;;  %v9039_v13 = vpack.c.bf16 %v7252_v10, %v7249_v8  ;;  %v7235_v10 = vld [vmem:[%s14345_s25 + $0x1] ss:$0 sm:$0xff] }
 0xe6b   : > { %9024 = vmatpush3.bf16.msra.mxu0 %v9023_v16 }
 0xe6c   : > { %9026 = vmatprep.subr.bf16.mxu0 %v9025_v59  ;;  %v7256_v59 = vld [vmem:[%s14304_s5 + $0x218] sm:$0xff] }
 0xe6d   : > { %v9041_v20 = vpack.c.bf16 %v7259_v19, %v7256_v59 }
 0xe6f   : > { %9028 = vmatpush3.bf16.msra.mxu0 %v9027_v21  ;;  %v7255_v21 = vld [vmem:[%s14304_s5 + $0x210] sm:$0xff] }
 0xe70   : > { %9061 = vmatprep.subr.bf16.mxu0 %v9789_v37 }
 0xf35   : > { %v3606_v30 = vpop.f32.mrb[32].mxu1 }
 0xf36   : > { %v3607_v31 = vadd.f32 %v3606_v30, %v3533_v28  ;;  %v3608_v33 = vpop.f32.mrb[33].mxu1  ;;  %v9043_v28 = vpack.c.bf16 %v7258_v22, %v7255_v21 }
 0xf37   : > { %v3609_v34 = vadd.f32 %v3608_v33, %v3537_v29  ;;  %v7260_v29 = vld [vmem:[%s14304_s5 + $0x238] sm:$0xff]  ;;  %v7265_v33 = vld [vmem:[%s14304_s5 + $0x260] sm:$0xff] }
 0xf38   : > { %v3613_v35 = vmul.f32 0.70710677, %v3607_v31  ;;  %v3611_v43 = vmul.f32 0.5, %v3607_v31  ;;  %v9071_v30 = vpack.c.bf16 %v7260_v29, %v7257_v26  ;;  %v7262_v31 = vld [vmem:[%s14304_s5 + $0x248] sm:$0xff] }
 0xf39   : > { %v3614_v36 = vmul.f32 0.70710677, %v3609_v34  ;;  %v3612_v42 = vmul.f32 0.5, %v3609_v34  ;;  %v9045_v34 = vpack.c.bf16 %v7265_v33, %v7262_v31 }
 0xf3a   : > { %9735 = verf.f32 %v3613_v35  ;;  %v7261_v35 = vld [vmem:[%s14304_s5 + $0x240] sm:$0xff] }
 0xf3b   : > { %9737 = verf.f32 %v3614_v36  ;;  %v7264_v36 = vld [vmem:[%s14304_s5 + $0x258] sm:$0xff] }
 0xf44   : > { %v9736_v39 = vpop.eup %9735 }
 0xf45   : > { %v9738_v40 = vpop.eup %9737  ;;  %v3617_v41 = vadd.f32 1.0, %v9736_v39  ;;  %v7263_v39 = vld [vmem:[%s14304_s5 + $0x250] sm:$0xff] }
 0xf46   : > { %v3618_v32 = vadd.f32 1.0, %v9738_v40  ;;  %v9047_v40 = vpack.c.bf16 %v7264_v36, %v7261_v35 }
 0xf47   : > { %v3619_v45 = vmul.f32 %v3617_v41, %v3611_v43  ;;  %v7266_v41 = vld [vmem:[%s14304_s5 + $0x268] sm:$0xff] }
 0xf48   : > { %v3620_v44 = vmul.f32 %v3618_v32, %v3612_v42  ;;  %v7268_v42 = vld [vmem:[%s14304_s5 + $0x278] sm:$0xff]  ;;  %v7271_v32 = vld [vmem:[%s14304_s5 + $0x290] sm:$0xff]  ;;  %v9074_v43 = vpack.c.bf16 %v7266_v41, %v7263_v39 }
 0xf4a   : > { %3724 = vmatprep.mubr.f32.mxu0 %v3620_v44  ;;  %v9049_v44 = vpack.c.bf16 %v7271_v32, %v7268_v42 }
 0xf4b   : > { %3725 = vmatmul.mubr.f32.vlgmr.msra.gmra.mrb[28].mxu0 %v3619_v45  ;;  %v7267_v45 = vld [vmem:[%s14304_s5 + $0x270] sm:$0xff] }
 0xf4c   : > { %8286 = vmatprep.mubr.msk.f32.mxu0 %vm9791_vm0, %v9790_v25  ;;  %9063 = vmatpush3.bf16.msra.mxu0 %v9062_v61  ;;  %v7283_v61 = vld [vmem:[%s14304_s5 + $0x2f0] sm:$0xff] }
 0xf4d   : > { %9064 = vmatprep.subr.bf16.mxu0 %v9789_v37 }
 0xf50   : > { %9066 = vmatpush3.bf16.msra.mxu0 %v9065_v5  ;;  %v9083_v5 = vpack.c.bf16 %v7284_v3, %v7281_v2 }
 0xf51   : > { %9067 = vmatprep.subr.bf16.mxu0 %v9789_v37 }
 0xf54   : > { %9069 = vmatpush3.bf16.msra.mxu0 %v9068_v14 }
 0xf55   : > { %9070 = vmatprep.subr.bf16.mxu0 %v9789_v37 }
 0xf58   : > { %9072 = vmatpush3.bf16.msra.mxu0 %v9071_v30 }
 0xf59   : > { %9073 = vmatprep.subr.bf16.mxu0 %v9789_v37 }
 0xf5c   : > { %9075 = vmatpush3.bf16.msra.mxu0 %v9074_v43 }
 0xf5d   : > { %9076 = vmatprep.subr.bf16.mxu0 %v9789_v37 }
0x101e   : > { %v8044_v46 = vpop.f32.mrb[28].mxu0 }
0x101f   : > { %v8045_v48 = vpop.f32.mrb[29].mxu0 }
0x1020   : > { %v8046_v49 = vadd.f32 %v8045_v48, %v8044_v46  ;;  %v7270_v46 = vld [vmem:[%s14304_s5 + $0x288] sm:$0xff] }
0x1021   : > { %v9051_v48 = vpack.c.bf16 %v7270_v46, %v7267_v45  ;;  %v7289_v45 = vld [vmem:[%s14305_s6 + $0xa0] sm:$0xff]  ;;  %v7290_v46 = vld [vmem:[%s14305_s6 + $0xa8] sm:$0xff] }
0x1022   : > { %v3727_v50 = vadd.f32 %v8046_v49, %v7232_v47  ;;  %v7269_v47 = vld [vmem:[%s14304_s5 + $0x280] sm:$0xff]  ;;  %v7272_v49 = vld [vmem:[%s14304_s5 + $0x298] sm:$0xff] }
0x1023   : > { %v9077_v53 = vpack.c.bf16 %v7272_v49, %v7269_v47  ;;  %v7291_v47 = vld [vmem:[%s14305_s6 + $0xb0] sm:$0xff]  ;;  %v7292_v49 = vld [vmem:[%s14305_s6 + $0xb8] sm:$0xff] }
0x1024   : > { %v12055_v51 = vadd.f32 %v3727_v50, %v11826_v38  ;;  %v7237_v38 = vld [vmem:[%s14304_s5 + $0x180] sm:$0xff]  ;;  %v7274_v50 = vld [vmem:[%s14304_s5 + $0x2a8] sm:$0xff] }
0x1025   : > { %v9031_v58 = vpack.c.bf16 %v7240_v55, %v7237_v38  ;;  %v9053_v38 = vpack.c.bf16 %v7277_v52, %v7274_v50  ;;  %v7276_v55 = vld [vmem:[%s14304_s5 + $0x2b8] sm:$0xff]  ;;  %9078 = vmatpush3.bf16.msra.mxu0 %v9077_v53  ;;  %v9089_v50 = vpack.c.bf16 %v7292_v49, %v7291_v47  ;;  %v7298_v47 = vld [vmem:[%s14305_s6 + $0xe8] sm:$0xff] }
0x1026   : > { %3736 = vadd.xlane.f32.xlu0 %v12055_v51  ;;  %3731 = vst [vmem:[%s12058_s28] sm:$0xff] %v12055_v51  ;;  %v9055_v62 = vpack.c.bf16 %v7276_v55, %v7273_v54  ;;  %9079 = vmatprep.subr.bf16.mxu0 %v9789_v37  ;;  %v7286_v54 = vld [vmem:[%s14305_s6 + $0x88] sm:$0xff]  ;;  %v7300_v49 = vld [vmem:[%s14305_s6 + $0xf8] sm:$0xff] }
0x1027   : > { %9032 = vmatpush1.bf16.msra.mxu1 %v9031_v58  ;;  %v7280_v58 = vld [vmem:[%s14304_s5 + $0x2d8] sm:$0xff] }
0x1028   : > { %9034 = vmatprep.subr.bf16.mxu1 %v9033_v1  ;;  %v9057_v0 = vpack.c.bf16 %v7283_v61, %v7280_v58  ;;  %v7279_v1 = vld [vmem:[%s14304_s5 + $0x2d0] sm:$0xff]  ;;  %v7288_v61 = vld [vmem:[%s14305_s6 + $0x98] sm:$0xff] }
0x1029   : > { %9081 = vmatpush3.bf16.msra.mxu0 %v9080_v63  ;;  %v7287_v58 = vld [vmem:[%s14305_s6 + $0x90] sm:$0xff] }
0x102a   : > { %9082 = vmatprep.subr.bf16.mxu0 %v9789_v37 }
0x102b   : > { %9036 = vmatpush1.bf16.msra.mxu1 %v9035_v4  ;;  %v9059_v4 = vpack.c.bf16 %v7282_v60, %v7279_v1 }
0x102c   : > { %9038 = vmatprep.subr.bf16.mxu1 %v9037_v9 }
0x102d   : > { %9084 = vmatpush3.bf16.msra.mxu0 %v9083_v5 }
0x102e   : > { %8299 = vmatprep.subr.mxu0 %v9790_v25 }
0x102f   : > { %9040 = vmatpush1.bf16.msra.mxu1 %v9039_v13 }
0x1030   : > { %9042 = vmatprep.subr.bf16.mxu1 %v9041_v20 }
0x1033   : > { %9044 = vmatpush1.bf16.msra.mxu1 %v9043_v28 }
0x1034   : > { %9046 = vmatprep.subr.bf16.mxu1 %v9045_v34 }
0x1037   : > { %9048 = vmatpush1.bf16.msra.mxu1 %v9047_v40 }
0x1038   : > { %9050 = vmatprep.subr.bf16.mxu1 %v9049_v44 }
0x103b   : > { %9052 = vmatpush1.bf16.msra.mxu1 %v9051_v48  ;;  %v9086_v48 = vpack.c.bf16 %v7290_v46, %v7289_v45  ;;  %v7297_v46 = vld [vmem:[%s14305_s6 + $0xe0] sm:$0xff] }
0x103c   : > { %9054 = vmatprep.subr.bf16.mxu1 %v9053_v38  ;;  %v7285_v38 = vld [vmem:[%s14305_s6 + $0x80] sm:$0xff] }
0x103d   : > { %v9092_v56 = vpack.c.bf16 %v7286_v54, %v7285_v38 }
0x103f   : > { %9056 = vmatpush1.bf16.msra.mxu1 %v9055_v62  ;;  %v9095_v62 = vpack.c.bf16 %v7288_v61, %v7287_v58 }
0x1040   : > { %9058 = vmatprep.subr.bf16.mxu1 %v9057_v0 }
0x1043   : > { %9060 = vmatpush1.bf16.msra.mxu1 %v9059_v4 }
0x1044   : > { %8289 = vmatprep.subr.mxu1 %v9790_v25 }
0x10b3   : > { %v3737_v15 = vpop.xlane.xlu0 %3736 }
0x10b4   : > { %v3738_v16 = vmul.f32 0.0078125, %v3737_v15 }
0x10b6   : > { %v12120_v17 = vsub.f32 %v12055_v51, %v3738_v16 }
0x10b8   : > { %v3740_v18 = vmul.f32 %v12120_v17, %v12120_v17 }
0x10ba   : > { %3741 = vadd.xlane.f32.xlu1 %v3740_v18 }
0x1147   : > { %v3742_v6 = vpop.xlane.xlu1 %3741 }
0x1148   : > { %v3743_v7 = vmul.f32 0.0078125, %v3742_v6 }
0x114a   : > { %v3744_v8 = vadd.f32 1e-05, %v3743_v7 }
0x114c   : > { %9739 = vrsqrt.f32 %v3744_v8 }
0x1156   : > { %v9740_v9 = vpop.eup %9739 }
0x1157   : > { %v3746_v11 = vmul.f32 %v9740_v9, %v12120_v17 }
0x1159   : > { %v3753_v13 = vmul.f32 %v7235_v10, %v3746_v11 }
0x115b   : > { %v3760_v14 = vadd.f32 %v7236_v12, %v3753_v13 }
0x115d   : > { %3875 = vmatmul.mubr.f32.vlgmr.msra.gmra.mrb[34].mxu1 %v3760_v14  ;;  %8287 = vmatmul.mubr.f32.vlgmr.msra.gmra.mrb[30].mxu0 %v3760_v14 }
0x115e   : > { %8291 = vmatprep.mubr.msk.f32.mxu1 %vm9791_vm0, %v9790_v25  ;;  %8301 = vmatprep.mubr.msk.f32.mxu0 %vm9791_vm0, %v9790_v25 }
0x1230   : > { %v12231_v15 = vpop.f32.mrb[34].mxu1  ;;  %v12233_v16 = vpop.f32.mrb[30].mxu0 }
0x1231   : > { %v12235_v18 = vpop.f32.mrb[35].mxu1  ;;  %v8288_v17 = vpop.f32.mrb[31].mxu0 }
0x1232   : > { %4130 = vrot.lane.b32.xlu1 %v12235_v18, %s9792_s29  ;;  %8290 = vmatpush3.xpose.msk.msra.mxu1 %vm2508_vm1, %v12235_v18 }
0x1233   : > { %8294 = vmatprep.subr.mxu1 %v9790_v25 }
0x1235   : > { %8292 = vmatmul.mubr.msk.f32.vlgmr.msra.gmra.mrb[36].mxu1 %vm2508_vm1, %v12231_v15 }
0x1236   : > { %4128 = vrot.lane.b32.xlu1 %v12231_v15, %s9792_s29  ;;  %8295 = vmatpush3.msra.mxu1 %v12233_v16 }
0x1237   : > { %8296 = vmatprep.mubr.msk.f32.mxu1 %vm9791_vm0, %v9790_v25  ;;  %8304 = vmatprep.subr.mxu1 %v9790_v25 }
0x12a4   : > { %v4131_v59 = vpop.permute.xlu1 %4130 }
0x12a5   : > { %8300 = vmatpush3.xpose.msk.msra.mxu0 %vm2508_vm1, %v4131_v59 }
0x12a6   : > { %9085 = vmatprep.subr.bf16.mxu0 %v9789_v37 }
0x12a8   : > { %v4129_v19 = vpop.permute.xlu1 %4128 }
0x12a9   : > { %8302 = vmatmul.mubr.msk.f32.vlgmr.msra.gmra.mrb[32].mxu0 %vm2508_vm1, %v4129_v19 }
0x12aa   : > { %8317 = vmatprep.mubr.msk.f32.mxu0 %vm9791_vm0, %v9790_v25  ;;  %9087 = vmatpush3.bf16.msra.mxu0 %v9086_v48  ;;  %v9104_v48 = vpack.c.bf16 %v7298_v47, %v7297_v46  ;;  %v7350_v46 = vld [vmem:[%s14309_s10 + $0x1d8] sm:$0xff] }
0x12ab   : > { %9088 = vmatprep.subr.bf16.mxu0 %v9789_v37 }
0x12ae   : > { %9090 = vmatpush3.bf16.msra.mxu0 %v9089_v50 }
0x12af   : > { %8331 = vmatprep.subr.mxu0 %v9790_v25 }
0x1308   : > { %v4040_v20 = vpop.f32.mrb[36].mxu1 }
0x1309   : > { %v8293_v21 = vpop.f32.mrb[37].mxu1  ;;  %v4044_v22 = vsel %vm2585_vm2, %v4040_v20, -inf }
0x130a   : > { %4045 = vmax.xlane.f32.xlu1 %v4044_v22  ;;  %v7295_v21 = vld [vmem:[%s14305_s6 + $0xd0] sm:$0xff] }
0x131b   : > { %4442 = vrot.lane.b32.xlu1 %v12235_v18, %s14346_s18 }
0x137c   : > { %v4202_v26 = vpop.f32.mrb[32].mxu0 }
0x137d   : > { %v8303_v28 = vpop.f32.mrb[33].mxu0  ;;  %v4206_v29 = vsel %vm2585_vm2, %v4202_v26, -inf }
0x137e   : > { %4207 = vmax.xlane.f32.xlu0 %v4206_v29 }
0x1397   : > { %v4046_v30 = vpop.xlane.xlu1 %4045 }
0x1398   : > { %v4047_v31 = vsub.f32 %v4040_v20, %v4046_v30  ;;  %v7293_v20 = vld [vmem:[%s14305_s6 + $0xc0] sm:$0xff] }
0x139a   : > { %v4048_v33 = vmul.f32 1.442695, %v4047_v31 }
0x139b   : > { %v4443_v60 = vpop.permute.xlu1 %4442 }
0x139c   : > { %9741 = vpow2.f32 %v4048_v33 }
0x13a6   : > { %v9742_v34 = vpop.eup %9741 }
0x13a7   : > { %v4050_v35 = vsel %vm2585_vm2, %v9742_v34, 0.0 }
0x13a8   : > { %4051 = vadd.xlane.f32.xlu0 %v4050_v35 }
0x140b   : > { %v4208_v36 = vpop.xlane.xlu0 %4207 }
0x140c   : > { %v4209_v39 = vsub.f32 %v4202_v26, %v4208_v36  ;;  %v7296_v26 = vld [vmem:[%s14305_s6 + $0xd8] sm:$0xff] }
0x140d   : > { %v9101_v28 = vpack.c.bf16 %v7296_v26, %v7295_v21  ;;  %v7336_v26 = vld [vmem:[%s14309_s10 + $0x168] sm:$0xff] }
0x140e   : > { %v4210_v40 = vmul.f32 1.442695, %v4209_v39 }
0x1410   : > { %9743 = vpow2.f32 %v4210_v40 }
0x141a   : > { %v9744_v41 = vpop.eup %9743 }
0x141b   : > { %v4212_v42 = vsel %vm2585_vm2, %v9744_v41, 0.0 }
0x141c   : > { %4213 = vadd.xlane.f32.xlu0 %v4212_v42 }
0x1432   : > { %4218 = vrot.lane.b32.xlu0 %v12233_v16, %s9792_s29 }
0x1435   : > { %v4052_v32 = vpop.xlane.xlu0 %4051 }
0x1436   : > { %9745 = vrcp.f32 %v4052_v32  ;;  %4440 = vrot.lane.b32.xlu0 %v12231_v15, %s14346_s18 }
0x1440   : > { %v9746_v43 = vpop.eup %9745 }
0x1441   : > { %v4054_v44 = vmul.f32 %v9746_v43, %v9742_v34 }
0x1443   : > { %8297 = vmatmul.mubr.msk.f32.vlgmr.msra.gmra.mrb[38].mxu1 %vm2585_vm2, %v4054_v44 }
0x1444   : > { %8306 = vmatprep.mubr.msk.f32.mxu1 %vm9791_vm0, %v9790_v25 }
0x14a9   : > { %v4214_v52 = vpop.xlane.xlu0 %4213 }
0x14aa   : > { %9747 = vrcp.f32 %v4214_v52 }
0x14ad   : > { %v4219_v53 = vpop.permute.xlu0 %4218 }
0x14ae   : > { %8305 = vmatpush3.msra.mxu1 %v4219_v53 }
0x14af   : > { %9091 = vmatprep.subr.bf16.mxu1 %v9789_v37 }
0x14b1   : > { %v4441_v3 = vpop.permute.xlu0 %4440 }
0x14b4   : > { %v9748_v55 = vpop.eup %9747 }
0x14b5   : > { %v4216_v57 = vmul.f32 %v9748_v55, %v9744_v41 }
0x14b7   : > { %8307 = vmatmul.mubr.msk.f32.vlgmr.msra.gmra.mrb[40].mxu1 %vm2585_vm2, %v4216_v57 }
0x14b8   : > { %9093 = vmatpush3.bf16.msra.mxu1 %v9092_v56  ;;  %8328 = vmatprep.mubr.msk.f32.mxu1 %vm9791_vm0, %v9790_v25 }
0x14b9   : > { %9094 = vmatprep.subr.bf16.mxu1 %v9789_v37 }
0x14bc   : > { %9096 = vmatpush3.bf16.msra.mxu1 %v9095_v62 }
0x14bd   : > { %8336 = vmatprep.subr.mxu1 %v9790_v25 }
0x1516   : > { %v4124_v63 = vpop.f32.mrb[38].mxu1 }
0x1517   : > { %v8298_v0 = vpop.f32.mrb[39].mxu1  ;;  %8329 = vmatmul.mubr.msk.f32.vlgmr.msra.gmra.mrb[42].mxu1 %vm2508_vm1, %v4124_v63  ;;  %v7318_v63 = vld [vmem:[%s14306_s7 + $0x1] ss:$0 sm:$0xff] }
0x1518   : > { %8338 = vmatprep.mubr.msk.f32.mxu1 %vm9791_vm0, %v9790_v25 }
0x158a   : > { %v4290_v1 = vpop.f32.mrb[40].mxu1 }
0x158b   : > { %v8308_v2 = vpop.f32.mrb[41].mxu1  ;;  %8318 = vmatmul.mubr.msk.f32.vlgmr.msra.gmra.mrb[34].mxu0 %vm2508_vm1, %v4290_v1 }
0x158c   : > { %8332 = vmatpush3.xpose.msk.msra.mxu0 %vm2508_vm1, %v4443_v60  ;;  %8333 = vmatprep.mubr.msk.f32.mxu0 %vm9791_vm0, %v9790_v25  ;;  %v7324_v60 = vld [vmem:[%s14309_s10 + $0x108] sm:$0xff]  ;;  %v7326_v2 = vld [vmem:[%s14309_s10 + $0x118] sm:$0xff] }
0x158d   : > { %9097 = vmatprep.subr.bf16.mxu0 %v9789_v37 }
0x158f   : > { %8334 = vmatmul.mubr.msk.f32.vlgmr.msra.gmra.mrb[36].mxu0 %vm2508_vm1, %v4441_v3  ;;  %v7323_v3 = vld [vmem:[%s14309_s10 + $0x100] sm:$0xff] }
0x1590   : > { %8349 = vmatprep.mubr.msk.f32.mxu0 %vm9791_vm0, %v9790_v25 }
0x15ea   : > { %v4436_v4 = vpop.f32.mrb[42].mxu1 }
0x15eb   : > { %v8330_v5 = vpop.f32.mrb[43].mxu1 }
0x15ec   : > { %v7328_v5 = vld [vmem:[%s14309_s10 + $0x128] sm:$0xff] }
0x165e   : > { %v4363_v6 = vpop.f32.mrb[34].mxu0 }
0x165f   : > { %v12311_v7 = vadd.f32 %v4436_v4, %v4363_v6  ;;  %v8319_v8 = vpop.f32.mrb[35].mxu0  ;;  %v9109_v4 = vpack.c.bf16 %v7326_v2, %v7324_v60  ;;  %v7330_v6 = vld [vmem:[%s14309_s10 + $0x138] sm:$0xff] }
0x1660   : > { %v9113_v8 = vpack.c.bf16 %v7330_v6, %v7328_v5  ;;  %v7377_v5 = vld [vmem:[%s14311_s12 + $0x1a8] sm:$0xff] }
0x1662   : > { %v4514_v9 = vpop.f32.mrb[36].mxu0 }
0x1663   : > { %v8335_v10 = vpop.f32.mrb[37].mxu0  ;;  %v4518_v11 = vsel %vm2585_vm2, %v4514_v9, -inf }
0x1664   : > { %4519 = vmax.xlane.f32.xlu0 %v4518_v11  ;;  %v7329_v10 = vld [vmem:[%s14309_s10 + $0x130] sm:$0xff]  ;;  %v7332_v11 = vld [vmem:[%s14309_s10 + $0x148] sm:$0xff] }
0x167a   : > { %4529 = vrot.lane.b32.xlu0 %v12233_v16, %s14346_s18  ;;  %s7086_s18 = scalar_lea.vmem (%p9920_p4), %s14351_s2, %s7394_s21 }
0x167e   : > { %4679 = vrot.lane.b32.xlu0 %v12231_v15, %s14347_s22  ;;  %v7294_v15 = vld [vmem:[%s14305_s6 + $0xc8] sm:$0xff] }
0x167f   : > { %v9098_v22 = vpack.c.bf16 %v7294_v15, %v7293_v20 }
0x1681   : > { %9099 = vmatpush3.bf16.msra.mxu0 %v9098_v22 }
0x1682   : > { %9100 = vmatprep.subr.bf16.mxu0 %v9789_v37 }
0x1685   : > { %9102 = vmatpush3.bf16.msra.mxu0 %v9101_v28  ;;  %v7338_v28 = vld [vmem:[%s14309_s10 + $0x178] sm:$0xff] }
0x1686   : > { %9103 = vmatprep.subr.bf16.mxu0 %v9789_v37 }
0x16f1   : > { %v4520_v12 = vpop.xlane.xlu0 %4519 }
0x16f2   : > { %v4521_v13 = vsub.f32 %v4514_v9, %v4520_v12  ;;  %v7327_v9 = vld [vmem:[%s14309_s10 + $0x120] sm:$0xff]  ;;  %v7334_v12 = vld [vmem:[%s14309_s10 + $0x158] sm:$0xff] }
0x16f4   : > { %v4522_v14 = vmul.f32 1.442695, %v4521_v13  ;;  %v9115_v13 = vpack.c.bf16 %v7329_v10, %v7327_v9  ;;  %v7361_v9 = vld [vmem:[%s14311_s12 + $0x128] sm:$0xff] }
0x16f5   : > { %v4530_v17 = vpop.permute.xlu0 %4529 }
0x16f6   : > { %9749 = vpow2.f32 %v4522_v14  ;;  %8337 = vmatpush3.msra.mxu1 %v4530_v17  ;;  %v9117_v14 = vpack.c.bf16 %v7334_v12, %v7332_v11  ;;  %v7331_v17 = vld [vmem:[%s14309_s10 + $0x140] sm:$0xff] }
0x16f7   : > { %8352 = vmatprep.subr.mxu1 %v9790_v25 }
0x16f9   : > { %v4680_v33 = vpop.permute.xlu0 %4679 }
0x1700   : > { %v9750_v59 = vpop.eup %9749 }
0x1701   : > { %v4524_v19 = vsel %vm2585_vm2, %v9750_v59, 0.0 }
0x1702   : > { %4525 = vadd.xlane.f32.xlu1 %v4524_v19 }
0x1713   : > { %4681 = vrot.lane.b32.xlu1 %v12235_v18, %s14347_s22 }
0x178f   : > { %v4526_v18 = vpop.xlane.xlu1 %4525 }
0x1790   : > { %9751 = vrcp.f32 %v4526_v18  ;;  %v9121_v18 = vpack.c.bf16 %v7338_v28, %v7336_v26  ;;  %v7379_v26 = vld [vmem:[%s14311_s12 + $0x1b8] sm:$0xff] }
0x1793   : > { %v4682_v31 = vpop.permute.xlu1 %4681 }
0x179a   : > { %v9752_v29 = vpop.eup %9751 }
0x179b   : > { %v4528_v30 = vmul.f32 %v9752_v29, %v9750_v59  ;;  %v7333_v59 = vld [vmem:[%s14309_s10 + $0x150] sm:$0xff]  ;;  %v7335_v29 = vld [vmem:[%s14309_s10 + $0x160] sm:$0xff] }
0x179c   : > { %v9119_v19 = vpack.c.bf16 %v7333_v59, %v7331_v17  ;;  %v7321_v17 = vld [vmem:[%s14307_s8 + $0x1] ss:$0 sm:$0xff] }
0x179d   : > { %8339 = vmatmul.mubr.msk.f32.vlgmr.msra.gmra.mrb[44].mxu1 %vm2585_vm2, %v4528_v30  ;;  %v7337_v30 = vld [vmem:[%s14309_s10 + $0x170] sm:$0xff] }
0x179e   : > { %8353 = vmatpush3.xpose.msk.msra.mxu1 %vm2508_vm1, %v4682_v31  ;;  %8354 = vmatprep.mubr.msk.f32.mxu1 %vm9791_vm0, %v9790_v25  ;;  %v9123_v31 = vpack.c.bf16 %v7337_v30, %v7335_v29  ;;  %v7380_v30 = vld [vmem:[%s14311_s12 + $0x1c0] sm:$0xff] }
0x179f   : > { %8357 = vmatprep.subr.mxu1 %v9790_v25 }
0x17a1   : > { %8355 = vmatmul.mubr.msk.f32.vlgmr.msra.gmra.mrb[46].mxu1 %vm2508_vm1, %v4680_v33  ;;  %v7340_v33 = vld [vmem:[%s14309_s10 + $0x188] sm:$0xff] }
0x17a2   : > { %8359 = vmatprep.mubr.msk.f32.mxu1 %vm9791_vm0, %v9790_v25 }
0x1870   : > { %v4601_v34 = vpop.f32.mrb[44].mxu1 }
0x1871   : > { %v8340_v35 = vpop.f32.mrb[45].mxu1  ;;  %8350 = vmatmul.mubr.msk.f32.vlgmr.msra.gmra.mrb[38].mxu0 %vm2508_vm1, %v4601_v34  ;;  %v7342_v34 = vld [vmem:[%s14309_s10 + $0x198] sm:$0xff] }
0x1872   : > { %8370 = vmatprep.mubr.msk.f32.mxu0 %vm9791_vm0, %v9790_v25  ;;  %9105 = vmatpush3.bf16.msra.mxu0 %v9104_v48  ;;  %v9125_v35 = vpack.c.bf16 %v7342_v34, %v7340_v33  ;;  %v7347_v48 = vld [vmem:[%s14309_s10 + $0x1c0] sm:$0xff] }
0x1873   : > { %9106 = vmatprep.subr.bf16.mxu0 %v9789_v37  ;;  %v7364_v34 = vld [vmem:[%s14311_s12 + $0x140] sm:$0xff] }
0x1874   : > { %v4753_v36 = vpop.f32.mrb[46].mxu1 }
0x1875   : > { %v8356_v39 = vpop.f32.mrb[47].mxu1  ;;  %v4757_v40 = vsel %vm2585_vm2, %v4753_v36, -inf }
0x1876   : > { %4758 = vmax.xlane.f32.xlu0 %v4757_v40  ;;  %v7341_v39 = vld [vmem:[%s14309_s10 + $0x190] sm:$0xff]  ;;  %v7344_v40 = vld [vmem:[%s14309_s10 + $0x1a8] sm:$0xff] }
0x188c   : > { %4768 = vrot.lane.b32.xlu0 %v12233_v16, %s14347_s22  ;;  %v7299_v16 = vld [vmem:[%s14305_s6 + $0xf0] sm:$0xff] }
0x188d   : > { %v9107_v50 = vpack.c.bf16 %v7300_v49, %v7299_v16  ;;  %v7349_v49 = vld [vmem:[%s14309_s10 + $0x1d0] sm:$0xff] }
0x188f   : > { %9108 = vmatpush3.bf16.msra.mxu0 %v9107_v50  ;;  %v7352_v50 = vld [vmem:[%s14309_s10 + $0x1e8] sm:$0xff] }
0x1903   : > { %v4759_v41 = vpop.xlane.xlu0 %4758 }
0x1904   : > { %v4760_v42 = vsub.f32 %v4753_v36, %v4759_v41  ;;  %v7339_v36 = vld [vmem:[%s14309_s10 + $0x180] sm:$0xff] }
0x1905   : > { %v9127_v41 = vpack.c.bf16 %v7341_v39, %v7339_v36  ;;  %v7382_v39 = vld [vmem:[%s14311_s12 + $0x1d0] sm:$0xff] }
0x1906   : > { %v4761_v32 = vmul.f32 1.442695, %v4760_v42  ;;  %v7346_v42 = vld [vmem:[%s14309_s10 + $0x1b8] sm:$0xff] }
0x1907   : > { %v4769_v43 = vpop.permute.xlu0 %4768 }
0x1908   : > { %9753 = vpow2.f32 %v4761_v32  ;;  %8358 = vmatpush3.msra.mxu1 %v4769_v43  ;;  %v7343_v32 = vld [vmem:[%s14309_s10 + $0x1a0] sm:$0xff]  ;;  %v7345_v43 = vld [vmem:[%s14309_s10 + $0x1b0] sm:$0xff] }
0x1909   : > { %9110 = vmatprep.subr.bf16.mxu1 %v9109_v4  ;;  %v9131_v47 = vpack.c.bf16 %v7345_v43, %v7343_v32  ;;  %v7359_v4 = vld [vmem:[%s14311_s12 + $0x118] sm:$0xff] }
0x190a   : > { %v7367_v32 = vld [vmem:[%s14311_s12 + $0x158] sm:$0xff] }
0x1912   : > { %v9754_v44 = vpop.eup %9753 }
0x1913   : > { %v4763_v45 = vsel %vm2585_vm2, %v9754_v44, 0.0 }
0x1914   : > { %4764 = vadd.xlane.f32.xlu1 %v4763_v45  ;;  %v7348_v45 = vld [vmem:[%s14309_s10 + $0x1c8] sm:$0xff] }
0x1915   : > { %v9133_v16 = vpack.c.bf16 %v7350_v46, %v7348_v45  ;;  %v7385_v45 = vld [vmem:[%s14311_s12 + $0x1e8] sm:$0xff] }
0x1944   : > { %v4674_v52 = vpop.f32.mrb[38].mxu0 }
0x1945   : > { %v4678_v53 = vadd.f32 %v4674_v52, %v12311_v7  ;;  %v8351_v38 = vpop.f32.mrb[39].mxu0  ;;  %v7354_v52 = vld [vmem:[%s14309_s10 + $0x1f8] sm:$0xff] }
0x1946   : > { %v9137_v38 = vpack.c.bf16 %v7354_v52, %v7352_v50  ;;  %v7387_v50 = vld [vmem:[%s14311_s12 + $0x1f8] sm:$0xff] }
0x19a1   : > { %v4765_v54 = vpop.xlane.xlu1 %4764 }
0x19a2   : > { %9755 = vrcp.f32 %v4765_v54  ;;  %v7351_v54 = vld [vmem:[%s14309_s10 + $0x1e0] sm:$0xff] }
0x19ac   : > { %v9756_v55 = vpop.eup %9755 }
0x19ad   : > { %v4767_v56 = vmul.f32 %v9756_v55, %v9754_v44  ;;  %v9129_v44 = vpack.c.bf16 %v7346_v42, %v7344_v40  ;;  %v7353_v55 = vld [vmem:[%s14309_s10 + $0x1f0] sm:$0xff]  ;;  %v7383_v40 = vld [vmem:[%s14311_s12 + $0x1d8] sm:$0xff] }
0x19ae   : > { %v7366_v42 = vld [vmem:[%s14311_s12 + $0x150] sm:$0xff] }
0x19af   : > { %8360 = vmatmul.mubr.msk.f32.vlgmr.msra.gmra.mrb[48].mxu1 %vm2585_vm2, %v4767_v56  ;;  %v9139_v56 = vpack.c.bf16 %v7353_v55, %v7351_v54  ;;  %v9163_v43 = vpack.c.bf16 %v7367_v32, %v7366_v42  ;;  %v7355_v55 = vld [vmem:[%s14310_s11 + $0x2] sm:$0x3]  ;;  %v5323_v42 = vld [vmem:[%s14315_s16 + $0x310] sm:$0xff]  ;;  %v5354_v32 = vld [vmem:[%s14315_s16 + $0x408] sm:$0xff] }
0x19b0   : > { %5067 = vmatprep.mubr.f32.mxu1 %v9790_v25 }
0x1a82   : > { %v4840_v57 = vpop.f32.mrb[48].mxu1 }
0x1a83   : > { %v8361_v58 = vpop.f32.mrb[49].mxu1  ;;  %8371 = vmatmul.mubr.msk.f32.vlgmr.msra.gmra.mrb[40].mxu0 %vm2508_vm1, %v4840_v57  ;;  %v7372_v57 = vld [vmem:[%s14311_s12 + $0x180] sm:$0xff] }
0x1a84   : > { %v7373_v58 = vld [vmem:[%s14311_s12 + $0x188] sm:$0xff] }
0x1b56   : > { %v4913_v61 = vpop.f32.mrb[40].mxu0 }
0x1b57   : > { %v4917_v62 = vadd.f32 %v4913_v61, %v4678_v53  ;;  %v8372_v37 = vpop.f32.mrb[41].mxu0  ;;  %v9135_v53 = vpack.c.bf16 %v7349_v49, %v7347_v48  ;;  %v7356_v61 = vld [vmem:[%s14311_s12 + $0x100] sm:$0xff]  ;;  %v7386_v49 = vld [vmem:[%s14311_s12 + $0x1f0] sm:$0xff] }
0x1b58   : > { %v7357_v37 = vld [vmem:[%s14311_s12 + $0x108] sm:$0xff]  ;;  %v9169_v52 = vpack.c.bf16 %v7387_v50, %v7386_v49  ;;  %v5385_v49 = vld [vmem:[%s14315_s16 + $0x500] sm:$0xff]  ;;  %v5355_v50 = vld [vmem:[%s14315_s16 + $0x410] sm:$0xff] }
0x1b59   : > { %v4918_v0 = vadd.f32 %v4917_v62, %v12055_v51  ;;  %v7325_v51 = vld [vmem:[%s14309_s10 + $0x110] sm:$0xff]  ;;  %v9141_v62 = vpack.c.bf16 %v7373_v58, %v7372_v57  ;;  %v9143_v60 = vpack.c.bf16 %v7357_v37, %v7356_v61  ;;  %v5000_v57 = vrot.slane %v7355_v55, %v12044_v27 }
0x1b5a   : > { %v9111_v7 = vpack.c.bf16 %v7325_v51, %v7323_v3  ;;  %v7358_v3 = vld [vmem:[%s14311_s12 + $0x110] sm:$0xff]  ;;  %v7376_v51 = vld [vmem:[%s14311_s12 + $0x1a0] sm:$0xff] }
0x1b5b   : > { %v12372_v1 = vadd.f32 %v7318_v63, %v4918_v0  ;;  %v7374_v63 = vld [vmem:[%s14311_s12 + $0x190] sm:$0xff]  ;;  %v7375_v0 = vld [vmem:[%s14311_s12 + $0x198] sm:$0xff]  ;;  %9142 = vmatprep.subr.bf16.mxu0 %v9141_v62  ;;  %v9147_v6 = vpack.c.bf16 %v7359_v4, %v7358_v3 }
0x1b5c   : > { %9112 = vmatpush1.bf16.msra.mxu1 %v9111_v7  ;;  %v9145_v2 = vpack.c.bf16 %v7375_v0, %v7374_v63  ;;  %9144 = vmatpush3.bf16.msra.mxu0 %v9143_v60  ;;  %v9149_v7 = vpack.c.bf16 %v7377_v5, %v7376_v51 }
0x1b5d   : > { %4932 = vadd.xlane.f32.xlu1 %v12372_v1  ;;  %9114 = vmatprep.subr.bf16.mxu1 %v9113_v8  ;;  %v7360_v8 = vld [vmem:[%s14311_s12 + $0x120] sm:$0xff] }
0x1b5e   : > { %9146 = vmatprep.subr.bf16.mxu0 %v9145_v2  ;;  %v9151_v10 = vpack.c.bf16 %v7361_v9, %v7360_v8  ;;  %v7389_v9 = vld [vmem:[%s14312_s13 + $0x1] ss:$0 sm:$0xff] }
0x1b60   : > { %9116 = vmatpush1.bf16.msra.mxu1 %v9115_v13  ;;  %9148 = vmatpush3.bf16.msra.mxu0 %v9147_v6 }
0x1b61   : > { %9118 = vmatprep.subr.bf16.mxu1 %v9117_v14  ;;  %9150 = vmatprep.subr.bf16.mxu0 %v9149_v7 }
0x1b64   : > { %9120 = vmatpush1.bf16.msra.mxu1 %v9119_v19  ;;  %9152 = vmatpush3.bf16.msra.mxu0 %v9151_v10  ;;  %v7322_v19 = vld [vmem:[%s14308_s9 + $0x1] ss:$0 sm:$0xff] }
0x1b65   : > { %9122 = vmatprep.subr.bf16.mxu1 %v9121_v18  ;;  %v7363_v18 = vld [vmem:[%s14311_s12 + $0x138] sm:$0xff] }
0x1b68   : > { %9124 = vmatpush1.bf16.msra.mxu1 %v9123_v31  ;;  %v7381_v31 = vld [vmem:[%s14311_s12 + $0x1c8] sm:$0xff] }
0x1b69   : > { %9126 = vmatprep.subr.bf16.mxu1 %v9125_v35  ;;  %v9157_v33 = vpack.c.bf16 %v7381_v31, %v7380_v30  ;;  %v7365_v35 = vld [vmem:[%s14311_s12 + $0x148] sm:$0xff]  ;;  %v5292_v31 = vld [vmem:[%s14315_s16 + $0x218] sm:$0xff] }
0x1b6a   : > { %v9159_v36 = vpack.c.bf16 %v7365_v35, %v7364_v34  ;;  %v5322_v30 = vld [vmem:[%s14315_s16 + $0x308] sm:$0xff] }
0x1b6c   : > { %9128 = vmatpush1.bf16.msra.mxu1 %v9127_v41  ;;  %v9161_v41 = vpack.c.bf16 %v7383_v40, %v7382_v39  ;;  %v5321_v39 = vld [vmem:[%s14315_s16 + $0x300] sm:$0xff]  ;;  %v5291_v40 = vld [vmem:[%s14315_s16 + $0x210] sm:$0xff] }
0x1b6d   : > { %9130 = vmatprep.subr.bf16.mxu1 %v9129_v44  ;;  %v7384_v44 = vld [vmem:[%s14311_s12 + $0x1e0] sm:$0xff] }
0x1b6e   : > { %v9165_v46 = vpack.c.bf16 %v7385_v45, %v7384_v44  ;;  %v9211_v44 = vpack.c.bf16 %v5323_v42, %v5291_v40  ;;  %v5644_v40 = vld [vmem:[%s14315_s16 + $0xd18] sm:$0xff]  ;;  %v5641_v42 = vld [vmem:[%s14315_s16 + $0xd00] sm:$0xff] }
0x1b70   : > { %9132 = vmatpush1.bf16.msra.mxu1 %v9131_v47  ;;  %v7368_v47 = vld [vmem:[%s14311_s12 + $0x160] sm:$0xff] }
0x1b71   : > { %9134 = vmatprep.subr.bf16.mxu1 %v9133_v16  ;;  %v7369_v16 = vld [vmem:[%s14311_s12 + $0x168] sm:$0xff] }
0x1b72   : > { %v9167_v48 = vpack.c.bf16 %v7369_v16, %v7368_v47  ;;  %v5388_v47 = vld [vmem:[%s14315_s16 + $0x518] sm:$0xff]  ;;  %v5353_v16 = vld [vmem:[%s14315_s16 + $0x400] sm:$0xff] }
0x1b74   : > { %9136 = vmatpush1.bf16.msra.mxu1 %v9135_v53  ;;  %v7370_v53 = vld [vmem:[%s14311_s12 + $0x170] sm:$0xff] }
0x1b75   : > { %9138 = vmatprep.subr.bf16.mxu1 %v9137_v38  ;;  %v7371_v38 = vld [vmem:[%s14311_s12 + $0x178] sm:$0xff] }
0x1b76   : > { %v9171_v54 = vpack.c.bf16 %v7371_v38, %v7370_v53  ;;  %v9183_v53 = vpack.c.bf16 %v5385_v49, %v5353_v16  ;;  %v5706_v16 = vld [vmem:[%s14315_s16 + $0xf08] sm:$0xff] }
0x1b78   : > { %9140 = vmatpush1.bf16.msra.mxu1 %v9139_v56  ;;  %v4996_v56 = vrot.slane %v7355_v55, %v12038_v24 }
0x1bea   : > { %v4933_v20 = vpop.xlane.xlu1 %4932 }
0x1beb   : > { %v4934_v15 = vmul.f32 0.0078125, %v4933_v20 }
0x1bed   : > { %v12412_v21 = vsub.f32 %v12372_v1, %v4934_v15 }
0x1bef   : > { %v4936_v22 = vmul.f32 %v12412_v21, %v12412_v21 }
0x1bf1   : > { %4937 = vadd.xlane.f32.xlu1 %v4936_v22  ;;  %v7378_v22 = vld [vmem:[%s14311_s12 + $0x1b0] sm:$0xff] }
0x1bf2   : > { %v9153_v28 = vpack.c.bf16 %v7379_v26, %v7378_v22 }
0x1bf4   : > { %9154 = vmatprep.subr.bf16.mxu0 %v9153_v28  ;;  %v5227_v28 = vld [vmem:[%s14315_s16 + $0x10] sm:$0xff] }
0x1c7e   : > { %v4938_v11 = vpop.xlane.xlu1 %4937 }
0x1c7f   : > { %v4939_v12 = vmul.f32 0.0078125, %v4938_v11 }
0x1c81   : > { %v4940_v13 = vadd.f32 1e-05, %v4939_v12 }
0x1c83   : > { %9757 = vrsqrt.f32 %v4940_v13 }
0x1c8d   : > { %v9758_v14 = vpop.eup %9757 }
0x1c8e   : > { %v4942_v59 = vmul.f32 %v9758_v14, %v12412_v21  ;;  %v7362_v21 = vld [vmem:[%s14311_s12 + $0x130] sm:$0xff]  ;;  %v5226_v14 = vld [vmem:[%s14315_s16 + $0x8] sm:$0xff] }
0x1c8f   : > { %v9155_v29 = vpack.c.bf16 %v7363_v18, %v7362_v21  ;;  %v5259_v21 = vld [vmem:[%s14315_s16 + $0x110] sm:$0xff]  ;;  %v5290_v18 = vld [vmem:[%s14315_s16 + $0x208] sm:$0xff] }
0x1c90   : > { %v4949_v20 = vmul.f32 %v7321_v17, %v4942_v59  ;;  %v5258_v17 = vld [vmem:[%s14315_s16 + $0x108] sm:$0xff]  ;;  %v5228_v59 = vld [vmem:[%s14315_s16 + $0x18] sm:$0xff]  ;;  %v9177_v34 = vpack.c.bf16 %v5322_v30, %v5290_v18  ;;  %v5547_v30 = vld [vmem:[%s14315_s16 + $0xa10] sm:$0xff] }
0x1c91   : > { %9156 = vmatpush3.bf16.msra.mxu0 %v9155_v29  ;;  %v9207_v29 = vpack.c.bf16 %v5259_v21, %v5227_v28  ;;  %v5545_v28 = vld [vmem:[%s14315_s16 + $0xa00] sm:$0xff] }
0x1c92   : > { %v4956_v15 = vadd.f32 %v7322_v19, %v4949_v20  ;;  %9158 = vmatprep.subr.bf16.mxu0 %v9157_v33  ;;  %v9173_v19 = vpack.c.bf16 %v5258_v17, %v5226_v14  ;;  %v5260_v20 = vld [vmem:[%s14315_s16 + $0x118] sm:$0xff]  ;;  %v5483_v17 = vld [vmem:[%s14315_s16 + $0x810] sm:$0xff]  ;;  %v5577_v21 = vld [vmem:[%s14315_s16 + $0xb00] sm:$0xff] }
0x1c93   : > { %v9205_v22 = vpack.c.bf16 %v5260_v20, %v5228_v59  ;;  %v5324_v33 = vld [vmem:[%s14315_s16 + $0x318] sm:$0xff]  ;;  %v5515_v59 = vld [vmem:[%s14315_s16 + $0x910] sm:$0xff]  ;;  %v5546_v20 = vld [vmem:[%s14315_s16 + $0xa08] sm:$0xff] }
0x1c94   : > { %5068 = vmatmul.mubr.f32.vlgmr.msra.gmra.mrb[50].mxu1 %v4956_v15  ;;  %v5257_v15 = vld [vmem:[%s14315_s16 + $0x100] sm:$0xff]  ;;  %9174 = vmatprep.subr.bf16.mxu1 %v9173_v19  ;;  %v9209_v35 = vpack.c.bf16 %v5324_v33, %v5292_v31  ;;  %v9223_v19 = vpack.c.bf16 %v5515_v59, %v5483_v17  ;;  %v5579_v31 = vld [vmem:[%s14315_s16 + $0xb10] sm:$0xff] }
0x1c95   : > { %5969 = vmatprep.mubr.f32.mxu1 %v9790_v25  ;;  %9160 = vmatpush3.bf16.msra.mxu0 %v9159_v36  ;;  %v5289_v36 = vld [vmem:[%s14315_s16 + $0x200] sm:$0xff]  ;;  %v9227_v33 = vpack.c.bf16 %v5579_v31, %v5547_v30  ;;  %v5360_v30 = vld [vmem:[%s14315_s16 + $0x438] sm:$0xff] }
0x1c96   : > { %9162 = vmatprep.subr.bf16.mxu0 %v9161_v41  ;;  %v9179_v41 = vpack.c.bf16 %v5321_v39, %v5289_v36  ;;  %v5612_v36 = vld [vmem:[%s14315_s16 + $0xc18] sm:$0xff] }
0x1c97   : > { %v5392_v31 = vld [vmem:[%s14315_s16 + $0x538] sm:$0xff] }
0x1c99   : > { %9164 = vmatpush3.bf16.msra.mxu0 %v9163_v43  ;;  %v5386_v43 = vld [vmem:[%s14315_s16 + $0x508] sm:$0xff] }
0x1c9a   : > { %9166 = vmatprep.subr.bf16.mxu0 %v9165_v46  ;;  %v9181_v45 = vpack.c.bf16 %v5386_v43, %v5354_v32  ;;  %v5356_v46 = vld [vmem:[%s14315_s16 + $0x418] sm:$0xff]  ;;  %v9229_v32 = vpack.c.bf16 %v5644_v40, %v5612_v36  ;;  %v5389_v36 = vld [vmem:[%s14315_s16 + $0x520] sm:$0xff]  ;;  %v9277_v40 = vpack.c.bf16 %v5392_v31, %v5360_v30  ;;  %v5710_v30 = vld [vmem:[%s14315_s16 + $0xf28] sm:$0xff] }
0x1c9b   : > { %v5680_v31 = vld [vmem:[%s14315_s16 + $0xe38] sm:$0xff] }
0x1c9d   : > { %9168 = vmatpush3.bf16.msra.mxu0 %v9167_v48  ;;  %v9213_v48 = vpack.c.bf16 %v5388_v47, %v5356_v46  ;;  %v5674_v47 = vld [vmem:[%s14315_s16 + $0xe08] sm:$0xff] }
0x1c9e   : > { %9170 = vmatprep.subr.bf16.mxu0 %v9169_v52  ;;  %v5387_v52 = vld [vmem:[%s14315_s16 + $0x510] sm:$0xff]  ;;  %v9201_v49 = vpack.c.bf16 %v5706_v16, %v5674_v47  ;;  %v5421_v16 = vld [vmem:[%s14315_s16 + $0x620] sm:$0xff] }
0x1c9f   : > { %v9215_v38 = vpack.c.bf16 %v5387_v52, %v5355_v50  ;;  %v5708_v50 = vld [vmem:[%s14315_s16 + $0xf18] sm:$0xff]  ;;  %v5673_v52 = vld [vmem:[%s14315_s16 + $0xe00] sm:$0xff] }
0x1ca1   : > { %9172 = vmatpush3.bf16.msra.mxu0 %v9171_v54 }
0x1ca2   : > { %9206 = vmatprep.subr.bf16.mxu0 %v9205_v22 }
0x1d67   : > { %v5069_v58 = vpop.f32.mrb[50].mxu1 }
0x1d68   : > { %v5070_v61 = vadd.f32 %v5069_v58, %v4996_v56  ;;  %v5071_v62 = vpop.f32.mrb[51].mxu1  ;;  %v5418_v58 = vld [vmem:[%s14315_s16 + $0x608] sm:$0xff] }
0x1d69   : > { %v5072_v37 = vadd.f32 %v5071_v62, %v5000_v57  ;;  %v5420_v62 = vld [vmem:[%s14315_s16 + $0x618] sm:$0xff] }
0x1d6a   : > { %v5076_v63 = vmul.f32 0.70710677, %v5070_v61  ;;  %v5074_v5 = vmul.f32 0.5, %v5070_v61  ;;  %v5450_v61 = vld [vmem:[%s14315_s16 + $0x708] sm:$0xff] }
0x1d6b   : > { %v5077_v0 = vmul.f32 0.70710677, %v5072_v37  ;;  %v5075_v4 = vmul.f32 0.5, %v5072_v37  ;;  %v9185_v37 = vpack.c.bf16 %v5450_v61, %v5418_v58  ;;  %v5230_v61 = vld [vmem:[%s14315_s16 + $0x28] sm:$0xff] }
0x1d6c   : > { %9759 = verf.f32 %v5076_v63  ;;  %v5452_v63 = vld [vmem:[%s14315_s16 + $0x718] sm:$0xff] }
0x1d6d   : > { %9761 = verf.f32 %v5077_v0  ;;  %v5417_v0 = vld [vmem:[%s14315_s16 + $0x600] sm:$0xff] }
0x1d76   : > { %v9760_v60 = vpop.eup %9759 }
0x1d77   : > { %v9762_v2 = vpop.eup %9761  ;;  %v5080_v3 = vadd.f32 1.0, %v9760_v60  ;;  %v5449_v60 = vld [vmem:[%s14315_s16 + $0x700] sm:$0xff] }
0x1d78   : > { %v5081_v51 = vadd.f32 1.0, %v9762_v2  ;;  %v9217_v2 = vpack.c.bf16 %v5452_v63, %v5420_v62  ;;  %v5262_v62 = vld [vmem:[%s14315_s16 + $0x128] sm:$0xff] }
0x1d79   : > { %v5082_v7 = vmul.f32 %v5080_v3, %v5074_v5  ;;  %v9187_v3 = vpack.c.bf16 %v5449_v60, %v5417_v0  ;;  %v9237_v63 = vpack.c.bf16 %v5262_v62, %v5230_v61  ;;  %v5264_v0 = vld [vmem:[%s14315_s16 + $0x138] sm:$0xff]  ;;  %v5485_v62 = vld [vmem:[%s14315_s16 + $0x820] sm:$0xff] }
0x1d7a   : > { %v5083_v6 = vmul.f32 %v5081_v51, %v5075_v4  ;;  %v5419_v4 = vld [vmem:[%s14315_s16 + $0x610] sm:$0xff] }
0x1d7b   : > { %v5451_v51 = vld [vmem:[%s14315_s16 + $0x710] sm:$0xff] }
0x1d7c   : > { %5189 = vmatprep.mubr.f32.mxu0 %v5083_v6  ;;  %v9219_v5 = vpack.c.bf16 %v5451_v51, %v5419_v4  ;;  %v5482_v6 = vld [vmem:[%s14315_s16 + $0x808] sm:$0xff]  ;;  %v7391_v51 = vld [vmem:[%s14313_s14] ss:$0 sm:$0xff] }
0x1d7d   : > { %5190 = vmatmul.mubr.f32.vlgmr.msra.gmra.mrb[42].mxu0 %v5082_v7  ;;  %v5514_v7 = vld [vmem:[%s14315_s16 + $0x908] sm:$0xff] }
0x1d7e   : > { %6040 = vmatprep.mubr.f32.mxu0 %v9790_v25  ;;  %9208 = vmatpush1.bf16.msra.mxu0 %v9207_v29  ;;  %v9195_v29 = vpack.c.bf16 %v5577_v21, %v5545_v28  ;;  %v5295_v28 = vld [vmem:[%s14315_s16 + $0x230] sm:$0xff] }
0x1d7f   : > { %9210 = vmatprep.subr.bf16.mxu0 %v9209_v35  ;;  %v5642_v35 = vld [vmem:[%s14315_s16 + $0xd08] sm:$0xff]  ;;  %v5327_v21 = vld [vmem:[%s14315_s16 + $0x330] sm:$0xff] }
0x1d82   : > { %9212 = vmatpush1.bf16.msra.mxu0 %v9211_v44  ;;  %v5611_v44 = vld [vmem:[%s14315_s16 + $0xc10] sm:$0xff] }
0x1d83   : > { %9214 = vmatprep.subr.bf16.mxu0 %v9213_v48  ;;  %v5676_v48 = vld [vmem:[%s14315_s16 + $0xe18] sm:$0xff] }
0x1d86   : > { %9216 = vmatpush1.bf16.msra.mxu0 %v9215_v38  ;;  %v9233_v38 = vpack.c.bf16 %v5708_v50, %v5676_v48  ;;  %v5453_v48 = vld [vmem:[%s14315_s16 + $0x720] sm:$0xff] }
0x1d87   : > { %9218 = vmatprep.subr.bf16.mxu0 %v9217_v2 }
0x1d8a   : > { %9220 = vmatpush1.bf16.msra.mxu0 %v9219_v5 }
0x1e50   : > { %v8132_v8 = vpop.f32.mrb[42].mxu0 }
0x1e51   : > { %v8133_v10 = vpop.f32.mrb[43].mxu0 }
0x1e52   : > { %v8134_v11 = vadd.f32 %v8133_v10, %v8132_v8  ;;  %v5484_v8 = vld [vmem:[%s14315_s16 + $0x818] sm:$0xff] }
0x1e53   : > { %v5516_v10 = vld [vmem:[%s14315_s16 + $0x918] sm:$0xff] }
0x1e54   : > { %v5192_v12 = vadd.f32 %v8134_v11, %v7389_v9  ;;  %v9189_v9 = vpack.c.bf16 %v5514_v7, %v5482_v6  ;;  %v5481_v11 = vld [vmem:[%s14315_s16 + $0x800] sm:$0xff] }
0x1e55   : > { %v7392_v6 = vld [vmem:[%s14314_s15] ss:$0 sm:$0xff] }
0x1e56   : > { %v5195_v13 = vadd.f32 %v5192_v12, %v12372_v1  ;;  %v5225_v1 = vld [vmem:[%s14315_s16] sm:$0xff] }
0x1e57   : > { %v9175_v26 = vpack.c.bf16 %v5257_v15, %v5225_v1  ;;  %v5513_v12 = vld [vmem:[%s14315_s16 + $0x900] sm:$0xff]  ;;  %v5578_v1 = vld [vmem:[%s14315_s16 + $0xb08] sm:$0xff]  ;;  %v5548_v15 = vld [vmem:[%s14315_s16 + $0xa18] sm:$0xff] }
0x1e58   : > { %5200 = vadd.xlane.f32.xlu1 %v5195_v13  ;;  %7390 = vst [vmem:[%s12058_s28 + $0x8] sm:$0xff] %v5195_v13  ;;  %v9191_v14 = vpack.c.bf16 %v5513_v12, %v5481_v11  ;;  %v9193_v22 = vpack.c.bf16 %v5578_v1, %v5546_v20  ;;  %v5229_v7 = vld [vmem:[%s14315_s16 + $0x20] sm:$0xff]  ;;  %v5263_v11 = vld [vmem:[%s14315_s16 + $0x130] sm:$0xff]  ;;  %v5294_v12 = vld [vmem:[%s14315_s16 + $0x228] sm:$0xff] }
0x1e59   : > { %9176 = vmatpush1.bf16.msra.mxu1 %v9175_v26  ;;  %v5580_v26 = vld [vmem:[%s14315_s16 + $0xb18] sm:$0xff]  ;;  %v5293_v20 = vld [vmem:[%s14315_s16 + $0x220] sm:$0xff] }
0x1e5a   : > { %9178 = vmatprep.subr.bf16.mxu1 %v9177_v34  ;;  %v9225_v18 = vpack.c.bf16 %v5580_v26, %v5548_v15  ;;  %v5610_v34 = vld [vmem:[%s14315_s16 + $0xc08] sm:$0xff]  ;;  %v5325_v1 = vld [vmem:[%s14315_s16 + $0x320] sm:$0xff] }
0x1e5b   : > { %v9197_v39 = vpack.c.bf16 %v5642_v35, %v5610_v34  ;;  %v9275_v34 = vpack.c.bf16 %v5327_v21, %v5295_v28  ;;  %v5357_v35 = vld [vmem:[%s14315_s16 + $0x420] sm:$0xff]  ;;  %v5615_v21 = vld [vmem:[%s14315_s16 + $0xc30] sm:$0xff] }
0x1e5d   : > { %9180 = vmatpush1.bf16.msra.mxu1 %v9179_v41  ;;  %v5609_v41 = vld [vmem:[%s14315_s16 + $0xc00] sm:$0xff] }
0x1e5e   : > { %9182 = vmatprep.subr.bf16.mxu1 %v9181_v45  ;;  %v9199_v43 = vpack.c.bf16 %v5641_v42, %v5609_v41  ;;  %v5643_v45 = vld [vmem:[%s14315_s16 + $0xd10] sm:$0xff] }
0x1e5f   : > { %v9231_v46 = vpack.c.bf16 %v5643_v45, %v5611_v44  ;;  %v5359_v41 = vld [vmem:[%s14315_s16 + $0x430] sm:$0xff]  ;;  %v5424_v44 = vld [vmem:[%s14315_s16 + $0x638] sm:$0xff] }
0x1e60   : > { %v5391_v42 = vld [vmem:[%s14315_s16 + $0x530] sm:$0xff]  ;;  %v5456_v45 = vld [vmem:[%s14315_s16 + $0x738] sm:$0xff] }
0x1e61   : > { %9184 = vmatpush1.bf16.msra.mxu1 %v9183_v53  ;;  %v5705_v53 = vld [vmem:[%s14315_s16 + $0xf00] sm:$0xff]  ;;  %v9279_v47 = vpack.c.bf16 %v5391_v42, %v5359_v41  ;;  %v9281_v50 = vpack.c.bf16 %v5456_v45, %v5424_v44  ;;  %v5679_v42 = vld [vmem:[%s14315_s16 + $0xe30] sm:$0xff]  ;;  %v5266_v44 = vld [vmem:[%s14315_s16 + $0x148] sm:$0xff] }
0x1e62   : > { %9186 = vmatprep.subr.bf16.mxu1 %v9185_v37  ;;  %v5232_v37 = vld [vmem:[%s14315_s16 + $0x38] sm:$0xff] }
0x1e63   : > { %v9269_v60 = vpack.c.bf16 %v5264_v0, %v5232_v37  ;;  %v5517_v37 = vld [vmem:[%s14315_s16 + $0x920] sm:$0xff]  ;;  %v5236_v45 = vld [vmem:[%s14315_s16 + $0x58] sm:$0xff] }
0x1e65   : > { %9188 = vmatpush1.bf16.msra.mxu1 %v9187_v3 }
0x1e66   : > { %9190 = vmatprep.subr.bf16.mxu1 %v9189_v9 }
0x1e69   : > { %9192 = vmatpush1.bf16.msra.mxu1 %v9191_v14  ;;  %v5328_v14 = vld [vmem:[%s14315_s16 + $0x338] sm:$0xff] }
0x1e6a   : > { %9194 = vmatprep.subr.bf16.mxu1 %v9193_v22 }
0x1e6d   : > { %9196 = vmatpush1.bf16.msra.mxu1 %v9195_v29  ;;  %v5390_v29 = vld [vmem:[%s14315_s16 + $0x528] sm:$0xff] }
0x1e6e   : > { %9198 = vmatprep.subr.bf16.mxu1 %v9197_v39 }
0x1e71   : > { %9200 = vmatpush1.bf16.msra.mxu1 %v9199_v43  ;;  %v5454_v43 = vld [vmem:[%s14315_s16 + $0x728] sm:$0xff] }
0x1e72   : > { %9202 = vmatprep.subr.bf16.mxu1 %v9201_v49 }
0x1ee5   : > { %v5201_v54 = vpop.xlane.xlu1 %5200 }
0x1ee6   : > { %v5202_v55 = vmul.f32 0.0078125, %v5201_v54  ;;  %v9203_v54 = vpack.c.bf16 %v5705_v53, %v5673_v52  ;;  %v5423_v52 = vld [vmem:[%s14315_s16 + $0x630] sm:$0xff] }
0x1ee7   : > { %v5455_v53 = vld [vmem:[%s14315_s16 + $0x730] sm:$0xff] }
0x1ee8   : > { %v12663_v56 = vsub.f32 %v5195_v13, %v5202_v55  ;;  %v9221_v13 = vpack.c.bf16 %v5516_v10, %v5484_v8  ;;  %v5675_v55 = vld [vmem:[%s14315_s16 + $0xe10] sm:$0xff]  ;;  %9204 = vmatpush1.bf16.msra.mxu1 %v9203_v54  ;;  %v5261_v8 = vld [vmem:[%s14315_s16 + $0x120] sm:$0xff]  ;;  %v5518_v54 = vld [vmem:[%s14315_s16 + $0x928] sm:$0xff]  ;;  %v9283_v61 = vpack.c.bf16 %v5455_v53, %v5423_v52 }
0x1ee9   : > { %9238 = vmatprep.subr.bf16.mxu1 %v9237_v63  ;;  %v5231_v10 = vld [vmem:[%s14315_s16 + $0x30] sm:$0xff]  ;;  %v9239_v59 = vpack.c.bf16 %v5261_v8, %v5229_v7  ;;  %v5549_v8 = vld [vmem:[%s14315_s16 + $0xa20] sm:$0xff] }
0x1eea   : > { %v5204_v57 = vmul.f32 %v12663_v56, %v12663_v56  ;;  %9222 = vmatprep.subr.bf16.mxu0 %v9221_v13  ;;  %v5326_v13 = vld [vmem:[%s14315_s16 + $0x328] sm:$0xff]  ;;  %v5235_v53 = vld [vmem:[%s14315_s16 + $0x50] sm:$0xff] }
0x1eeb   : > { %9224 = vmatpush1.bf16.msra.mxu0 %v9223_v19  ;;  %v9271_v19 = vpack.c.bf16 %v5263_v11, %v5231_v10  ;;  %v9241_v22 = vpack.c.bf16 %v5326_v13, %v5294_v12  ;;  %v5551_v12 = vld [vmem:[%s14315_s16 + $0xa30] sm:$0xff] }
0x1eec   : > { %5205 = vadd.xlane.f32.xlu0 %v5204_v57  ;;  %9226 = vmatprep.subr.bf16.mxu0 %v9225_v18  ;;  %v5707_v57 = vld [vmem:[%s14315_s16 + $0xf10] sm:$0xff]  ;;  %v5358_v18 = vld [vmem:[%s14315_s16 + $0x428] sm:$0xff] }
0x1eed   : > { %v9235_v58 = vpack.c.bf16 %v5707_v57, %v5675_v55  ;;  %v9245_v39 = vpack.c.bf16 %v5390_v29, %v5358_v18  ;;  %v5488_v55 = vld [vmem:[%s14315_s16 + $0x838] sm:$0xff]  ;;  %v5583_v13 = vld [vmem:[%s14315_s16 + $0xb30] sm:$0xff]  ;;  %v5678_v29 = vld [vmem:[%s14315_s16 + $0xe28] sm:$0xff] }
0x1eee   : > { %v5520_v57 = vld [vmem:[%s14315_s16 + $0x938] sm:$0xff]  ;;  %v5647_v18 = vld [vmem:[%s14315_s16 + $0xd30] sm:$0xff] }
0x1eef   : > { %9228 = vmatpush1.bf16.msra.mxu0 %v9227_v33  ;;  %v9243_v33 = vpack.c.bf16 %v5325_v1, %v5293_v20  ;;  %v9285_v0 = vpack.c.bf16 %v5520_v57, %v5488_v55  ;;  %v9291_v20 = vpack.c.bf16 %v5583_v13, %v5551_v12  ;;  %v5613_v1 = vld [vmem:[%s14315_s16 + $0xc20] sm:$0xff]  ;;  %v5330_v55 = vld [vmem:[%s14315_s16 + $0x348] sm:$0xff]  ;;  %v5300_v57 = vld [vmem:[%s14315_s16 + $0x258] sm:$0xff] }
0x1ef0   : > { %9230 = vmatprep.subr.bf16.mxu0 %v9229_v32  ;;  %v5422_v32 = vld [vmem:[%s14315_s16 + $0x628] sm:$0xff]  ;;  %v5363_v13 = vld [vmem:[%s14315_s16 + $0x450] sm:$0xff] }
0x1ef1   : > { %v9249_v49 = vpack.c.bf16 %v5454_v43, %v5422_v32  ;;  %v5711_v32 = vld [vmem:[%s14315_s16 + $0xf30] sm:$0xff]  ;;  %v5234_v43 = vld [vmem:[%s14315_s16 + $0x48] sm:$0xff] }
0x1ef3   : > { %9232 = vmatpush1.bf16.msra.mxu0 %v9231_v46  ;;  %v9247_v46 = vpack.c.bf16 %v5389_v36, %v5357_v35  ;;  %v9295_v35 = vpack.c.bf16 %v5647_v18, %v5615_v21  ;;  %v5677_v36 = vld [vmem:[%s14315_s16 + $0xe20] sm:$0xff]  ;;  %v5427_v18 = vld [vmem:[%s14315_s16 + $0x650] sm:$0xff] }
0x1ef4   : > { %9234 = vmatprep.subr.bf16.mxu0 %v9233_v38  ;;  %v5486_v38 = vld [vmem:[%s14315_s16 + $0x828] sm:$0xff] }
0x1ef5   : > { %v9253_v63 = vpack.c.bf16 %v5518_v54, %v5486_v38  ;;  %v5267_v38 = vld [vmem:[%s14315_s16 + $0x150] sm:$0xff]  ;;  %v5298_v54 = vld [vmem:[%s14315_s16 + $0x248] sm:$0xff] }
0x1ef7   : > { %9236 = vmatpush1.bf16.msra.mxu0 %v9235_v58  ;;  %v9251_v58 = vpack.c.bf16 %v5453_v48, %v5421_v16  ;;  %v9299_v16 = vpack.c.bf16 %v5711_v32, %v5679_v42  ;;  %v5233_v48 = vld [vmem:[%s14315_s16 + $0x40] sm:$0xff]  ;;  %v5491_v32 = vld [vmem:[%s14315_s16 + $0x850] sm:$0xff] }
0x1ef8   : > { %9270 = vmatprep.subr.bf16.mxu0 %v9269_v60  ;;  %v5487_v60 = vld [vmem:[%s14315_s16 + $0x830] sm:$0xff] }
0x1f79   : > { %v5206_v2 = vpop.xlane.xlu0 %5205 }
0x1f7a   : > { %v5207_v3 = vmul.f32 0.0078125, %v5206_v2  ;;  %v5519_v2 = vld [vmem:[%s14315_s16 + $0x930] sm:$0xff] }
0x1f7b   : > { %v9287_v7 = vpack.c.bf16 %v5519_v2, %v5487_v60  ;;  %v5299_v2 = vld [vmem:[%s14315_s16 + $0x250] sm:$0xff] }
0x1f7c   : > { %v5208_v4 = vadd.f32 1e-05, %v5207_v3  ;;  %v5550_v3 = vld [vmem:[%s14315_s16 + $0xa28] sm:$0xff] }
0x1f7e   : > { %9763 = vrsqrt.f32 %v5208_v4  ;;  %v5582_v4 = vld [vmem:[%s14315_s16 + $0xb28] sm:$0xff] }
0x1f7f   : > { %v9257_v10 = vpack.c.bf16 %v5582_v4, %v5550_v3  ;;  %v5331_v3 = vld [vmem:[%s14315_s16 + $0x350] sm:$0xff]  ;;  %v5362_v4 = vld [vmem:[%s14315_s16 + $0x448] sm:$0xff] }
0x1f88   : > { %v9764_v5 = vpop.eup %9763 }
0x1f89   : > { %v5210_v9 = vmul.f32 %v9764_v5, %v12663_v56  ;;  %v5296_v56 = vld [vmem:[%s14315_s16 + $0x238] sm:$0xff] }
0x1f8a   : > { %v9273_v26 = vpack.c.bf16 %v5328_v14, %v5296_v56  ;;  %v5584_v5 = vld [vmem:[%s14315_s16 + $0xb38] sm:$0xff]  ;;  %v5614_v56 = vld [vmem:[%s14315_s16 + $0xc28] sm:$0xff] }
0x1f8b   : > { %v5217_v17 = vmul.f32 %v7391_v51, %v5210_v9  ;;  %v5552_v51 = vld [vmem:[%s14315_s16 + $0xa38] sm:$0xff]  ;;  %v5581_v9 = vld [vmem:[%s14315_s16 + $0xb20] sm:$0xff]  ;;  %v5646_v14 = vld [vmem:[%s14315_s16 + $0xd28] sm:$0xff] }
0x1f8c   : > { %v9289_v11 = vpack.c.bf16 %v5584_v5, %v5552_v51  ;;  %v5394_v51 = vld [vmem:[%s14315_s16 + $0x548] sm:$0xff]  ;;  %v5364_v5 = vld [vmem:[%s14315_s16 + $0x458] sm:$0xff] }
0x1f8d   : > { %v12836_v15 = vadd.f32 %v7392_v6, %v5217_v17  ;;  %v9255_v6 = vpack.c.bf16 %v5517_v37, %v5485_v62  ;;  %v5616_v17 = vld [vmem:[%s14315_s16 + $0xc38] sm:$0xff]  ;;  %v9335_v62 = vpack.c.bf16 %v5267_v38, %v5235_v53  ;;  %v5297_v37 = vld [vmem:[%s14315_s16 + $0x240] sm:$0xff]  ;;  %v5555_v38 = vld [vmem:[%s14315_s16 + $0xa50] sm:$0xff] }
0x1f8f   : > { %5970 = vmatmul.mubr.f32.vlgmr.msra.gmra.mrb[52].mxu1 %v12836_v15  ;;  %6041 = vmatmul.mubr.f32.vlgmr.msra.gmra.mrb[44].mxu0 %v12836_v15 }
0x1f90   : > { %9240 = vmatpush1.bf16.msra.mxu1 %v9239_v59  ;;  %9272 = vmatpush1.bf16.msra.mxu0 %v9271_v19  ;;  %v5648_v59 = vld [vmem:[%s14315_s16 + $0xd38] sm:$0xff]  ;;  %v9259_v19 = vpack.c.bf16 %v5581_v9, %v5549_v8  ;;  %v9339_v8 = vpack.c.bf16 %v5331_v3, %v5299_v2  ;;  %v5361_v9 = vld [vmem:[%s14315_s16 + $0x440] sm:$0xff]  ;;  %v5619_v3 = vld [vmem:[%s14315_s16 + $0xc50] sm:$0xff] }
0x1f91   : > { %9242 = vmatprep.subr.bf16.mxu1 %v9241_v22  ;;  %9274 = vmatprep.subr.bf16.mxu0 %v9273_v26  ;;  %v5645_v22 = vld [vmem:[%s14315_s16 + $0xd20] sm:$0xff]  ;;  %v9261_v26 = vpack.c.bf16 %v5646_v14, %v5614_v56  ;;  %v9293_v28 = vpack.c.bf16 %v5648_v59, %v5616_v17  ;;  %v5395_v56 = vld [vmem:[%s14315_s16 + $0x550] sm:$0xff]  ;;  %v5426_v14 = vld [vmem:[%s14315_s16 + $0x648] sm:$0xff] }
0x1f92   : > { %6111 = vmatprep.mubr.f32.mxu1 %v9790_v25  ;;  %6182 = vmatprep.mubr.f32.mxu0 %v9790_v25  ;;  %v5458_v17 = vld [vmem:[%s14315_s16 + $0x748] sm:$0xff]  ;;  %v5428_v59 = vld [vmem:[%s14315_s16 + $0x658] sm:$0xff] }
0x1f94   : > { %9244 = vmatpush1.bf16.msra.mxu1 %v9243_v33  ;;  %9276 = vmatpush1.bf16.msra.mxu0 %v9275_v34  ;;  %v5712_v33 = vld [vmem:[%s14315_s16 + $0xf38] sm:$0xff]  ;;  %v9263_v34 = vpack.c.bf16 %v5645_v22, %v5613_v1  ;;  %v9343_v1 = vpack.c.bf16 %v5395_v56, %v5363_v13  ;;  %v5425_v22 = vld [vmem:[%s14315_s16 + $0x640] sm:$0xff]  ;;  %v5683_v56 = vld [vmem:[%s14315_s16 + $0xe50] sm:$0xff] }
0x1f95   : > { %9246 = vmatprep.subr.bf16.mxu1 %v9245_v39  ;;  %9278 = vmatprep.subr.bf16.mxu0 %v9277_v40  ;;  %v5709_v39 = vld [vmem:[%s14315_s16 + $0xf20] sm:$0xff]  ;;  %v9265_v40 = vpack.c.bf16 %v5710_v30, %v5678_v29  ;;  %v9297_v41 = vpack.c.bf16 %v5712_v33, %v5680_v31  ;;  %v5459_v29 = vld [vmem:[%s14315_s16 + $0x750] sm:$0xff]  ;;  %v5490_v30 = vld [vmem:[%s14315_s16 + $0x848] sm:$0xff] }
0x1f96   : > { %v5522_v31 = vld [vmem:[%s14315_s16 + $0x948] sm:$0xff]  ;;  %v5492_v33 = vld [vmem:[%s14315_s16 + $0x858] sm:$0xff] }
0x1f98   : > { %9248 = vmatpush1.bf16.msra.mxu1 %v9247_v46  ;;  %9280 = vmatpush1.bf16.msra.mxu0 %v9279_v47  ;;  %v5268_v46 = vld [vmem:[%s14315_s16 + $0x158] sm:$0xff]  ;;  %v9267_v47 = vpack.c.bf16 %v5709_v39, %v5677_v36  ;;  %v9347_v36 = vpack.c.bf16 %v5459_v29, %v5427_v18  ;;  %v5489_v39 = vld [vmem:[%s14315_s16 + $0x840] sm:$0xff]  ;;  %v5239_v29 = vld [vmem:[%s14315_s16 + $0x70] sm:$0xff] }
0x1f99   : > { %9250 = vmatprep.subr.bf16.mxu1 %v9249_v49  ;;  %9282 = vmatprep.subr.bf16.mxu0 %v9281_v50  ;;  %v5265_v49 = vld [vmem:[%s14315_s16 + $0x140] sm:$0xff]  ;;  %v9301_v50 = vpack.c.bf16 %v5266_v44, %v5234_v43  ;;  %v9333_v52 = vpack.c.bf16 %v5268_v46, %v5236_v45  ;;  %v5523_v43 = vld [vmem:[%s14315_s16 + $0x950] sm:$0xff]  ;;  %v5554_v44 = vld [vmem:[%s14315_s16 + $0xa48] sm:$0xff] }
0x1f9a   : > { %v5586_v45 = vld [vmem:[%s14315_s16 + $0xb48] sm:$0xff]  ;;  %v5556_v46 = vld [vmem:[%s14315_s16 + $0xa58] sm:$0xff] }
0x1f9c   : > { %9252 = vmatpush1.bf16.msra.mxu1 %v9251_v58  ;;  %9284 = vmatpush1.bf16.msra.mxu0 %v9283_v61  ;;  %v5332_v58 = vld [vmem:[%s14315_s16 + $0x358] sm:$0xff]  ;;  %v9303_v61 = vpack.c.bf16 %v5265_v49, %v5233_v48  ;;  %v9351_v48 = vpack.c.bf16 %v5523_v43, %v5491_v32  ;;  %v5553_v49 = vld [vmem:[%s14315_s16 + $0xa40] sm:$0xff]  ;;  %v5303_v43 = vld [vmem:[%s14315_s16 + $0x270] sm:$0xff] }
0x1f9d   : > { %9254 = vmatprep.subr.bf16.mxu1 %v9253_v63  ;;  %9286 = vmatprep.subr.bf16.mxu0 %v9285_v0  ;;  %v5329_v63 = vld [vmem:[%s14315_s16 + $0x340] sm:$0xff]  ;;  %v9305_v0 = vpack.c.bf16 %v5330_v55, %v5298_v54  ;;  %v9337_v60 = vpack.c.bf16 %v5332_v58, %v5300_v57  ;;  %v5587_v54 = vld [vmem:[%s14315_s16 + $0xb50] sm:$0xff]  ;;  %v5618_v55 = vld [vmem:[%s14315_s16 + $0xc48] sm:$0xff] }
0x1f9e   : > { %v5650_v57 = vld [vmem:[%s14315_s16 + $0xd48] sm:$0xff]  ;;  %v5620_v58 = vld [vmem:[%s14315_s16 + $0xc58] sm:$0xff] }
0x1fa0   : > { %9256 = vmatpush1.bf16.msra.mxu1 %v9255_v6  ;;  %9288 = vmatpush1.bf16.msra.mxu0 %v9287_v7  ;;  %v5396_v6 = vld [vmem:[%s14315_s16 + $0x558] sm:$0xff]  ;;  %v9307_v7 = vpack.c.bf16 %v5329_v63, %v5297_v37  ;;  %v9355_v37 = vpack.c.bf16 %v5587_v54, %v5555_v38  ;;  %v5617_v63 = vld [vmem:[%s14315_s16 + $0xc40] sm:$0xff]  ;;  %v5367_v54 = vld [vmem:[%s14315_s16 + $0x470] sm:$0xff] }
0x1fa1   : > { %9258 = vmatprep.subr.bf16.mxu1 %v9257_v10  ;;  %9290 = vmatprep.subr.bf16.mxu0 %v9289_v11  ;;  %v5393_v10 = vld [vmem:[%s14315_s16 + $0x540] sm:$0xff]  ;;  %v9309_v11 = vpack.c.bf16 %v5394_v51, %v5362_v4  ;;  %v9341_v12 = vpack.c.bf16 %v5396_v6, %v5364_v5  ;;  %v5651_v4 = vld [vmem:[%s14315_s16 + $0xd50] sm:$0xff]  ;;  %v5682_v51 = vld [vmem:[%s14315_s16 + $0xe48] sm:$0xff] }
0x1fa2   : > { %v5714_v5 = vld [vmem:[%s14315_s16 + $0xf48] sm:$0xff]  ;;  %v5684_v6 = vld [vmem:[%s14315_s16 + $0xe58] sm:$0xff] }
0x1fa4   : > { %9260 = vmatpush1.bf16.msra.mxu1 %v9259_v19  ;;  %9292 = vmatpush1.bf16.msra.mxu0 %v9291_v20  ;;  %v5460_v19 = vld [vmem:[%s14315_s16 + $0x758] sm:$0xff]  ;;  %v9311_v20 = vpack.c.bf16 %v5393_v10, %v5361_v9  ;;  %v9359_v9 = vpack.c.bf16 %v5651_v4, %v5619_v3  ;;  %v5681_v10 = vld [vmem:[%s14315_s16 + $0xe40] sm:$0xff]  ;;  %v5431_v4 = vld [vmem:[%s14315_s16 + $0x670] sm:$0xff] }
0x1fa5   : > { %9262 = vmatprep.subr.bf16.mxu1 %v9261_v26  ;;  %9294 = vmatprep.subr.bf16.mxu0 %v9293_v28  ;;  %v5457_v26 = vld [vmem:[%s14315_s16 + $0x740] sm:$0xff]  ;;  %v9313_v28 = vpack.c.bf16 %v5458_v17, %v5426_v14  ;;  %v9345_v21 = vpack.c.bf16 %v5460_v19, %v5428_v59  ;;  %v5715_v14 = vld [vmem:[%s14315_s16 + $0xf50] sm:$0xff]  ;;  %v5238_v17 = vld [vmem:[%s14315_s16 + $0x68] sm:$0xff] }
0x1fa6   : > { %v5270_v59 = vld [vmem:[%s14315_s16 + $0x168] sm:$0xff]  ;;  %v5240_v19 = vld [vmem:[%s14315_s16 + $0x78] sm:$0xff] }
0x1fa8   : > { %9264 = vmatpush1.bf16.msra.mxu1 %v9263_v34  ;;  %9296 = vmatpush1.bf16.msra.mxu0 %v9295_v35  ;;  %v5524_v34 = vld [vmem:[%s14315_s16 + $0x958] sm:$0xff]  ;;  %v9315_v35 = vpack.c.bf16 %v5457_v26, %v5425_v22  ;;  %v9363_v22 = vpack.c.bf16 %v5715_v14, %v5683_v56  ;;  %v5237_v26 = vld [vmem:[%s14315_s16 + $0x60] sm:$0xff]  ;;  %v5495_v14 = vld [vmem:[%s14315_s16 + $0x870] sm:$0xff] }
0x1fa9   : > { %9266 = vmatprep.subr.bf16.mxu1 %v9265_v40  ;;  %9298 = vmatprep.subr.bf16.mxu0 %v9297_v41  ;;  %v5521_v40 = vld [vmem:[%s14315_s16 + $0x940] sm:$0xff]  ;;  %v9317_v41 = vpack.c.bf16 %v5522_v31, %v5490_v30  ;;  %v9349_v42 = vpack.c.bf16 %v5524_v34, %v5492_v33  ;;  %v5271_v30 = vld [vmem:[%s14315_s16 + $0x170] sm:$0xff]  ;;  %v5302_v31 = vld [vmem:[%s14315_s16 + $0x268] sm:$0xff] }
0x1faa   : > { %v5334_v33 = vld [vmem:[%s14315_s16 + $0x368] sm:$0xff]  ;;  %v5304_v34 = vld [vmem:[%s14315_s16 + $0x278] sm:$0xff] }
0x1fac   : > { %9268 = vmatpush1.bf16.msra.mxu1 %v9267_v47  ;;  %9300 = vmatpush1.bf16.msra.mxu0 %v9299_v16  ;;  %v5588_v47 = vld [vmem:[%s14315_s16 + $0xb58] sm:$0xff]  ;;  %v9319_v16 = vpack.c.bf16 %v5521_v40, %v5489_v39  ;;  %v9399_v39 = vpack.c.bf16 %v5271_v30, %v5239_v29  ;;  %v5301_v40 = vld [vmem:[%s14315_s16 + $0x260] sm:$0xff]  ;;  %v5559_v30 = vld [vmem:[%s14315_s16 + $0xa70] sm:$0xff] }
0x1fad   : > { %9302 = vmatprep.subr.bf16.mxu1 %v9301_v50  ;;  %9334 = vmatprep.subr.bf16.mxu0 %v9333_v52  ;;  %v5585_v50 = vld [vmem:[%s14315_s16 + $0xb40] sm:$0xff]  ;;  %v9321_v52 = vpack.c.bf16 %v5586_v45, %v5554_v44  ;;  %v9353_v53 = vpack.c.bf16 %v5588_v47, %v5556_v46  ;;  %v5335_v44 = vld [vmem:[%s14315_s16 + $0x370] sm:$0xff]  ;;  %v5366_v45 = vld [vmem:[%s14315_s16 + $0x468] sm:$0xff] }
0x1fae   : > { %v5398_v46 = vld [vmem:[%s14315_s16 + $0x568] sm:$0xff]  ;;  %v5368_v47 = vld [vmem:[%s14315_s16 + $0x478] sm:$0xff] }
0x1faf   : > { %6112 = vmatmul.mubr.f32.vlgmr.msra.gmra.mrb[54].mxu1 %v12836_v15  ;;  %6183 = vmatmul.mubr.f32.vlgmr.msra.gmra.mrb[46].mxu0 %v12836_v15 }
0x1fb0   : > { %9304 = vmatpush1.bf16.msra.mxu1 %v9303_v61  ;;  %9336 = vmatpush1.bf16.msra.mxu0 %v9335_v62  ;;  %v5652_v61 = vld [vmem:[%s14315_s16 + $0xd58] sm:$0xff]  ;;  %v9323_v62 = vpack.c.bf16 %v5585_v50, %v5553_v49  ;;  %v9403_v49 = vpack.c.bf16 %v5335_v44, %v5303_v43  ;;  %v5365_v50 = vld [vmem:[%s14315_s16 + $0x460] sm:$0xff]  ;;  %v5623_v44 = vld [vmem:[%s14315_s16 + $0xc70] sm:$0xff] }
0x1fb1   : > { %9306 = vmatprep.subr.bf16.mxu1 %v9305_v0  ;;  %9338 = vmatprep.subr.bf16.mxu0 %v9337_v60  ;;  %v5649_v0 = vld [vmem:[%s14315_s16 + $0xd40] sm:$0xff]  ;;  %v9325_v60 = vpack.c.bf16 %v5650_v57, %v5618_v55  ;;  %v9357_v2 = vpack.c.bf16 %v5652_v61, %v5620_v58  ;;  %v5399_v55 = vld [vmem:[%s14315_s16 + $0x570] sm:$0xff]  ;;  %v5430_v57 = vld [vmem:[%s14315_s16 + $0x668] sm:$0xff] }
0x1fb2   : > { %6253 = vmatprep.mubr.f32.mxu1 %v9790_v25  ;;  %6324 = vmatprep.mubr.f32.mxu0 %v9790_v25  ;;  %v5462_v58 = vld [vmem:[%s14315_s16 + $0x768] sm:$0xff]  ;;  %v5432_v61 = vld [vmem:[%s14315_s16 + $0x678] sm:$0xff] }
0x1fb4   : > { %9308 = vmatpush1.bf16.msra.mxu1 %v9307_v7  ;;  %9340 = vmatpush1.bf16.msra.mxu0 %v9339_v8  ;;  %v5716_v7 = vld [vmem:[%s14315_s16 + $0xf58] sm:$0xff]  ;;  %v9327_v8 = vpack.c.bf16 %v5649_v0, %v5617_v63  ;;  %v9407_v63 = vpack.c.bf16 %v5399_v55, %v5367_v54  ;;  %v5429_v0 = vld [vmem:[%s14315_s16 + $0x660] sm:$0xff]  ;;  %v5687_v55 = vld [vmem:[%s14315_s16 + $0xe70] sm:$0xff] }
0x1fb5   : > { %9310 = vmatprep.subr.bf16.mxu1 %v9309_v11  ;;  %9342 = vmatprep.subr.bf16.mxu0 %v9341_v12  ;;  %v5713_v11 = vld [vmem:[%s14315_s16 + $0xf40] sm:$0xff]  ;;  %v9329_v12 = vpack.c.bf16 %v5714_v5, %v5682_v51  ;;  %v9361_v13 = vpack.c.bf16 %v5716_v7, %v5684_v6  ;;  %v5463_v51 = vld [vmem:[%s14315_s16 + $0x770] sm:$0xff]  ;;  %v5494_v5 = vld [vmem:[%s14315_s16 + $0x868] sm:$0xff] }
0x1fb6   : > { %v5526_v6 = vld [vmem:[%s14315_s16 + $0x968] sm:$0xff]  ;;  %v5496_v7 = vld [vmem:[%s14315_s16 + $0x878] sm:$0xff] }
0x1fb8   : > { %9312 = vmatpush1.bf16.msra.mxu1 %v9311_v20  ;;  %9344 = vmatpush1.bf16.msra.mxu0 %v9343_v1  ;;  %v5272_v20 = vld [vmem:[%s14315_s16 + $0x178] sm:$0xff]  ;;  %v9331_v1 = vpack.c.bf16 %v5713_v11, %v5681_v10  ;;  %v9411_v10 = vpack.c.bf16 %v5463_v51, %v5431_v4  ;;  %v5493_v11 = vld [vmem:[%s14315_s16 + $0x860] sm:$0xff]  ;;  %v5243_v51 = vld [vmem:[%s14315_s16 + $0x90] sm:$0xff] }
0x1fb9   : > { %9314 = vmatprep.subr.bf16.mxu1 %v9313_v28  ;;  %9346 = vmatprep.subr.bf16.mxu0 %v9345_v21  ;;  %v5269_v28 = vld [vmem:[%s14315_s16 + $0x160] sm:$0xff]  ;;  %v9365_v21 = vpack.c.bf16 %v5270_v59, %v5238_v17  ;;  %v9397_v18 = vpack.c.bf16 %v5272_v20, %v5240_v19  ;;  %v5527_v17 = vld [vmem:[%s14315_s16 + $0x970] sm:$0xff]  ;;  %v5558_v59 = vld [vmem:[%s14315_s16 + $0xa68] sm:$0xff] }
0x1fba   : > { %v5590_v19 = vld [vmem:[%s14315_s16 + $0xb68] sm:$0xff]  ;;  %v5560_v20 = vld [vmem:[%s14315_s16 + $0xa78] sm:$0xff] }
0x1fbc   : > { %9316 = vmatpush1.bf16.msra.mxu1 %v9315_v35  ;;  %9348 = vmatpush1.bf16.msra.mxu0 %v9347_v36  ;;  %v5336_v35 = vld [vmem:[%s14315_s16 + $0x378] sm:$0xff]  ;;  %v9367_v36 = vpack.c.bf16 %v5269_v28, %v5237_v26  ;;  %v9415_v26 = vpack.c.bf16 %v5527_v17, %v5495_v14  ;;  %v5557_v28 = vld [vmem:[%s14315_s16 + $0xa60] sm:$0xff]  ;;  %v5307_v17 = vld [vmem:[%s14315_s16 + $0x290] sm:$0xff] }
0x1fbd   : > { %9318 = vmatprep.subr.bf16.mxu1 %v9317_v41  ;;  %9350 = vmatprep.subr.bf16.mxu0 %v9349_v42  ;;  %v5333_v41 = vld [vmem:[%s14315_s16 + $0x360] sm:$0xff]  ;;  %v9369_v42 = vpack.c.bf16 %v5334_v33, %v5302_v31  ;;  %v9401_v32 = vpack.c.bf16 %v5336_v35, %v5304_v34  ;;  %v5591_v31 = vld [vmem:[%s14315_s16 + $0xb70] sm:$0xff]  ;;  %v5622_v33 = vld [vmem:[%s14315_s16 + $0xc68] sm:$0xff] }
0x1fbe   : > { %v5654_v34 = vld [vmem:[%s14315_s16 + $0xd68] sm:$0xff]  ;;  %v5624_v35 = vld [vmem:[%s14315_s16 + $0xc78] sm:$0xff] }
0x1fc0   : > { %9320 = vmatpush1.bf16.msra.mxu1 %v9319_v16  ;;  %9352 = vmatpush1.bf16.msra.mxu0 %v9351_v48  ;;  %v5400_v16 = vld [vmem:[%s14315_s16 + $0x578] sm:$0xff]  ;;  %v9371_v48 = vpack.c.bf16 %v5333_v41, %v5301_v40  ;;  %v9419_v40 = vpack.c.bf16 %v5591_v31, %v5559_v30  ;;  %v5621_v41 = vld [vmem:[%s14315_s16 + $0xc60] sm:$0xff]  ;;  %v5371_v31 = vld [vmem:[%s14315_s16 + $0x490] sm:$0xff] }
0x1fc1   : > { %9322 = vmatprep.subr.bf16.mxu1 %v9321_v52  ;;  %9354 = vmatprep.subr.bf16.mxu0 %v9353_v53  ;;  %v5397_v52 = vld [vmem:[%s14315_s16 + $0x560] sm:$0xff]  ;;  %v9373_v53 = vpack.c.bf16 %v5398_v46, %v5366_v45  ;;  %v9405_v38 = vpack.c.bf16 %v5400_v16, %v5368_v47  ;;  %v5655_v45 = vld [vmem:[%s14315_s16 + $0xd70] sm:$0xff]  ;;  %v5686_v46 = vld [vmem:[%s14315_s16 + $0xe68] sm:$0xff] }
0x1fc2   : > { %v5718_v47 = vld [vmem:[%s14315_s16 + $0xf68] sm:$0xff]  ;;  %v5688_v16 = vld [vmem:[%s14315_s16 + $0xe78] sm:$0xff] }
0x1fc4   : > { %9324 = vmatpush1.bf16.msra.mxu1 %v9323_v62  ;;  %9356 = vmatpush1.bf16.msra.mxu0 %v9355_v37  ;;  %v5464_v62 = vld [vmem:[%s14315_s16 + $0x778] sm:$0xff]  ;;  %v9375_v37 = vpack.c.bf16 %v5397_v52, %v5365_v50  ;;  %v9423_v50 = vpack.c.bf16 %v5655_v45, %v5623_v44  ;;  %v5685_v52 = vld [vmem:[%s14315_s16 + $0xe60] sm:$0xff]  ;;  %v5435_v45 = vld [vmem:[%s14315_s16 + $0x690] sm:$0xff] }
0x1fc5   : > { %9326 = vmatprep.subr.bf16.mxu1 %v9325_v60  ;;  %9358 = vmatprep.subr.bf16.mxu0 %v9357_v2  ;;  %v5461_v60 = vld [vmem:[%s14315_s16 + $0x760] sm:$0xff]  ;;  %v9377_v2 = vpack.c.bf16 %v5462_v58, %v5430_v57  ;;  %v9409_v3 = vpack.c.bf16 %v5464_v62, %v5432_v61  ;;  %v5719_v57 = vld [vmem:[%s14315_s16 + $0xf70] sm:$0xff]  ;;  %v5242_v58 = vld [vmem:[%s14315_s16 + $0x88] sm:$0xff] }
0x1fc6   : > { %v5274_v61 = vld [vmem:[%s14315_s16 + $0x188] sm:$0xff]  ;;  %v5244_v62 = vld [vmem:[%s14315_s16 + $0x98] sm:$0xff] }
0x1fc8   : > { %9328 = vmatpush1.bf16.msra.mxu1 %v9327_v8  ;;  %9360 = vmatpush1.bf16.msra.mxu0 %v9359_v9  ;;  %v5528_v8 = vld [vmem:[%s14315_s16 + $0x978] sm:$0xff]  ;;  %v9379_v9 = vpack.c.bf16 %v5461_v60, %v5429_v0  ;;  %v9427_v0 = vpack.c.bf16 %v5719_v57, %v5687_v55  ;;  %v5241_v60 = vld [vmem:[%s14315_s16 + $0x80] sm:$0xff]  ;;  %v5499_v57 = vld [vmem:[%s14315_s16 + $0x890] sm:$0xff] }
0x1fc9   : > { %9330 = vmatprep.subr.bf16.mxu1 %v9329_v12  ;;  %9362 = vmatprep.subr.bf16.mxu0 %v9361_v13  ;;  %v5525_v12 = vld [vmem:[%s14315_s16 + $0x960] sm:$0xff]  ;;  %v9381_v13 = vpack.c.bf16 %v5526_v6, %v5494_v5  ;;  %v9413_v56 = vpack.c.bf16 %v5528_v8, %v5496_v7  ;;  %v5275_v5 = vld [vmem:[%s14315_s16 + $0x190] sm:$0xff]  ;;  %v5306_v6 = vld [vmem:[%s14315_s16 + $0x288] sm:$0xff] }
0x1fca   : > { %v5338_v7 = vld [vmem:[%s14315_s16 + $0x388] sm:$0xff]  ;;  %v5308_v8 = vld [vmem:[%s14315_s16 + $0x298] sm:$0xff] }
0x1fcc   : > { %9332 = vmatpush1.bf16.msra.mxu1 %v9331_v1  ;;  %9364 = vmatpush1.bf16.msra.mxu0 %v9363_v22  ;;  %v5592_v1 = vld [vmem:[%s14315_s16 + $0xb78] sm:$0xff]  ;;  %v9383_v22 = vpack.c.bf16 %v5525_v12, %v5493_v11  ;;  %v9463_v11 = vpack.c.bf16 %v5275_v5, %v5243_v51  ;;  %v5305_v12 = vld [vmem:[%s14315_s16 + $0x280] sm:$0xff]  ;;  %v5563_v5 = vld [vmem:[%s14315_s16 + $0xa90] sm:$0xff] }
0x1fcd   : > { %9366 = vmatprep.subr.bf16.mxu1 %v9365_v21  ;;  %9398 = vmatprep.subr.bf16.mxu0 %v9397_v18  ;;  %v5589_v21 = vld [vmem:[%s14315_s16 + $0xb60] sm:$0xff]  ;;  %v9385_v18 = vpack.c.bf16 %v5590_v19, %v5558_v59  ;;  %v9417_v29 = vpack.c.bf16 %v5592_v1, %v5560_v20  ;;  %v5339_v59 = vld [vmem:[%s14315_s16 + $0x390] sm:$0xff]  ;;  %v5370_v19 = vld [vmem:[%s14315_s16 + $0x488] sm:$0xff] }
0x1fce   : > { %v5402_v20 = vld [vmem:[%s14315_s16 + $0x588] sm:$0xff]  ;;  %v5372_v1 = vld [vmem:[%s14315_s16 + $0x498] sm:$0xff] }
0x1fcf   : > { %6254 = vmatmul.mubr.f32.vlgmr.msra.gmra.mrb[56].mxu1 %v12836_v15  ;;  %6325 = vmatmul.mubr.f32.vlgmr.msra.gmra.mrb[48].mxu0 %v12836_v15 }
0x1fd0   : > { %9368 = vmatpush1.bf16.msra.mxu1 %v9367_v36  ;;  %9400 = vmatpush1.bf16.msra.mxu0 %v9399_v39  ;;  %v5656_v36 = vld [vmem:[%s14315_s16 + $0xd78] sm:$0xff]  ;;  %v9387_v39 = vpack.c.bf16 %v5589_v21, %v5557_v28  ;;  %v9467_v28 = vpack.c.bf16 %v5339_v59, %v5307_v17  ;;  %v5369_v21 = vld [vmem:[%s14315_s16 + $0x480] sm:$0xff]  ;;  %v5627_v59 = vld [vmem:[%s14315_s16 + $0xc90] sm:$0xff] }
0x1fd1   : > { %9370 = vmatprep.subr.bf16.mxu1 %v9369_v42  ;;  %9402 = vmatprep.subr.bf16.mxu0 %v9401_v32  ;;  %v5653_v42 = vld [vmem:[%s14315_s16 + $0xd60] sm:$0xff]  ;;  %v9389_v32 = vpack.c.bf16 %v5654_v34, %v5622_v33  ;;  %v9421_v43 = vpack.c.bf16 %v5656_v36, %v5624_v35  ;;  %v5403_v33 = vld [vmem:[%s14315_s16 + $0x590] sm:$0xff]  ;;  %v5434_v34 = vld [vmem:[%s14315_s16 + $0x688] sm:$0xff] }
0x1fd2   : > { %6395 = vmatprep.mubr.f32.mxu1 %v9790_v25  ;;  %6466 = vmatprep.mubr.f32.mxu0 %v9790_v25  ;;  %v5466_v35 = vld [vmem:[%s14315_s16 + $0x788] sm:$0xff]  ;;  %v5436_v36 = vld [vmem:[%s14315_s16 + $0x698] sm:$0xff] }
0x1fd4   : > { %9372 = vmatpush1.bf16.msra.mxu1 %v9371_v48  ;;  %9404 = vmatpush1.bf16.msra.mxu0 %v9403_v49  ;;  %v5720_v48 = vld [vmem:[%s14315_s16 + $0xf78] sm:$0xff]  ;;  %v9391_v49 = vpack.c.bf16 %v5653_v42, %v5621_v41  ;;  %v9471_v41 = vpack.c.bf16 %v5403_v33, %v5371_v31  ;;  %v5433_v42 = vld [vmem:[%s14315_s16 + $0x680] sm:$0xff]  ;;  %v5691_v33 = vld [vmem:[%s14315_s16 + $0xe90] sm:$0xff] }
0x1fd5   : > { %9374 = vmatprep.subr.bf16.mxu1 %v9373_v53  ;;  %9406 = vmatprep.subr.bf16.mxu0 %v9405_v38  ;;  %v5717_v53 = vld [vmem:[%s14315_s16 + $0xf60] sm:$0xff]  ;;  %v9393_v38 = vpack.c.bf16 %v5718_v47, %v5686_v46  ;;  %v9425_v54 = vpack.c.bf16 %v5720_v48, %v5688_v16  ;;  %v5467_v46 = vld [vmem:[%s14315_s16 + $0x790] sm:$0xff]  ;;  %v5498_v47 = vld [vmem:[%s14315_s16 + $0x888] sm:$0xff] }
0x1fd6   : > { %v5530_v16 = vld [vmem:[%s14315_s16 + $0x988] sm:$0xff]  ;;  %v5500_v48 = vld [vmem:[%s14315_s16 + $0x898] sm:$0xff] }
0x1fd8   : > { %9376 = vmatpush1.bf16.msra.mxu1 %v9375_v37  ;;  %9408 = vmatpush1.bf16.msra.mxu0 %v9407_v63  ;;  %v5276_v37 = vld [vmem:[%s14315_s16 + $0x198] sm:$0xff]  ;;  %v9395_v63 = vpack.c.bf16 %v5717_v53, %v5685_v52  ;;  %v9475_v52 = vpack.c.bf16 %v5467_v46, %v5435_v45  ;;  %v5497_v53 = vld [vmem:[%s14315_s16 + $0x880] sm:$0xff]  ;;  %v5247_v46 = vld [vmem:[%s14315_s16 + $0xb0] sm:$0xff] }
0x1fd9   : > { %9378 = vmatprep.subr.bf16.mxu1 %v9377_v2  ;;  %9410 = vmatprep.subr.bf16.mxu0 %v9409_v3  ;;  %v5273_v2 = vld [vmem:[%s14315_s16 + $0x180] sm:$0xff]  ;;  %v9429_v3 = vpack.c.bf16 %v5274_v61, %v5242_v58  ;;  %v9461_v4 = vpack.c.bf16 %v5276_v37, %v5244_v62  ;;  %v5531_v58 = vld [vmem:[%s14315_s16 + $0x990] sm:$0xff]  ;;  %v5562_v61 = vld [vmem:[%s14315_s16 + $0xa88] sm:$0xff] }
0x1fda   : > { %v5594_v62 = vld [vmem:[%s14315_s16 + $0xb88] sm:$0xff]  ;;  %v5564_v37 = vld [vmem:[%s14315_s16 + $0xa98] sm:$0xff] }
0x1fdc   : > { %9380 = vmatpush1.bf16.msra.mxu1 %v9379_v9  ;;  %9412 = vmatpush1.bf16.msra.mxu0 %v9411_v10  ;;  %v5340_v9 = vld [vmem:[%s14315_s16 + $0x398] sm:$0xff]  ;;  %v9431_v10 = vpack.c.bf16 %v5273_v2, %v5241_v60  ;;  %v9479_v60 = vpack.c.bf16 %v5531_v58, %v5499_v57  ;;  %v5561_v2 = vld [vmem:[%s14315_s16 + $0xa80] sm:$0xff]  ;;  %v5311_v58 = vld [vmem:[%s14315_s16 + $0x2b0] sm:$0xff] }
0x1fdd   : > { %9382 = vmatprep.subr.bf16.mxu1 %v9381_v13  ;;  %9414 = vmatprep.subr.bf16.mxu0 %v9413_v56  ;;  %v5337_v13 = vld [vmem:[%s14315_s16 + $0x380] sm:$0xff]  ;;  %v9433_v56 = vpack.c.bf16 %v5338_v7, %v5306_v6  ;;  %v9465_v14 = vpack.c.bf16 %v5340_v9, %v5308_v8  ;;  %v5595_v6 = vld [vmem:[%s14315_s16 + $0xb90] sm:$0xff]  ;;  %v5626_v7 = vld [vmem:[%s14315_s16 + $0xc88] sm:$0xff] }
0x1fde   : > { %v5658_v8 = vld [vmem:[%s14315_s16 + $0xd88] sm:$0xff]  ;;  %v5628_v9 = vld [vmem:[%s14315_s16 + $0xc98] sm:$0xff] }
0x1fe0   : > { %9384 = vmatpush1.bf16.msra.mxu1 %v9383_v22  ;;  %9416 = vmatpush1.bf16.msra.mxu0 %v9415_v26  ;;  %v5404_v22 = vld [vmem:[%s14315_s16 + $0x598] sm:$0xff]  ;;  %v9435_v26 = vpack.c.bf16 %v5337_v13, %v5305_v12  ;;  %v9483_v12 = vpack.c.bf16 %v5595_v6, %v5563_v5  ;;  %v5625_v13 = vld [vmem:[%s14315_s16 + $0xc80] sm:$0xff]  ;;  %v5375_v6 = vld [vmem:[%s14315_s16 + $0x4b0] sm:$0xff] }
0x1fe1   : > { %9386 = vmatprep.subr.bf16.mxu1 %v9385_v18  ;;  %9418 = vmatprep.subr.bf16.mxu0 %v9417_v29  ;;  %v5401_v18 = vld [vmem:[%s14315_s16 + $0x580] sm:$0xff]  ;;  %v9437_v29 = vpack.c.bf16 %v5402_v20, %v5370_v19  ;;  %v9469_v30 = vpack.c.bf16 %v5404_v22, %v5372_v1  ;;  %v5659_v19 = vld [vmem:[%s14315_s16 + $0xd90] sm:$0xff]  ;;  %v5690_v20 = vld [vmem:[%s14315_s16 + $0xe88] sm:$0xff] }
0x1fe2   : > { %v5722_v1 = vld [vmem:[%s14315_s16 + $0xf88] sm:$0xff]  ;;  %v5692_v22 = vld [vmem:[%s14315_s16 + $0xe98] sm:$0xff] }
0x1fe4   : > { %9388 = vmatpush1.bf16.msra.mxu1 %v9387_v39  ;;  %9420 = vmatpush1.bf16.msra.mxu0 %v9419_v40  ;;  %v5468_v39 = vld [vmem:[%s14315_s16 + $0x798] sm:$0xff]  ;;  %v9439_v40 = vpack.c.bf16 %v5401_v18, %v5369_v21  ;;  %v9487_v21 = vpack.c.bf16 %v5659_v19, %v5627_v59  ;;  %v5689_v18 = vld [vmem:[%s14315_s16 + $0xe80] sm:$0xff]  ;;  %v5439_v19 = vld [vmem:[%s14315_s16 + $0x6b0] sm:$0xff] }
0x1fe5   : > { %9390 = vmatprep.subr.bf16.mxu1 %v9389_v32  ;;  %9422 = vmatprep.subr.bf16.mxu0 %v9421_v43  ;;  %v5465_v32 = vld [vmem:[%s14315_s16 + $0x780] sm:$0xff]  ;;  %v9441_v43 = vpack.c.bf16 %v5466_v35, %v5434_v34  ;;  %v9473_v44 = vpack.c.bf16 %v5468_v39, %v5436_v36  ;;  %v5723_v34 = vld [vmem:[%s14315_s16 + $0xf90] sm:$0xff]  ;;  %v5246_v35 = vld [vmem:[%s14315_s16 + $0xa8] sm:$0xff] }
0x1fe6   : > { %v5278_v36 = vld [vmem:[%s14315_s16 + $0x1a8] sm:$0xff]  ;;  %v5248_v39 = vld [vmem:[%s14315_s16 + $0xb8] sm:$0xff] }
0x1fe8   : > { %9392 = vmatpush1.bf16.msra.mxu1 %v9391_v49  ;;  %9424 = vmatpush1.bf16.msra.mxu0 %v9423_v50  ;;  %v5532_v49 = vld [vmem:[%s14315_s16 + $0x998] sm:$0xff]  ;;  %v9443_v50 = vpack.c.bf16 %v5465_v32, %v5433_v42  ;;  %v9491_v42 = vpack.c.bf16 %v5723_v34, %v5691_v33  ;;  %v5245_v32 = vld [vmem:[%s14315_s16 + $0xa0] sm:$0xff]  ;;  %v5503_v34 = vld [vmem:[%s14315_s16 + $0x8b0] sm:$0xff] }
0x1fe9   : > { %9394 = vmatprep.subr.bf16.mxu1 %v9393_v38  ;;  %9426 = vmatprep.subr.bf16.mxu0 %v9425_v54  ;;  %v5529_v38 = vld [vmem:[%s14315_s16 + $0x980] sm:$0xff]  ;;  %v9445_v54 = vpack.c.bf16 %v5530_v16, %v5498_v47  ;;  %v9477_v55 = vpack.c.bf16 %v5532_v49, %v5500_v48  ;;  %v5279_v47 = vld [vmem:[%s14315_s16 + $0x1b0] sm:$0xff]  ;;  %v5310_v16 = vld [vmem:[%s14315_s16 + $0x2a8] sm:$0xff] }
0x1fea   : > { %v5342_v48 = vld [vmem:[%s14315_s16 + $0x3a8] sm:$0xff]  ;;  %v5312_v49 = vld [vmem:[%s14315_s16 + $0x2b8] sm:$0xff] }
0x1fec   : > { %9396 = vmatpush1.bf16.msra.mxu1 %v9395_v63  ;;  %9428 = vmatpush1.bf16.msra.mxu0 %v9427_v0  ;;  %v5596_v63 = vld [vmem:[%s14315_s16 + $0xb98] sm:$0xff]  ;;  %v9447_v0 = vpack.c.bf16 %v5529_v38, %v5497_v53  ;;  %v9527_v53 = vpack.c.bf16 %v5279_v47, %v5247_v46  ;;  %v5309_v38 = vld [vmem:[%s14315_s16 + $0x2a0] sm:$0xff]  ;;  %v5567_v47 = vld [vmem:[%s14315_s16 + $0xab0] sm:$0xff] }
0x1fed   : > { %9430 = vmatprep.subr.bf16.mxu1 %v9429_v3  ;;  %9462 = vmatprep.subr.bf16.mxu0 %v9461_v4  ;;  %v5593_v3 = vld [vmem:[%s14315_s16 + $0xb80] sm:$0xff]  ;;  %v9449_v4 = vpack.c.bf16 %v5594_v62, %v5562_v61  ;;  %v9481_v51 = vpack.c.bf16 %v5596_v63, %v5564_v37  ;;  %v5343_v61 = vld [vmem:[%s14315_s16 + $0x3b0] sm:$0xff]  ;;  %v5374_v62 = vld [vmem:[%s14315_s16 + $0x4a8] sm:$0xff] }
0x1fee   : > { %v5406_v37 = vld [vmem:[%s14315_s16 + $0x5a8] sm:$0xff]  ;;  %v5376_v63 = vld [vmem:[%s14315_s16 + $0x4b8] sm:$0xff] }
0x1fef   : > { %6396 = vmatmul.mubr.f32.vlgmr.msra.gmra.mrb[58].mxu1 %v12836_v15  ;;  %6467 = vmatmul.mubr.f32.vlgmr.msra.gmra.mrb[50].mxu0 %v12836_v15 }
0x1ff0   : > { %9432 = vmatpush1.bf16.msra.mxu1 %v9431_v10  ;;  %9464 = vmatpush1.bf16.msra.mxu0 %v9463_v11  ;;  %v5660_v10 = vld [vmem:[%s14315_s16 + $0xd98] sm:$0xff]  ;;  %v9451_v11 = vpack.c.bf16 %v5593_v3, %v5561_v2  ;;  %v9531_v2 = vpack.c.bf16 %v5343_v61, %v5311_v58  ;;  %v5373_v3 = vld [vmem:[%s14315_s16 + $0x4a0] sm:$0xff]  ;;  %v5631_v61 = vld [vmem:[%s14315_s16 + $0xcb0] sm:$0xff] }
0x1ff1   : > { %9434 = vmatprep.subr.bf16.mxu1 %v9433_v56  ;;  %9466 = vmatprep.subr.bf16.mxu0 %v9465_v14  ;;  %v5657_v56 = vld [vmem:[%s14315_s16 + $0xd80] sm:$0xff]  ;;  %v9453_v14 = vpack.c.bf16 %v5658_v8, %v5626_v7  ;;  %v9485_v17 = vpack.c.bf16 %v5660_v10, %v5628_v9  ;;  %v5407_v7 = vld [vmem:[%s14315_s16 + $0x5b0] sm:$0xff]  ;;  %v5438_v8 = vld [vmem:[%s14315_s16 + $0x6a8] sm:$0xff] }
0x1ff2   : > { %6537 = vmatprep.mubr.f32.mxu1 %v9790_v25  ;;  %6608 = vmatprep.mubr.f32.mxu0 %v9790_v25  ;;  %v5470_v9 = vld [vmem:[%s14315_s16 + $0x7a8] sm:$0xff]  ;;  %v5440_v10 = vld [vmem:[%s14315_s16 + $0x6b8] sm:$0xff] }
0x1ff4   : > { %9436 = vmatpush1.bf16.msra.mxu1 %v9435_v26  ;;  %9468 = vmatpush1.bf16.msra.mxu0 %v9467_v28  ;;  %v5724_v26 = vld [vmem:[%s14315_s16 + $0xf98] sm:$0xff]  ;;  %v9455_v28 = vpack.c.bf16 %v5657_v56, %v5625_v13  ;;  %v9535_v13 = vpack.c.bf16 %v5407_v7, %v5375_v6  ;;  %v5437_v56 = vld [vmem:[%s14315_s16 + $0x6a0] sm:$0xff]  ;;  %v5695_v7 = vld [vmem:[%s14315_s16 + $0xeb0] sm:$0xff] }
0x1ff5   : > { %9438 = vmatprep.subr.bf16.mxu1 %v9437_v29  ;;  %9470 = vmatprep.subr.bf16.mxu0 %v9469_v30  ;;  %v5721_v29 = vld [vmem:[%s14315_s16 + $0xf80] sm:$0xff]  ;;  %v9457_v30 = vpack.c.bf16 %v5722_v1, %v5690_v20  ;;  %v9489_v31 = vpack.c.bf16 %v5724_v26, %v5692_v22  ;;  %v5471_v20 = vld [vmem:[%s14315_s16 + $0x7b0] sm:$0xff]  ;;  %v5502_v1 = vld [vmem:[%s14315_s16 + $0x8a8] sm:$0xff] }
0x1ff6   : > { %v5534_v22 = vld [vmem:[%s14315_s16 + $0x9a8] sm:$0xff]  ;;  %v5504_v26 = vld [vmem:[%s14315_s16 + $0x8b8] sm:$0xff] }
0x1ff8   : > { %9440 = vmatpush1.bf16.msra.mxu1 %v9439_v40  ;;  %9472 = vmatpush1.bf16.msra.mxu0 %v9471_v41  ;;  %v5280_v40 = vld [vmem:[%s14315_s16 + $0x1b8] sm:$0xff]  ;;  %v9459_v41 = vpack.c.bf16 %v5721_v29, %v5689_v18  ;;  %v9539_v18 = vpack.c.bf16 %v5471_v20, %v5439_v19  ;;  %v5501_v29 = vld [vmem:[%s14315_s16 + $0x8a0] sm:$0xff]  ;;  %v5251_v20 = vld [vmem:[%s14315_s16 + $0xd0] sm:$0xff] }
0x1ff9   : > { %9442 = vmatprep.subr.bf16.mxu1 %v9441_v43  ;;  %9474 = vmatprep.subr.bf16.mxu0 %v9473_v44  ;;  %v5277_v43 = vld [vmem:[%s14315_s16 + $0x1a0] sm:$0xff]  ;;  %v9493_v44 = vpack.c.bf16 %v5278_v36, %v5246_v35  ;;  %v9525_v45 = vpack.c.bf16 %v5280_v40, %v5248_v39  ;;  %v5535_v35 = vld [vmem:[%s14315_s16 + $0x9b0] sm:$0xff]  ;;  %v5566_v36 = vld [vmem:[%s14315_s16 + $0xaa8] sm:$0xff] }
0x1ffa   : > { %v5598_v39 = vld [vmem:[%s14315_s16 + $0xba8] sm:$0xff]  ;;  %v5568_v40 = vld [vmem:[%s14315_s16 + $0xab8] sm:$0xff] }
0x1ffc   : > { %9444 = vmatpush1.bf16.msra.mxu1 %v9443_v50  ;;  %9476 = vmatpush1.bf16.msra.mxu0 %v9475_v52  ;;  %v5344_v50 = vld [vmem:[%s14315_s16 + $0x3b8] sm:$0xff]  ;;  %v9495_v52 = vpack.c.bf16 %v5277_v43, %v5245_v32  ;;  %v9543_v32 = vpack.c.bf16 %v5535_v35, %v5503_v34  ;;  %v5565_v43 = vld [vmem:[%s14315_s16 + $0xaa0] sm:$0xff]  ;;  %v5315_v35 = vld [vmem:[%s14315_s16 + $0x2d0] sm:$0xff] }
0x1ffd   : > { %9446 = vmatprep.subr.bf16.mxu1 %v9445_v54  ;;  %9478 = vmatprep.subr.bf16.mxu0 %v9477_v55  ;;  %v5341_v54 = vld [vmem:[%s14315_s16 + $0x3a0] sm:$0xff]  ;;  %v9497_v55 = vpack.c.bf16 %v5342_v48, %v5310_v16  ;;  %v9529_v57 = vpack.c.bf16 %v5344_v50, %v5312_v49  ;;  %v5599_v16 = vld [vmem:[%s14315_s16 + $0xbb0] sm:$0xff]  ;;  %v5630_v48 = vld [vmem:[%s14315_s16 + $0xca8] sm:$0xff] }
0x1ffe   : > { %v5662_v49 = vld [vmem:[%s14315_s16 + $0xda8] sm:$0xff]  ;;  %v5632_v50 = vld [vmem:[%s14315_s16 + $0xcb8] sm:$0xff] }
0x2000   : > { %9448 = vmatpush1.bf16.msra.mxu1 %v9447_v0  ;;  %9480 = vmatpush1.bf16.msra.mxu0 %v9479_v60  ;;  %v5408_v0 = vld [vmem:[%s14315_s16 + $0x5b8] sm:$0xff]  ;;  %v9499_v60 = vpack.c.bf16 %v5341_v54, %v5309_v38  ;;  %v9547_v38 = vpack.c.bf16 %v5599_v16, %v5567_v47  ;;  %v5629_v54 = vld [vmem:[%s14315_s16 + $0xca0] sm:$0xff]  ;;  %v5379_v16 = vld [vmem:[%s14315_s16 + $0x4d0] sm:$0xff] }
0x2001   : > { %9450 = vmatprep.subr.bf16.mxu1 %v9449_v4  ;;  %9482 = vmatprep.subr.bf16.mxu0 %v9481_v51  ;;  %v5405_v4 = vld [vmem:[%s14315_s16 + $0x5a0] sm:$0xff]  ;;  %v9501_v51 = vpack.c.bf16 %v5406_v37, %v5374_v62  ;;  %v9533_v5 = vpack.c.bf16 %v5408_v0, %v5376_v63  ;;  %v5663_v62 = vld [vmem:[%s14315_s16 + $0xdb0] sm:$0xff]  ;;  %v5694_v37 = vld [vmem:[%s14315_s16 + $0xea8] sm:$0xff] }
0x2002   : > { %v5726_v63 = vld [vmem:[%s14315_s16 + $0xfa8] sm:$0xff]  ;;  %v5696_v0 = vld [vmem:[%s14315_s16 + $0xeb8] sm:$0xff] }
0x2004   : > { %9452 = vmatpush1.bf16.msra.mxu1 %v9451_v11  ;;  %9484 = vmatpush1.bf16.msra.mxu0 %v9483_v12  ;;  %v5472_v11 = vld [vmem:[%s14315_s16 + $0x7b8] sm:$0xff]  ;;  %v9503_v12 = vpack.c.bf16 %v5405_v4, %v5373_v3  ;;  %v9551_v3 = vpack.c.bf16 %v5663_v62, %v5631_v61  ;;  %v5693_v4 = vld [vmem:[%s14315_s16 + $0xea0] sm:$0xff]  ;;  %v5443_v62 = vld [vmem:[%s14315_s16 + $0x6d0] sm:$0xff] }
0x2005   : > { %9454 = vmatprep.subr.bf16.mxu1 %v9453_v14  ;;  %9486 = vmatprep.subr.bf16.mxu0 %v9485_v17  ;;  %v5469_v14 = vld [vmem:[%s14315_s16 + $0x7a0] sm:$0xff]  ;;  %v9505_v17 = vpack.c.bf16 %v5470_v9, %v5438_v8  ;;  %v9537_v59 = vpack.c.bf16 %v5472_v11, %v5440_v10  ;;  %v5727_v8 = vld [vmem:[%s14315_s16 + $0xfb0] sm:$0xff]  ;;  %v5250_v9 = vld [vmem:[%s14315_s16 + $0xc8] sm:$0xff] }
0x2006   : > { %v5282_v10 = vld [vmem:[%s14315_s16 + $0x1c8] sm:$0xff]  ;;  %v5252_v11 = vld [vmem:[%s14315_s16 + $0xd8] sm:$0xff] }
0x2008   : > { %9456 = vmatpush1.bf16.msra.mxu1 %v9455_v28  ;;  %9488 = vmatpush1.bf16.msra.mxu0 %v9487_v21  ;;  %v5536_v28 = vld [vmem:[%s14315_s16 + $0x9b8] sm:$0xff]  ;;  %v9507_v21 = vpack.c.bf16 %v5469_v14, %v5437_v56  ;;  %v9555_v56 = vpack.c.bf16 %v5727_v8, %v5695_v7  ;;  %v5249_v14 = vld [vmem:[%s14315_s16 + $0xc0] sm:$0xff]  ;;  %v5507_v8 = vld [vmem:[%s14315_s16 + $0x8d0] sm:$0xff] }
0x2009   : > { %9458 = vmatprep.subr.bf16.mxu1 %v9457_v30  ;;  %9490 = vmatprep.subr.bf16.mxu0 %v9489_v31  ;;  %v5533_v30 = vld [vmem:[%s14315_s16 + $0x9a0] sm:$0xff]  ;;  %v9509_v31 = vpack.c.bf16 %v5534_v22, %v5502_v1  ;;  %v9541_v33 = vpack.c.bf16 %v5536_v28, %v5504_v26  ;;  %v5283_v1 = vld [vmem:[%s14315_s16 + $0x1d0] sm:$0xff]  ;;  %v5314_v22 = vld [vmem:[%s14315_s16 + $0x2c8] sm:$0xff] }
0x200a   : > { %v5346_v26 = vld [vmem:[%s14315_s16 + $0x3c8] sm:$0xff]  ;;  %v5316_v28 = vld [vmem:[%s14315_s16 + $0x2d8] sm:$0xff] }
0x200c   : > { %9460 = vmatpush1.bf16.msra.mxu1 %v9459_v41  ;;  %9492 = vmatpush1.bf16.msra.mxu0 %v9491_v42  ;;  %v5600_v41 = vld [vmem:[%s14315_s16 + $0xbb8] sm:$0xff]  ;;  %v9511_v42 = vpack.c.bf16 %v5533_v30, %v5501_v29  ;;  %v9591_v29 = vpack.c.bf16 %v5283_v1, %v5251_v20  ;;  %v5313_v30 = vld [vmem:[%s14315_s16 + $0x2c0] sm:$0xff]  ;;  %v5571_v1 = vld [vmem:[%s14315_s16 + $0xad0] sm:$0xff] }
0x200d   : > { %9494 = vmatprep.subr.bf16.mxu1 %v9493_v44  ;;  %9526 = vmatprep.subr.bf16.mxu0 %v9525_v45  ;;  %v5597_v44 = vld [vmem:[%s14315_s16 + $0xba0] sm:$0xff]  ;;  %v9513_v45 = vpack.c.bf16 %v5598_v39, %v5566_v36  ;;  %v9545_v46 = vpack.c.bf16 %v5600_v41, %v5568_v40  ;;  %v5347_v36 = vld [vmem:[%s14315_s16 + $0x3d0] sm:$0xff]  ;;  %v5378_v39 = vld [vmem:[%s14315_s16 + $0x4c8] sm:$0xff] }
0x200e   : > { %v5410_v40 = vld [vmem:[%s14315_s16 + $0x5c8] sm:$0xff]  ;;  %v5380_v41 = vld [vmem:[%s14315_s16 + $0x4d8] sm:$0xff] }
0x200f   : > { %6538 = vmatmul.mubr.f32.vlgmr.msra.gmra.mrb[60].mxu1 %v12836_v15  ;;  %6609 = vmatmul.mubr.f32.vlgmr.msra.gmra.mrb[52].mxu0 %v12836_v15 }
0x2010   : > { %9496 = vmatpush1.bf16.msra.mxu1 %v9495_v52  ;;  %9528 = vmatpush1.bf16.msra.mxu0 %v9527_v53  ;;  %v5664_v52 = vld [vmem:[%s14315_s16 + $0xdb8] sm:$0xff]  ;;  %v9515_v53 = vpack.c.bf16 %v5597_v44, %v5565_v43  ;;  %v9595_v43 = vpack.c.bf16 %v5347_v36, %v5315_v35  ;;  %v5377_v44 = vld [vmem:[%s14315_s16 + $0x4c0] sm:$0xff]  ;;  %v5635_v36 = vld [vmem:[%s14315_s16 + $0xcd0] sm:$0xff] }
0x2011   : > { %9498 = vmatprep.subr.bf16.mxu1 %v9497_v55  ;;  %9530 = vmatprep.subr.bf16.mxu0 %v9529_v57  ;;  %v5661_v55 = vld [vmem:[%s14315_s16 + $0xda0] sm:$0xff]  ;;  %v9517_v57 = vpack.c.bf16 %v5662_v49, %v5630_v48  ;;  %v9549_v58 = vpack.c.bf16 %v5664_v52, %v5632_v50  ;;  %v5411_v48 = vld [vmem:[%s14315_s16 + $0x5d0] sm:$0xff]  ;;  %v5442_v49 = vld [vmem:[%s14315_s16 + $0x6c8] sm:$0xff] }
0x2012   : > { %6679 = vmatprep.mubr.f32.mxu1 %v9790_v25  ;;  %6750 = vmatprep.mubr.f32.mxu0 %v9790_v25  ;;  %v5474_v50 = vld [vmem:[%s14315_s16 + $0x7c8] sm:$0xff]  ;;  %v5444_v52 = vld [vmem:[%s14315_s16 + $0x6d8] sm:$0xff] }
0x2014   : > { %9500 = vmatpush1.bf16.msra.mxu1 %v9499_v60  ;;  %9532 = vmatpush1.bf16.msra.mxu0 %v9531_v2  ;;  %v5728_v60 = vld [vmem:[%s14315_s16 + $0xfb8] sm:$0xff]  ;;  %v9519_v2 = vpack.c.bf16 %v5661_v55, %v5629_v54  ;;  %v9599_v54 = vpack.c.bf16 %v5411_v48, %v5379_v16  ;;  %v5441_v55 = vld [vmem:[%s14315_s16 + $0x6c0] sm:$0xff]  ;;  %v5699_v48 = vld [vmem:[%s14315_s16 + $0xed0] sm:$0xff] }
0x2015   : > { %9502 = vmatprep.subr.bf16.mxu1 %v9501_v51  ;;  %9534 = vmatprep.subr.bf16.mxu0 %v9533_v5  ;;  %v5725_v51 = vld [vmem:[%s14315_s16 + $0xfa0] sm:$0xff]  ;;  %v9521_v5 = vpack.c.bf16 %v5726_v63, %v5694_v37  ;;  %v9553_v6 = vpack.c.bf16 %v5728_v60, %v5696_v0  ;;  %v5475_v37 = vld [vmem:[%s14315_s16 + $0x7d0] sm:$0xff]  ;;  %v5506_v63 = vld [vmem:[%s14315_s16 + $0x8c8] sm:$0xff] }
0x2016   : > { %v5538_v0 = vld [vmem:[%s14315_s16 + $0x9c8] sm:$0xff]  ;;  %v5508_v60 = vld [vmem:[%s14315_s16 + $0x8d8] sm:$0xff] }
0x2018   : > { %9504 = vmatpush1.bf16.msra.mxu1 %v9503_v12  ;;  %9536 = vmatpush1.bf16.msra.mxu0 %v9535_v13  ;;  %v5284_v12 = vld [vmem:[%s14315_s16 + $0x1d8] sm:$0xff]  ;;  %v9523_v13 = vpack.c.bf16 %v5725_v51, %v5693_v4  ;;  %v9603_v4 = vpack.c.bf16 %v5475_v37, %v5443_v62  ;;  %v5505_v51 = vld [vmem:[%s14315_s16 + $0x8c0] sm:$0xff]  ;;  %v5255_v37 = vld [vmem:[%s14315_s16 + $0xf0] sm:$0xff] }
0x2019   : > { %9506 = vmatprep.subr.bf16.mxu1 %v9505_v17  ;;  %9538 = vmatprep.subr.bf16.mxu0 %v9537_v59  ;;  %v5281_v17 = vld [vmem:[%s14315_s16 + $0x1c0] sm:$0xff]  ;;  %v9557_v59 = vpack.c.bf16 %v5282_v10, %v5250_v9  ;;  %v9589_v19 = vpack.c.bf16 %v5284_v12, %v5252_v11  ;;  %v5539_v9 = vld [vmem:[%s14315_s16 + $0x9d0] sm:$0xff]  ;;  %v5570_v10 = vld [vmem:[%s14315_s16 + $0xac8] sm:$0xff] }
0x201a   : > { %v5602_v11 = vld [vmem:[%s14315_s16 + $0xbc8] sm:$0xff]  ;;  %v5572_v12 = vld [vmem:[%s14315_s16 + $0xad8] sm:$0xff] }
0x201c   : > { %9508 = vmatpush1.bf16.msra.mxu1 %v9507_v21  ;;  %9540 = vmatpush1.bf16.msra.mxu0 %v9539_v18  ;;  %v5348_v21 = vld [vmem:[%s14315_s16 + $0x3d8] sm:$0xff]  ;;  %v9559_v18 = vpack.c.bf16 %v5281_v17, %v5249_v14  ;;  %v9607_v14 = vpack.c.bf16 %v5539_v9, %v5507_v8  ;;  %v5569_v17 = vld [vmem:[%s14315_s16 + $0xac0] sm:$0xff]  ;;  %v5319_v9 = vld [vmem:[%s14315_s16 + $0x2f0] sm:$0xff] }
0x201d   : > { %9510 = vmatprep.subr.bf16.mxu1 %v9509_v31  ;;  %9542 = vmatprep.subr.bf16.mxu0 %v9541_v33  ;;  %v5345_v31 = vld [vmem:[%s14315_s16 + $0x3c0] sm:$0xff]  ;;  %v9561_v33 = vpack.c.bf16 %v5346_v26, %v5314_v22  ;;  %v9593_v34 = vpack.c.bf16 %v5348_v21, %v5316_v28  ;;  %v5603_v22 = vld [vmem:[%s14315_s16 + $0xbd0] sm:$0xff]  ;;  %v5634_v26 = vld [vmem:[%s14315_s16 + $0xcc8] sm:$0xff] }
0x201e   : > { %v5666_v28 = vld [vmem:[%s14315_s16 + $0xdc8] sm:$0xff]  ;;  %v5636_v21 = vld [vmem:[%s14315_s16 + $0xcd8] sm:$0xff] }
0x2020   : > { %9512 = vmatpush1.bf16.msra.mxu1 %v9511_v42  ;;  %9544 = vmatpush1.bf16.msra.mxu0 %v9543_v32  ;;  %v5412_v42 = vld [vmem:[%s14315_s16 + $0x5d8] sm:$0xff]  ;;  %v9563_v32 = vpack.c.bf16 %v5345_v31, %v5313_v30  ;;  %v9611_v30 = vpack.c.bf16 %v5603_v22, %v5571_v1  ;;  %v5633_v31 = vld [vmem:[%s14315_s16 + $0xcc0] sm:$0xff]  ;;  %v5383_v22 = vld [vmem:[%s14315_s16 + $0x4f0] sm:$0xff] }
0x2021   : > { %9514 = vmatprep.subr.bf16.mxu1 %v9513_v45  ;;  %9546 = vmatprep.subr.bf16.mxu0 %v9545_v46  ;;  %v5409_v45 = vld [vmem:[%s14315_s16 + $0x5c0] sm:$0xff]  ;;  %v9565_v46 = vpack.c.bf16 %v5410_v40, %v5378_v39  ;;  %v9597_v47 = vpack.c.bf16 %v5412_v42, %v5380_v41  ;;  %v5667_v39 = vld [vmem:[%s14315_s16 + $0xdd0] sm:$0xff]  ;;  %v5698_v40 = vld [vmem:[%s14315_s16 + $0xec8] sm:$0xff] }
0x2022   : > { %v5730_v41 = vld [vmem:[%s14315_s16 + $0xfc8] sm:$0xff]  ;;  %v5700_v42 = vld [vmem:[%s14315_s16 + $0xed8] sm:$0xff] }
0x2024   : > { %9516 = vmatpush1.bf16.msra.mxu1 %v9515_v53  ;;  %9548 = vmatpush1.bf16.msra.mxu0 %v9547_v38  ;;  %v5476_v53 = vld [vmem:[%s14315_s16 + $0x7d8] sm:$0xff]  ;;  %v9567_v38 = vpack.c.bf16 %v5409_v45, %v5377_v44  ;;  %v9615_v44 = vpack.c.bf16 %v5667_v39, %v5635_v36  ;;  %v5697_v45 = vld [vmem:[%s14315_s16 + $0xec0] sm:$0xff]  ;;  %v5479_v39 = vld [vmem:[%s14315_s16 + $0x7f0] sm:$0xff] }
0x2025   : > { %9518 = vmatprep.subr.bf16.mxu1 %v9517_v57  ;;  %9550 = vmatprep.subr.bf16.mxu0 %v9549_v58  ;;  %v5473_v57 = vld [vmem:[%s14315_s16 + $0x7c0] sm:$0xff]  ;;  %v9569_v58 = vpack.c.bf16 %v5474_v50, %v5442_v49  ;;  %v9601_v61 = vpack.c.bf16 %v5476_v53, %v5444_v52  ;;  %v5731_v49 = vld [vmem:[%s14315_s16 + $0xfd0] sm:$0xff]  ;;  %v5254_v50 = vld [vmem:[%s14315_s16 + $0xe8] sm:$0xff] }
0x2026   : > { %v5286_v52 = vld [vmem:[%s14315_s16 + $0x1e8] sm:$0xff]  ;;  %v5256_v53 = vld [vmem:[%s14315_s16 + $0xf8] sm:$0xff] }
0x2028   : > { %9520 = vmatpush1.bf16.msra.mxu1 %v9519_v2  ;;  %9552 = vmatpush1.bf16.msra.mxu0 %v9551_v3  ;;  %v5540_v2 = vld [vmem:[%s14315_s16 + $0x9d8] sm:$0xff]  ;;  %v9571_v3 = vpack.c.bf16 %v5473_v57, %v5441_v55  ;;  %v9619_v55 = vpack.c.bf16 %v5731_v49, %v5699_v48  ;;  %v5253_v57 = vld [vmem:[%s14315_s16 + $0xe0] sm:$0xff]  ;;  %v5511_v48 = vld [vmem:[%s14315_s16 + $0x8f0] sm:$0xff] }
0x2029   : > { %9522 = vmatprep.subr.bf16.mxu1 %v9521_v5  ;;  %9554 = vmatprep.subr.bf16.mxu0 %v9553_v6  ;;  %v5537_v5 = vld [vmem:[%s14315_s16 + $0x9c0] sm:$0xff]  ;;  %v9573_v6 = vpack.c.bf16 %v5538_v0, %v5506_v63  ;;  %v9605_v7 = vpack.c.bf16 %v5540_v2, %v5508_v60  ;;  %v5287_v63 = vld [vmem:[%s14315_s16 + $0x1f0] sm:$0xff]  ;;  %v5318_v0 = vld [vmem:[%s14315_s16 + $0x2e8] sm:$0xff] }
0x202a   : > { %v5350_v60 = vld [vmem:[%s14315_s16 + $0x3e8] sm:$0xff]  ;;  %v5320_v2 = vld [vmem:[%s14315_s16 + $0x2f8] sm:$0xff]  ;;  %v5543_v49 = vld [vmem:[%s14315_s16 + $0x9f0] sm:$0xff] }
0x202c   : > { %9524 = vmatpush1.bf16.msra.mxu1 %v9523_v13  ;;  %9556 = vmatpush1.bf16.msra.mxu0 %v9555_v56  ;;  %v5604_v13 = vld [vmem:[%s14315_s16 + $0xbd8] sm:$0xff]  ;;  %v9575_v56 = vpack.c.bf16 %v5537_v5, %v5505_v51  ;;  %v9655_v51 = vpack.c.bf16 %v5287_v63, %v5255_v37  ;;  %v5317_v5 = vld [vmem:[%s14315_s16 + $0x2e0] sm:$0xff] }
0x202d   : > { %9558 = vmatprep.subr.bf16.mxu1 %v9557_v59  ;;  %9590 = vmatprep.subr.bf16.mxu0 %v9589_v19  ;;  %v5601_v59 = vld [vmem:[%s14315_s16 + $0xbc0] sm:$0xff]  ;;  %v9577_v19 = vpack.c.bf16 %v5602_v11, %v5570_v10  ;;  %v9609_v20 = vpack.c.bf16 %v5604_v13, %v5572_v12  ;;  %v5351_v10 = vld [vmem:[%s14315_s16 + $0x3f0] sm:$0xff]  ;;  %v5382_v11 = vld [vmem:[%s14315_s16 + $0x4e8] sm:$0xff] }
0x202e   : > { %v5414_v12 = vld [vmem:[%s14315_s16 + $0x5e8] sm:$0xff]  ;;  %v5384_v13 = vld [vmem:[%s14315_s16 + $0x4f8] sm:$0xff]  ;;  %v5605_v37 = vld [vmem:[%s14315_s16 + $0xbe0] sm:$0xff] }
0x202f   : > { %6680 = vmatmul.mubr.f32.vlgmr.msra.gmra.mrb[62].mxu1 %v12836_v15  ;;  %6751 = vmatmul.mubr.f32.vlgmr.msra.gmra.mrb[54].mxu0 %v12836_v15 }
0x2030   : > { %9560 = vmatpush1.bf16.msra.mxu1 %v9559_v18  ;;  %9592 = vmatpush1.bf16.msra.mxu0 %v9591_v29  ;;  %v5668_v18 = vld [vmem:[%s14315_s16 + $0xdd8] sm:$0xff]  ;;  %v9579_v29 = vpack.c.bf16 %v5601_v59, %v5569_v17  ;;  %v9659_v17 = vpack.c.bf16 %v5351_v10, %v5319_v9  ;;  %v5381_v59 = vld [vmem:[%s14315_s16 + $0x4e0] sm:$0xff] }
0x2031   : > { %9562 = vmatprep.subr.bf16.mxu1 %v9561_v33  ;;  %9594 = vmatprep.subr.bf16.mxu0 %v9593_v34  ;;  %v5665_v33 = vld [vmem:[%s14315_s16 + $0xdc0] sm:$0xff]  ;;  %v9581_v34 = vpack.c.bf16 %v5666_v28, %v5634_v26  ;;  %v9613_v35 = vpack.c.bf16 %v5668_v18, %v5636_v21  ;;  %v5415_v26 = vld [vmem:[%s14315_s16 + $0x5f0] sm:$0xff]  ;;  %v5446_v28 = vld [vmem:[%s14315_s16 + $0x6e8] sm:$0xff] }
0x2032   : > { %6821 = vmatprep.mubr.f32.mxu1 %v9790_v25  ;;  %6892 = vmatprep.mubr.f32.mxu0 %v9790_v25  ;;  %v5478_v21 = vld [vmem:[%s14315_s16 + $0x7e8] sm:$0xff]  ;;  %v5448_v18 = vld [vmem:[%s14315_s16 + $0x6f8] sm:$0xff] }
0x2034   : > { %9564 = vmatpush1.bf16.msra.mxu1 %v9563_v32  ;;  %9596 = vmatpush1.bf16.msra.mxu0 %v9595_v43  ;;  %v5732_v32 = vld [vmem:[%s14315_s16 + $0xfd8] sm:$0xff]  ;;  %v9583_v43 = vpack.c.bf16 %v5665_v33, %v5633_v31  ;;  %v9663_v31 = vpack.c.bf16 %v5415_v26, %v5383_v22  ;;  %v5445_v33 = vld [vmem:[%s14315_s16 + $0x6e0] sm:$0xff]  ;;  %v5734_v22 = vld [vmem:[%s14315_s16 + $0xfe8] sm:$0xff] }
0x2035   : > { %9566 = vmatprep.subr.bf16.mxu1 %v9565_v46  ;;  %9598 = vmatprep.subr.bf16.mxu0 %v9597_v47  ;;  %v5729_v46 = vld [vmem:[%s14315_s16 + $0xfc0] sm:$0xff]  ;;  %v9585_v47 = vpack.c.bf16 %v5730_v41, %v5698_v40  ;;  %v9617_v16 = vpack.c.bf16 %v5732_v32, %v5700_v42  ;;  %v5510_v40 = vld [vmem:[%s14315_s16 + $0x8e8] sm:$0xff]  ;;  %v5512_v42 = vld [vmem:[%s14315_s16 + $0x8f8] sm:$0xff] }
0x2036   : > { %v5542_v41 = vld [vmem:[%s14315_s16 + $0x9e8] sm:$0xff]  ;;  %v5544_v32 = vld [vmem:[%s14315_s16 + $0x9f8] sm:$0xff] }
0x2037   : > { %v5704_v26 = vld [vmem:[%s14315_s16 + $0xef8] sm:$0xff] }
0x2038   : > { %9568 = vmatpush1.bf16.msra.mxu1 %v9567_v38  ;;  %9600 = vmatpush1.bf16.msra.mxu0 %v9599_v54  ;;  %v5288_v38 = vld [vmem:[%s14315_s16 + $0x1f8] sm:$0xff]  ;;  %v9587_v54 = vpack.c.bf16 %v5729_v46, %v5697_v45  ;;  %v5509_v45 = vld [vmem:[%s14315_s16 + $0x8e0] sm:$0xff] }
0x2039   : > { %9570 = vmatprep.subr.bf16.mxu1 %v9569_v58  ;;  %9602 = vmatprep.subr.bf16.mxu0 %v9601_v61  ;;  %v5285_v58 = vld [vmem:[%s14315_s16 + $0x1e0] sm:$0xff]  ;;  %v9621_v61 = vpack.c.bf16 %v5286_v52, %v5254_v50  ;;  %v9653_v62 = vpack.c.bf16 %v5288_v38, %v5256_v53  ;;  %v5574_v50 = vld [vmem:[%s14315_s16 + $0xae8] sm:$0xff]  ;;  %v5576_v53 = vld [vmem:[%s14315_s16 + $0xaf8] sm:$0xff] }
0x203a   : > { %v5541_v46 = vld [vmem:[%s14315_s16 + $0x9e0] sm:$0xff]  ;;  %v5606_v52 = vld [vmem:[%s14315_s16 + $0xbe8] sm:$0xff]  ;;  %v5608_v38 = vld [vmem:[%s14315_s16 + $0xbf8] sm:$0xff] }
0x203b   : > { %v9641_v63 = vpack.c.bf16 %v5606_v52, %v5574_v50 }
0x203c   : > { %9572 = vmatpush1.bf16.msra.mxu1 %v9571_v3  ;;  %9604 = vmatpush1.bf16.msra.mxu0 %v9603_v4  ;;  %v5352_v3 = vld [vmem:[%s14315_s16 + $0x3f8] sm:$0xff]  ;;  %v9623_v4 = vpack.c.bf16 %v5285_v58, %v5253_v57  ;;  %v9671_v57 = vpack.c.bf16 %v5543_v49, %v5511_v48  ;;  %v14114_v58 = vld [vmem:[%s14316_s17] sm:$0xff] }
0x203d   : > { %9574 = vmatprep.subr.bf16.mxu1 %v9573_v6  ;;  %9606 = vmatprep.subr.bf16.mxu0 %v9605_v7  ;;  %v5349_v6 = vld [vmem:[%s14315_s16 + $0x3e0] sm:$0xff]  ;;  %v9625_v7 = vpack.c.bf16 %v5350_v60, %v5318_v0  ;;  %v9657_v8 = vpack.c.bf16 %v5352_v3, %v5320_v2  ;;  %v9673_v0 = vpack.c.bf16 %v5608_v38, %v5576_v53  ;;  %v5575_v60 = vld [vmem:[%s14315_s16 + $0xaf0] sm:$0xff]  ;;  %v5638_v3 = vld [vmem:[%s14315_s16 + $0xce8] sm:$0xff] }
0x203e   : > { %v5607_v2 = vld [vmem:[%s14315_s16 + $0xbf0] sm:$0xff] }
0x2040   : > { %9576 = vmatpush1.bf16.msra.mxu1 %v9575_v56  ;;  %9608 = vmatpush1.bf16.msra.mxu0 %v9607_v14  ;;  %v5416_v56 = vld [vmem:[%s14315_s16 + $0x5f8] sm:$0xff]  ;;  %v9627_v14 = vpack.c.bf16 %v5349_v6, %v5317_v5  ;;  %v5748_v6 = vrot.slane %v14114_v58, %v12038_v24 }
0x2041   : > { %9578 = vmatprep.subr.bf16.mxu1 %v9577_v19  ;;  %9610 = vmatprep.subr.bf16.mxu0 %v9609_v20  ;;  %v5413_v19 = vld [vmem:[%s14315_s16 + $0x5e0] sm:$0xff]  ;;  %v9629_v20 = vpack.c.bf16 %v5414_v12, %v5382_v11  ;;  %v9661_v1 = vpack.c.bf16 %v5416_v56, %v5384_v13  ;;  %v5672_v5 = vld [vmem:[%s14315_s16 + $0xdf8] sm:$0xff]  ;;  %v9675_v11 = vpack.c.bf16 %v5607_v2, %v5575_v60 }
0x2042   : > { %v5637_v12 = vld [vmem:[%s14315_s16 + $0xce0] sm:$0xff] }
0x2043   : > { %v5669_v13 = vld [vmem:[%s14315_s16 + $0xde0] sm:$0xff] }
0x2044   : > { %9580 = vmatpush1.bf16.msra.mxu1 %v9579_v29  ;;  %9612 = vmatpush1.bf16.msra.mxu0 %v9611_v30  ;;  %v5480_v29 = vld [vmem:[%s14315_s16 + $0x7f8] sm:$0xff]  ;;  %v9631_v30 = vpack.c.bf16 %v5413_v19, %v5381_v59  ;;  %v5671_v59 = vld [vmem:[%s14315_s16 + $0xdf0] sm:$0xff]  ;;  %v5702_v19 = vld [vmem:[%s14315_s16 + $0xee8] sm:$0xff] }
0x2045   : > { %9582 = vmatprep.subr.bf16.mxu1 %v9581_v34  ;;  %9614 = vmatprep.subr.bf16.mxu0 %v9613_v35  ;;  %v5477_v34 = vld [vmem:[%s14315_s16 + $0x7e0] sm:$0xff]  ;;  %v9633_v35 = vpack.c.bf16 %v5478_v21, %v5446_v28  ;;  %v9665_v36 = vpack.c.bf16 %v5480_v29, %v5448_v18  ;;  %v5736_v28 = vld [vmem:[%s14315_s16 + $0xff8] sm:$0xff] }
0x2048   : > { %9584 = vmatpush1.bf16.msra.mxu1 %v9583_v43  ;;  %9616 = vmatpush1.bf16.msra.mxu0 %v9615_v44  ;;  %v9635_v43 = vpack.c.bf16 %v5477_v34, %v5445_v33 }
0x2049   : > { %9586 = vmatprep.subr.bf16.mxu1 %v9585_v47  ;;  %9618 = vmatprep.subr.bf16.mxu0 %v9617_v16  ;;  %v9637_v47 = vpack.c.bf16 %v5542_v41, %v5510_v40  ;;  %v9669_v16 = vpack.c.bf16 %v5544_v32, %v5512_v42  ;;  %v5733_v40 = vld [vmem:[%s14315_s16 + $0xfe0] sm:$0xff]  ;;  %v5703_v41 = vld [vmem:[%s14315_s16 + $0xef0] sm:$0xff] }
0x204a   : > { %v5735_v42 = vld [vmem:[%s14315_s16 + $0xff0] sm:$0xff] }
0x204c   : > { %9588 = vmatpush1.bf16.msra.mxu1 %v9587_v54  ;;  %9620 = vmatpush1.bf16.msra.mxu0 %v9619_v55  ;;  %v14109_v54 = vsub.s32 2, %v12035_v23  ;;  %v9639_v55 = vpack.c.bf16 %v5541_v46, %v5509_v45  ;;  %v14204_v45 = vsub.s32 6, %v12035_v23  ;;  %v14207_v46 = vsub.s32 5, %v12035_v23 }
0x204d   : > { %9622 = vmatprep.subr.bf16.mxu1 %v9621_v61  ;;  %9654 = vmatprep.subr.bf16.mxu0 %v9653_v62  ;;  %v14117_v61 = vsub.s32 3, %v12035_v23  ;;  %v5573_v62 = vld [vmem:[%s14315_s16 + $0xae0] sm:$0xff] }
0x204e   : > { %v9643_v10 = vpack.c.bf16 %v5605_v37, %v5573_v62  ;;  %v5768_v48 = vrot.slane %v14114_v58, %v14207_v46  ;;  %v5738_v37 = vld [vmem:[%s14316_s17 + $0x8] sm:$0xff] }
0x204f   : > { %6822 = vmatmul.mubr.f32.vlgmr.msra.gmra.mrb[64].mxu1 %v12836_v15  ;;  %6893 = vmatmul.mubr.f32.vlgmr.msra.gmra.mrb[56].mxu0 %v12836_v15  ;;  %v5760_v9 = vrot.slane %v14114_v58, %v14117_v61  ;;  %v5792_v60 = vrot.slane %v5738_v37, %v14117_v61 }
0x2050   : > { %9624 = vmatpush1.bf16.msra.mxu1 %v9623_v4  ;;  %9656 = vmatpush1.bf16.msra.mxu0 %v9655_v51  ;;  %v5670_v4 = vld [vmem:[%s14315_s16 + $0xde8] sm:$0xff]  ;;  %v5640_v51 = vld [vmem:[%s14315_s16 + $0xcf8] sm:$0xff] }
0x2051   : > { %9626 = vmatprep.subr.bf16.mxu1 %v9625_v7  ;;  %9658 = vmatprep.subr.bf16.mxu0 %v9657_v8  ;;  %v5756_v7 = vrot.slane %v14114_v58, %v14109_v54  ;;  %v5752_v8 = vrot.slane %v14114_v58, %v12044_v27  ;;  %v9645_v56 = vpack.c.bf16 %v5670_v4, %v5638_v3 }
0x2052   : > { %6963 = vmatprep.mubr.f32.mxu1 %v9790_v25  ;;  %7034 = vmatprep.mubr.f32.mxu0 %v9790_v25  ;;  %v5447_v25 = vld [vmem:[%s14315_s16 + $0x6f0] sm:$0xff] }
0x2053   : > { %v9667_v44 = vpack.c.bf16 %v5479_v39, %v5447_v25  ;;  %v9649_v25 = vpack.c.bf16 %v5734_v22, %v5702_v19  ;;  %v9681_v39 = vpack.c.bf16 %v5736_v28, %v5704_v26  ;;  %v5739_v22 = vld [vmem:[%s14316_s17 + $0x10] sm:$0xff] }
0x2054   : > { %9628 = vmatpush1.bf16.msra.mxu1 %v9627_v14  ;;  %9660 = vmatpush1.bf16.msra.mxu0 %v9659_v17  ;;  %v9677_v14 = vpack.c.bf16 %v5672_v5, %v5640_v51  ;;  %v5639_v17 = vld [vmem:[%s14315_s16 + $0xcf0] sm:$0xff]  ;;  %v5812_v26 = vrot.slane %v5739_v22, %v12038_v24  ;;  %v5820_v28 = vrot.slane %v5739_v22, %v14109_v54 }
0x2055   : > { %9630 = vmatprep.subr.bf16.mxu1 %v9629_v20  ;;  %9662 = vmatprep.subr.bf16.mxu0 %v9661_v1 }
0x2058   : > { %9632 = vmatpush1.bf16.msra.mxu1 %v9631_v30  ;;  %9664 = vmatpush1.bf16.msra.mxu0 %v9663_v31  ;;  %v9647_v31 = vpack.c.bf16 %v5669_v13, %v5637_v12 }
0x2059   : > { %9634 = vmatprep.subr.bf16.mxu1 %v9633_v35  ;;  %9666 = vmatprep.subr.bf16.mxu0 %v9665_v36  ;;  %v9679_v35 = vpack.c.bf16 %v5671_v59, %v5639_v17  ;;  %v5701_v36 = vld [vmem:[%s14315_s16 + $0xee0] sm:$0xff] }
0x205a   : > { %v9651_v32 = vpack.c.bf16 %v5733_v40, %v5701_v36  ;;  %v5836_v40 = vrot.slane %v5739_v22, %v14204_v45 }
0x205c   : > { %9636 = vmatpush1.bf16.msra.mxu1 %v9635_v43  ;;  %9668 = vmatpush1.bf16.msra.mxu0 %v9667_v44  ;;  %v9683_v43 = vpack.c.bf16 %v5735_v42, %v5703_v41  ;;  %v14201_v44 = vsub.s32 4, %v12035_v23  ;;  %v5832_v41 = vrot.slane %v5739_v22, %v14207_v46 }
0x205d   : > { %9638 = vmatprep.subr.bf16.mxu1 %v9637_v47  ;;  %9670 = vmatprep.subr.bf16.mxu0 %v9669_v16  ;;  %v14210_v47 = vsub.s32 7, %v12035_v23 }
0x205e   : > { %v5764_v16 = vrot.slane %v14114_v58, %v14201_v44 }
0x205f   : > { %v5776_v49 = vrot.slane %v14114_v58, %v14210_v47  ;;  %v5808_v12 = vrot.slane %v5738_v37, %v14210_v47  ;;  %v5840_v42 = vrot.slane %v5739_v22, %v14210_v47 }
0x2060   : > { %9640 = vmatpush1.bf16.msra.mxu1 %v9639_v55  ;;  %9672 = vmatpush1.bf16.msra.mxu0 %v9671_v57 }
0x2061   : > { %9642 = vmatprep.subr.bf16.mxu1 %v9641_v63  ;;  %9674 = vmatprep.subr.bf16.mxu0 %v9673_v0  ;;  %v5788_v63 = vrot.slane %v5738_v37, %v14109_v54  ;;  %v5784_v0 = vrot.slane %v5738_v37, %v12044_v27 }
0x2062   : > { %v5971_v20 = vpop.f32.mrb[52].mxu1  ;;  %v6042_v1 = vpop.f32.mrb[44].mxu0 }
0x2063   : > { %v5972_v21 = vadd.f32 %v5971_v20, %v5748_v6  ;;  %v6043_v18 = vadd.f32 %v6042_v1, %v5756_v7  ;;  %v5973_v29 = vpop.f32.mrb[53].mxu1  ;;  %v6044_v30 = vpop.f32.mrb[45].mxu0 }
0x2064   : > { %v5974_v33 = vadd.f32 %v5973_v29, %v5752_v8  ;;  %v6045_v34 = vadd.f32 %v6044_v30, %v5760_v9  ;;  %9644 = vmatpush1.bf16.msra.mxu1 %v9643_v10  ;;  %9676 = vmatpush1.bf16.msra.mxu0 %v9675_v11  ;;  %v5796_v9 = vrot.slane %v5738_v37, %v14201_v44 }
0x2065   : > { %7041 = vst [vmem:[%s14171_s23] sm:$0xff] %v5972_v21  ;;  %7043 = vst [vmem:[%s14171_s23 + $0x10] sm:$0xff] %v6043_v18  ;;  %9646 = vmatprep.subr.bf16.mxu1 %v9645_v56  ;;  %9678 = vmatprep.subr.bf16.mxu0 %v9677_v14  ;;  %v5804_v10 = vrot.slane %v5738_v37, %v14204_v45  ;;  %v5800_v11 = vrot.slane %v5738_v37, %v14207_v46 }
0x2066   : > { %7042 = vst [vmem:[%s14171_s23 + $0x8] sm:$0xff] %v5974_v33  ;;  %7044 = vst [vmem:[%s14171_s23 + $0x18] sm:$0xff] %v6045_v34  ;;  %v5816_v21 = vrot.slane %v5739_v22, %v12044_v27  ;;  %v5824_v18 = vrot.slane %v5739_v22, %v14117_v61 }
0x2068   : > { %9648 = vmatpush1.bf16.msra.mxu1 %v9647_v31  ;;  %9680 = vmatpush1.bf16.msra.mxu0 %v9679_v35 }
0x2069   : > { %9650 = vmatprep.subr.bf16.mxu1 %v9649_v25  ;;  %9682 = vmatprep.subr.bf16.mxu0 %v9681_v39  ;;  %v5828_v39 = vrot.slane %v5739_v22, %v14201_v44 }
0x206c   : > { %9652 = vmatpush1.bf16.msra.mxu1 %v9651_v32  ;;  %9684 = vmatpush1.bf16.msra.mxu0 %v9683_v43 }
0x206f   : > { %6964 = vmatmul.mubr.f32.vlgmr.msra.gmra.mrb[66].mxu1 %v12836_v15  ;;  %7035 = vmatmul.mubr.f32.vlgmr.msra.gmra.mrb[58].mxu0 %v12836_v15  ;;  %v5772_v15 = vrot.slane %v14114_v58, %v14204_v45  ;;  %v5780_v58 = vrot.slane %v5738_v37, %v12038_v24 }
0x2082   : > { %v6113_v50 = vpop.f32.mrb[54].mxu1  ;;  %v6184_v52 = vpop.f32.mrb[46].mxu0 }
0x2083   : > { %v6114_v53 = vadd.f32 %v6113_v50, %v5764_v16  ;;  %v6185_v38 = vadd.f32 %v6184_v52, %v5772_v15  ;;  %v6115_v55 = vpop.f32.mrb[55].mxu1  ;;  %v6186_v23 = vpop.f32.mrb[47].mxu0 }
0x2084   : > { %v6116_v57 = vadd.f32 %v6115_v55, %v5768_v48  ;;  %v6187_v62 = vadd.f32 %v6186_v23, %v5776_v49 }
0x2085   : > { %7045 = vst [vmem:[%s14171_s23 + $0x20] sm:$0xff] %v6114_v53  ;;  %7047 = vst [vmem:[%s14171_s23 + $0x30] sm:$0xff] %v6185_v38  ;;  %v5740_v53 = vld [vmem:[%s14316_s17 + $0x18] sm:$0xff] }
0x2086   : > { %7046 = vst [vmem:[%s14171_s23 + $0x28] sm:$0xff] %v6116_v57  ;;  %7048 = vst [vmem:[%s14171_s23 + $0x38] sm:$0xff] %v6187_v62  ;;  %v5844_v38 = vrot.slane %v5740_v53, %v12038_v24  ;;  %v5852_v55 = vrot.slane %v5740_v53, %v14109_v54  ;;  %v5848_v23 = vrot.slane %v5740_v53, %v12044_v27 }
0x2087   : > { %v5856_v57 = vrot.slane %v5740_v53, %v14117_v61  ;;  %v5860_v24 = vrot.slane %v5740_v53, %v14201_v44  ;;  %v5868_v27 = vrot.slane %v5740_v53, %v14204_v45  ;;  %v5864_v54 = vrot.slane %v5740_v53, %v14207_v46  ;;  %v7116_v44 = vld [vmem:[%s12058_s28] sm:$0xff] (%p9920_p4)  ;;  %v7118_v45 = vld [vmem:[%s12058_s28 + $0x8] sm:$0xff] (%p9920_p4) }
0x2088   : > { %v5872_v61 = vrot.slane %v5740_v53, %v14210_v47  ;;  %7117 = vst [vmem:[%s7086_s18] sm:$0xff] (%p9920_p4), %v7116_v44  ;;  %7119 = vst [vmem:[%s7086_s18 + $0x10] sm:$0xff] (%p9920_p4), %v7118_v45 }
0x20a2   : > { %v6255_v2 = vpop.f32.mrb[56].mxu1  ;;  %v6326_v3 = vpop.f32.mrb[48].mxu0 }
0x20a3   : > { %v6256_v4 = vadd.f32 %v6255_v2, %v5780_v58  ;;  %v6327_v51 = vadd.f32 %v6326_v3, %v5788_v63  ;;  %v6257_v5 = vpop.f32.mrb[57].mxu1  ;;  %v6328_v6 = vpop.f32.mrb[49].mxu0 }
0x20a4   : > { %v6258_v7 = vadd.f32 %v6257_v5, %v5784_v0  ;;  %v6329_v8 = vadd.f32 %v6328_v6, %v5792_v60 }
0x20a5   : > { %7049 = vst [vmem:[%s14171_s23 + $0x40] sm:$0xff] %v6256_v4  ;;  %7051 = vst [vmem:[%s14171_s23 + $0x50] sm:$0xff] %v6327_v51 }
0x20a6   : > { %7050 = vst [vmem:[%s14171_s23 + $0x48] sm:$0xff] %v6258_v7  ;;  %7052 = vst [vmem:[%s14171_s23 + $0x58] sm:$0xff] %v6329_v8 }
0x20c2   : > { %v6397_v13 = vpop.f32.mrb[58].mxu1  ;;  %v6468_v56 = vpop.f32.mrb[50].mxu0 }
0x20c3   : > { %v6398_v14 = vadd.f32 %v6397_v13, %v5796_v9  ;;  %v6469_v17 = vadd.f32 %v6468_v56, %v5804_v10  ;;  %v6399_v59 = vpop.f32.mrb[59].mxu1  ;;  %v6470_v19 = vpop.f32.mrb[51].mxu0 }
0x20c4   : > { %v6400_v20 = vadd.f32 %v6399_v59, %v5800_v11  ;;  %v6471_v1 = vadd.f32 %v6470_v19, %v5808_v12 }
0x20c5   : > { %7053 = vst [vmem:[%s14171_s23 + $0x60] sm:$0xff] %v6398_v14  ;;  %7055 = vst [vmem:[%s14171_s23 + $0x70] sm:$0xff] %v6469_v17 }
0x20c6   : > { %7054 = vst [vmem:[%s14171_s23 + $0x68] sm:$0xff] %v6400_v20  ;;  %7056 = vst [vmem:[%s14171_s23 + $0x78] sm:$0xff] %v6471_v1 }
0x20e2   : > { %v6539_v29 = vpop.f32.mrb[60].mxu1  ;;  %v6610_v30 = vpop.f32.mrb[52].mxu0 }
0x20e3   : > { %v6540_v31 = vadd.f32 %v6539_v29, %v5812_v26  ;;  %v6611_v33 = vadd.f32 %v6610_v30, %v5820_v28  ;;  %v6541_v34 = vpop.f32.mrb[61].mxu1  ;;  %v6612_v35 = vpop.f32.mrb[53].mxu0 }
0x20e4   : > { %v6542_v36 = vadd.f32 %v6541_v34, %v5816_v21  ;;  %v6613_v25 = vadd.f32 %v6612_v35, %v5824_v18 }
0x20e5   : > { %7057 = vst [vmem:[%s14171_s23 + $0x80] sm:$0xff] %v6540_v31  ;;  %7059 = vst [vmem:[%s14171_s23 + $0x90] sm:$0xff] %v6611_v33 }
0x20e6   : > { %7058 = vst [vmem:[%s14171_s23 + $0x88] sm:$0xff] %v6542_v36  ;;  %7060 = vst [vmem:[%s14171_s23 + $0x98] sm:$0xff] %v6613_v25 }
0x2102   : > { %v6681_v32 = vpop.f32.mrb[62].mxu1  ;;  %v6752_v43 = vpop.f32.mrb[54].mxu0 }
0x2103   : > { %v6682_v16 = vadd.f32 %v6681_v32, %v5828_v39  ;;  %v6753_v15 = vadd.f32 %v6752_v43, %v5836_v40  ;;  %v6683_v48 = vpop.f32.mrb[63].mxu1  ;;  %v6754_v49 = vpop.f32.mrb[55].mxu0 }
0x2104   : > { %v6684_v50 = vadd.f32 %v6683_v48, %v5832_v41  ;;  %v6755_v52 = vadd.f32 %v6754_v49, %v5840_v42 }
0x2105   : > { %7061 = vst [vmem:[%s14171_s23 + $0xa0] sm:$0xff] %v6682_v16  ;;  %7063 = vst [vmem:[%s14171_s23 + $0xb0] sm:$0xff] %v6753_v15 }
0x2106   : > { %7062 = vst [vmem:[%s14171_s23 + $0xa8] sm:$0xff] %v6684_v50  ;;  %7064 = vst [vmem:[%s14171_s23 + $0xb8] sm:$0xff] %v6755_v52 }
0x2122   : > { %v6823_v62 = vpop.f32.mrb[64].mxu1  ;;  %v6894_v37 = vpop.f32.mrb[56].mxu0 }
0x2123   : > { %v6824_v58 = vadd.f32 %v6823_v62, %v5844_v38  ;;  %v6895_v63 = vadd.f32 %v6894_v37, %v5852_v55  ;;  %v6825_v0 = vpop.f32.mrb[65].mxu1  ;;  %v6896_v60 = vpop.f32.mrb[57].mxu0 }
0x2124   : > { %v6826_v2 = vadd.f32 %v6825_v0, %v5848_v23  ;;  %v6897_v3 = vadd.f32 %v6896_v60, %v5856_v57 }
0x2125   : > { %7065 = vst [vmem:[%s14171_s23 + $0xc0] sm:$0xff] %v6824_v58  ;;  %7067 = vst [vmem:[%s14171_s23 + $0xd0] sm:$0xff] %v6895_v63 }
0x2126   : > { %7066 = vst [vmem:[%s14171_s23 + $0xc8] sm:$0xff] %v6826_v2  ;;  %7068 = vst [vmem:[%s14171_s23 + $0xd8] sm:$0xff] %v6897_v3 }
0x2140   : > { %7084 = sbr.rel (!%p9920_p4) target bundleno = 8519 (0x2147), region = 96 }
0x2142   : > { %v6965_v4 = vpop.f32.mrb[66].mxu1  ;;  %v7036_v51 = vpop.f32.mrb[58].mxu0 }
0x2143   : > { %v6966_v5 = vadd.f32 %v6965_v4, %v5860_v24  ;;  %v7037_v6 = vadd.f32 %v7036_v51, %v5868_v27  ;;  %v6967_v7 = vpop.f32.mrb[67].mxu1  ;;  %v7038_v8 = vpop.f32.mrb[59].mxu0 }
0x2144   : > { %v6968_v9 = vadd.f32 %v6967_v7, %v5864_v54  ;;  %v7039_v10 = vadd.f32 %v7038_v8, %v5872_v61 }
0x2145   : > { %7069 = vst [vmem:[%s14171_s23 + $0xe0] sm:$0xff] %v6966_v5  ;;  %7071 = vst [vmem:[%s14171_s23 + $0xf0] sm:$0xff] %v7037_v6 }
0x2146   : > { %7070 = vst [vmem:[%s14171_s23 + $0xe8] sm:$0xff] %v6968_v9  ;;  %7072 = vst [vmem:[%s14171_s23 + $0xf8] sm:$0xff] %v7039_v10 }
0x2147 PF: > { %s14352_s20 = sld [smem:[#allocation5_spill]]  ;;  %s14353_s0 = sld [smem:[#allocation3_spill]] }
0x2148   : > { %s14354_s30 = sld [smem:[#allocation6_spill]] }
0x214d   : > { %p27_p8 = scmp.ge.s32.totalorder %s14352_s20, 4  }
0x214f   :  { %29 = sbr.rel (!%p27_p8) target bundleno = 8 (0x8), region = 184 }

</bundles_post_ra>
